<compile_context>
chip_gen: v6e
topology: v6e:2x2x1
jax: 0.10.0
libtpu: 0.0.40
codegen_flags: <defaults>
</compile_context>

<pallas_src>
import functools

import numpy as np

import jax
import jax.numpy as jnp
from jax.experimental import pallas as pl
from jax.experimental.pallas import tpu as pltpu

_LANE = 128
_SUBLANE = 8


def _round_up(x, m):
    return (x + m - 1) // m * m


def _vmem_limit_bytes(per_step_bytes):
    # Double-buffered pipeline + compiler-scratch headroom; never reserve the
    # whole 64 MiB of a v7x TensorCore (review #9).
    est = 2 * per_step_bytes + (4 << 20)
    return int(max(16 << 20, min(est, 48 << 20)))


# ----------------------------- Pallas kernels --------------------------------
def _conv3x3_kernel(*refs, fuse_in_bn):
    """3x3 / stride-1 / pad-1 conv of one image (+ optional fused input BN+ReLU)
    plus per-channel sum / sum-of-squares from the f32 accumulator.

    Refs (fuse_in_bn=True):
      x_ref     : (1, H, W, Cin)       input image tile (real channels)
      w_ref     : (9*Cin_p, Cout_p)    bf16 tap-major weight (lane-padded)
      scale_ref : (1, Cin) f32         bn scale applied to the INPUT tile
      shift_ref : (1, Cin) f32         bn shift applied to the INPUT tile
      conv_ref  : (1, H, W, Cout)      bf16 conv output (real channels)
      sum_ref   : (1, 1, Cout_p) f32   per-image per-channel sum
      ssq_ref   : (1, 1, Cout_p) f32   per-image per-channel sum of squares
      slab_ref  : (H+3, Wp, Cin_p)     bf16 VMEM scratch (zero-padded slab)
    """
    if fuse_in_bn:
        (x_ref, w_ref, scale_ref, shift_ref,
         conv_ref, sum_ref, ssq_ref, slab_ref) = refs
    else:
        x_ref, w_ref, conv_ref, sum_ref, ssq_ref, slab_ref = refs
        scale_ref = shift_ref = None

    H = conv_ref.shape[1]
    W = conv_ref.shape[2]
    c_out = conv_ref.shape[3]           # real output channels (unpadded store)
    c_in = x_ref.shape[3]               # real input channels
    Wp = slab_ref.shape[1]              # sublane-aligned padded width
    cin_p = slab_ref.shape[2]           # lane-padded input channels
    cout_p = w_ref.shape[1]             # lane-padded output channels

    # All spatial / channel padding lives in VMEM only.  Re-zero every step so
    # the kernel stays correct when the "parallel" grid is split across cores
    # (each core owns its own scratch).
    slab_ref[...] = jnp.zeros(slab_ref.shape, slab_ref.dtype)

    x = x_ref[0].astype(jnp.float32)                     # (H, W, c_in)
    if fuse_in_bn:
        scale = scale_ref[...].reshape(1, 1, c_in)
        shift = shift_ref[...].reshape(1, 1, c_in)
        x = jnp.maximum(x * scale + shift, 0.0)          # fused bn1 + relu
    slab_ref[1:H + 1, 1:W + 1, 0:c_in] = x.astype(slab_ref.dtype)

    # Flatten rows as h*Wp + w: every tap (dh, dw) becomes the contiguous row
    # window starting at dh*Wp + dw (no strided per-tap reshape copies).
    slab2d = slab_ref[...].reshape(-1, cin_p)            # ((H+3)*Wp, cin_p)

    m_rows = H * Wp                      # includes Wp - W garbage columns
    acc = jnp.zeros((m_rows, cout_p), jnp.float32)
    for dh in range(3):                  # static unroll: 9 MXU matmuls,
        for dw in range(3):              # single dependent accumulate chain
            k = dh * 3 + dw
            start = dh * Wp + dw
            patch = slab2d[start:start + m_rows, :]       # (m_rows, cin_p) bf16
            wk = w_ref[k * cin_p:(k + 1) * cin_p, :]      # (cin_p, cout_p) bf16
            acc = acc + jnp.dot(patch, wk, preferred_element_type=jnp.float32)

    valid = acc.reshape(H, Wp, cout_p)[:, 0:W, :]         # drop garbage columns

    # BatchNorm statistics from the f32 accumulator (before the bf16 cast).
    sum_ref[...] = jnp.sum(valid, axis=(0, 1)).reshape(1, 1, cout_p)
    ssq_ref[...] = jnp.sum(valid * valid, axis=(0, 1)).reshape(1, 1, cout_p)

    # bf16, real-channel store: halves the HBM write and the later re-read.
    conv_ref[...] = (valid[:, :, 0:c_out]
                     .reshape(1, H, W, c_out).astype(conv_ref.dtype))


def _bn_residual_relu_kernel(conv_ref, scale_ref, shift_ref, res_ref, o_ref):
    """out = relu(conv * scale + shift + residual) for one image tile."""
    c = conv_ref.shape[3]
    scale = scale_ref[...].reshape(1, 1, 1, c)
    shift = shift_ref[...].reshape(1, 1, 1, c)
    y = conv_ref[...].astype(jnp.float32) * scale + shift
    y = y + res_ref[...].astype(jnp.float32)
    o_ref[...] = jnp.maximum(y, 0.0).astype(o_ref.dtype)


# --------------------------- pallas_call wrappers -----------------------------
def _conv3x3_stats(x, w2d, out_channels, in_scale=None, in_shift=None):
    """conv3x3(s=1, p=1) over NHWC `x` (real channels) + per-image channel stats.

    If in_scale/in_shift are given, relu(x*scale + shift) is applied to the
    input tile inside the kernel (bn1-into-conv2 fusion).
    """
    N, H, W, c_in = x.shape
    cin_p = w2d.shape[0] // 9
    cout_p = w2d.shape[1]
    Wp = _round_up(W + 2, _SUBLANE)
    fuse = in_scale is not None

    kernel = functools.partial(_conv3x3_kernel, fuse_in_bn=fuse)

    inputs = [x, w2d]
    in_specs = [
        pl.BlockSpec((1, H, W, c_in), lambda i: (i, 0, 0, 0)),
        pl.BlockSpec((9 * cin_p, cout_p), lambda i: (0, 0)),
    ]
    if fuse:
        inputs += [in_scale, in_shift]
        in_specs += [pl.BlockSpec((1, c_in), lambda i: (0, 0)),
                     pl.BlockSpec((1, c_in), lambda i: (0, 0))]

    per_step = (H * W * c_in * x.dtype.itemsize            # input block
                + H * W * out_channels * 2                  # bf16 output block
                + 9 * cin_p * cout_p * 2                    # weight
                + (H + 3) * Wp * cin_p * 2                  # VMEM slab scratch
                + H * Wp * cout_p * 4)                      # f32 accumulator

    return pl.pallas_call(
        kernel,
        grid=(N,),
        in_specs=in_specs,
        out_specs=[
            pl.BlockSpec((1, H, W, out_channels), lambda i: (i, 0, 0, 0)),
            pl.BlockSpec((1, 1, cout_p), lambda i: (i, 0, 0)),
            pl.BlockSpec((1, 1, cout_p), lambda i: (i, 0, 0)),
        ],
        out_shape=[
            jax.ShapeDtypeStruct((N, H, W, out_channels), jnp.bfloat16),
            jax.ShapeDtypeStruct((N, 1, cout_p), jnp.float32),
            jax.ShapeDtypeStruct((N, 1, cout_p), jnp.float32),
        ],
        scratch_shapes=[pltpu.VMEM((H + 3, Wp, cin_p), jnp.bfloat16)],
        compiler_params=pltpu.CompilerParams(
            dimension_semantics=("parallel",),
            vmem_limit_bytes=_vmem_limit_bytes(per_step)),
    )(*inputs)


def _bn_residual_relu(conv_out, scale, shift, residual, out_dtype):
    """relu(conv_out * scale + shift + residual); writes unpadded channels."""
    N, H, W, c = conv_out.shape
    c_res = residual.shape[3]
    per_step = (H * W * c * 2
                + H * W * c_res * residual.dtype.itemsize
                + H * W * c * np.dtype(out_dtype).itemsize)
    return pl.pallas_call(
        _bn_residual_relu_kernel,
        grid=(N,),
        in_specs=[
            pl.BlockSpec((1, H, W, c), lambda i: (i, 0, 0, 0)),
            pl.BlockSpec((1, c), lambda i: (0, 0)),
            pl.BlockSpec((1, c), lambda i: (0, 0)),
            pl.BlockSpec((1, H, W, c_res), lambda i: (i, 0, 0, 0)),
        ],
        out_specs=pl.BlockSpec((1, H, W, c), lambda i: (i, 0, 0, 0)),
        out_shape=jax.ShapeDtypeStruct((N, H, W, c), out_dtype),
        compiler_params=pltpu.CompilerParams(
            dimension_semantics=("parallel",),
            vmem_limit_bytes=_vmem_limit_bytes(per_step)),
    )(conv_out, scale, shift, residual)


# ------------------------------- JAX glue -------------------------------------
def _prep_weight(w_oihw, cin_p, cout_p):
    """PyTorch (Cout,Cin,3,3) -> (9*Cin_p, Cout_p) bf16, tap-major rows."""
    cout, cin, kh, kw = w_oihw.shape
    w = jnp.transpose(w_oihw.astype(jnp.float32), (2, 3, 1, 0))   # (3,3,Cin,Cout)
    w = jnp.pad(w, ((0, 0), (0, 0), (0, cin_p - cin), (0, cout_p - cout)))
    return w.reshape(kh * kw * cin_p, cout_p).astype(jnp.bfloat16)


def _pad_vec(v, cp):
    v = v.astype(jnp.float32).reshape(-1)
    return jnp.pad(v, (0, cp - v.shape[0]))


def _bn_scale_shift(sums, ssqs, gamma_p, beta_p, count, eps):
    """Fold per-image sum / sum-sq into per-channel scale / shift (f32)."""
    s = jnp.sum(sums, axis=0).reshape(-1)
    q = jnp.sum(ssqs, axis=0).reshape(-1)
    mean = s / count
    var = jnp.maximum(q / count - mean * mean, 0.0)   # biased var (training fwd)
    scale = gamma_p * jax.lax.rsqrt(var + eps)
    shift = beta_p - mean * scale
    return scale.reshape(1, -1), shift.reshape(1, -1)


def basic_block_forward_nhwc(x_nhwc, params, eps=1e-5):
    """Fast path: NHWC in / NHWC out (no wrapper layout passes)."""
    N, H, W, C = x_nhwc.shape
    planes, inplanes = params["w1"].shape[0], params["w1"].shape[1]
    if C != inplanes or planes != inplanes:
        raise ValueError("downsample=None requires inplanes == planes == C")

    cin_p = _round_up(C, _LANE)
    cout_p = _round_up(planes, _LANE)

    # Weights / BN params are tiny: lane-padding them in HBM is fine.
    w1 = _prep_weight(params["w1"], cin_p, cout_p)
    w2 = _prep_weight(params["w2"], cout_p, cout_p)
    g1 = _pad_vec(params["gamma1"], cout_p)
    b1 = _pad_vec(params["beta1"], cout_p)
    g2 = _pad_vec(params["gamma2"], cout_p)
    b2 = _pad_vec(params["beta2"], cout_p)

    x_f32 = x_nhwc.astype(jnp.float32)
    count = N * H * W

    # ---- conv1 (+ bn1 batch statistics) --------------------------------------
    conv1, s1, q1 = _conv3x3_stats(x_f32, w1, out_channels=planes)
    scale1, shift1 = _bn_scale_shift(s1, q1, g1, b1, count, eps)

    # ---- bn1+relu fused into conv2's input path; conv2 (+ bn2 statistics) ----
    conv2, s2, q2 = _conv3x3_stats(conv1, w2, out_channels=planes,
                                   in_scale=scale1[:, :planes],
                                   in_shift=shift1[:, :planes])
    scale2, shift2 = _bn_scale_shift(s2, q2, g2, b2, count, eps)

    # ---- bn2 + residual + relu ------------------------------------------------
    return _bn_residual_relu(conv2, scale2[:, :planes], shift2[:, :planes],
                             x_f32, out_dtype=x_nhwc.dtype)


def basic_block_forward(x_nchw, params, eps=1e-5):
    """NCHW wrapper matching the PyTorch module layout.

    Prefer basic_block_forward_nhwc in pipelines: the two transposes here are
    extra full-activation HBM passes done only to mirror the PyTorch layout.
    """
    x_nhwc = jnp.transpose(x_nchw, (0, 2, 3, 1))
    out = basic_block_forward_nhwc(x_nhwc, params, eps)
    return jnp.transpose(out, (0, 3, 1, 2))


# ---------------------------- f32 reference ----------------------------------
def _reference_forward(x, params, eps=1e-5):
    def conv(x, w):
        return jax.lax.conv_general_dilated(
            x, w, (1, 1), ((1, 1), (1, 1)),
            dimension_numbers=("NCHW", "OIHW", "NCHW"))

    def bn(x, g, b):
        mean = jnp.mean(x, axis=(0, 2, 3), keepdims=True)
        var = jnp.mean((x - mean) ** 2, axis=(0, 2, 3), keepdims=True)
        return ((x - mean) * jax.lax.rsqrt(var + eps)
                * g.reshape(1, -1, 1, 1) + b.reshape(1, -1, 1, 1))

    out = jax.nn.relu(bn(conv(x, params["w1"]), params["gamma1"], params["beta1"]))
    out = bn(conv(out, params["w2"]), params["gamma2"], params["beta2"]) + x
    return jax.nn.relu(out)


# ---------------------------------- main --------------------------------------
if __name__ == "__main__":
    key = jax.random.PRNGKey(0)
    k_x, k_w1, k_w2 = jax.random.split(key, 3)

    N, C, H, W = 2, 8, 16, 16          # inplanes == planes, stride=1
    planes = C

    x = jax.random.normal(k_x, (N, C, H, W), dtype=jnp.float32)
    params = {
        "w1": 0.1 * jax.random.normal(k_w1, (planes, C, 3, 3), dtype=jnp.float32),
        "w2": 0.1 * jax.random.normal(k_w2, (planes, planes, 3, 3), dtype=jnp.float32),
        "gamma1": jnp.ones((planes,), jnp.float32),
        "beta1": jnp.zeros((planes,), jnp.float32),
        "gamma2": jnp.ones((planes,), jnp.float32),
        "beta2": jnp.zeros((planes,), jnp.float32),
    }

    out = jax.jit(basic_block_forward)(x, params)
    out = jax.block_until_ready(out)

    ref = _reference_forward(x, params)

    assert out.shape == (N, planes, H, W)
    assert bool(jnp.all(jnp.isfinite(out)))
    assert bool(jnp.all(out >= 0.0))   # final ReLU
    max_err = float(jnp.max(jnp.abs(out - ref)))
    assert max_err < 0.1, f"max abs err vs f32 reference: {max_err}"
    print("KERNEL_OK")
</pallas_src>

<mosaic_0001>
module attributes {stable_mosaic.version = 11 : i64} {
  func.func @_conv3x3_kernel(%arg0: i32, %arg1: memref<1x16x16x8xf32, #tpu.memory_space<vmem>>, %arg2: memref<1152x128xbf16, #tpu.memory_space<vmem>>, %arg3: memref<1x16x16x8xbf16, #tpu.memory_space<vmem>>, %arg4: memref<1x1x128xf32, #tpu.memory_space<vmem>>, %arg5: memref<1x1x128xf32, #tpu.memory_space<vmem>>, %arg6: memref<19x24x128xbf16, #tpu.memory_space<vmem>>) attributes {dimension_semantics = [#tpu.dimension_semantics<parallel>], iteration_bounds = array<i64: 2>, scalar_prefetch = 0 : i64, scratch_operands = 1 : i64, tpu.core_type = #tpu.core_type<tc>, window_params = [{transform_indices = @transform_0, window_bounds = array<i64: 1, 16, 16, 8>}, {pipeline_mode = #tpu.pipeline_mode<synchronous>, transform_indices = @transform_1, window_bounds = array<i64: 1152, 128>}, {transform_indices = @transform_2, window_bounds = array<i64: 1, 16, 16, 8>}, {transform_indices = @transform_3, window_bounds = array<i64: 1, 1, 128>}, {transform_indices = @transform_4, window_bounds = array<i64: 1, 1, 128>}]} {
    %cst = arith.constant 0.000000e+00 : bf16
    %0 = vector.broadcast %cst : bf16 to vector<19x24x128xbf16>
    %c0 = arith.constant 0 : index
    %c0_0 = arith.constant 0 : index
    %c0_1 = arith.constant 0 : index
    %1 = vector.load %arg6[%c0, %c0_0, %c0_1] : memref<19x24x128xbf16, #tpu.memory_space<vmem>>, vector<19x24x128xbf16>
    tpu.vector_store %arg6[%c0, %c0_0, %c0_1], %0 {strides = array<i32>} : memref<19x24x128xbf16, #tpu.memory_space<vmem>>, vector<19x24x128xbf16>,
    %c0_2 = arith.constant 0 : index
    %c0_3 = arith.constant 0 : index
    %c0_4 = arith.constant 0 : index
    %c0_5 = arith.constant 0 : index
    %2 = vector.load %arg1[%c0_2, %c0_3, %c0_4, %c0_5] : memref<1x16x16x8xf32, #tpu.memory_space<vmem>>, vector<1x16x16x8xf32>
    %3 = vector.shape_cast %2 : vector<1x16x16x8xf32> to vector<16x16x8xf32>
    %4 = arith.truncf %3 : vector<16x16x8xf32> to vector<16x16x8xbf16>
    %c1 = arith.constant 1 : index
    %c1_6 = arith.constant 1 : index
    %c0_7 = arith.constant 0 : index
    %5 = vector.load %arg6[%c1, %c1_6, %c0_7] : memref<19x24x128xbf16, #tpu.memory_space<vmem>>, vector<16x16x8xbf16>
    tpu.vector_store %arg6[%c1, %c1_6, %c0_7], %4 {strides = array<i32>} : memref<19x24x128xbf16, #tpu.memory_space<vmem>>, vector<16x16x8xbf16>,
    %c0_8 = arith.constant 0 : index
    %c0_9 = arith.constant 0 : index
    %c0_10 = arith.constant 0 : index
    %6 = vector.load %arg6[%c0_8, %c0_9, %c0_10] : memref<19x24x128xbf16, #tpu.memory_space<vmem>>, vector<19x24x128xbf16>
    %7 = vector.shape_cast %6 : vector<19x24x128xbf16> to vector<456x128xbf16>
    %cst_11 = arith.constant 0.000000e+00 : f32
    %8 = vector.broadcast %cst_11 : f32 to vector<384x128xf32>
    %9 = vector.extract_strided_slice %7 {offsets = [0, 0], sizes = [384, 128], strides = [1, 1]} : vector<456x128xbf16> to vector<384x128xbf16>
    %c0_12 = arith.constant 0 : index
    %c0_13 = arith.constant 0 : index
    %10 = vector.load %arg2[%c0_12, %c0_13] : memref<1152x128xbf16, #tpu.memory_space<vmem>>, vector<128x128xbf16>
    %cst_14 = arith.constant dense<0.000000e+00> : vector<384x128xf32>
    %11 = tpu.matmul %9, %10, %cst_14 {dimension_numbers = #tpu.dot_dimension_numbers<[1], [0], [0], [1], [0, 0, 1, 1], [], []>} : vector<384x128xbf16>, vector<128x128xbf16>, vector<384x128xf32> -> vector<384x128xf32>
    %12 = arith.addf %8, %11 : vector<384x128xf32>
    %13 = vector.extract_strided_slice %7 {offsets = [1, 0], sizes = [384, 128], strides = [1, 1]} : vector<456x128xbf16> to vector<384x128xbf16>
    %c128 = arith.constant 128 : index
    %c0_15 = arith.constant 0 : index
    %14 = vector.load %arg2[%c128, %c0_15] : memref<1152x128xbf16, #tpu.memory_space<vmem>>, vector<128x128xbf16>
    %cst_16 = arith.constant dense<0.000000e+00> : vector<384x128xf32>
    %15 = tpu.matmul %13, %14, %cst_16 {dimension_numbers = #tpu.dot_dimension_numbers<[1], [0], [0], [1], [0, 0, 1, 1], [], []>} : vector<384x128xbf16>, vector<128x128xbf16>, vector<384x128xf32> -> vector<384x128xf32>
    %16 = arith.addf %12, %15 : vector<384x128xf32>
    %17 = vector.extract_strided_slice %7 {offsets = [2, 0], sizes = [384, 128], strides = [1, 1]} : vector<456x128xbf16> to vector<384x128xbf16>
    %c256 = arith.constant 256 : index
    %c0_17 = arith.constant 0 : index
    %18 = vector.load %arg2[%c256, %c0_17] : memref<1152x128xbf16, #tpu.memory_space<vmem>>, vector<128x128xbf16>
    %cst_18 = arith.constant dense<0.000000e+00> : vector<384x128xf32>
    %19 = tpu.matmul %17, %18, %cst_18 {dimension_numbers = #tpu.dot_dimension_numbers<[1], [0], [0], [1], [0, 0, 1, 1], [], []>} : vector<384x128xbf16>, vector<128x128xbf16>, vector<384x128xf32> -> vector<384x128xf32>
    %20 = arith.addf %16, %19 : vector<384x128xf32>
    %21 = vector.extract_strided_slice %7 {offsets = [24, 0], sizes = [384, 128], strides = [1, 1]} : vector<456x128xbf16> to vector<384x128xbf16>
    %c384 = arith.constant 384 : index
    %c0_19 = arith.constant 0 : index
    %22 = vector.load %arg2[%c384, %c0_19] : memref<1152x128xbf16, #tpu.memory_space<vmem>>, vector<128x128xbf16>
    %cst_20 = arith.constant dense<0.000000e+00> : vector<384x128xf32>
    %23 = tpu.matmul %21, %22, %cst_20 {dimension_numbers = #tpu.dot_dimension_numbers<[1], [0], [0], [1], [0, 0, 1, 1], [], []>} : vector<384x128xbf16>, vector<128x128xbf16>, vector<384x128xf32> -> vector<384x128xf32>
    %24 = arith.addf %20, %23 : vector<384x128xf32>
    %25 = vector.extract_strided_slice %7 {offsets = [25, 0], sizes = [384, 128], strides = [1, 1]} : vector<456x128xbf16> to vector<384x128xbf16>
    %c512 = arith.constant 512 : index
    %c0_21 = arith.constant 0 : index
    %26 = vector.load %arg2[%c512, %c0_21] : memref<1152x128xbf16, #tpu.memory_space<vmem>>, vector<128x128xbf16>
    %cst_22 = arith.constant dense<0.000000e+00> : vector<384x128xf32>
    %27 = tpu.matmul %25, %26, %cst_22 {dimension_numbers = #tpu.dot_dimension_numbers<[1], [0], [0], [1], [0, 0, 1, 1], [], []>} : vector<384x128xbf16>, vector<128x128xbf16>, vector<384x128xf32> -> vector<384x128xf32>
    %28 = arith.addf %24, %27 : vector<384x128xf32>
    %29 = vector.extract_strided_slice %7 {offsets = [26, 0], sizes = [384, 128], strides = [1, 1]} : vector<456x128xbf16> to vector<384x128xbf16>
    %c640 = arith.constant 640 : index
    %c0_23 = arith.constant 0 : index
    %30 = vector.load %arg2[%c640, %c0_23] : memref<1152x128xbf16, #tpu.memory_space<vmem>>, vector<128x128xbf16>
    %cst_24 = arith.constant dense<0.000000e+00> : vector<384x128xf32>
    %31 = tpu.matmul %29, %30, %cst_24 {dimension_numbers = #tpu.dot_dimension_numbers<[1], [0], [0], [1], [0, 0, 1, 1], [], []>} : vector<384x128xbf16>, vector<128x128xbf16>, vector<384x128xf32> -> vector<384x128xf32>
    %32 = arith.addf %28, %31 : vector<384x128xf32>
    %33 = vector.extract_strided_slice %7 {offsets = [48, 0], sizes = [384, 128], strides = [1, 1]} : vector<456x128xbf16> to vector<384x128xbf16>
    %c768 = arith.constant 768 : index
    %c0_25 = arith.constant 0 : index
    %34 = vector.load %arg2[%c768, %c0_25] : memref<1152x128xbf16, #tpu.memory_space<vmem>>, vector<128x128xbf16>
    %cst_26 = arith.constant dense<0.000000e+00> : vector<384x128xf32>
    %35 = tpu.matmul %33, %34, %cst_26 {dimension_numbers = #tpu.dot_dimension_numbers<[1], [0], [0], [1], [0, 0, 1, 1], [], []>} : vector<384x128xbf16>, vector<128x128xbf16>, vector<384x128xf32> -> vector<384x128xf32>
    %36 = arith.addf %32, %35 : vector<384x128xf32>
    %37 = vector.extract_strided_slice %7 {offsets = [49, 0], sizes = [384, 128], strides = [1, 1]} : vector<456x128xbf16> to vector<384x128xbf16>
    %c896 = arith.constant 896 : index
    %c0_27 = arith.constant 0 : index
    %38 = vector.load %arg2[%c896, %c0_27] : memref<1152x128xbf16, #tpu.memory_space<vmem>>, vector<128x128xbf16>
    %cst_28 = arith.constant dense<0.000000e+00> : vector<384x128xf32>
    %39 = tpu.matmul %37, %38, %cst_28 {dimension_numbers = #tpu.dot_dimension_numbers<[1], [0], [0], [1], [0, 0, 1, 1], [], []>} : vector<384x128xbf16>, vector<128x128xbf16>, vector<384x128xf32> -> vector<384x128xf32>
    %40 = arith.addf %36, %39 : vector<384x128xf32>
    %41 = vector.extract_strided_slice %7 {offsets = [50, 0], sizes = [384, 128], strides = [1, 1]} : vector<456x128xbf16> to vector<384x128xbf16>
    %c1024 = arith.constant 1024 : index
    %c0_29 = arith.constant 0 : index
    %42 = vector.load %arg2[%c1024, %c0_29] : memref<1152x128xbf16, #tpu.memory_space<vmem>>, vector<128x128xbf16>
    %cst_30 = arith.constant dense<0.000000e+00> : vector<384x128xf32>
    %43 = tpu.matmul %41, %42, %cst_30 {dimension_numbers = #tpu.dot_dimension_numbers<[1], [0], [0], [1], [0, 0, 1, 1], [], []>} : vector<384x128xbf16>, vector<128x128xbf16>, vector<384x128xf32> -> vector<384x128xf32>
    %44 = arith.addf %40, %43 : vector<384x128xf32>
    %45 = vector.shape_cast %44 : vector<384x128xf32> to vector<16x24x128xf32>
    %46 = vector.extract_strided_slice %45 {offsets = [0, 0, 0], sizes = [16, 16, 128], strides = [1, 1, 1]} : vector<16x24x128xf32> to vector<16x16x128xf32>
    %cst_31 = arith.constant dense<0.000000e+00> : vector<128xf32>
    %47 = vector.multi_reduction <add>, %46, %cst_31 [0, 1] : vector<16x16x128xf32> to vector<128xf32>
    %48 = vector.shape_cast %47 : vector<128xf32> to vector<1x1x128xf32>
    %c0_32 = arith.constant 0 : index
    %c0_33 = arith.constant 0 : index
    %c0_34 = arith.constant 0 : index
    %49 = vector.load %arg4[%c0_32, %c0_33, %c0_34] : memref<1x1x128xf32, #tpu.memory_space<vmem>>, vector<1x1x128xf32>
    tpu.vector_store %arg4[%c0_32, %c0_33, %c0_34], %48 {strides = array<i32>} : memref<1x1x128xf32, #tpu.memory_space<vmem>>, vector<1x1x128xf32>,
    %50 = arith.mulf %46, %46 : vector<16x16x128xf32>
    %cst_35 = arith.constant dense<0.000000e+00> : vector<128xf32>
    %51 = vector.multi_reduction <add>, %50, %cst_35 [0, 1] : vector<16x16x128xf32> to vector<128xf32>
    %52 = vector.shape_cast %51 : vector<128xf32> to vector<1x1x128xf32>
    %c0_36 = arith.constant 0 : index
    %c0_37 = arith.constant 0 : index
    %c0_38 = arith.constant 0 : index
    %53 = vector.load %arg5[%c0_36, %c0_37, %c0_38] : memref<1x1x128xf32, #tpu.memory_space<vmem>>, vector<1x1x128xf32>
    tpu.vector_store %arg5[%c0_36, %c0_37, %c0_38], %52 {strides = array<i32>} : memref<1x1x128xf32, #tpu.memory_space<vmem>>, vector<1x1x128xf32>,
    %54 = vector.extract_strided_slice %46 {offsets = [0, 0, 0], sizes = [16, 16, 8], strides = [1, 1, 1]} : vector<16x16x128xf32> to vector<16x16x8xf32>
    %55 = vector.shape_cast %54 : vector<16x16x8xf32> to vector<1x16x16x8xf32>
    %56 = arith.truncf %55 : vector<1x16x16x8xf32> to vector<1x16x16x8xbf16>
    %c0_39 = arith.constant 0 : index
    %c0_40 = arith.constant 0 : index
    %c0_41 = arith.constant 0 : index
    %c0_42 = arith.constant 0 : index
    %57 = vector.load %arg3[%c0_39, %c0_40, %c0_41, %c0_42] : memref<1x16x16x8xbf16, #tpu.memory_space<vmem>>, vector<1x16x16x8xbf16>
    tpu.vector_store %arg3[%c0_39, %c0_40, %c0_41, %c0_42], %56 {strides = array<i32>} : memref<1x16x16x8xbf16, #tpu.memory_space<vmem>>, vector<1x16x16x8xbf16>,
    return
  }
  func.func @transform_0(%arg0: i32) -> (i32, i32, i32, i32) {
    %c0_i32 = arith.constant 0 : i32
    %c0_i32_0 = arith.constant 0 : i32
    %c0_i32_1 = arith.constant 0 : i32
    %c0_i32_2 = arith.constant 0 : i32
    return %arg0, %c0_i32, %c0_i32_0, %c0_i32_1 : i32, i32, i32, i32
  }
  func.func @transform_1(%arg0: i32) -> (i32, i32) {
    %c0_i32 = arith.constant 0 : i32
    %c0_i32_0 = arith.constant 0 : i32
    %c0_i32_1 = arith.constant 0 : i32
    return %c0_i32, %c0_i32_0 : i32, i32
  }
  func.func @transform_2(%arg0: i32) -> (i32, i32, i32, i32) {
    %c0_i32 = arith.constant 0 : i32
    %c0_i32_0 = arith.constant 0 : i32
    %c0_i32_1 = arith.constant 0 : i32
    %c0_i32_2 = arith.constant 0 : i32
    return %arg0, %c0_i32, %c0_i32_0, %c0_i32_1 : i32, i32, i32, i32
  }
  func.func @transform_3(%arg0: i32) -> (i32, i32, i32) {
    %c0_i32 = arith.constant 0 : i32
    %c0_i32_0 = arith.constant 0 : i32
    %c0_i32_1 = arith.constant 0 : i32
    return %arg0, %c0_i32, %c0_i32_0 : i32, i32, i32
  }
  func.func @transform_4(%arg0: i32) -> (i32, i32, i32) {
    %c0_i32 = arith.constant 0 : i32
    %c0_i32_0 = arith.constant 0 : i32
    %c0_i32_1 = arith.constant 0 : i32
    return %arg0, %c0_i32, %c0_i32_0 : i32, i32, i32
  }
}

module attributes {stable_mosaic.version = 11 : i64} {
  func.func @_bn_residual_relu_kernel(%arg0: i32, %arg1: memref<1x16x16x8xbf16, #tpu.memory_space<vmem>>, %arg2: memref<1x8xf32, #tpu.memory_space<vmem>>, %arg3: memref<1x8xf32, #tpu.memory_space<vmem>>, %arg4: memref<1x16x16x8xf32, #tpu.memory_space<vmem>>, %arg5: memref<1x16x16x8xf32, #tpu.memory_space<vmem>>) attributes {dimension_semantics = [#tpu.dimension_semantics<parallel>], iteration_bounds = array<i64: 2>, scalar_prefetch = 0 : i64, scratch_operands = 0 : i64, tpu.core_type = #tpu.core_type<tc>, window_params = [{transform_indices = @transform_0, window_bounds = array<i64: 1, 16, 16, 8>}, {pipeline_mode = #tpu.pipeline_mode<synchronous>, transform_indices = @transform_1, window_bounds = array<i64: 1, 8>}, {pipeline_mode = #tpu.pipeline_mode<synchronous>, transform_indices = @transform_2, window_bounds = array<i64: 1, 8>}, {transform_indices = @transform_3, window_bounds = array<i64: 1, 16, 16, 8>}, {transform_indices = @transform_4, window_bounds = array<i64: 1, 16, 16, 8>}]} {
    %c0 = arith.constant 0 : index
    %c0_0 = arith.constant 0 : index
    %0 = vector.load %arg2[%c0, %c0_0] : memref<1x8xf32, #tpu.memory_space<vmem>>, vector<1x8xf32>
    %1 = vector.shape_cast %0 : vector<1x8xf32> to vector<1x1x1x8xf32>
    %c0_1 = arith.constant 0 : index
    %c0_2 = arith.constant 0 : index
    %2 = vector.load %arg3[%c0_1, %c0_2] : memref<1x8xf32, #tpu.memory_space<vmem>>, vector<1x8xf32>
    %3 = vector.shape_cast %2 : vector<1x8xf32> to vector<1x1x1x8xf32>
    %c0_3 = arith.constant 0 : index
    %c0_4 = arith.constant 0 : index
    %c0_5 = arith.constant 0 : index
    %c0_6 = arith.constant 0 : index
    %4 = vector.load %arg1[%c0_3, %c0_4, %c0_5, %c0_6] : memref<1x16x16x8xbf16, #tpu.memory_space<vmem>>, vector<1x16x16x8xbf16>
    %5 = arith.extf %4 : vector<1x16x16x8xbf16> to vector<1x16x16x8xf32>
    %6 = vector.broadcast %1 : vector<1x1x1x8xf32> to vector<1x16x16x8xf32>
    %7 = arith.mulf %5, %6 : vector<1x16x16x8xf32>
    %8 = vector.broadcast %3 : vector<1x1x1x8xf32> to vector<1x16x16x8xf32>
    %9 = arith.addf %7, %8 : vector<1x16x16x8xf32>
    %c0_7 = arith.constant 0 : index
    %c0_8 = arith.constant 0 : index
    %c0_9 = arith.constant 0 : index
    %c0_10 = arith.constant 0 : index
    %10 = vector.load %arg4[%c0_7, %c0_8, %c0_9, %c0_10] : memref<1x16x16x8xf32, #tpu.memory_space<vmem>>, vector<1x16x16x8xf32>
    %11 = arith.addf %9, %10 : vector<1x16x16x8xf32>
    %cst = arith.constant 0.000000e+00 : f32
    %12 = vector.broadcast %cst : f32 to vector<1x16x16x8xf32>
    %13 = arith.maximumf %11, %12 : vector<1x16x16x8xf32>
    %c0_11 = arith.constant 0 : index
    %c0_12 = arith.constant 0 : index
    %c0_13 = arith.constant 0 : index
    %c0_14 = arith.constant 0 : index
    %14 = vector.load %arg5[%c0_11, %c0_12, %c0_13, %c0_14] : memref<1x16x16x8xf32, #tpu.memory_space<vmem>>, vector<1x16x16x8xf32>
    tpu.vector_store %arg5[%c0_11, %c0_12, %c0_13, %c0_14], %13 {strides = array<i32>} : memref<1x16x16x8xf32, #tpu.memory_space<vmem>>, vector<1x16x16x8xf32>,
    return
  }
  func.func @transform_0(%arg0: i32) -> (i32, i32, i32, i32) {
    %c0_i32 = arith.constant 0 : i32
    %c0_i32_0 = arith.constant 0 : i32
    %c0_i32_1 = arith.constant 0 : i32
    %c0_i32_2 = arith.constant 0 : i32
    return %arg0, %c0_i32, %c0_i32_0, %c0_i32_1 : i32, i32, i32, i32
  }
  func.func @transform_1(%arg0: i32) -> (i32, i32) {
    %c0_i32 = arith.constant 0 : i32
    %c0_i32_0 = arith.constant 0 : i32
    %c0_i32_1 = arith.constant 0 : i32
    return %c0_i32, %c0_i32_0 : i32, i32
  }
  func.func @transform_2(%arg0: i32) -> (i32, i32) {
    %c0_i32 = arith.constant 0 : i32
    %c0_i32_0 = arith.constant 0 : i32
    %c0_i32_1 = arith.constant 0 : i32
    return %c0_i32, %c0_i32_0 : i32, i32
  }
  func.func @transform_3(%arg0: i32) -> (i32, i32, i32, i32) {
    %c0_i32 = arith.constant 0 : i32
    %c0_i32_0 = arith.constant 0 : i32
    %c0_i32_1 = arith.constant 0 : i32
    %c0_i32_2 = arith.constant 0 : i32
    return %arg0, %c0_i32, %c0_i32_0, %c0_i32_1 : i32, i32, i32, i32
  }
  func.func @transform_4(%arg0: i32) -> (i32, i32, i32, i32) {
    %c0_i32 = arith.constant 0 : i32
    %c0_i32_0 = arith.constant 0 : i32
    %c0_i32_1 = arith.constant 0 : i32
    %c0_i32_2 = arith.constant 0 : i32
    return %arg0, %c0_i32, %c0_i32_0, %c0_i32_1 : i32, i32, i32, i32
  }
}

module attributes {stable_mosaic.version = 11 : i64} {
  func.func @_conv3x3_kernel(%arg0: i32, %arg1: memref<1x16x16x8xbf16, #tpu.memory_space<vmem>>, %arg2: memref<1152x128xbf16, #tpu.memory_space<vmem>>, %arg3: memref<1x8xf32, #tpu.memory_space<vmem>>, %arg4: memref<1x8xf32, #tpu.memory_space<vmem>>, %arg5: memref<1x16x16x8xbf16, #tpu.memory_space<vmem>>, %arg6: memref<1x1x128xf32, #tpu.memory_space<vmem>>, %arg7: memref<1x1x128xf32, #tpu.memory_space<vmem>>, %arg8: memref<19x24x128xbf16, #tpu.memory_space<vmem>>) attributes {dimension_semantics = [#tpu.dimension_semantics<parallel>], iteration_bounds = array<i64: 2>, scalar_prefetch = 0 : i64, scratch_operands = 1 : i64, tpu.core_type = #tpu.core_type<tc>, window_params = [{transform_indices = @transform_0, window_bounds = array<i64: 1, 16, 16, 8>}, {pipeline_mode = #tpu.pipeline_mode<synchronous>, transform_indices = @transform_1, window_bounds = array<i64: 1152, 128>}, {pipeline_mode = #tpu.pipeline_mode<synchronous>, transform_indices = @transform_2, window_bounds = array<i64: 1, 8>}, {pipeline_mode = #tpu.pipeline_mode<synchronous>, transform_indices = @transform_3, window_bounds = array<i64: 1, 8>}, {transform_indices = @transform_4, window_bounds = array<i64: 1, 16, 16, 8>}, {transform_indices = @transform_5, window_bounds = array<i64: 1, 1, 128>}, {transform_indices = @transform_6, window_bounds = array<i64: 1, 1, 128>}]} {
    %cst = arith.constant 0.000000e+00 : bf16
    %0 = vector.broadcast %cst : bf16 to vector<19x24x128xbf16>
    %c0 = arith.constant 0 : index
    %c0_0 = arith.constant 0 : index
    %c0_1 = arith.constant 0 : index
    %1 = vector.load %arg8[%c0, %c0_0, %c0_1] : memref<19x24x128xbf16, #tpu.memory_space<vmem>>, vector<19x24x128xbf16>
    tpu.vector_store %arg8[%c0, %c0_0, %c0_1], %0 {strides = array<i32>} : memref<19x24x128xbf16, #tpu.memory_space<vmem>>, vector<19x24x128xbf16>,
    %c0_2 = arith.constant 0 : index
    %c0_3 = arith.constant 0 : index
    %c0_4 = arith.constant 0 : index
    %c0_5 = arith.constant 0 : index
    %2 = vector.load %arg1[%c0_2, %c0_3, %c0_4, %c0_5] : memref<1x16x16x8xbf16, #tpu.memory_space<vmem>>, vector<1x16x16x8xbf16>
    %3 = vector.shape_cast %2 : vector<1x16x16x8xbf16> to vector<16x16x8xbf16>
    %4 = arith.extf %3 : vector<16x16x8xbf16> to vector<16x16x8xf32>
    %c0_6 = arith.constant 0 : index
    %c0_7 = arith.constant 0 : index
    %5 = vector.load %arg3[%c0_6, %c0_7] : memref<1x8xf32, #tpu.memory_space<vmem>>, vector<1x8xf32>
    %6 = vector.shape_cast %5 : vector<1x8xf32> to vector<1x1x8xf32>
    %c0_8 = arith.constant 0 : index
    %c0_9 = arith.constant 0 : index
    %7 = vector.load %arg4[%c0_8, %c0_9] : memref<1x8xf32, #tpu.memory_space<vmem>>, vector<1x8xf32>
    %8 = vector.shape_cast %7 : vector<1x8xf32> to vector<1x1x8xf32>
    %9 = vector.broadcast %6 : vector<1x1x8xf32> to vector<16x16x8xf32>
    %10 = arith.mulf %4, %9 : vector<16x16x8xf32>
    %11 = vector.broadcast %8 : vector<1x1x8xf32> to vector<16x16x8xf32>
    %12 = arith.addf %10, %11 : vector<16x16x8xf32>
    %cst_10 = arith.constant 0.000000e+00 : f32
    %13 = vector.broadcast %cst_10 : f32 to vector<16x16x8xf32>
    %14 = arith.maximumf %12, %13 : vector<16x16x8xf32>
    %15 = arith.truncf %14 : vector<16x16x8xf32> to vector<16x16x8xbf16>
    %c1 = arith.constant 1 : index
    %c1_11 = arith.constant 1 : index
    %c0_12 = arith.constant 0 : index
    %16 = vector.load %arg8[%c1, %c1_11, %c0_12] : memref<19x24x128xbf16, #tpu.memory_space<vmem>>, vector<16x16x8xbf16>
    tpu.vector_store %arg8[%c1, %c1_11, %c0_12], %15 {strides = array<i32>} : memref<19x24x128xbf16, #tpu.memory_space<vmem>>, vector<16x16x8xbf16>,
    %c0_13 = arith.constant 0 : index
    %c0_14 = arith.constant 0 : index
    %c0_15 = arith.constant 0 : index
    %17 = vector.load %arg8[%c0_13, %c0_14, %c0_15] : memref<19x24x128xbf16, #tpu.memory_space<vmem>>, vector<19x24x128xbf16>
    %18 = vector.shape_cast %17 : vector<19x24x128xbf16> to vector<456x128xbf16>
    %cst_16 = arith.constant 0.000000e+00 : f32
    %19 = vector.broadcast %cst_16 : f32 to vector<384x128xf32>
    %20 = vector.extract_strided_slice %18 {offsets = [0, 0], sizes = [384, 128], strides = [1, 1]} : vector<456x128xbf16> to vector<384x128xbf16>
    %c0_17 = arith.constant 0 : index
    %c0_18 = arith.constant 0 : index
    %21 = vector.load %arg2[%c0_17, %c0_18] : memref<1152x128xbf16, #tpu.memory_space<vmem>>, vector<128x128xbf16>
    %cst_19 = arith.constant dense<0.000000e+00> : vector<384x128xf32>
    %22 = tpu.matmul %20, %21, %cst_19 {dimension_numbers = #tpu.dot_dimension_numbers<[1], [0], [0], [1], [0, 0, 1, 1], [], []>} : vector<384x128xbf16>, vector<128x128xbf16>, vector<384x128xf32> -> vector<384x128xf32>
    %23 = arith.addf %19, %22 : vector<384x128xf32>
    %24 = vector.extract_strided_slice %18 {offsets = [1, 0], sizes = [384, 128], strides = [1, 1]} : vector<456x128xbf16> to vector<384x128xbf16>
    %c128 = arith.constant 128 : index
    %c0_20 = arith.constant 0 : index
    %25 = vector.load %arg2[%c128, %c0_20] : memref<1152x128xbf16, #tpu.memory_space<vmem>>, vector<128x128xbf16>
    %cst_21 = arith.constant dense<0.000000e+00> : vector<384x128xf32>
    %26 = tpu.matmul %24, %25, %cst_21 {dimension_numbers = #tpu.dot_dimension_numbers<[1], [0], [0], [1], [0, 0, 1, 1], [], []>} : vector<384x128xbf16>, vector<128x128xbf16>, vector<384x128xf32> -> vector<384x128xf32>
    %27 = arith.addf %23, %26 : vector<384x128xf32>
    %28 = vector.extract_strided_slice %18 {offsets = [2, 0], sizes = [384, 128], strides = [1, 1]} : vector<456x128xbf16> to vector<384x128xbf16>
    %c256 = arith.constant 256 : index
    %c0_22 = arith.constant 0 : index
    %29 = vector.load %arg2[%c256, %c0_22] : memref<1152x128xbf16, #tpu.memory_space<vmem>>, vector<128x128xbf16>
    %cst_23 = arith.constant dense<0.000000e+00> : vector<384x128xf32>
    %30 = tpu.matmul %28, %29, %cst_23 {dimension_numbers = #tpu.dot_dimension_numbers<[1], [0], [0], [1], [0, 0, 1, 1], [], []>} : vector<384x128xbf16>, vector<128x128xbf16>, vector<384x128xf32> -> vector<384x128xf32>
    %31 = arith.addf %27, %30 : vector<384x128xf32>
    %32 = vector.extract_strided_slice %18 {offsets = [24, 0], sizes = [384, 128], strides = [1, 1]} : vector<456x128xbf16> to vector<384x128xbf16>
    %c384 = arith.constant 384 : index
    %c0_24 = arith.constant 0 : index
    %33 = vector.load %arg2[%c384, %c0_24] : memref<1152x128xbf16, #tpu.memory_space<vmem>>, vector<128x128xbf16>
    %cst_25 = arith.constant dense<0.000000e+00> : vector<384x128xf32>
    %34 = tpu.matmul %32, %33, %cst_25 {dimension_numbers = #tpu.dot_dimension_numbers<[1], [0], [0], [1], [0, 0, 1, 1], [], []>} : vector<384x128xbf16>, vector<128x128xbf16>, vector<384x128xf32> -> vector<384x128xf32>
    %35 = arith.addf %31, %34 : vector<384x128xf32>
    %36 = vector.extract_strided_slice %18 {offsets = [25, 0], sizes = [384, 128], strides = [1, 1]} : vector<456x128xbf16> to vector<384x128xbf16>
    %c512 = arith.constant 512 : index
    %c0_26 = arith.constant 0 : index
    %37 = vector.load %arg2[%c512, %c0_26] : memref<1152x128xbf16, #tpu.memory_space<vmem>>, vector<128x128xbf16>
    %cst_27 = arith.constant dense<0.000000e+00> : vector<384x128xf32>
    %38 = tpu.matmul %36, %37, %cst_27 {dimension_numbers = #tpu.dot_dimension_numbers<[1], [0], [0], [1], [0, 0, 1, 1], [], []>} : vector<384x128xbf16>, vector<128x128xbf16>, vector<384x128xf32> -> vector<384x128xf32>
    %39 = arith.addf %35, %38 : vector<384x128xf32>
    %40 = vector.extract_strided_slice %18 {offsets = [26, 0], sizes = [384, 128], strides = [1, 1]} : vector<456x128xbf16> to vector<384x128xbf16>
    %c640 = arith.constant 640 : index
    %c0_28 = arith.constant 0 : index
    %41 = vector.load %arg2[%c640, %c0_28] : memref<1152x128xbf16, #tpu.memory_space<vmem>>, vector<128x128xbf16>
    %cst_29 = arith.constant dense<0.000000e+00> : vector<384x128xf32>
    %42 = tpu.matmul %40, %41, %cst_29 {dimension_numbers = #tpu.dot_dimension_numbers<[1], [0], [0], [1], [0, 0, 1, 1], [], []>} : vector<384x128xbf16>, vector<128x128xbf16>, vector<384x128xf32> -> vector<384x128xf32>
    %43 = arith.addf %39, %42 : vector<384x128xf32>
    %44 = vector.extract_strided_slice %18 {offsets = [48, 0], sizes = [384, 128], strides = [1, 1]} : vector<456x128xbf16> to vector<384x128xbf16>
    %c768 = arith.constant 768 : index
    %c0_30 = arith.constant 0 : index
    %45 = vector.load %arg2[%c768, %c0_30] : memref<1152x128xbf16, #tpu.memory_space<vmem>>, vector<128x128xbf16>
    %cst_31 = arith.constant dense<0.000000e+00> : vector<384x128xf32>
    %46 = tpu.matmul %44, %45, %cst_31 {dimension_numbers = #tpu.dot_dimension_numbers<[1], [0], [0], [1], [0, 0, 1, 1], [], []>} : vector<384x128xbf16>, vector<128x128xbf16>, vector<384x128xf32> -> vector<384x128xf32>
    %47 = arith.addf %43, %46 : vector<384x128xf32>
    %48 = vector.extract_strided_slice %18 {offsets = [49, 0], sizes = [384, 128], strides = [1, 1]} : vector<456x128xbf16> to vector<384x128xbf16>
    %c896 = arith.constant 896 : index
    %c0_32 = arith.constant 0 : index
    %49 = vector.load %arg2[%c896, %c0_32] : memref<1152x128xbf16, #tpu.memory_space<vmem>>, vector<128x128xbf16>
    %cst_33 = arith.constant dense<0.000000e+00> : vector<384x128xf32>
    %50 = tpu.matmul %48, %49, %cst_33 {dimension_numbers = #tpu.dot_dimension_numbers<[1], [0], [0], [1], [0, 0, 1, 1], [], []>} : vector<384x128xbf16>, vector<128x128xbf16>, vector<384x128xf32> -> vector<384x128xf32>
    %51 = arith.addf %47, %50 : vector<384x128xf32>
    %52 = vector.extract_strided_slice %18 {offsets = [50, 0], sizes = [384, 128], strides = [1, 1]} : vector<456x128xbf16> to vector<384x128xbf16>
    %c1024 = arith.constant 1024 : index
    %c0_34 = arith.constant 0 : index
    %53 = vector.load %arg2[%c1024, %c0_34] : memref<1152x128xbf16, #tpu.memory_space<vmem>>, vector<128x128xbf16>
    %cst_35 = arith.constant dense<0.000000e+00> : vector<384x128xf32>
    %54 = tpu.matmul %52, %53, %cst_35 {dimension_numbers = #tpu.dot_dimension_numbers<[1], [0], [0], [1], [0, 0, 1, 1], [], []>} : vector<384x128xbf16>, vector<128x128xbf16>, vector<384x128xf32> -> vector<384x128xf32>
    %55 = arith.addf %51, %54 : vector<384x128xf32>
    %56 = vector.shape_cast %55 : vector<384x128xf32> to vector<16x24x128xf32>
    %57 = vector.extract_strided_slice %56 {offsets = [0, 0, 0], sizes = [16, 16, 128], strides = [1, 1, 1]} : vector<16x24x128xf32> to vector<16x16x128xf32>
    %cst_36 = arith.constant dense<0.000000e+00> : vector<128xf32>
    %58 = vector.multi_reduction <add>, %57, %cst_36 [0, 1] : vector<16x16x128xf32> to vector<128xf32>
    %59 = vector.shape_cast %58 : vector<128xf32> to vector<1x1x128xf32>
    %c0_37 = arith.constant 0 : index
    %c0_38 = arith.constant 0 : index
    %c0_39 = arith.constant 0 : index
    %60 = vector.load %arg6[%c0_37, %c0_38, %c0_39] : memref<1x1x128xf32, #tpu.memory_space<vmem>>, vector<1x1x128xf32>
    tpu.vector_store %arg6[%c0_37, %c0_38, %c0_39], %59 {strides = array<i32>} : memref<1x1x128xf32, #tpu.memory_space<vmem>>, vector<1x1x128xf32>,
    %61 = arith.mulf %57, %57 : vector<16x16x128xf32>
    %cst_40 = arith.constant dense<0.000000e+00> : vector<128xf32>
    %62 = vector.multi_reduction <add>, %61, %cst_40 [0, 1] : vector<16x16x128xf32> to vector<128xf32>
    %63 = vector.shape_cast %62 : vector<128xf32> to vector<1x1x128xf32>
    %c0_41 = arith.constant 0 : index
    %c0_42 = arith.constant 0 : index
    %c0_43 = arith.constant 0 : index
    %64 = vector.load %arg7[%c0_41, %c0_42, %c0_43] : memref<1x1x128xf32, #tpu.memory_space<vmem>>, vector<1x1x128xf32>
    tpu.vector_store %arg7[%c0_41, %c0_42, %c0_43], %63 {strides = array<i32>} : memref<1x1x128xf32, #tpu.memory_space<vmem>>, vector<1x1x128xf32>,
    %65 = vector.extract_strided_slice %57 {offsets = [0, 0, 0], sizes = [16, 16, 8], strides = [1, 1, 1]} : vector<16x16x128xf32> to vector<16x16x8xf32>
    %66 = vector.shape_cast %65 : vector<16x16x8xf32> to vector<1x16x16x8xf32>
    %67 = arith.truncf %66 : vector<1x16x16x8xf32> to vector<1x16x16x8xbf16>
    %c0_44 = arith.constant 0 : index
    %c0_45 = arith.constant 0 : index
    %c0_46 = arith.constant 0 : index
    %c0_47 = arith.constant 0 : index
    %68 = vector.load %arg5[%c0_44, %c0_45, %c0_46, %c0_47] : memref<1x16x16x8xbf16, #tpu.memory_space<vmem>>, vector<1x16x16x8xbf16>
    tpu.vector_store %arg5[%c0_44, %c0_45, %c0_46, %c0_47], %67 {strides = array<i32>} : memref<1x16x16x8xbf16, #tpu.memory_space<vmem>>, vector<1x16x16x8xbf16>,
    return
  }
  func.func @transform_0(%arg0: i32) -> (i32, i32, i32, i32) {
    %c0_i32 = arith.constant 0 : i32
    %c0_i32_0 = arith.constant 0 : i32
    %c0_i32_1 = arith.constant 0 : i32
    %c0_i32_2 = arith.constant 0 : i32
    return %arg0, %c0_i32, %c0_i32_0, %c0_i32_1 : i32, i32, i32, i32
  }
  func.func @transform_1(%arg0: i32) -> (i32, i32) {
    %c0_i32 = arith.constant 0 : i32
    %c0_i32_0 = arith.constant 0 : i32
    %c0_i32_1 = arith.constant 0 : i32
    return %c0_i32, %c0_i32_0 : i32, i32
  }
  func.func @transform_2(%arg0: i32) -> (i32, i32) {
    %c0_i32 = arith.constant 0 : i32
    %c0_i32_0 = arith.constant 0 : i32
    %c0_i32_1 = arith.constant 0 : i32
    return %c0_i32, %c0_i32_0 : i32, i32
  }
  func.func @transform_3(%arg0: i32) -> (i32, i32) {
    %c0_i32 = arith.constant 0 : i32
    %c0_i32_0 = arith.constant 0 : i32
    %c0_i32_1 = arith.constant 0 : i32
    return %c0_i32, %c0_i32_0 : i32, i32
  }
  func.func @transform_4(%arg0: i32) -> (i32, i32, i32, i32) {
    %c0_i32 = arith.constant 0 : i32
    %c0_i32_0 = arith.constant 0 : i32
    %c0_i32_1 = arith.constant 0 : i32
    %c0_i32_2 = arith.constant 0 : i32
    return %arg0, %c0_i32, %c0_i32_0, %c0_i32_1 : i32, i32, i32, i32
  }
  func.func @transform_5(%arg0: i32) -> (i32, i32, i32) {
    %c0_i32 = arith.constant 0 : i32
    %c0_i32_0 = arith.constant 0 : i32
    %c0_i32_1 = arith.constant 0 : i32
    return %arg0, %c0_i32, %c0_i32_0 : i32, i32, i32
  }
  func.func @transform_6(%arg0: i32) -> (i32, i32, i32) {
    %c0_i32 = arith.constant 0 : i32
    %c0_i32_0 = arith.constant 0 : i32
    %c0_i32_1 = arith.constant 0 : i32
    return %arg0, %c0_i32, %c0_i32_0 : i32, i32, i32
  }
}

</mosaic_0001>

<bundles_post_ra>
// kernel: basic_block_forward.5
= control target key start
LH: loop header
LB: loop body
LE: loop exit
PB: predicated region body
PF: predicated region fallthrough
CT: control target
= control target key end

     0   :  { %s694_s15 = smov 0   ;;  %s914_s0 = inlined_call_operand.vmem [shape: bf16[2,16,16,8], index: 0, kind: input, shape index: {}]   ;;  %s915_s1 = inlined_call_operand.vmem [shape: f32[1,8], index: 1, kind: input, shape index: {}]   ;;  %s916_s2 = inlined_call_operand.vmem [shape: f32[1,8], index: 2, kind: input, shape index: {}]   ;;  %s917_s3 = inlined_call_operand.vmem [shape: f32[2,16,16,8], index: 3, kind: input, shape index: {}]   ;;  %s918_s4 = inlined_call_operand.vmem [shape: f32[2,16,16,8], index: 4, kind: output, shape index: {}]  }
   0x1 LB: > { %s556_s16 = sadd.s32 4294967295, %s667_s15   ;;  %p560_p0 = scmp.ge.s32.totalorder %s667_s15, 1  ;;  %s667_s15 = sphi %s694_s15, %s14_s15  }
   0x2   : > { %p172_p1 = scmp.lt.s32.totalorder %s667_s15, 3 }
   0x4   : > { %p173_p2 = pnand %p560_p0, %p172_p1 }
   0x5   : > { %p203_p3 = scmp.lt.s32.totalorder (!%p173_p2), %s556_s16, 1 }
   0x6   : > { %176 = sbr.rel (%p173_p2) target bundleno = 58 (0x3a), region = 36 }
   0xb   : > { %s920_s16 = smov (!%p203_p3, %s556_s16), 1  ;;  %v714_v0 = vld [vmem:[%s915_s1] ss:$0 sm:$0xff]  ;;  %vm456_vm0 = vcmask 64512  }
   0xc   : > { %s571_s17 = sshll.u32 %s920_s16, 7  ;;  %s572_s18 = sshll.u32 %s920_s16, 8  ;;  %v728_v5 = vld [vmem:[%s916_s2] ss:$0 sm:$0xff] }
   0xd   : > { %s709_s21 = scalar_lea.vmem %s914_s0, %s571_s17  ;;  %s722_s26 = scalar_lea.vmem %s917_s3, %s572_s18 }
   0xe   : > { %v575_v1 = vld [vmem:[%s709_s21] sm:$0xff]   ;;  %v638_v4 = vld [vmem:[%s709_s21 + $0x8] sm:$0xff]   ;;  %v639_v8 = vld [vmem:[%s709_s21 + $0x10] sm:$0xff]   ;;  %s759_s5 = scalar_lea.vmem %s918_s4, %s572_s18 }
   0xf   : > { %v576_v2 = vunpack.c.l.bf16 %v575_v1  ;;  %v577_v3 = vunpack.c.h.bf16 %v575_v1  ;;  %v580_v6 = vunpack.c.l.bf16 %v638_v4  ;;  %v581_v7 = vunpack.c.h.bf16 %v638_v4  ;;  %v640_v13 = vld [vmem:[%s709_s21 + $0x18] sm:$0xff]   ;;  %v360_v14 = vld [vmem:[%s722_s26] sm:$0xff]  ;;  %v361_v15 = vld [vmem:[%s722_s26 + $0x8] sm:$0xff] }
  0x10   : > { %v584_v11 = vunpack.c.l.bf16 %v639_v8  ;;  %v585_v12 = vunpack.c.h.bf16 %v639_v8  ;;  %v588_v18 = vunpack.c.l.bf16 %v640_v13  ;;  %v589_v19 = vunpack.c.h.bf16 %v640_v13  ;;  %v362_v22 = vld [vmem:[%s722_s26 + $0x10] sm:$0xff]  ;;  %v363_v23 = vld [vmem:[%s722_s26 + $0x18] sm:$0xff]  ;;  %v364_v28 = vld [vmem:[%s722_s26 + $0x20] sm:$0xff] }
  0x11   : > { %v290_v9 = vmul.f32 %v576_v2, %v714_v0  ;;  %v291_v10 = vmul.f32 %v577_v3, %v714_v0  ;;  %v292_v16 = vmul.f32 %v580_v6, %v714_v0  ;;  %v293_v17 = vmul.f32 %v581_v7, %v714_v0  ;;  %v365_v29 = vld [vmem:[%s722_s26 + $0x28] sm:$0xff]  ;;  %v366_v36 = vld [vmem:[%s722_s26 + $0x30] sm:$0xff]  ;;  %v367_v37 = vld [vmem:[%s722_s26 + $0x38] sm:$0xff] }
  0x12   : > { %v294_v24 = vmul.f32 %v584_v11, %v714_v0  ;;  %v295_v25 = vmul.f32 %v585_v12, %v714_v0  ;;  %v296_v30 = vmul.f32 %v588_v18, %v714_v0  ;;  %v297_v31 = vmul.f32 %v589_v19, %v714_v0  ;;  %v641_v42 = vld [vmem:[%s709_s21 + $0x20] sm:$0xff]   ;;  %v642_v47 = vld [vmem:[%s709_s21 + $0x28] sm:$0xff]   ;;  %v643_v52 = vld [vmem:[%s709_s21 + $0x30] sm:$0xff]  }
  0x13   : > { %v328_v20 = vadd.f32 %v728_v5, %v290_v9  ;;  %v329_v21 = vadd.f32 %v728_v5, %v291_v10  ;;  %v330_v26 = vadd.f32 %v728_v5, %v292_v16  ;;  %v331_v27 = vadd.f32 %v728_v5, %v293_v17  ;;  %v644_v57 = vld [vmem:[%s709_s21 + $0x38] sm:$0xff]   ;;  %v368_v3 = vld [vmem:[%s722_s26 + $0x40] sm:$0xff]  ;;  %v369_v4 = vld [vmem:[%s722_s26 + $0x48] sm:$0xff] }
  0x14   : > { %v332_v34 = vadd.f32 %v728_v5, %v294_v24  ;;  %v333_v35 = vadd.f32 %v728_v5, %v295_v25  ;;  %v334_v40 = vadd.f32 %v728_v5, %v296_v30  ;;  %v335_v41 = vadd.f32 %v728_v5, %v297_v31  ;;  %v370_v12 = vld [vmem:[%s722_s26 + $0x50] sm:$0xff]  ;;  %v371_v13 = vld [vmem:[%s722_s26 + $0x58] sm:$0xff]  ;;  %v372_v18 = vld [vmem:[%s722_s26 + $0x60] sm:$0xff] }
  0x15   : > { %v392_v32 = vadd.f32 %v360_v14, %v328_v20  ;;  %v393_v33 = vadd.f32 %v361_v15, %v329_v21  ;;  %v394_v38 = vadd.f32 %v362_v22, %v330_v26  ;;  %v395_v39 = vadd.f32 %v363_v23, %v331_v27  ;;  %v373_v19 = vld [vmem:[%s722_s26 + $0x68] sm:$0xff]  ;;  %v374_v26 = vld [vmem:[%s722_s26 + $0x70] sm:$0xff]  ;;  %v375_v27 = vld [vmem:[%s722_s26 + $0x78] sm:$0xff] }
  0x16   : > { %v396_v45 = vadd.f32 %v364_v28, %v332_v34  ;;  %v397_v46 = vadd.f32 %v365_v29, %v333_v35  ;;  %v398_v50 = vadd.f32 %v366_v36, %v334_v40  ;;  %v399_v51 = vadd.f32 %v367_v37, %v335_v41  ;;  %v646_v37 = vld [vmem:[%s709_s21 + $0x48] sm:$0xff]  }
  0x17   : > { %v424_v43 = vmax.f32 %v392_v32, 0.0  ;;  %v425_v44 = vmax.f32 %v393_v33, 0.0  ;;  %v426_v48 = vmax.f32 %v394_v38, 0.0  ;;  %v427_v49 = vmax.f32 %v395_v39, 0.0  ;;  %v645_v32 = vld [vmem:[%s709_s21 + $0x40] sm:$0xff]  }
  0x18   : > { %v428_v53 = vmax.f32 %v396_v45, 0.0  ;;  %v429_v54 = vmax.f32 %v397_v46, 0.0  ;;  %v592_v55 = vunpack.c.l.bf16 %v641_v42  ;;  %v593_v56 = vunpack.c.h.bf16 %v641_v42  ;;  %v647_v42 = vld [vmem:[%s709_s21 + $0x50] sm:$0xff]  }
  0x19   : > { %457 = vst.msk [vmem:[%s759_s5] sm:$0xff] %vm456_vm0, %v424_v43  ;;  %458 = vst.msk [vmem:[%s759_s5 + $0x8] sm:$0xff] %vm456_vm0, %v425_v44  ;;  %v430_v58 = vmax.f32 %v398_v50, 0.0  ;;  %v431_v59 = vmax.f32 %v399_v51, 0.0  ;;  %v596_v60 = vunpack.c.l.bf16 %v642_v47  ;;  %v597_v61 = vunpack.c.h.bf16 %v642_v47  ;;  %v648_v47 = vld [vmem:[%s709_s21 + $0x58] sm:$0xff]  }
  0x1a   : > { %459 = vst.msk [vmem:[%s759_s5 + $0x10] sm:$0xff] %vm456_vm0, %v426_v48  ;;  %460 = vst.msk [vmem:[%s759_s5 + $0x18] sm:$0xff] %vm456_vm0, %v427_v49  ;;  %v298_v62 = vmul.f32 %v592_v55, %v714_v0  ;;  %v299_v63 = vmul.f32 %v593_v56, %v714_v0  ;;  %v600_v1 = vunpack.c.l.bf16 %v643_v52  ;;  %v601_v2 = vunpack.c.h.bf16 %v643_v52  ;;  %v376_v56 = vld [vmem:[%s722_s26 + $0x80] sm:$0xff] }
  0x1b   : > { %461 = vst.msk [vmem:[%s759_s5 + $0x20] sm:$0xff] %vm456_vm0, %v428_v53  ;;  %462 = vst.msk [vmem:[%s759_s5 + $0x28] sm:$0xff] %vm456_vm0, %v429_v54  ;;  %v300_v6 = vmul.f32 %v596_v60, %v714_v0  ;;  %v301_v7 = vmul.f32 %v597_v61, %v714_v0  ;;  %v604_v8 = vunpack.c.l.bf16 %v644_v57  ;;  %v605_v9 = vunpack.c.h.bf16 %v644_v57  ;;  %v377_v57 = vld [vmem:[%s722_s26 + $0x88] sm:$0xff] }
  0x1c   : > { %463 = vst.msk [vmem:[%s759_s5 + $0x30] sm:$0xff] %vm456_vm0, %v430_v58  ;;  %464 = vst.msk [vmem:[%s759_s5 + $0x38] sm:$0xff] %vm456_vm0, %v431_v59  ;;  %v336_v10 = vadd.f32 %v728_v5, %v298_v62  ;;  %v337_v11 = vadd.f32 %v728_v5, %v299_v63  ;;  %v302_v14 = vmul.f32 %v600_v1, %v714_v0  ;;  %v608_v45 = vunpack.c.l.bf16 %v645_v32  ;;  %v378_v1 = vld [vmem:[%s722_s26 + $0x90] sm:$0xff] }
  0x1d   : > { %v303_v15 = vmul.f32 %v601_v2, %v714_v0  ;;  %v338_v16 = vadd.f32 %v728_v5, %v300_v6  ;;  %v339_v17 = vadd.f32 %v728_v5, %v301_v7  ;;  %v304_v20 = vmul.f32 %v604_v8, %v714_v0  ;;  %v379_v2 = vld [vmem:[%s722_s26 + $0x98] sm:$0xff]  ;;  %v380_v8 = vld [vmem:[%s722_s26 + $0xa0] sm:$0xff] }
  0x1e   : > { %v305_v21 = vmul.f32 %v605_v9, %v714_v0  ;;  %v400_v22 = vadd.f32 %v368_v3, %v336_v10  ;;  %v401_v23 = vadd.f32 %v369_v4, %v337_v11  ;;  %v340_v24 = vadd.f32 %v728_v5, %v302_v14  ;;  %v381_v9 = vld [vmem:[%s722_s26 + $0xa8] sm:$0xff] }
  0x1f   : > { %v341_v25 = vadd.f32 %v728_v5, %v303_v15  ;;  %v402_v28 = vadd.f32 %v370_v12, %v338_v16  ;;  %v403_v29 = vadd.f32 %v371_v13, %v339_v17  ;;  %v342_v30 = vadd.f32 %v728_v5, %v304_v20  ;;  %v382_v16 = vld [vmem:[%s722_s26 + $0xb0] sm:$0xff]  ;;  %v383_v17 = vld [vmem:[%s722_s26 + $0xb8] sm:$0xff] }
  0x20   : > { %v343_v31 = vadd.f32 %v728_v5, %v305_v21  ;;  %v432_v33 = vmax.f32 %v400_v22, 0.0  ;;  %v433_v34 = vmax.f32 %v401_v23, 0.0  ;;  %v404_v35 = vadd.f32 %v372_v18, %v340_v24  ;;  %v649_v22 = vld [vmem:[%s709_s21 + $0x60] sm:$0xff]  }
  0x21   : > { %v405_v36 = vadd.f32 %v373_v19, %v341_v25  ;;  %v434_v38 = vmax.f32 %v402_v28, 0.0  ;;  %v435_v39 = vmax.f32 %v403_v29, 0.0  ;;  %v406_v40 = vadd.f32 %v374_v26, %v342_v30 }
  0x22   : > { %v407_v41 = vadd.f32 %v375_v27, %v343_v31  ;;  %465 = vst.msk [vmem:[%s759_s5 + $0x40] sm:$0xff] %vm456_vm0, %v432_v33  ;;  %466 = vst.msk [vmem:[%s759_s5 + $0x48] sm:$0xff] %vm456_vm0, %v433_v34  ;;  %v436_v43 = vmax.f32 %v404_v35, 0.0  ;;  %v609_v46 = vunpack.c.h.bf16 %v645_v32  ;;  %v612_v50 = vunpack.c.l.bf16 %v646_v37  ;;  %v650_v27 = vld [vmem:[%s709_s21 + $0x68] sm:$0xff]   ;;  %v651_v32 = vld [vmem:[%s709_s21 + $0x70] sm:$0xff]  }
  0x23   : > { %v437_v44 = vmax.f32 %v405_v36, 0.0  ;;  %467 = vst.msk [vmem:[%s759_s5 + $0x50] sm:$0xff] %vm456_vm0, %v434_v38  ;;  %468 = vst.msk [vmem:[%s759_s5 + $0x58] sm:$0xff] %vm456_vm0, %v435_v39  ;;  %v438_v48 = vmax.f32 %v406_v40, 0.0  ;;  %v613_v51 = vunpack.c.h.bf16 %v646_v37  ;;  %v306_v52 = vmul.f32 %v608_v45, %v714_v0  ;;  %v652_v37 = vld [vmem:[%s709_s21 + $0x78] sm:$0xff]  }
  0x24   : > { %v439_v49 = vmax.f32 %v407_v41, 0.0  ;;  %469 = vst.msk [vmem:[%s759_s5 + $0x60] sm:$0xff] %vm456_vm0, %v436_v43  ;;  %v307_v53 = vmul.f32 %v609_v46, %v714_v0  ;;  %v616_v54 = vunpack.c.l.bf16 %v647_v42  ;;  %v617_v55 = vunpack.c.h.bf16 %v647_v42  ;;  %v384_v46 = vld [vmem:[%s722_s26 + $0xc0] sm:$0xff] }
  0x25   : > { %470 = vst.msk [vmem:[%s759_s5 + $0x68] sm:$0xff] %vm456_vm0, %v437_v44  ;;  %471 = vst.msk [vmem:[%s759_s5 + $0x70] sm:$0xff] %vm456_vm0, %v438_v48  ;;  %v308_v58 = vmul.f32 %v612_v50, %v714_v0  ;;  %v309_v59 = vmul.f32 %v613_v51, %v714_v0  ;;  %v620_v60 = vunpack.c.l.bf16 %v648_v47  ;;  %v621_v61 = vunpack.c.h.bf16 %v648_v47  ;;  %v385_v47 = vld [vmem:[%s722_s26 + $0xc8] sm:$0xff] }
  0x26   : > { %472 = vst.msk [vmem:[%s759_s5 + $0x78] sm:$0xff] %vm456_vm0, %v439_v49  ;;  %v344_v62 = vadd.f32 %v728_v5, %v306_v52  ;;  %v345_v63 = vadd.f32 %v728_v5, %v307_v53  ;;  %v310_v3 = vmul.f32 %v616_v54, %v714_v0  ;;  %v311_v4 = vmul.f32 %v617_v55, %v714_v0  ;;  %v386_v54 = vld [vmem:[%s722_s26 + $0xd0] sm:$0xff]  ;;  %v387_v55 = vld [vmem:[%s722_s26 + $0xd8] sm:$0xff] }
  0x27   : > { %v346_v6 = vadd.f32 %v728_v5, %v308_v58  ;;  %v347_v7 = vadd.f32 %v728_v5, %v309_v59  ;;  %v312_v10 = vmul.f32 %v620_v60, %v714_v0  ;;  %v313_v11 = vmul.f32 %v621_v61, %v714_v0  ;;  %v388_v60 = vld [vmem:[%s722_s26 + $0xe0] sm:$0xff]  ;;  %v389_v61 = vld [vmem:[%s722_s26 + $0xe8] sm:$0xff] }
  0x28   : > { %v408_v12 = vadd.f32 %v376_v56, %v344_v62  ;;  %v409_v13 = vadd.f32 %v377_v57, %v345_v63  ;;  %v348_v14 = vadd.f32 %v728_v5, %v310_v3  ;;  %v349_v15 = vadd.f32 %v728_v5, %v311_v4 }
  0x29   : > { %v410_v18 = vadd.f32 %v378_v1, %v346_v6  ;;  %v411_v19 = vadd.f32 %v379_v2, %v347_v7  ;;  %v350_v20 = vadd.f32 %v728_v5, %v312_v10  ;;  %v351_v21 = vadd.f32 %v728_v5, %v313_v11  ;;  %v390_v6 = vld [vmem:[%s722_s26 + $0xf0] sm:$0xff]  ;;  %v391_v7 = vld [vmem:[%s722_s26 + $0xf8] sm:$0xff] }
  0x2a   : > { %v440_v23 = vmax.f32 %v408_v12, 0.0  ;;  %v441_v24 = vmax.f32 %v409_v13, 0.0  ;;  %v412_v25 = vadd.f32 %v380_v8, %v348_v14  ;;  %v413_v26 = vadd.f32 %v381_v9, %v349_v15 }
  0x2b   : > { %v442_v28 = vmax.f32 %v410_v18, 0.0  ;;  %v443_v29 = vmax.f32 %v411_v19, 0.0  ;;  %v414_v30 = vadd.f32 %v382_v16, %v350_v20  ;;  %v415_v31 = vadd.f32 %v383_v17, %v351_v21 }
  0x2c   : > { %473 = vst.msk [vmem:[%s759_s5 + $0x80] sm:$0xff] %vm456_vm0, %v440_v23  ;;  %474 = vst.msk [vmem:[%s759_s5 + $0x88] sm:$0xff] %vm456_vm0, %v441_v24  ;;  %v444_v33 = vmax.f32 %v412_v25, 0.0  ;;  %v445_v34 = vmax.f32 %v413_v26, 0.0  ;;  %v624_v35 = vunpack.c.l.bf16 %v649_v22  ;;  %v625_v36 = vunpack.c.h.bf16 %v649_v22 }
  0x2d   : > { %475 = vst.msk [vmem:[%s759_s5 + $0x90] sm:$0xff] %vm456_vm0, %v442_v28  ;;  %476 = vst.msk [vmem:[%s759_s5 + $0x98] sm:$0xff] %vm456_vm0, %v443_v29  ;;  %v446_v38 = vmax.f32 %v414_v30, 0.0  ;;  %v447_v39 = vmax.f32 %v415_v31, 0.0  ;;  %v628_v40 = vunpack.c.l.bf16 %v650_v27  ;;  %v629_v41 = vunpack.c.h.bf16 %v650_v27 }
  0x2e   : > { %477 = vst.msk [vmem:[%s759_s5 + $0xa0] sm:$0xff] %vm456_vm0, %v444_v33  ;;  %478 = vst.msk [vmem:[%s759_s5 + $0xa8] sm:$0xff] %vm456_vm0, %v445_v34  ;;  %v314_v42 = vmul.f32 %v624_v35, %v714_v0  ;;  %v315_v43 = vmul.f32 %v625_v36, %v714_v0  ;;  %v632_v44 = vunpack.c.l.bf16 %v651_v32  ;;  %v633_v45 = vunpack.c.h.bf16 %v651_v32 }
  0x2f   : > { %479 = vst.msk [vmem:[%s759_s5 + $0xb0] sm:$0xff] %vm456_vm0, %v446_v38  ;;  %480 = vst.msk [vmem:[%s759_s5 + $0xb8] sm:$0xff] %vm456_vm0, %v447_v39  ;;  %v316_v48 = vmul.f32 %v628_v40, %v714_v0  ;;  %v317_v49 = vmul.f32 %v629_v41, %v714_v0  ;;  %v636_v50 = vunpack.c.l.bf16 %v652_v37  ;;  %v637_v51 = vunpack.c.h.bf16 %v652_v37 }
  0x30   : > { %v352_v52 = vadd.f32 %v728_v5, %v314_v42  ;;  %v353_v53 = vadd.f32 %v728_v5, %v315_v43  ;;  %v318_v56 = vmul.f32 %v632_v44, %v714_v0  ;;  %v319_v57 = vmul.f32 %v633_v45, %v714_v0 }
  0x31   : > { %v354_v58 = vadd.f32 %v728_v5, %v316_v48  ;;  %v355_v59 = vadd.f32 %v728_v5, %v317_v49  ;;  %v320_v62 = vmul.f32 %v636_v50, %v714_v0  ;;  %v321_v63 = vmul.f32 %v637_v51, %v714_v0 }
  0x32   : > { %v416_v1 = vadd.f32 %v384_v46, %v352_v52  ;;  %v417_v2 = vadd.f32 %v385_v47, %v353_v53  ;;  %v356_v3 = vadd.f32 %v728_v5, %v318_v56  ;;  %v357_v4 = vadd.f32 %v728_v5, %v319_v57 }
  0x33   : > { %v418_v8 = vadd.f32 %v386_v54, %v354_v58  ;;  %v419_v9 = vadd.f32 %v387_v55, %v355_v59  ;;  %v358_v10 = vadd.f32 %v728_v5, %v320_v62  ;;  %v359_v11 = vadd.f32 %v728_v5, %v321_v63 }
  0x34   : > { %v448_v12 = vmax.f32 %v416_v1, 0.0  ;;  %v449_v0 = vmax.f32 %v417_v2, 0.0  ;;  %v420_v13 = vadd.f32 %v388_v60, %v356_v3  ;;  %v421_v14 = vadd.f32 %v389_v61, %v357_v4 }
  0x35   : > { %v450_v15 = vmax.f32 %v418_v8, 0.0  ;;  %v451_v16 = vmax.f32 %v419_v9, 0.0  ;;  %v422_v17 = vadd.f32 %v390_v6, %v358_v10  ;;  %v423_v18 = vadd.f32 %v391_v7, %v359_v11 }
  0x36   : > { %481 = vst.msk [vmem:[%s759_s5 + $0xc0] sm:$0xff] %vm456_vm0, %v448_v12  ;;  %482 = vst.msk [vmem:[%s759_s5 + $0xc8] sm:$0xff] %vm456_vm0, %v449_v0  ;;  %v452_v19 = vmax.f32 %v420_v13, 0.0  ;;  %v453_v20 = vmax.f32 %v421_v14, 0.0 }
  0x37   : > { %483 = vst.msk [vmem:[%s759_s5 + $0xd0] sm:$0xff] %vm456_vm0, %v450_v15  ;;  %484 = vst.msk [vmem:[%s759_s5 + $0xd8] sm:$0xff] %vm456_vm0, %v451_v16  ;;  %v454_v5 = vmax.f32 %v422_v17, 0.0  ;;  %v455_v21 = vmax.f32 %v423_v18, 0.0 }
  0x38   : > { %485 = vst.msk [vmem:[%s759_s5 + $0xe0] sm:$0xff] %vm456_vm0, %v452_v19  ;;  %486 = vst.msk [vmem:[%s759_s5 + $0xe8] sm:$0xff] %vm456_vm0, %v453_v20 }
  0x39   : > { %487 = vst.msk [vmem:[%s759_s5 + $0xf0] sm:$0xff] %vm456_vm0, %v454_v5  ;;  %488 = vst.msk [vmem:[%s759_s5 + $0xf8] sm:$0xff] %vm456_vm0, %v455_v21 }
  0x3a PF: > { %s14_s15 = sadd.s32 1, %s667_s15  }
  0x3b   : > { %p11_p4 = scmp.ge.s32.totalorder %s14_s15, 4  }
  0x3d   :  { %13 = sbr.rel (!%p11_p4) target bundleno = 1 (0x1), region = 69 }

// kernel: basic_block_forward.4
= control target key start
LH: loop header
LB: loop body
LE: loop exit
PB: predicated region body
PF: predicated region fallthrough
CT: control target
= control target key end

     0   :  { %s6410_s21 = smov 0   ;;  %s8187_s0 = inlined_call_operand.vmem [shape: bf16[2,16,16,8], index: 0, kind: input, shape index: {}]   ;;  %s8188_s1 = inlined_call_operand.vmem [shape: bf16[1152,128], index: 1, kind: input, shape index: {}]   ;;  %s8189_s2 = inlined_call_operand.vmem [shape: f32[1,8], index: 2, kind: input, shape index: {}]   ;;  %s8190_s3 = inlined_call_operand.vmem [shape: f32[1,8], index: 3, kind: input, shape index: {}]   ;;  %s8191_s4 = inlined_call_operand.vmem [shape: bf16[2,16,16,8], index: 4, kind: output, shape index: {0}]   ;;  %s8192_s5 = inlined_call_operand.vmem [shape: f32[2,1,128], index: 5, kind: output, shape index: {1}]   ;;  %s8193_s6 = inlined_call_operand.vmem [shape: f32[2,1,128], index: 6, kind: output, shape index: {2}]  }
   0x1 LB: > { %s4996_s22 = sadd.s32 4294967295, %s6372_s21   ;;  %p5000_p0 = scmp.ge.s32.totalorder %s6372_s21, 1  ;;  %s6372_s21 = sphi %s6410_s21, %s17_s21  }
   0x2   : > { %p217_p1 = scmp.lt.s32.totalorder %s6372_s21, 3 }
   0x4   : > { %p218_p2 = pnand %p5000_p0, %p217_p1 }
   0x6   : > { %221 = sbr.rel (%p218_p2) target bundleno = 773 (0x305), region = 36 }
   0xb   : > { %v6233_v0 = vld [vmem:[%s8188_s1 + $0x78] sm:$0xff]   ;;  %p253_p3 = scmp.lt.s32.totalorder %s4996_s22, 1  ;;  %v6424_v1 = vld [vmem:[%s8188_s1 + $0x70] sm:$0xff]   ;;  %v6374_v2 = vmov 0   ;;  %v6235_v3 = vld [vmem:[%s8188_s1 + $0x68] sm:$0xff]   ;;  %vm921_vm1 = vcmask 60416  }
   0xc   : > { %5632 = vmatprep.subr.bf16.mxu0 %v6233_v0  ;;  %6208 = vmatprep.subr.bf16.mxu1 %v6233_v0  ;;  %270 = vst [vmem:[#allocation2] sm:$0xf] %v6374_v2  ;;  %271 = vst [vmem:[#allocation2 + $0x4] sm:$0xf] %v6374_v2  ;;  %v6236_v4 = vld [vmem:[%s8188_s1 + $0x60] sm:$0xff]   ;;  %v6237_v13 = vld [vmem:[%s8188_s1 + $0x58] sm:$0xff]  }
   0xd   : > { %s8403_s22 = smov (!%p253_p3, %s4996_s22), 1  ;;  %272 = vst [vmem:[#allocation2 + $0x8] sm:$0xf] %v6374_v2  ;;  %273 = vst [vmem:[#allocation2 + $0xc] sm:$0xf] %v6374_v2  ;;  %5633 = vmatpush3.bf16.msra.mxu0 %v6233_v0  ;;  %6216 = vmatpush3.bf16.msra.mxu1 %v6233_v0  ;;  %v6238_v20 = vld [vmem:[%s8188_s1 + $0x50] sm:$0xff]  }
   0xe   : > { %274 = vst [vmem:[#allocation2 + $0x10] sm:$0xf] %v6374_v2  ;;  %275 = vst [vmem:[#allocation2 + $0x14] sm:$0xf] %v6374_v2  ;;  %5634 = vmatprep.subr.bf16.mxu0 %v6424_v1  ;;  %6209 = vmatprep.subr.bf16.mxu1 %v6424_v1  ;;  %s5199_s29 = sshll.u32 %s8403_s22, 7  ;;  %vm929_vm2 = vcmask 57344   ;;  %s265_s14 = scalar_lea.vmem %s8192_s5, %s8403_s22 }
   0xf   : > { %276 = vst [vmem:[#allocation2 + $0x18] sm:$0xf] %v6374_v2  ;;  %277 = vst [vmem:[#allocation2 + $0x1c] sm:$0xf] %v6374_v2  ;;  %s6439_s8 = scalar_lea.vmem %s8187_s0, %s5199_s29  ;;  %v6450_v6 = vld [vmem:[%s8189_s2] ss:$0 sm:$0xff]  ;;  %s8080_s12 = scalar_lea.vmem %s8191_s4, %s5199_s29 }
  0x10   : > { %278 = vst [vmem:[#allocation2 + $0x20] sm:$0xf] %v6374_v2  ;;  %279 = vst [vmem:[#allocation2 + $0x24] sm:$0xf] %v6374_v2  ;;  %v5266_v5 = vld [vmem:[%s6439_s8] sm:$0xff]   ;;  %v5335_v14 = vld [vmem:[%s6439_s8 + $0x38] sm:$0xff]   ;;  %s268_s17 = scalar_lea.vmem %s8193_s6, %s8403_s22 }
  0x11   : > { %280 = vst [vmem:[#allocation2 + $0x28] sm:$0xf] %v6374_v2  ;;  %281 = vst [vmem:[#allocation2 + $0x2c] sm:$0xf] %v6374_v2  ;;  %5635 = vmatpush3.bf16.msra.mxu0 %v6424_v1  ;;  %6217 = vmatpush3.bf16.msra.mxu1 %v6424_v1  ;;  %v5267_v7 = vunpack.c.l.bf16 %v5266_v5  ;;  %v5268_v8 = vunpack.c.h.bf16 %v5266_v5  ;;  %v6455_v9 = vld [vmem:[%s8190_s3] ss:$0 sm:$0xff]  ;;  %v5295_v21 = vunpack.c.l.bf16 %v5335_v14  ;;  %v5296_v22 = vunpack.c.h.bf16 %v5335_v14 }
  0x12   : > { %282 = vst [vmem:[#allocation2 + $0x30] sm:$0xf] %v6374_v2  ;;  %283 = vst [vmem:[#allocation2 + $0x34] sm:$0xf] %v6374_v2  ;;  %5636 = vmatprep.subr.bf16.mxu0 %v6235_v3  ;;  %6210 = vmatprep.subr.bf16.mxu1 %v6235_v3  ;;  %vm597_vm0 = vsmask.f32 256 }
  0x13   : > { %284 = vst [vmem:[#allocation2 + $0x38] sm:$0xf] %v6374_v2  ;;  %285 = vst [vmem:[#allocation2 + $0x3c] sm:$0xf] %v6374_v2  ;;  %v399_v10 = vmul.f32 %v5267_v7, %v6450_v6  ;;  %v400_v11 = vmul.f32 %v5268_v8, %v6450_v6  ;;  %v6241_v12 = vld [vmem:[#allocation2] sm:$0xff]   ;;  %v413_v28 = vmul.f32 %v5295_v21, %v6450_v6  ;;  %v5329_v38 = vld [vmem:[%s6439_s8 + $0x8] sm:$0xff]  }
  0x14   : > { %286 = vst [vmem:[#allocation2 + $0x40] sm:$0xf] %v6374_v2  ;;  %287 = vst [vmem:[#allocation2 + $0x44] sm:$0xf] %v6374_v2  ;;  %v1251_v17 = vshrl.u32 %v6241_v12, 16  ;;  %v1253_v18 = vshll.u32 %v6241_v12, 16  ;;  %v414_v29 = vmul.f32 %v5296_v22, %v6450_v6  ;;  %v5271_v52 = vunpack.c.l.bf16 %v5329_v38 }
  0x15   : > { %288 = vst [vmem:[#allocation2 + $0x48] sm:$0xf] %v6374_v2  ;;  %289 = vst [vmem:[#allocation2 + $0x4c] sm:$0xf] %v6374_v2  ;;  %5637 = vmatpush3.bf16.msra.mxu0 %v6235_v3  ;;  %6218 = vmatpush3.bf16.msra.mxu1 %v6235_v3  ;;  %v437_v15 = vadd.f32 %v6455_v9, %v399_v10  ;;  %v438_v16 = vadd.f32 %v6455_v9, %v400_v11  ;;  %v5336_v19 = vld [vmem:[%s6439_s8 + $0x40] sm:$0xff]   ;;  %v6239_v43 = vld [vmem:[%s8188_s1 + $0x48] sm:$0xff]   ;;  %v5272_v53 = vunpack.c.h.bf16 %v5329_v38 }
  0x16   : > { %290 = vst [vmem:[#allocation2 + $0x50] sm:$0xf] %v6374_v2  ;;  %291 = vst [vmem:[#allocation2 + $0x54] sm:$0xf] %v6374_v2  ;;  %5638 = vmatprep.subr.bf16.mxu0 %v6236_v4  ;;  %6211 = vmatprep.subr.bf16.mxu1 %v6236_v4  ;;  %v5299_v23 = vunpack.c.l.bf16 %v5336_v19  ;;  %v5300_v24 = vunpack.c.h.bf16 %v5336_v19  ;;  %v1255_v27 = vrot.slane %v1253_v18, 1  ;;  %v451_v35 = vadd.f32 %v6455_v9, %v413_v28  ;;  %v6240_v60 = vld [vmem:[%s8188_s1 + $0x40] sm:$0xff]  }
  0x17   : > { %292 = vst [vmem:[#allocation2 + $0x58] sm:$0xf] %v6374_v2  ;;  %293 = vst [vmem:[#allocation2 + $0x5c] sm:$0xf] %v6374_v2  ;;  %v469_v25 = vmax.f32 %v437_v15, 0.0  ;;  %v470_v26 = vmax.f32 %v438_v16, 0.0  ;;  %v452_v36 = vadd.f32 %v6455_v9, %v414_v29  ;;  %v402_v21 = vmul.f32 %v5272_v53, %v6450_v6 }
  0x18   : > { %294 = vst [vmem:[#allocation2 + $0x60] sm:$0xf] %v6374_v2  ;;  %295 = vst [vmem:[#allocation2 + $0x64] sm:$0xf] %v6374_v2  ;;  %vm598_vm3 = vsmask.f32 4368  ;;  %v415_v30 = vmul.f32 %v5299_v23, %v6450_v6  ;;  %v416_v33 = vmul.f32 %v5300_v24, %v6450_v6  ;;  %v6473_v34 = vor.u32 %v1255_v27, %v1251_v17 }
  0x19   : > { %296 = vst [vmem:[#allocation2 + $0x68] sm:$0xf] %v6374_v2  ;;  %297 = vst [vmem:[#allocation2 + $0x6c] sm:$0xf] %v6374_v2  ;;  %5639 = vmatpush3.bf16.msra.mxu0 %v6236_v4  ;;  %6219 = vmatpush3.bf16.msra.mxu1 %v6236_v4  ;;  %v5201_v31 = vpack.c.bf16 %v469_v25, %v469_v25  ;;  %v5202_v32 = vpack.c.bf16 %v470_v26, %v470_v26  ;;  %vm922_vm4 = vsmask.f32 7938 }
  0x1a   : > { %298 = vst [vmem:[#allocation2 + $0x70] sm:$0xf] %v6374_v2  ;;  %299 = vst [vmem:[#allocation2 + $0x74] sm:$0xf] %v6374_v2  ;;  %5640 = vmatprep.subr.bf16.mxu0 %v6237_v13  ;;  %6212 = vmatprep.subr.bf16.mxu1 %v6237_v13  ;;  %v453_v37 = vadd.f32 %v6455_v9, %v415_v30  ;;  %v483_v44 = vmax.f32 %v451_v35, 0.0  ;;  %v484_v45 = vmax.f32 %v452_v36, 0.0 }
  0x1b   : > { %300 = vst [vmem:[#allocation2 + $0x78] sm:$0xf] %v6374_v2  ;;  %301 = vst [vmem:[#allocation2 + $0x7c] sm:$0xf] %v6374_v2  ;;  %v601_v39 = vshrl.u32 %v5201_v31, 16  ;;  %v604_v40 = vshll.u32 %v5201_v31, 16  ;;  %v454_v47 = vadd.f32 %v6455_v9, %v416_v33 }
  0x1c   : > { %302 = vst [vmem:[#allocation2 + $0x80] sm:$0xf] %v6374_v2  ;;  %303 = vst [vmem:[#allocation2 + $0x84] sm:$0xf] %v6374_v2  ;;  %v609_v41 = vshrl.u32 %v5202_v32, 16  ;;  %v612_v42 = vshll.u32 %v5202_v32, 16  ;;  %v5215_v56 = vpack.c.bf16 %v483_v44, %v483_v44  ;;  %v5216_v57 = vpack.c.bf16 %v484_v45, %v484_v45 }
  0x1d   : > { %304 = vst [vmem:[#allocation2 + $0x88] sm:$0xf] %v6374_v2  ;;  %305 = vst [vmem:[#allocation2 + $0x8c] sm:$0xf] %v6374_v2  ;;  %5641 = vmatpush3.bf16.msra.mxu0 %v6237_v13  ;;  %6220 = vmatpush3.bf16.msra.mxu1 %v6237_v13  ;;  %v485_v46 = vmax.f32 %v453_v37, 0.0  ;;  %v603_v48 = vrot.slane %v601_v39, 7  ;;  %v440_v45 = vadd.f32 %v6455_v9, %v402_v21 }
  0x1e   : > { %306 = vst [vmem:[#allocation2 + $0x90] sm:$0xf] %v6374_v2  ;;  %307 = vst [vmem:[#allocation2 + $0x94] sm:$0xf] %v6374_v2  ;;  %5642 = vmatprep.subr.bf16.mxu0 %v6238_v20  ;;  %6213 = vmatprep.subr.bf16.mxu1 %v6238_v20  ;;  %v611_v49 = vrot.slane %v609_v41, 7  ;;  %v486_v59 = vmax.f32 %v454_v47, 0.0 }
  0x1f   : > { %308 = vst [vmem:[#allocation2 + $0x98] sm:$0xf] %v6374_v2  ;;  %309 = vst [vmem:[#allocation2 + $0x9c] sm:$0xf] %v6374_v2  ;;  %v924_v51 = vld [vmem:[#allocation2 + $0xc] sm:$0xf]  ;;  %v5217_v58 = vpack.c.bf16 %v485_v46, %v485_v46  ;;  %v606_v61 = vor.u32 %v604_v40, %v603_v48 }
  0x20   : > { %310 = vst [vmem:[#allocation2 + $0xa0] sm:$0xf] %v6374_v2  ;;  %311 = vst [vmem:[#allocation2 + $0xa4] sm:$0xf] %v6374_v2  ;;  %v931_v55 = vld [vmem:[#allocation2 + $0x14] sm:$0x1]  ;;  %v614_v63 = vor.u32 %v612_v42, %v611_v49  ;;  %v5218_v16 = vpack.c.bf16 %v486_v59, %v486_v59 }
  0x21   : > { %312 = vst [vmem:[#allocation2 + $0xa8] sm:$0xf] %v6374_v2  ;;  %313 = vst [vmem:[#allocation2 + $0xac] sm:$0xf] %v6374_v2  ;;  %5643 = vmatpush3.bf16.msra.mxu0 %v6238_v20  ;;  %6221 = vmatpush3.bf16.msra.mxu1 %v6238_v20  ;;  %v607_v62 = vrot.slane %v603_v48, 4  ;;  %v616_v0 = vrot.slane %v611_v49, 4  ;;  %v401_v20 = vmul.f32 %v5271_v52, %v6450_v6 }
  0x22   : > { %314 = vst [vmem:[#allocation2 + $0xb0] sm:$0xf] %v6374_v2  ;;  %315 = vst [vmem:[#allocation2 + $0xb4] sm:$0xf] %v6374_v2  ;;  %v6499_v1 = vld [vmem:[%s6439_s8 + $0x10] sm:$0xff]   ;;  %5644 = vmatprep.subr.bf16.mxu0 %v6239_v43  ;;  %6214 = vmatprep.subr.bf16.mxu1 %v6239_v43  ;;  %v720_v3 = vshrl.u32 %v5215_v56, 16 }
  0x23   : > { %316 = vst [vmem:[#allocation2 + $0xb8] sm:$0xf] %v6374_v2  ;;  %317 = vst [vmem:[#allocation2 + $0xbc] sm:$0xf] %v6374_v2  ;;  %v723_v4 = vshll.u32 %v5215_v56, 16  ;;  %v728_v5 = vshrl.u32 %v5216_v57, 16  ;;  %v5275_v22 = vunpack.c.l.bf16 %v6499_v1  ;;  %v439_v41 = vadd.f32 %v6455_v9, %v401_v20 }
  0x24   : > { %318 = vst [vmem:[#allocation2 + $0xc0] sm:$0xf] %v6374_v2  ;;  %319 = vst [vmem:[#allocation2 + $0xc4] sm:$0xf] %v6374_v2  ;;  %v731_v7 = vshll.u32 %v5216_v57, 16  ;;  %v737_v12 = vshrl.u32 %v5217_v58, 16  ;;  %v5276_v59 = vunpack.c.h.bf16 %v6499_v1 }
  0x25   : > { %320 = vst [vmem:[#allocation2 + $0xc8] sm:$0xf] %v6374_v2  ;;  %321 = vst [vmem:[#allocation2 + $0xcc] sm:$0xf] %v6374_v2  ;;  %v722_v13 = vrot.slane %v720_v3, 7  ;;  %v730_v14 = vrot.slane %v728_v5, 7  ;;  %5645 = vmatpush3.bf16.msra.mxu0 %v6239_v43  ;;  %6222 = vmatpush3.bf16.msra.mxu1 %v6239_v43  ;;  %v403_v46 = vmul.f32 %v5275_v22, %v6450_v6 }
  0x26   : > { %322 = vst [vmem:[#allocation2 + $0xd0] sm:$0xf] %v6374_v2  ;;  %323 = vst [vmem:[#allocation2 + $0xd4] sm:$0xf] %v6374_v2  ;;  %v740_v15 = vshll.u32 %v5217_v58, 16  ;;  %v739_v17 = vrot.slane %v737_v12, 7  ;;  %5646 = vmatprep.subr.bf16.mxu0 %v6240_v60  ;;  %6215 = vmatprep.subr.bf16.mxu1 %v6240_v60 }
  0x27   : > { %324 = vst [vmem:[#allocation2 + $0xd8] sm:$0xf] %v6374_v2  ;;  %vm6485_vm5 = vmand %vm921_vm1, %vm922_vm4  ;;  %v976_v18 = vld [vmem:[#allocation2 + $0x60] sm:$0xf]  ;;  %v980_v19 = vld [vmem:[#allocation2 + $0x68] sm:$0x1]  ;;  %v725_v23 = vor.u32 %v723_v4, %v722_v13  ;;  %v733_v25 = vor.u32 %v731_v7, %v730_v14  ;;  %v441_v58 = vadd.f32 %v6455_v9, %v403_v46 }
  0x28   : > { %vm6491_vm6 = vmand %vm929_vm2, %vm597_vm0  ;;  %v925_v10 = vsel %vm6485_vm5, %v606_v61, %v924_v51  ;;  %v726_v24 = vrot.slane %v722_v13, 4  ;;  %v735_v26 = vrot.slane %v730_v14, 4  ;;  %v983_v27 = vld [vmem:[#allocation2 + $0x6c] sm:$0xf]  ;;  %v6520_v28 = vld [vmem:[%s8188_s1 + $0x38] sm:$0xff]   ;;  %v742_v30 = vor.u32 %v740_v15, %v739_v17 }
  0x29   : > { %vm6503_vm7 = vmor %vm597_vm0, %vm598_vm3  ;;  %v932_v11 = vsel %vm6491_vm6, %v616_v0, %v931_v55  ;;  %926 = vst [vmem:[#allocation2 + $0xc] sm:$0xf] %v925_v10  ;;  %v6525_v29 = vld [vmem:[%s8188_s1 + $0xb8] sm:$0xff]   ;;  %vm1249_vm8 = vsmask.f32 7424  ;;  %v743_v31 = vrot.slane %v739_v17, 4  ;;  %v977_v39 = vsel %vm6485_vm5, %v725_v23, %v976_v18  ;;  %5647 = vmatpush3.bf16.msra.mxu0 %v6240_v60  ;;  %6223 = vmatpush3.bf16.msra.mxu1 %v6240_v60 }
  0x2a   : > { %v615_v8 = vsel %vm6503_vm7, %v607_v62, %v614_v63  ;;  %933 = vst [vmem:[#allocation2 + $0x14] sm:$0x1] %v932_v11  ;;  %v745_v32 = vshrl.u32 %v5218_v16, 16  ;;  %v748_v33 = vshll.u32 %v5218_v16, 16  ;;  %v6528_v35 = vld [vmem:[%s6439_s8 + $0x48] sm:$0xff]   ;;  %v6531_v36 = vld [vmem:[%s6439_s8 + $0x50] sm:$0xff]   ;;  %v734_v38 = vsel %vm6503_vm7, %v726_v24, %v733_v25  ;;  %5696 = vmatprep.subr.bf16.mxu1 %v6520_v28  ;;  %5760 = vmatprep.subr.bf16.mxu0 %v6525_v29 }
  0x2b   : > { %928 = vst.msk [vmem:[#allocation2 + $0x10] sm:$0xf] %vm921_vm1, %v615_v8  ;;  %v6534_v37 = vld [vmem:[%s6439_s8 + $0x18] sm:$0xff]   ;;  %v981_v40 = vsel %vm6491_vm6, %v735_v26, %v980_v19  ;;  %v1041_v42 = vld [vmem:[#allocation2 + $0x8] sm:$0xf]  ;;  %v984_v43 = vsel %vm6485_vm5, %v742_v30, %v983_v27  ;;  %v471_v48 = vmax.f32 %v439_v41, 0.0  ;;  %v5303_v49 = vunpack.c.l.bf16 %v6528_v35 }
  0x2c   : > { %978 = vst [vmem:[#allocation2 + $0x60] sm:$0xf] %v977_v39  ;;  %979 = vst.msk [vmem:[#allocation2 + $0x64] sm:$0xf] %vm921_vm1, %v734_v38  ;;  %v747_v44 = vrot.slane %v745_v32, 7  ;;  %v5304_v51 = vunpack.c.h.bf16 %v6528_v35  ;;  %v5307_v52 = vunpack.c.l.bf16 %v6531_v36  ;;  %v5279_v60 = vunpack.c.l.bf16 %v6534_v37 }
  0x2d   : > { %982 = vst [vmem:[#allocation2 + $0x68] sm:$0x1] %v981_v40  ;;  %985 = vst [vmem:[#allocation2 + $0x6c] sm:$0xf] %v984_v43  ;;  %v987_v47 = vld [vmem:[#allocation2 + $0x74] sm:$0x1]  ;;  %v5203_v5 = vpack.c.bf16 %v471_v48, %v471_v48  ;;  %v417_v23 = vmul.f32 %v5303_v49, %v6450_v6 }
  0x2e   : > { %v750_v57 = vor.u32 %v748_v33, %v747_v44  ;;  %v752_v0 = vrot.slane %v747_v44, 4  ;;  %v472_v4 = vmax.f32 %v440_v45, 0.0  ;;  %v473_v7 = vmax.f32 %v441_v58, 0.0  ;;  %v934_v21 = vld [vmem:[#allocation2 + $0x18] sm:$0xf]  ;;  %v6253_v43 = vld [vmem:[%s8188_s1 + $0xb0] sm:$0xff]  }
  0x2f   : > { %v618_v14 = vshrl.u32 %v5203_v5, 16  ;;  %v621_v15 = vshll.u32 %v5203_v5, 16  ;;  %vm2024_vm9 = vcmask 1046528  }
  0x30   : > { %v1042_v53 = vld [vmem:[#allocation2 + $0xc] sm:$0xf]  ;;  %v751_v3 = vsel %vm6503_vm7, %v743_v31, %v750_v57  ;;  %v988_v12 = vsel %vm6491_vm6, %v752_v0, %v987_v47  ;;  %v5204_v13 = vpack.c.bf16 %v472_v4, %v472_v4  ;;  %v5205_v22 = vpack.c.bf16 %v473_v7, %v473_v7 }
  0x31   : > { %v1044_v56 = vld [vmem:[#allocation2 + $0x14] sm:$0xf]  ;;  %v6556_v61 = vcombine.low %v1041_v42, %v1042_v53  ;;  %986 = vst.msk [vmem:[#allocation2 + $0x70] sm:$0xf] %vm921_vm1, %v751_v3  ;;  %989 = vst [vmem:[#allocation2 + $0x74] sm:$0x1] %v988_v12  ;;  %v418_v31 = vmul.f32 %v5304_v51, %v6450_v6 }
  0x32   : > { %v1043_v55 = vld [vmem:[#allocation2 + $0x10] sm:$0xf]  ;;  %v620_v27 = vrot.slane %v618_v14, 7  ;;  %v626_v30 = vshrl.u32 %v5204_v13, 16  ;;  %v629_v38 = vshll.u32 %v5204_v13, 16  ;;  %v638_v3 = vshll.u32 %v5205_v22, 16 }
  0x33   : > { %v6558_v62 = vcombine.low %v1042_v53, %v1043_v55  ;;  %v6560_v63 = vcombine.low %v1043_v55, %v1044_v56  ;;  %v1258_v8 = vshll.u32 %v6556_v61, 16  ;;  %v1262_v10 = vshrl.u32 %v6556_v61, 16  ;;  %v1063_v19 = vld [vmem:[#allocation2 + $0x60] sm:$0xf]  ;;  %v1064_v20 = vld [vmem:[#allocation2 + $0x64] sm:$0xf] }
  0x34   : > { %v1065_v24 = vld [vmem:[#allocation2 + $0x68] sm:$0xf]  ;;  %v1066_v25 = vld [vmem:[#allocation2 + $0x6c] sm:$0xf]  ;;  %v6572_v26 = vcombine.low %v1063_v19, %v1064_v20  ;;  %v623_v41 = vor.u32 %v621_v15, %v620_v27  ;;  %v624_v42 = vrot.slane %v620_v27, 4  ;;  %v628_v46 = vrot.slane %v626_v30, 7 }
  0x35   : > { %v1266_v11 = vshll.u32 %v6560_v63, 16  ;;  %v1270_v16 = vshrl.u32 %v6560_v63, 16  ;;  %v1260_v17 = vrot.slane %v1258_v8, 1  ;;  %v6577_v35 = vcombine.low %v1065_v24, %v1066_v25  ;;  %v938_v55 = vld [vmem:[#allocation2 + $0x20] sm:$0x1] }
  0x36   : > { %v1346_v39 = vshll.u32 %v6572_v26, 16  ;;  %v1350_v40 = vshrl.u32 %v6572_v26, 16  ;;  %v935_v49 = vsel %vm6485_vm5, %v623_v41, %v934_v21  ;;  %v635_v53 = vshrl.u32 %v5205_v22, 16  ;;  %v941_v13 = vld [vmem:[#allocation2 + $0x24] sm:$0xf] }
  0x37   : > { %v1268_v18 = vrot.slane %v1266_v11, 1  ;;  %v1261_v32 = vsel %vm1249_vm8, %v6473_v34, %v1260_v17  ;;  %v1264_v33 = vor.u32 %v1262_v10, %v1260_v17  ;;  %v1354_v45 = vshll.u32 %v6577_v35, 16  ;;  %936 = vst [vmem:[#allocation2 + $0x18] sm:$0xf] %v935_v49  ;;  %v6256_v10 = vld [vmem:[%s8188_s1 + $0xa8] sm:$0xff]  }
  0x38   : > { %5648 = vmatprep.mubr.bf16.mxu0 %v1261_v32  ;;  %v1358_v34 = vshrl.u32 %v6577_v35, 16  ;;  %v6587_v47 = vrot.slane %v1346_v39, 1  ;;  %v1067_v48 = vld [vmem:[#allocation2 + $0x70] sm:$0xf]  ;;  %v1068_v57 = vld [vmem:[#allocation2 + $0x74] sm:$0xf]  ;;  %v631_v58 = vor.u32 %v629_v38, %v628_v46  ;;  %v455_v8 = vadd.f32 %v6455_v9, %v417_v23 }
  0x39   : > { %v1269_v44 = vsel %vm1249_vm8, %v1264_v33, %v1268_v18  ;;  %v6591_v51 = vor.u32 %v1270_v16, %v1268_v18  ;;  %v1356_v56 = vrot.slane %v1354_v45, 1  ;;  %v633_v0 = vrot.slane %v628_v46, 4  ;;  %v6262_v23 = vld [vmem:[%s8188_s1 + $0xa0] sm:$0xff]   ;;  %v990_v45 = vld [vmem:[#allocation2 + $0x78] sm:$0xf] }
  0x3a   : > { %5649 = vmatmul.mubr.bf16.vlgmr.msra.gmra.mxu0 %v1269_v44  ;;  %v1352_v4 = vor.u32 %v1350_v40, %v6587_v47  ;;  %v6595_v5 = vcombine.low %v1067_v48, %v1068_v57  ;;  %v6597_v7 = vrot.slane %v635_v53, 7  ;;  %v456_v14 = vadd.f32 %v6455_v9, %v418_v31  ;;  %v994_v49 = vld [vmem:[#allocation2 + $0x80] sm:$0x1]  ;;  %v6268_v57 = vld [vmem:[%s8188_s1 + $0x98] sm:$0xff]  }
  0x3b   : > { %5761 = vmatpush3.bf16.msra.mxu0 %v6525_v29  ;;  %v1360_v11 = vor.u32 %v1358_v34, %v1356_v56  ;;  %v632_v29 = vsel %vm6503_vm7, %v624_v42, %v631_v58  ;;  %v939_v12 = vsel %vm6491_vm6, %v633_v0, %v938_v55  ;;  %v487_v18 = vmax.f32 %v455_v8, 0.0  ;;  %v6640_v42 = vld [vmem:[%s6439_s8 + $0x58] sm:$0xff]  }
  0x3c   : > { %5762 = vmatprep.subr.bf16.mxu0 %v6253_v43  ;;  %v6609_v15 = vsel %vm1249_vm8, %v1352_v4, %v1356_v56  ;;  %v1362_v16 = vshll.u32 %v6595_v5, 16  ;;  %937 = vst.msk [vmem:[#allocation2 + $0x1c] sm:$0xf] %vm921_vm1, %v632_v29  ;;  %v640_v17 = vor.u32 %v638_v3, %v6597_v7  ;;  %940 = vst [vmem:[#allocation2 + $0x20] sm:$0x1] %v939_v12  ;;  %v488_v19 = vmax.f32 %v456_v14, 0.0 }
  0x3d   : > { %8260 = vst [vmem:[#allocation3_spill] sm:$0xff] %v6609_v15  ;;  %5672 = vmatprep.mubr.bf16.mxu1 %v6609_v15  ;;  %v1366_v20 = vshrl.u32 %v6595_v5, 16  ;;  %v419_v21 = vmul.f32 %v5307_v52, %v6450_v6  ;;  %v404_v22 = vmul.f32 %v5276_v59, %v6450_v6  ;;  %v5219_v27 = vpack.c.bf16 %v487_v18, %v487_v18  ;;  %v6249_v52 = vld [vmem:[%s8188_s1 + $0x30] sm:$0xff]   ;;  %v6255_v4 = vld [vmem:[%s8188_s1 + $0x28] sm:$0xff]  }
  0x3e   : > { %v1364_v24 = vrot.slane %v1362_v16, 1  ;;  %v942_v25 = vsel %vm6485_vm5, %v640_v17, %v941_v13  ;;  %v641_v30 = vrot.slane %v6597_v7, 4  ;;  %v5220_v1 = vpack.c.bf16 %v488_v19, %v488_v19  ;;  %v1045_v38 = vld [vmem:[#allocation2 + $0x18] sm:$0xf] }
  0x3f   : > { %5763 = vmatpush3.bf16.msra.mxu0 %v6253_v43  ;;  %943 = vst [vmem:[#allocation2 + $0x24] sm:$0xf] %v942_v25  ;;  %v457_v59 = vadd.f32 %v6455_v9, %v419_v21  ;;  %v442_v31 = vadd.f32 %v6455_v9, %v404_v22  ;;  %v5280_v32 = vunpack.c.h.bf16 %v6534_v37  ;;  %v754_v39 = vshrl.u32 %v5219_v27, 16  ;;  %v997_v21 = vld [vmem:[#allocation2 + $0x84] sm:$0xf] }
  0x40   : > { %5764 = vmatprep.subr.bf16.mxu0 %v6256_v10  ;;  %v6635_v33 = vsel %vm1249_vm8, %v1360_v11, %v1364_v24  ;;  %v757_v40 = vshll.u32 %v5219_v27, 16  ;;  %v6637_v41 = vor.u32 %v1366_v20, %v1364_v24  ;;  %v762_v43 = vshrl.u32 %v5220_v1, 16  ;;  %v6273_v24 = vld [vmem:[%s8188_s1 + $0x90] sm:$0xff]  }
  0x41   : > { %8261 = vst [vmem:[#allocation4_spill] sm:$0xff] %v6635_v33  ;;  %5673 = vmatmul.mubr.bf16.vlgmr.msra.gmra.mxu1 %v6635_v33  ;;  %v765_v44 = vshll.u32 %v5220_v1, 16  ;;  %v489_v34 = vmax.f32 %v457_v59, 0.0  ;;  %v474_v46 = vmax.f32 %v442_v31, 0.0  ;;  %v756_v48 = vrot.slane %v754_v39, 7  ;;  %v6261_v59 = vld [vmem:[%s8188_s1 + $0x20] sm:$0xff]  }
  0x42   : > { %5697 = vmatpush3.bf16.msra.mxu1 %v6520_v28  ;;  %v405_v53 = vmul.f32 %v5279_v60, %v6450_v6  ;;  %v406_v55 = vmul.f32 %v5280_v32, %v6450_v6  ;;  %v5308_v56 = vunpack.c.h.bf16 %v6531_v36  ;;  %v764_v3 = vrot.slane %v762_v43, 7  ;;  %v945_v1 = vld [vmem:[#allocation2 + $0x2c] sm:$0x1]  ;;  %v948_v36 = vld [vmem:[#allocation2 + $0x30] sm:$0xf] }
  0x43   : > { %5765 = vmatpush3.bf16.msra.mxu0 %v6256_v10  ;;  %5698 = vmatprep.subr.bf16.mxu1 %v6249_v52  ;;  %v1046_v58 = vld [vmem:[#allocation2 + $0x1c] sm:$0xf]  ;;  %v1047_v0 = vld [vmem:[#allocation2 + $0x20] sm:$0xf]  ;;  %v5221_v28 = vpack.c.bf16 %v489_v34, %v489_v34  ;;  %v5206_v37 = vpack.c.bf16 %v474_v46, %v474_v46  ;;  %v5311_v60 = vunpack.c.l.bf16 %v6640_v42  ;;  %v759_v10 = vor.u32 %v757_v40, %v756_v48 }
  0x44   : > { %5766 = vmatprep.subr.bf16.mxu0 %v6262_v23  ;;  %v6656_v8 = vcombine.low %v1045_v38, %v1046_v58  ;;  %v760_v11 = vrot.slane %v756_v48, 4  ;;  %v443_v29 = vadd.f32 %v6455_v9, %v405_v53  ;;  %v767_v12 = vor.u32 %v765_v44, %v764_v3  ;;  %v6266_v34 = vld [vmem:[%s8188_s1 + $0x18] sm:$0xff]  }
  0x45   : > { %v769_v13 = vrot.slane %v764_v3, 4  ;;  %v771_v14 = vshrl.u32 %v5221_v28, 16  ;;  %v774_v16 = vshll.u32 %v5221_v28, 16  ;;  %v991_v20 = vsel %vm6485_vm5, %v759_v10, %v990_v45  ;;  %v5332_v10 = vld [vmem:[%s6439_s8 + $0x20] sm:$0xff]  }
  0x46   : > { %v1274_v17 = vshll.u32 %v6656_v8, 16  ;;  %5699 = vmatpush3.bf16.msra.mxu1 %v6249_v52  ;;  %v1048_v18 = vld [vmem:[#allocation2 + $0x24] sm:$0xf]  ;;  %v1278_v19 = vshrl.u32 %v6656_v8, 16  ;;  %v643_v22 = vshrl.u32 %v5206_v37, 16  ;;  %v646_v38 = vshll.u32 %v5206_v37, 16 }
  0x47   : > { %5767 = vmatpush3.bf16.msra.mxu0 %v6262_v23  ;;  %v6666_v25 = vcombine.low %v1047_v0, %v1048_v18  ;;  %v768_v23 = vsel %vm6503_vm7, %v760_v11, %v767_v12  ;;  %992 = vst [vmem:[#allocation2 + $0x78] sm:$0xf] %v991_v20  ;;  %v6670_v27 = vrot.slane %v771_v14, 7  ;;  %v995_v52 = vsel %vm6491_vm6, %v769_v13, %v994_v49 }
  0x48   : > { %5768 = vmatprep.subr.bf16.mxu0 %v6268_v57  ;;  %5700 = vmatprep.subr.bf16.mxu1 %v6255_v4  ;;  %v1276_v31 = vrot.slane %v1274_v17, 1  ;;  %993 = vst.msk [vmem:[#allocation2 + $0x7c] sm:$0xf] %vm921_vm1, %v768_v23  ;;  %996 = vst [vmem:[#allocation2 + $0x80] sm:$0x1] %v995_v52  ;;  %v645_v32 = vrot.slane %v643_v22, 7  ;;  %v444_v39 = vadd.f32 %v6455_v9, %v406_v55  ;;  %v5312_v14 = vunpack.c.h.bf16 %v6640_v42 }
  0x49   : > { %v1282_v40 = vshll.u32 %v6666_v25, 16  ;;  %v776_v43 = vor.u32 %v774_v16, %v6670_v27  ;;  %v1286_v44 = vshrl.u32 %v6666_v25, 16  ;;  %v475_v45 = vmax.f32 %v443_v29, 0.0  ;;  %v6276_v55 = vld [vmem:[%s8188_s1 + $0x88] sm:$0xff]   ;;  %v6281_v17 = vld [vmem:[%s8188_s1 + $0x80] sm:$0xff]  }
  0x4a   : > { %v1277_v46 = vsel %vm1249_vm8, %v6591_v51, %v1276_v31  ;;  %v1280_v48 = vor.u32 %v1278_v19, %v1276_v31  ;;  %5701 = vmatpush3.bf16.msra.mxu1 %v6255_v4  ;;  %v648_v49 = vor.u32 %v646_v38, %v645_v32  ;;  %v650_v53 = vrot.slane %v645_v32, 4 }
  0x4b   : > { %5769 = vmatpush3.bf16.msra.mxu0 %v6268_v57  ;;  %5652 = vmatprep.mubr.bf16.mxu0 %v1277_v46  ;;  %v1284_v58 = vrot.slane %v1282_v40, 1  ;;  %v998_v0 = vsel %vm6485_vm5, %v776_v43, %v997_v21  ;;  %v476_v3 = vmax.f32 %v444_v39, 0.0  ;;  %v5207_v57 = vpack.c.bf16 %v475_v45, %v475_v45 }
  0x4c   : > { %5770 = vmatprep.subr.bf16.mxu0 %v6273_v24  ;;  %5702 = vmatprep.subr.bf16.mxu1 %v6261_v59  ;;  %999 = vst [vmem:[#allocation2 + $0x84] sm:$0xf] %v998_v0  ;;  %v649_v51 = vsel %vm6503_vm7, %v641_v30, %v648_v49  ;;  %v946_v28 = vsel %vm6491_vm6, %v650_v53, %v945_v1  ;;  %v777_v37 = vrot.slane %v6670_v27, 4  ;;  %v5283_v21 = vunpack.c.l.bf16 %v5332_v10 }
  0x4d   : > { %v420_v4 = vmul.f32 %v5308_v56, %v6450_v6  ;;  %v6704_v11 = vsel %vm1249_vm8, %v1280_v48, %v1284_v58  ;;  %944 = vst.msk [vmem:[#allocation2 + $0x28] sm:$0xf] %vm921_vm1, %v649_v51  ;;  %947 = vst [vmem:[#allocation2 + $0x2c] sm:$0x1] %v946_v28  ;;  %v6707_v7 = vor.u32 %v1286_v44, %v1284_v58  ;;  %v652_v30 = vshrl.u32 %v5207_v57, 16 }
  0x4e   : > { %8262 = vst [vmem:[#allocation5_spill] sm:$0xff] %v6704_v11  ;;  %v5208_v29 = vpack.c.bf16 %v476_v3, %v476_v3  ;;  %5653 = vmatmul.mubr.bf16.gmra.mxu0 %v6704_v11  ;;  %v1069_v12 = vld [vmem:[#allocation2 + $0x78] sm:$0xf]  ;;  %v655_v13 = vshll.u32 %v5207_v57, 16  ;;  %v421_v16 = vmul.f32 %v5311_v60, %v6450_v6  ;;  %5703 = vmatpush3.bf16.msra.mxu1 %v6261_v59  ;;  %v5284_v22 = vunpack.c.h.bf16 %v5332_v10 }
  0x4f   : > { %5771 = vmatpush3.bf16.msra.mxu0 %v6273_v24  ;;  %v458_v56 = vadd.f32 %v6455_v9, %v420_v4  ;;  %v1070_v18 = vld [vmem:[#allocation2 + $0x7c] sm:$0xf]  ;;  %v654_v19 = vrot.slane %v652_v30, 7  ;;  %5704 = vmatprep.subr.bf16.mxu1 %v6266_v34  ;;  %v6269_v24 = vld [vmem:[%s8188_s1 + $0x10] sm:$0xff]   ;;  %v1071_v42 = vld [vmem:[#allocation2 + $0x80] sm:$0xf]  ;;  %v422_v1 = vmul.f32 %v5312_v14, %v6450_v6  ;;  %v407_v58 = vmul.f32 %v5283_v21, %v6450_v6 }
  0x50   : > { %v660_v20 = vshrl.u32 %v5208_v29, 16  ;;  %5772 = vmatprep.subr.bf16.mxu0 %v6276_v55  ;;  %v6721_v23 = vcombine.low %v1069_v12, %v1070_v18  ;;  %v663_v60 = vshll.u32 %v5208_v29, 16  ;;  %v6727_v59 = vld [vmem:[%s8188_s1 + $0x138] sm:$0xff]   ;;  %v459_v39 = vadd.f32 %v6455_v9, %v421_v16  ;;  %v1001_v30 = vld [vmem:[#allocation2 + $0x8c] sm:$0x1]  ;;  %v6280_v18 = vld [vmem:[%s8188_s1] sm:$0xff]  }
  0x51   : > { %v490_v52 = vmax.f32 %v458_v56, 0.0  ;;  %v657_v31 = vor.u32 %v655_v13, %v654_v19  ;;  %v658_v32 = vrot.slane %v654_v19, 4  ;;  %v460_v45 = vadd.f32 %v6455_v9, %v422_v1 }
  0x52   : > { %8263 = vst [vmem:[#allocation6_spill] sm:$0xff] %v6721_v23  ;;  %v6729_v38 = vrot.slane %v660_v20, 7  ;;  %v1370_v40 = vshll.u32 %v6721_v23, 16  ;;  %v1374_v43 = vshrl.u32 %v6721_v23, 16  ;;  %5705 = vmatpush3.bf16.msra.mxu1 %v6266_v34  ;;  %v491_v53 = vmax.f32 %v459_v39, 0.0 }
  0x53   : > { %5773 = vmatpush3.bf16.msra.mxu0 %v6276_v55  ;;  %v5222_v44 = vpack.c.bf16 %v490_v52, %v490_v52  ;;  %v1072_v46 = vld [vmem:[#allocation2 + $0x84] sm:$0xf]  ;;  %v949_v49 = vsel %vm6485_vm5, %v657_v31, %v948_v36  ;;  %5706 = vmatprep.subr.bf16.mxu1 %v6269_v24  ;;  %v6275_v55 = vld [vmem:[%s8188_s1 + $0x8] sm:$0xff]   ;;  %v408_v28 = vmul.f32 %v5284_v22, %v6450_v6  ;;  %v492_v12 = vmax.f32 %v460_v45, 0.0  ;;  %v952_v31 = vld [vmem:[#allocation2 + $0x38] sm:$0x1] }
  0x54   : > { %5774 = vmatprep.subr.bf16.mxu0 %v6281_v17  ;;  %v665_v48 = vor.u32 %v663_v60, %v6729_v38  ;;  %v1372_v0 = vrot.slane %v1370_v40, 1  ;;  %v6742_v3 = vcombine.low %v1071_v42, %v1072_v46  ;;  %v1049_v57 = vld [vmem:[#allocation2 + $0x28] sm:$0xf]  ;;  %v1050_v34 = vld [vmem:[#allocation2 + $0x2c] sm:$0xf]  ;;  %v445_v1 = vadd.f32 %v6455_v9, %v407_v58 }
  0x55   : > { %950 = vst [vmem:[#allocation2 + $0x30] sm:$0xf] %v949_v49  ;;  %v779_v51 = vshrl.u32 %v5222_v44, 16  ;;  %v6745_v4 = vcombine.low %v1049_v57, %v1050_v34  ;;  %v782_v29 = vshll.u32 %v5222_v44, 16  ;;  %v5224_v22 = vpack.c.bf16 %v492_v12, %v492_v12  ;;  %v1004_v44 = vld [vmem:[#allocation2 + $0x90] sm:$0xf] }
  0x56   : > { %8264 = vst [vmem:[#allocation7_spill] sm:$0xff] %v6742_v3  ;;  %v666_v10 = vsel %vm6503_vm7, %v658_v32, %v665_v48  ;;  %v6751_v13 = vsel %vm1249_vm8, %v6637_v41, %v1372_v0  ;;  %v1376_v36 = vor.u32 %v1374_v43, %v1372_v0  ;;  %v1378_v56 = vshll.u32 %v6742_v3, 16  ;;  %5707 = vmatpush3.bf16.msra.mxu1 %v6269_v24  ;;  %v6764_v24 = vld [vmem:[%s6439_s8 + $0x60] sm:$0xff]   ;;  %v6770_v32 = vld [vmem:[%s8188_s1 + $0xf8] sm:$0xff]  }
  0x57   : > { %5775 = vmatpush3.bf16.msra.mxu0 %v6281_v17  ;;  %8265 = vst [vmem:[#allocation8_spill] sm:$0xff] %v6751_v13  ;;  %951 = vst.msk [vmem:[#allocation2 + $0x34] sm:$0xf] %vm921_vm1, %v666_v10  ;;  %v781_v6 = vrot.slane %v779_v51, 7  ;;  %5676 = vmatprep.mubr.bf16.mxu1 %v6751_v13  ;;  %v1290_v14 = vshll.u32 %v6745_v4, 16  ;;  %v1294_v16 = vshrl.u32 %v6745_v4, 16  ;;  %v5223_v41 = vpack.c.bf16 %v491_v53, %v491_v53 }
  0x58   : > { %5888 = vmatprep.subr.bf16.mxu0 %v6727_v59  ;;  %v1382_v17 = vshrl.u32 %v6742_v3, 16  ;;  %5708 = vmatprep.subr.bf16.mxu1 %v6275_v55  ;;  %v1380_v19 = vrot.slane %v1378_v56, 1  ;;  %v796_v49 = vshrl.u32 %v5224_v22, 16  ;;  %v477_v53 = vmax.f32 %v445_v1, 0.0  ;;  %v1008_v0 = vld [vmem:[#allocation2 + $0x98] sm:$0x1] }
  0x59   : > { %v784_v20 = vor.u32 %v782_v29, %v781_v6  ;;  %v786_v21 = vrot.slane %v781_v6, 4  ;;  %v1292_v42 = vrot.slane %v1290_v14, 1  ;;  %v788_v60 = vshrl.u32 %v5223_v41, 16  ;;  %v5333_v14 = vld [vmem:[%s6439_s8 + $0x28] sm:$0xff]  }
  0x5a   : > { %v791_v52 = vshll.u32 %v5223_v41, 16  ;;  %v6773_v39 = vsel %vm1249_vm8, %v1376_v36, %v1380_v19  ;;  %5709 = vmatpush3.bf16.msra.mxu1 %v6275_v55  ;;  %v6787_v48 = vor.u32 %v1382_v17, %v1380_v19  ;;  %v667_v58 = vrot.slane %v6729_v38, 4  ;;  %v6802_v38 = vld [vmem:[%s8189_s2] ss:$0 sm:$0xff] }
  0x5b   : > { %8266 = vst [vmem:[#allocation9_spill] sm:$0xff] %v6773_v39  ;;  %v785_v40 = vsel %vm6503_vm7, %v777_v37, %v784_v20  ;;  %v1002_v43 = vsel %vm6491_vm6, %v786_v21, %v1001_v30  ;;  %5677 = vmatmul.mubr.bf16.gmra.mxu1 %v6773_v39  ;;  %v6784_v45 = vsel %vm1249_vm8, %v6707_v7, %v1292_v42  ;;  %v790_v27 = vrot.slane %v788_v60, 7  ;;  %v955_v21 = vld [vmem:[#allocation2 + $0x3c] sm:$0xf]  ;;  %v6813_v60 = vld [vmem:[%s8190_s3] ss:$0 sm:$0xff] }
  0x5c   : > { %8267 = vst [vmem:[#allocation10_spill] sm:$0xff] %v6784_v45  ;;  %v1051_v46 = vld [vmem:[#allocation2 + $0x30] sm:$0xf]  ;;  %1000 = vst.msk [vmem:[#allocation2 + $0x88] sm:$0xf] %vm921_vm1, %v785_v40  ;;  %5710 = vmatprep.subr.bf16.mxu1 %v6280_v18  ;;  %5656 = vmatprep.mubr.bf16.mxu0 %v6784_v45  ;;  %v799_v37 = vshll.u32 %v5224_v22, 16  ;;  %v446_v55 = vadd.f32 %v6455_v9, %v408_v28  ;;  %v5315_v10 = vunpack.c.l.bf16 %v6764_v24 }
  0x5d   : > { %1003 = vst [vmem:[#allocation2 + $0x8c] sm:$0x1] %v1002_v43  ;;  %v793_v57 = vor.u32 %v791_v52, %v790_v27  ;;  %v794_v34 = vrot.slane %v790_v27, 4  ;;  %v798_v51 = vrot.slane %v796_v49, 7  ;;  %v5209_v30 = vpack.c.bf16 %v477_v53, %v477_v53 }
  0x5e   : > { %v1052_v7 = vld [vmem:[#allocation2 + $0x34] sm:$0xf]  ;;  %v953_v12 = vsel %vm6491_vm6, %v667_v58, %v952_v31  ;;  %v478_v36 = vmax.f32 %v446_v55, 0.0  ;;  %5711 = vmatpush3.bf16.msra.mxu1 %v6280_v18  ;;  %v423_v28 = vmul.f32 %v6802_v38, %v5315_v10  ;;  %v1296_v17 = vor.u32 %v1294_v16, %v1292_v42  ;;  %v959_v10 = vld [vmem:[#allocation2 + $0x44] sm:$0x1] }
  0x5f   : > { %v6793_v29 = vcombine.low %v1051_v46, %v1052_v7  ;;  %v801_v56 = vor.u32 %v799_v37, %v798_v51  ;;  %v1005_v9 = vsel %vm6485_vm5, %v793_v57, %v1004_v44  ;;  %954 = vst [vmem:[#allocation2 + $0x38] sm:$0x1] %v953_v12  ;;  %v803_v6 = vrot.slane %v798_v51, 4  ;;  %5824 = vmatprep.subr.bf16.mxu1 %v6770_v32 }
  0x60   : > { %1006 = vst [vmem:[#allocation2 + $0x90] sm:$0xf] %v1005_v9  ;;  %v669_v18 = vshrl.u32 %v5209_v30, 16  ;;  %v672_v19 = vshll.u32 %v5209_v30, 16  ;;  %v5210_v22 = vpack.c.bf16 %v478_v36, %v478_v36  ;;  %v461_v52 = vadd.f32 %v6813_v60, %v423_v28 }
  0x61   : > { %v1298_v41 = vshll.u32 %v6793_v29, 16  ;;  %v802_v20 = vsel %vm6503_vm7, %v794_v34, %v801_v56  ;;  %v1009_v16 = vsel %vm6491_vm6, %v803_v6, %v1008_v0  ;;  %v5316_v43 = vunpack.c.h.bf16 %v6764_v24 }
  0x62   : > { %1007 = vst.msk [vmem:[#allocation2 + $0x94] sm:$0xf] %vm921_vm1, %v802_v20  ;;  %v671_v40 = vrot.slane %v669_v18, 7  ;;  %1010 = vst [vmem:[#allocation2 + $0x98] sm:$0x1] %v1009_v16  ;;  %v5287_v44 = vunpack.c.l.bf16 %v5333_v14  ;;  %v677_v27 = vshrl.u32 %v5210_v22, 16  ;;  %v5288_v12 = vunpack.c.h.bf16 %v5333_v14 }
  0x63   : > { %v1300_v42 = vrot.slane %v1298_v41, 1  ;;  %v1073_v1 = vld [vmem:[#allocation2 + $0x88] sm:$0xf]  ;;  %v680_v49 = vshll.u32 %v5210_v22, 16  ;;  %v493_v37 = vmax.f32 %v461_v52, 0.0  ;;  %v1302_v55 = vshrl.u32 %v6793_v29, 16 }
  0x64   : > { %v1074_v31 = vld [vmem:[#allocation2 + $0x8c] sm:$0xf]  ;;  %v674_v58 = vor.u32 %v672_v19, %v671_v40  ;;  %v675_v0 = vrot.slane %v671_v40, 4  ;;  %v679_v24 = vrot.slane %v677_v27, 7  ;;  %v424_v30 = vmul.f32 %v6802_v38, %v5316_v43 }
  0x65   : > { %v6820_v46 = vcombine.low %v1073_v1, %v1074_v31  ;;  %v6823_v53 = vsel %vm1249_vm8, %v1296_v17, %v1300_v42  ;;  %v5225_v34 = vpack.c.bf16 %v493_v37, %v493_v37  ;;  %v409_v36 = vmul.f32 %v6802_v38, %v5287_v44  ;;  %v1011_v1 = vld [vmem:[#allocation2 + $0x9c] sm:$0xf]  ;;  %v6848_v31 = vld [vmem:[%s6439_s8 + $0x68] sm:$0xff]  }
  0x66   : > { %8269 = vst [vmem:[#allocation12_spill] sm:$0xff] %v6823_v53  ;;  %5657 = vmatmul.mubr.bf16.gmra.mxu0 %v6823_v53  ;;  %v956_v51 = vsel %vm6485_vm5, %v674_v58, %v955_v21  ;;  %v682_v28 = vor.u32 %v680_v49, %v679_v24  ;;  %v684_v6 = vrot.slane %v679_v24, 4  ;;  %v462_v18 = vadd.f32 %v6813_v60, %v424_v30  ;;  %v6837_v21 = vld [vmem:[%s6439_s8 + $0x30] sm:$0xff]   ;;  %v6853_v43 = vld [vmem:[#allocation2 + $0x38] sm:$0xf] }
  0x67   : > { %8268 = vst [vmem:[#allocation11_spill] sm:$0xff] %v6820_v46  ;;  %v1386_v7 = vshll.u32 %v6820_v46, 16  ;;  %v1390_v57 = vshrl.u32 %v6820_v46, 16  ;;  %v1075_v9 = vld [vmem:[#allocation2 + $0x90] sm:$0xf]  ;;  %v805_v17 = vshrl.u32 %v5225_v34, 16  ;;  %v410_v19 = vmul.f32 %v6802_v38, %v5288_v12 }
  0x68   : > { %957 = vst [vmem:[#allocation2 + $0x3c] sm:$0xf] %v956_v51  ;;  %v808_v41 = vshll.u32 %v5225_v34, 16  ;;  %v447_v20 = vadd.f32 %v6813_v60, %v409_v36  ;;  %v683_v52 = vsel %vm6503_vm7, %v675_v0, %v682_v28  ;;  %v960_v16 = vsel %vm6491_vm6, %v684_v6, %v959_v10 }
  0x69   : > { %v1388_v56 = vrot.slane %v1386_v7, 1  ;;  %v1076_v22 = vld [vmem:[#allocation2 + $0x94] sm:$0xf]  ;;  %958 = vst.msk [vmem:[#allocation2 + $0x40] sm:$0xf] %vm921_vm1, %v683_v52  ;;  %v494_v44 = vmax.f32 %v462_v18, 0.0  ;;  %v448_v27 = vadd.f32 %v6813_v60, %v410_v19  ;;  %v1304_v37 = vor.u32 %v1302_v55, %v1300_v42 }
  0x6a   : > { %v6851_v40 = vcombine.low %v1075_v9, %v1076_v22  ;;  %961 = vst [vmem:[#allocation2 + $0x44] sm:$0x1] %v960_v16  ;;  %v479_v58 = vmax.f32 %v447_v20, 0.0  ;;  %v5291_v0 = vunpack.c.l.bf16 %v6837_v21  ;;  %v5319_v51 = vunpack.c.l.bf16 %v6848_v31 }
  0x6b   : > { %v6841_v14 = vsel %vm1249_vm8, %v6787_v48, %v1388_v56  ;;  %v807_v48 = vrot.slane %v805_v17, 7  ;;  %v1392_v49 = vor.u32 %v1390_v57, %v1388_v56  ;;  %v5226_v34 = vpack.c.bf16 %v494_v44, %v494_v44  ;;  %v1015_v17 = vld [vmem:[#allocation2 + $0xa4] sm:$0x1] }
  0x6c   : > { %8270 = vst [vmem:[#allocation13_spill] sm:$0xff] %v6841_v14  ;;  %5680 = vmatprep.mubr.bf16.mxu1 %v6841_v14  ;;  %8271 = vst [vmem:[#allocation14_spill] sm:$0xff] %v6851_v40  ;;  %v1394_v7 = vshll.u32 %v6851_v40, 16  ;;  %v1398_v10 = vshrl.u32 %v6851_v40, 16  ;;  %v480_v30 = vmax.f32 %v448_v27, 0.0  ;;  %v5211_v12 = vpack.c.bf16 %v479_v58, %v479_v58 }
  0x6d   : > { %v810_v24 = vor.u32 %v808_v41, %v807_v48  ;;  %v411_v36 = vmul.f32 %v6802_v38, %v5291_v0  ;;  %v813_v55 = vshrl.u32 %v5226_v34, 16  ;;  %v816_v57 = vshll.u32 %v5226_v34, 16  ;;  %v962_v27 = vld [vmem:[#allocation2 + $0x48] sm:$0xf] }
  0x6e   : > { %v1396_v9 = vrot.slane %v1394_v7, 1  ;;  %v811_v6 = vrot.slane %v807_v48, 4  ;;  %v5212_v41 = vpack.c.bf16 %v480_v30, %v480_v30  ;;  %v686_v18 = vshrl.u32 %v5211_v12, 16  ;;  %v1077_v7 = vld [vmem:[#allocation2 + $0x98] sm:$0xf] }
  0x6f   : > { %v6862_v28 = vld [vmem:[#allocation2 + $0x3c] sm:$0xf]  ;;  %v1012_v42 = vsel %vm6485_vm5, %v810_v24, %v1011_v1  ;;  %v815_v20 = vrot.slane %v813_v55, 7  ;;  %v689_v22 = vshll.u32 %v5211_v12, 16  ;;  %v449_v52 = vadd.f32 %v6813_v60, %v411_v36 }
  0x70   : > { %v6868_v56 = vcombine.low %v6853_v43, %v6862_v28  ;;  %1013 = vst [vmem:[#allocation2 + $0x9c] sm:$0xf] %v1012_v42  ;;  %v6871_v19 = vsel %vm1249_vm8, %v1392_v49, %v1396_v9  ;;  %v6876_v1 = vld [vmem:[#allocation2 + $0x40] sm:$0xf]  ;;  %v5320_v58 = vunpack.c.h.bf16 %v6848_v31  ;;  %v425_v49 = vmul.f32 %v6802_v38, %v5319_v51 }
  0x71   : > { %8272 = vst [vmem:[#allocation15_spill] sm:$0xff] %v6871_v19  ;;  %5681 = vmatmul.mubr.bf16.gmra.mxu1 %v6871_v19  ;;  %v6878_v44 = vld [vmem:[#allocation2 + $0x44] sm:$0xf]  ;;  %v818_v24 = vor.u32 %v816_v57, %v815_v20  ;;  %v820_v34 = vrot.slane %v815_v20, 4  ;;  %v688_v30 = vrot.slane %v686_v18, 7  ;;  %v694_v36 = vshrl.u32 %v5212_v41, 16 }
  0x72   : > { %v1306_v16 = vshll.u32 %v6868_v56, 16  ;;  %v1310_v48 = vshrl.u32 %v6868_v56, 16  ;;  %v6885_v0 = vcombine.low %v6876_v1, %v6878_v44  ;;  %v697_v42 = vshll.u32 %v5212_v41, 16 }
  0x73   : > { %v481_v55 = vmax.f32 %v449_v52, 0.0  ;;  %v819_v14 = vsel %vm6503_vm7, %v811_v6, %v818_v24  ;;  %v1016_v31 = vsel %vm6491_vm6, %v820_v34, %v1015_v17  ;;  %v691_v51 = vor.u32 %v689_v22, %v688_v30  ;;  %v966_v22 = vld [vmem:[#allocation2 + $0x50] sm:$0x1] }
  0x74   : > { %v1308_v12 = vrot.slane %v1306_v16, 1  ;;  %v1314_v19 = vshll.u32 %v6885_v0, 16  ;;  %1014 = vst.msk [vmem:[#allocation2 + $0xa0] sm:$0xf] %vm921_vm1, %v819_v14  ;;  %1017 = vst [vmem:[#allocation2 + $0xa4] sm:$0x1] %v1016_v31  ;;  %v1400_v34 = vor.u32 %v1398_v10, %v1396_v9 }
  0x75   : > { %v692_v57 = vrot.slane %v688_v30, 4  ;;  %v696_v41 = vrot.slane %v694_v36, 7  ;;  %v963_v6 = vsel %vm6485_vm5, %v691_v51, %v962_v27  ;;  %v5213_v17 = vpack.c.bf16 %v481_v55, %v481_v55  ;;  %v5342_v24 = vld [vmem:[%s6439_s8 + $0x70] sm:$0xff]  }
  0x76   : > { %v6893_v39 = vsel %vm1249_vm8, %v1304_v37, %v1308_v12  ;;  %v1312_v13 = vor.u32 %v1310_v48, %v1308_v12  ;;  %v6897_v18 = vrot.slane %v1314_v19, 1  ;;  %v426_v37 = vmul.f32 %v6802_v38, %v5320_v58  ;;  %964 = vst [vmem:[#allocation2 + $0x48] sm:$0xf] %v963_v6  ;;  %v969_v36 = vld [vmem:[#allocation2 + $0x54] sm:$0xf] }
  0x77   : > { %8273 = vst [vmem:[#allocation16_spill] sm:$0xff] %v6893_v39  ;;  %5660 = vmatprep.mubr.bf16.mxu0 %v6893_v39  ;;  %v1078_v20 = vld [vmem:[#allocation2 + $0x9c] sm:$0xf]  ;;  %v699_v16 = vor.u32 %v697_v42, %v696_v41  ;;  %v701_v14 = vrot.slane %v696_v41, 4  ;;  %v463_v48 = vadd.f32 %v6813_v60, %v425_v49  ;;  %v703_v30 = vshrl.u32 %v5213_v17, 16 }
  0x78   : > { %v6902_v52 = vcombine.low %v1077_v7, %v1078_v20  ;;  %v6908_v19 = vsel %vm1249_vm8, %v1312_v13, %v6897_v18  ;;  %v706_v12 = vshll.u32 %v5213_v17, 16  ;;  %v1318_v7 = vshrl.u32 %v6885_v0, 16 }
  0x79   : > { %8275 = vst [vmem:[#allocation18_spill] sm:$0xff] %v6908_v19  ;;  %5661 = vmatmul.mubr.bf16.gmra.mxu0 %v6908_v19  ;;  %v700_v58 = vsel %vm6503_vm7, %v692_v57, %v699_v16  ;;  %v967_v49 = vsel %vm6491_vm6, %v701_v14, %v966_v22  ;;  %v6918_v13 = vrot.slane %v703_v30, 7  ;;  %v464_v10 = vadd.f32 %v6813_v60, %v426_v37 }
  0x7a   : > { %8274 = vst [vmem:[#allocation17_spill] sm:$0xff] %v6902_v52  ;;  %v1402_v27 = vshll.u32 %v6902_v52, 16  ;;  %965 = vst.msk [vmem:[#allocation2 + $0x4c] sm:$0xf] %vm921_vm1, %v700_v58  ;;  %v495_v9 = vmax.f32 %v463_v48, 0.0  ;;  %v5323_v42 = vunpack.c.l.bf16 %v5342_v24  ;;  %v1406_v31 = vshrl.u32 %v6902_v52, 16 }
  0x7b   : > { %968 = vst [vmem:[#allocation2 + $0x50] sm:$0x1] %v967_v49  ;;  %v5292_v51 = vunpack.c.h.bf16 %v6837_v21  ;;  %v1079_v57 = vld [vmem:[#allocation2 + $0xa0] sm:$0xf]  ;;  %v1080_v41 = vld [vmem:[#allocation2 + $0xa4] sm:$0xf]  ;;  %v708_v20 = vor.u32 %v706_v12, %v6918_v13  ;;  %v5324_v48 = vunpack.c.h.bf16 %v5342_v24 }
  0x7c   : > { %v1404_v55 = vrot.slane %v1402_v27, 1  ;;  %v496_v6 = vmax.f32 %v464_v10, 0.0  ;;  %v5227_v17 = vpack.c.bf16 %v495_v9, %v495_v9  ;;  %v427_v22 = vmul.f32 %v6802_v38, %v5323_v42  ;;  %v6937_v49 = vld [vmem:[%s6439_s8 + $0x78] sm:$0xff]  }
  0x7d   : > { %v6928_v37 = vcombine.low %v1079_v57, %v1080_v41  ;;  %v412_v14 = vmul.f32 %v6802_v38, %v5292_v51  ;;  %v6932_v21 = vld [vmem:[#allocation2 + $0x48] sm:$0xf]  ;;  %v970_v30 = vsel %vm6485_vm5, %v708_v20, %v969_v36  ;;  %v2056_v54 = vrot.slane %v6742_v3, 1 }
  0x7e   : > { %v6926_v16 = vsel %vm1249_vm8, %v1400_v34, %v1404_v55  ;;  %v5228_v12 = vpack.c.bf16 %v496_v6, %v496_v6  ;;  %v822_v27 = vshrl.u32 %v5227_v17, 16  ;;  %v825_v58 = vshll.u32 %v5227_v17, 16  ;;  %971 = vst [vmem:[#allocation2 + $0x54] sm:$0xf] %v970_v30  ;;  %v1018_v36 = vld [vmem:[#allocation2 + $0xa8] sm:$0xf] }
  0x7f   : > { %8276 = vst [vmem:[#allocation19_spill] sm:$0xff] %v6926_v16  ;;  %8277 = vst [vmem:[#allocation20_spill] sm:$0xff] %v6928_v37  ;;  %5684 = vmatprep.mubr.bf16.mxu1 %v6926_v16  ;;  %v1408_v10 = vor.u32 %v1406_v31, %v1404_v55  ;;  %v1410_v34 = vshll.u32 %v6928_v37, 16  ;;  %v465_v9 = vadd.f32 %v6813_v60, %v427_v22  ;;  %v5327_v55 = vunpack.c.l.bf16 %v6937_v49 }
  0x80   : > { %v450_v24 = vadd.f32 %v6813_v60, %v412_v14  ;;  %v824_v42 = vrot.slane %v822_v27, 7  ;;  %v830_v51 = vshrl.u32 %v5228_v12, 16  ;;  %v833_v57 = vshll.u32 %v5228_v12, 16  ;;  %v1022_v12 = vld [vmem:[#allocation2 + $0xb0] sm:$0x1] }
  0x81   : > { %v6942_v41 = vrot.slane %v1410_v34, 1  ;;  %v6944_v16 = vld [vmem:[#allocation2 + $0x4c] sm:$0xf]  ;;  %v497_v20 = vmax.f32 %v465_v9, 0.0  ;;  %v428_v6 = vmul.f32 %v6802_v38, %v5324_v48  ;;  %v1320_v34 = vor.u32 %v1318_v7, %v6897_v18  ;;  %v1025_v7 = vld [vmem:[#allocation2 + $0xb4] sm:$0xf] }
  0x82   : > { %v6950_v31 = vcombine.low %v6932_v21, %v6944_v16  ;;  %v6952_v17 = vld [vmem:[#allocation2 + $0x50] sm:$0xf]  ;;  %v827_v22 = vor.u32 %v825_v58, %v824_v42  ;;  %v828_v14 = vrot.slane %v824_v42, 4  ;;  %v832_v30 = vrot.slane %v830_v51, 7 }
  0x83   : > { %v6956_v27 = vsel %vm1249_vm8, %v1408_v10, %v6942_v41  ;;  %v5229_v9 = vpack.c.bf16 %v497_v20, %v497_v20  ;;  %v482_v48 = vmax.f32 %v450_v24, 0.0  ;;  %v466_v24 = vadd.f32 %v6813_v60, %v428_v6 }
  0x84   : > { %8278 = vst [vmem:[#allocation21_spill] sm:$0xff] %v6956_v27  ;;  %5685 = vmatmul.mubr.bf16.gmra.mxu1 %v6956_v27  ;;  %v1322_v33 = vshll.u32 %v6950_v31, 16  ;;  %v1326_v15 = vshrl.u32 %v6950_v31, 16  ;;  %v835_v19 = vor.u32 %v833_v57, %v832_v30  ;;  %v1019_v58 = vsel %vm6485_vm5, %v827_v22, %v1018_v36 }
  0x85   : > { %1020 = vst [vmem:[#allocation2 + $0xa8] sm:$0xf] %v1019_v58  ;;  %v837_v42 = vrot.slane %v832_v30, 4  ;;  %v839_v51 = vshrl.u32 %v5229_v9, 16  ;;  %v842_v39 = vshll.u32 %v5229_v9, 16  ;;  %v5214_v10 = vpack.c.bf16 %v482_v48, %v482_v48 }
  0x86   : > { %v1324_v53 = vrot.slane %v1322_v33, 1  ;;  %v6964_v45 = vld [vmem:[#allocation2 + $0x54] sm:$0xf]  ;;  %v836_v18 = vsel %vm6503_vm7, %v828_v14, %v835_v19  ;;  %v429_v20 = vmul.f32 %v6802_v38, %v5327_v55  ;;  %v709_v19 = vrot.slane %v6918_v13, 4 }
  0x87   : > { %v6972_v57 = vcombine.low %v6952_v17, %v6964_v45  ;;  %1021 = vst.msk [vmem:[#allocation2 + $0xac] sm:$0xf] %vm921_vm1, %v836_v18  ;;  %v841_v36 = vrot.slane %v839_v51, 7  ;;  %v1023_v33 = vsel %vm6491_vm6, %v837_v42, %v1022_v12  ;;  %v711_v22 = vshrl.u32 %v5214_v10, 16  ;;  %v973_v51 = vld [vmem:[#allocation2 + $0x5c] sm:$0x1] }
  0x88   : > { %v6978_v30 = vsel %vm1249_vm8, %v1320_v34, %v1324_v53  ;;  %1024 = vst [vmem:[#allocation2 + $0xb0] sm:$0x1] %v1023_v33  ;;  %v714_v6 = vshll.u32 %v5214_v10, 16  ;;  %v498_v14 = vmax.f32 %v466_v24, 0.0  ;;  %v1328_v55 = vor.u32 %v1326_v15, %v1324_v53 }
  0x89   : > { %8279 = vst [vmem:[#allocation22_spill] sm:$0xff] %v6978_v30  ;;  %5664 = vmatprep.mubr.bf16.mxu0 %v6978_v30  ;;  %v1330_v9 = vshll.u32 %v6972_v57, 16  ;;  %v844_v48 = vor.u32 %v842_v39, %v841_v36  ;;  %v713_v58 = vrot.slane %v711_v22, 7  ;;  %v467_v12 = vadd.f32 %v6813_v60, %v429_v20 }
  0x8a   : > { %v5230_v18 = vpack.c.bf16 %v498_v14, %v498_v14  ;;  %v1414_v39 = vshrl.u32 %v6928_v37, 16  ;;  %v2058_v2 = vrot.slane %v6820_v46, 1 }
  0x8b   : > { %v1332_v42 = vrot.slane %v1330_v9, 1  ;;  %v1026_v34 = vsel %vm6485_vm5, %v844_v48, %v1025_v7  ;;  %v716_v33 = vor.u32 %v714_v6, %v713_v58  ;;  %v718_v27 = vrot.slane %v713_v58, 4  ;;  %v1029_v48 = vld [vmem:[#allocation2 + $0xbc] sm:$0x1] }
  0x8c   : > { %v6986_v13 = vld [vmem:[#allocation2 + $0xa8] sm:$0xf]  ;;  %1027 = vst [vmem:[#allocation2 + $0xb4] sm:$0xf] %v1026_v34  ;;  %v847_v10 = vshrl.u32 %v5230_v18, 16  ;;  %v850_v24 = vshll.u32 %v5230_v18, 16 }
  0x8d   : > { %8280 = vst [vmem:[#allocation23_spill] sm:$0xff] %v6986_v13  ;;  %v499_v15 = vmax.f32 %v467_v12, 0.0  ;;  %v6989_v53 = vsel %vm1249_vm8, %v1328_v55, %v1332_v42  ;;  %v717_v20 = vsel %vm6503_vm7, %v709_v19, %v716_v33  ;;  %v974_v22 = vsel %vm6491_vm6, %v718_v27, %v973_v51 }
  0x8e   : > { %8281 = vst [vmem:[#allocation24_spill] sm:$0xff] %v6989_v53  ;;  %5665 = vmatmul.mubr.bf16.gmra.mxu0 %v6989_v53  ;;  %v6997_v7 = vld [vmem:[#allocation2 + $0xac] sm:$0xf]  ;;  %972 = vst.msk [vmem:[#allocation2 + $0x58] sm:$0xf] %vm921_vm1, %v717_v20  ;;  %v845_v6 = vrot.slane %v841_v36, 4  ;;  %v1416_v27 = vor.u32 %v1414_v39, %v6942_v41 }
  0x8f   : > { %975 = vst [vmem:[#allocation2 + $0x5c] sm:$0x1] %v974_v22  ;;  %v849_v14 = vrot.slane %v847_v10, 7  ;;  %v5231_v9 = vpack.c.bf16 %v499_v15, %v499_v15  ;;  %v7002_v55 = vcombine.low %v6986_v13, %v6997_v7  ;;  %v7006_v34 = vld [vmem:[#allocation2 + $0xb0] sm:$0xf]  ;;  %v1334_v22 = vshrl.u32 %v6972_v57, 16 }
  0x90   : > { %v1032_v41 = vld [vmem:[#allocation2 + $0xc0] sm:$0xf] }
  0x91   : > { %8282 = vst [vmem:[#allocation25_spill] sm:$0xff] %v7002_v55  ;;  %v852_v58 = vor.u32 %v850_v24, %v849_v14  ;;  %v854_v19 = vrot.slane %v849_v14, 4  ;;  %v856_v18 = vshrl.u32 %v5231_v9, 16  ;;  %v859_v12 = vshll.u32 %v5231_v9, 16 }
  0x92   : > { %v1418_v51 = vshll.u32 %v7002_v55, 16  ;;  %v1422_v33 = vshrl.u32 %v7002_v55, 16 }
  0x93   : > { %v853_v36 = vsel %vm6503_vm7, %v845_v6, %v852_v58  ;;  %v1030_v10 = vsel %vm6491_vm6, %v854_v19, %v1029_v48  ;;  %v7013_v15 = vrot.slane %v856_v18, 7  ;;  %v7015_v20 = vld [vmem:[#allocation2 + $0xb4] sm:$0xf] }
  0x94   : > { %v1420_v24 = vrot.slane %v1418_v51, 1  ;;  %1028 = vst.msk [vmem:[#allocation2 + $0xb8] sm:$0xf] %vm921_vm1, %v853_v36  ;;  %1031 = vst [vmem:[#allocation2 + $0xbc] sm:$0x1] %v1030_v10  ;;  %v7020_v39 = vcombine.low %v7006_v34, %v7015_v20 }
  0x95   : > { %v861_v6 = vor.u32 %v859_v12, %v7013_v15  ;;  %v7027_v9 = vld [vmem:[#allocation2 + $0x58] sm:$0xf] }
  0x96   : > { %8283 = vst [vmem:[#allocation26_spill] sm:$0xff] %v7020_v39  ;;  %v7025_v14 = vsel %vm1249_vm8, %v1416_v27, %v1420_v24  ;;  %v7029_v48 = vld [vmem:[#allocation2 + $0x5c] sm:$0xf]  ;;  %v1424_v58 = vor.u32 %v1422_v33, %v1420_v24  ;;  %v1426_v19 = vshll.u32 %v7020_v39, 16  ;;  %v1336_v27 = vor.u32 %v1334_v22, %v1332_v42 }
  0x97   : > { %8284 = vst [vmem:[#allocation27_spill] sm:$0xff] %v7025_v14  ;;  %5688 = vmatprep.mubr.bf16.mxu1 %v7025_v14  ;;  %v7035_v18 = vcombine.low %v7027_v9, %v7029_v48  ;;  %v1033_v51 = vsel %vm6485_vm5, %v861_v6, %v1032_v41  ;;  %v1430_v53 = vshrl.u32 %v7020_v39, 16  ;;  %v6337_v14 = vld [vmem:[#allocation2] sm:$0xff]   ;;  %v2026_v24 = vrot.slane %v6556_v61, 1 }
  0x98   : > { %1034 = vst [vmem:[#allocation2 + $0xc0] sm:$0xf] %v1033_v51  ;;  %v1428_v12 = vrot.slane %v1426_v19, 1  ;;  %v2025_v33 = vrot.slane %v6337_v14, 1 }
  0x99   : > { %v1338_v36 = vshll.u32 %v7035_v18, 16  ;;  %v1342_v10 = vshrl.u32 %v7035_v18, 16 }
  0x9a   : > { %v7044_v30 = vsel %vm1249_vm8, %v1424_v58, %v1428_v12  ;;  %v1432_v6 = vor.u32 %v1430_v53, %v1428_v12  ;;  %v2027_v51 = vsel %vm2024_vm9, %v2025_v33, %v2026_v24  ;;  %v2028_v53 = vrot.slane %v6560_v63, 1 }
  0x9b   : > { %8285 = vst [vmem:[#allocation28_spill] sm:$0xff] %v7044_v30  ;;  %v1340_v11 = vrot.slane %v1338_v36, 1  ;;  %v7046_v13 = vld [vmem:[#allocation2 + $0xb8] sm:$0xf]  ;;  %v7048_v50 = vld [vmem:[#allocation2 + $0xbc] sm:$0xf]  ;;  %5689 = vmatmul.mubr.bf16.gmra.mxu1 %v7044_v30 }
  0x9c   : > { %v7053_v42 = vcombine.low %v7046_v13, %v7048_v50  ;;  %v2030_v33 = vrot.slane %v6656_v8, 1 }
  0x9d   : > { %v7056_v41 = vsel %vm1249_vm8, %v1336_v27, %v1340_v11  ;;  %v1344_v22 = vor.u32 %v1342_v10, %v1340_v11 }
  0x9e   : > { %8286 = vst [vmem:[#allocation29_spill] sm:$0xff] %v7053_v42  ;;  %8287 = vst [vmem:[#allocation30_spill] sm:$0xff] %v7056_v41  ;;  %5668 = vmatprep.mubr.bf16.mxu0 %v7056_v41  ;;  %v1434_v58 = vshll.u32 %v7053_v42, 16  ;;  %v1438_v19 = vshrl.u32 %v7053_v42, 16 }
  0x9f   : > { %v7064_v36 = vsel %vm1249_vm8, %v1344_v22, %v6587_v47  ;;  %v7066_v30 = vld [vmem:[#allocation2 + $0xc0] sm:$0xf] }
  0xa0   : > { %8288 = vst [vmem:[#allocation31_spill] sm:$0xff] %v7064_v36  ;;  %5669 = vmatmul.mubr.bf16.gmra.mxu0 %v7064_v36  ;;  %v1436_v27 = vrot.slane %v1434_v58, 1  ;;  %v7071_v11 = vcombine.low %v7066_v30, %v7066_v30  ;;  %v2029_v58 = vsel %vm2024_vm9, %v2026_v24, %v2028_v53  ;;  %v2032_v24 = vrot.slane %v6666_v25, 1 }
  0xa1   : > { %5776 = vmatprep.mubr.bf16.mxu0 %v2027_v51  ;;  %v2031_v51 = vsel %vm2024_vm9, %v2028_v53, %v2030_v33  ;;  %v2034_v53 = vrot.slane %v6745_v4, 1 }
  0xa2   : > { %v7075_v12 = vsel %vm1249_vm8, %v1432_v6, %v1436_v27  ;;  %v7077_v10 = vor.u32 %v1438_v19, %v1436_v27  ;;  %v1442_v47 = vshll.u32 %v7071_v11, 16  ;;  %v6285_v6 = vld [vmem:[%s8188_s1 + $0x130] sm:$0xff]   ;;  %v7091_v19 = vcombine.low %v6862_v28, %v6876_v1  ;;  %v6287_v27 = vld [vmem:[%s8188_s1 + $0x128] sm:$0xff]  }
  0xa3   : > { %8289 = vst [vmem:[#allocation32_spill] sm:$0xff] %v7075_v12  ;;  %5692 = vmatprep.mubr.bf16.mxu1 %v7075_v12  ;;  %v7104_v28 = vcombine.low %v6878_v44, %v6932_v21  ;;  %v7111_v1 = vcombine.low %v6944_v16, %v6952_v17  ;;  %v7122_v44 = vcombine.low %v6964_v45, %v7027_v9  ;;  %v2036_v16 = vrot.slane %v6793_v29, 1  ;;  %v6293_v9 = vld [vmem:[%s8188_s1 + $0x110] sm:$0xff]   ;;  %v1036_v12 = vld [vmem:[#allocation2 + $0xc8] sm:$0x1] }
  0xa4   : > { %8290 = vst [vmem:[#allocation33_spill] sm:$0xff] %v7077_v10  ;;  %v1444_v22 = vrot.slane %v1442_v47, 1  ;;  %v6289_v47 = vld [vmem:[%s8188_s1 + $0x120] sm:$0xff]   ;;  %v2038_v21 = vrot.slane %v6868_v56, 1 }
  0xa5   : > { %v7140_v45 = vsel %vm2024_vm9, %v2034_v53, %v2036_v16 }
  0xa6   : > { %v1445_v36 = vsel %vm1249_vm8, %v7077_v10, %v1444_v22  ;;  %8293 = vst [vmem:[#allocation36_spill] sm:$0xff] %v7140_v45  ;;  %v7144_v17 = vsel %vm2024_vm9, %v2036_v16, %v2038_v21  ;;  %v2040_v22 = vrot.slane %v6885_v0, 1  ;;  %v2046_v16 = vrot.slane %v7035_v18, 1 }
  0xa7   : > { %5693 = vmatmul.mubr.bf16.gmra.mxu1 %v1445_v36  ;;  %v7115_v36 = vsel %vm2024_vm9, %v2032_v24, %v2034_v53  ;;  %8294 = vst [vmem:[#allocation37_spill] sm:$0xff] %v7144_v17  ;;  %v6297_v53 = vld [vmem:[%s8188_s1 + $0x100] sm:$0xff]   ;;  %v2764_v10 = vshrl.u32 %v6558_v62, 16 }
  0xa8   : > { %5712 = vmatprep.mubr.bf16.mxu1 %v6337_v14  ;;  %5777 = vmatmul.mubr.bf16.vlgmr.msra.gmra.mxu0 %v2029_v58  ;;  %v6284_v14 = vld [vmem:[%s8188_s1 + $0xf0] sm:$0xff]   ;;  %8292 = vst [vmem:[#allocation35_spill] sm:$0xff] %v7115_v36  ;;  %v2042_v58 = vrot.slane %v6950_v31, 1 }
  0xa9   : > { %5889 = vmatpush3.bf16.msra.mxu0 %v6727_v59  ;;  %5780 = vmatprep.mubr.bf16.mxu0 %v2031_v51  ;;  %v7107_v59 = vsel %vm2024_vm9, %v2030_v33, %v2032_v24  ;;  %v6290_v33 = vld [vmem:[%s8188_s1 + $0xd8] sm:$0xff]   ;;  %v6295_v51 = vld [vmem:[%s8188_s1 + $0x108] sm:$0xff]   ;;  %v7164_v24 = vsel %vm2024_vm9, %v2038_v21, %v2040_v22 }
  0xaa   : > { %5890 = vmatprep.subr.bf16.mxu0 %v6285_v6  ;;  %8291 = vst [vmem:[#allocation34_spill] sm:$0xff] %v7107_v59  ;;  %8295 = vst [vmem:[#allocation38_spill] sm:$0xff] %v7164_v24  ;;  %v7185_v21 = vld [vmem:[%s8188_s1 + $0x1b8] sm:$0xff]  }
  0xad   : > { %5891 = vmatpush3.bf16.msra.mxu0 %v6285_v6  ;;  %v6292_v6 = vld [vmem:[%s8188_s1 + $0xd0] sm:$0xff]  }
  0xae   : > { %5892 = vmatprep.subr.bf16.mxu0 %v6287_v27 }
  0xaf   : > { %5713 = vmatmul.mubr.bf16.vlgmr.msra.gmra.mxu1 %v6556_v61  ;;  %v6286_v61 = vld [vmem:[%s8188_s1 + $0xe8] sm:$0xff]  }
  0xb0   : > { %5825 = vmatpush3.bf16.msra.mxu1 %v6770_v32  ;;  %5716 = vmatprep.mubr.bf16.mxu1 %v6560_v63  ;;  %v6291_v32 = vld [vmem:[%s8188_s1 + $0x118] sm:$0xff]   ;;  %v6288_v63 = vld [vmem:[%s8188_s1 + $0xe0] sm:$0xff]  }
  0xb1   : > { %5781 = vmatmul.mubr.bf16.gmra.mxu0 %v7107_v59  ;;  %5826 = vmatprep.subr.bf16.mxu1 %v6284_v14  ;;  %v6348_v59 = vld [vmem:[#allocation2 + $0x64] sm:$0xf] }
  0xb2   : > { %5784 = vmatprep.mubr.bf16.mxu0 %v7115_v36  ;;  %5893 = vmatpush3.bf16.msra.mxu0 %v6287_v27  ;;  %v7168_v27 = vsel %vm2024_vm9, %v2040_v22, %v2042_v58  ;;  %v7205_v22 = vld [vmem:[%s8188_s1 + $0x178] sm:$0xff]  }
  0xb3   : > { %5894 = vmatprep.subr.bf16.mxu0 %v6289_v47  ;;  %8296 = vst [vmem:[#allocation39_spill] sm:$0xff] %v7168_v27 }
  0xb4   : > { %5827 = vmatpush3.bf16.msra.mxu1 %v6284_v14  ;;  %v6294_v14 = vld [vmem:[%s8188_s1 + $0xc8] sm:$0xff]  }
  0xb5   : > { %5828 = vmatprep.subr.bf16.mxu1 %v6286_v61 }
  0xb6   : > { %5895 = vmatpush3.bf16.msra.mxu0 %v6289_v47  ;;  %v5328_v47 = vunpack.c.h.bf16 %v6937_v49 }
  0xb7   : > { %5717 = vmatmul.mubr.bf16.gmra.mxu1 %v6656_v8  ;;  %5896 = vmatprep.subr.bf16.mxu0 %v6291_v32 }
  0xb8   : > { %5720 = vmatprep.mubr.bf16.mxu1 %v6666_v25  ;;  %5829 = vmatpush3.bf16.msra.mxu1 %v6286_v61  ;;  %v2044_v61 = vrot.slane %v6972_v57, 1 }
  0xb9   : > { %5785 = vmatmul.mubr.bf16.gmra.mxu0 %v7140_v45  ;;  %5830 = vmatprep.subr.bf16.mxu1 %v6288_v63 }
  0xba   : > { %5788 = vmatprep.mubr.bf16.mxu0 %v7144_v17  ;;  %5897 = vmatpush3.bf16.msra.mxu0 %v6291_v32  ;;  %v6296_v32 = vld [vmem:[%s8188_s1 + $0xc0] sm:$0xff]   ;;  %v7191_v49 = vsel %vm2024_vm9, %v2042_v58, %v2044_v61 }
  0xbb   : > { %5898 = vmatprep.subr.bf16.mxu0 %v6293_v9  ;;  %8297 = vst [vmem:[#allocation40_spill] sm:$0xff] %v7191_v49 }
  0xbc   : > { %5831 = vmatpush3.bf16.msra.mxu1 %v6288_v63  ;;  %v430_v63 = vmul.f32 %v6802_v38, %v5328_v47  ;;  %v2048_v38 = vrot.slane %v6572_v26, 1  ;;  %v7220_v47 = vcombine.low %v6997_v7, %v7006_v34 }
  0xbd   : > { %5832 = vmatprep.subr.bf16.mxu1 %v6290_v33 }
  0xbe   : > { %5899 = vmatpush3.bf16.msra.mxu0 %v6293_v9  ;;  %v7196_v9 = vsel %vm2024_vm9, %v2044_v61, %v2046_v16  ;;  %v862_v61 = vrot.slane %v7013_v15, 4  ;;  %v7234_v15 = vcombine.low %v7015_v20, %v7046_v13  ;;  %v7254_v20 = vsel %vm2024_vm9, %v2056_v54, %v2058_v2 }
  0xbf   : > { %5721 = vmatmul.mubr.bf16.gmra.mxu1 %v6745_v4  ;;  %5900 = vmatprep.subr.bf16.mxu0 %v6295_v51  ;;  %8298 = vst [vmem:[#allocation41_spill] sm:$0xff] %v7196_v9  ;;  %8304 = vst [vmem:[#allocation47_spill] sm:$0xff] %v7254_v20 }
  0xc0   : > { %5724 = vmatprep.mubr.bf16.mxu1 %v6793_v29  ;;  %5833 = vmatpush3.bf16.msra.mxu1 %v6290_v33  ;;  %v468_v33 = vadd.f32 %v6813_v60, %v430_v63  ;;  %v7212_v60 = vsel %vm2024_vm9, %v2046_v16, %v2048_v38  ;;  %v2052_v16 = vrot.slane %v6595_v5, 1 }
  0xc1   : > { %5789 = vmatmul.mubr.bf16.gmra.mxu0 %v7164_v24  ;;  %5834 = vmatprep.subr.bf16.mxu1 %v6292_v6  ;;  %8299 = vst [vmem:[#allocation42_spill] sm:$0xff] %v7212_v60  ;;  %v6309_v24 = vld [vmem:[%s8188_s1 + $0x190] sm:$0xff]  }
  0xc2   : > { %5792 = vmatprep.mubr.bf16.mxu0 %v7168_v27  ;;  %5901 = vmatpush3.bf16.msra.mxu0 %v6295_v51  ;;  %v500_v58 = vmax.f32 %v468_v33, 0.0  ;;  %v2050_v51 = vrot.slane %v6577_v35, 1 }
  0xc3   : > { %5902 = vmatprep.subr.bf16.mxu0 %v6297_v53 }
  0xc4   : > { %5835 = vmatpush3.bf16.msra.mxu1 %v6292_v6  ;;  %v5232_v6 = vpack.c.bf16 %v500_v58, %v500_v58 }
  0xc5   : > { %5836 = vmatprep.subr.bf16.mxu1 %v6294_v14 }
  0xc6   : > { %5903 = vmatpush3.bf16.msra.mxu0 %v6297_v53  ;;  %v864_v53 = vshrl.u32 %v5232_v6, 16  ;;  %v867_v63 = vshll.u32 %v5232_v6, 16  ;;  %v7238_v6 = vsel %vm2024_vm9, %v2050_v51, %v2052_v16 }
  0xc7   : > { %5725 = vmatmul.mubr.bf16.gmra.mxu1 %v6868_v56  ;;  %6016 = vmatprep.subr.bf16.mxu0 %v7185_v21  ;;  %8301 = vst [vmem:[#allocation44_spill] sm:$0xff] %v7238_v6 }
  0xc8   : > { %5728 = vmatprep.mubr.bf16.mxu1 %v6885_v0  ;;  %5837 = vmatpush3.bf16.msra.mxu1 %v6294_v14  ;;  %v7216_v14 = vsel %vm2024_vm9, %v2048_v38, %v2050_v51  ;;  %v2054_v38 = vrot.slane %v6721_v23, 1  ;;  %v2062_v51 = vrot.slane %v6902_v52, 1 }
  0xc9   : > { %5793 = vmatmul.mubr.bf16.gmra.mxu0 %v7191_v49  ;;  %5838 = vmatprep.subr.bf16.mxu1 %v6296_v32  ;;  %8300 = vst [vmem:[#allocation43_spill] sm:$0xff] %v7216_v14 }
  0xca   : > { %5796 = vmatprep.mubr.bf16.mxu0 %v7196_v9  ;;  %v7250_v13 = vsel %vm2024_vm9, %v2054_v38, %v2056_v54  ;;  %v6339_v54 = vld [vmem:[#allocation2 + $0x18] sm:$0xf] }
  0xcb   : > { %8303 = vst [vmem:[#allocation46_spill] sm:$0xff] %v7250_v13 }
  0xcc   : > { %5839 = vmatpush3.bf16.msra.mxu1 %v6296_v32  ;;  %v866_v32 = vrot.slane %v864_v53, 7  ;;  %v7242_v53 = vsel %vm2024_vm9, %v2052_v16, %v2054_v38  ;;  %v2066_v16 = vrot.slane %v7002_v55, 1  ;;  %v2068_v38 = vrot.slane %v7020_v39, 1 }
  0xcd   : > { %5952 = vmatprep.subr.bf16.mxu1 %v7205_v22  ;;  %8302 = vst [vmem:[#allocation45_spill] sm:$0xff] %v7242_v53 }
  0xce   : > { %v869_v33 = vor.u32 %v867_v63, %v866_v32  ;;  %v871_v58 = vrot.slane %v866_v32, 4  ;;  %v2064_v63 = vrot.slane %v6928_v37, 1 }
  0xcf   : > { %5729 = vmatmul.mubr.bf16.gmra.mxu1 %v6950_v31 }
  0xd0   : > { %5732 = vmatprep.mubr.bf16.mxu1 %v6972_v57  ;;  %v870_v7 = vsel %vm6503_vm7, %v862_v61, %v869_v33  ;;  %v1037_v34 = vsel %vm6491_vm6, %v871_v58, %v1036_v12  ;;  %v2060_v12 = vrot.slane %v6851_v40, 1  ;;  %v7274_v33 = vsel %vm2024_vm9, %v2062_v51, %v2064_v63 }
  0xd1   : > { %5797 = vmatmul.mubr.bf16.gmra.mxu0 %v7212_v60  ;;  %1035 = vst.msk [vmem:[#allocation2 + $0xc4] sm:$0xf] %vm921_vm1, %v870_v7  ;;  %1038 = vst [vmem:[#allocation2 + $0xc8] sm:$0x1] %v1037_v34  ;;  %v7278_v58 = vsel %vm2024_vm9, %v2064_v63, %v2066_v16  ;;  %v7285_v7 = vrot.slane %v7053_v42, 1 }
  0xd2   : > { %5800 = vmatprep.mubr.bf16.mxu0 %v7216_v14  ;;  %v7262_v61 = vsel %vm2024_vm9, %v2058_v2, %v2060_v12  ;;  %v7266_v32 = vsel %vm2024_vm9, %v2060_v12, %v2062_v51  ;;  %8307 = vst [vmem:[#allocation50_spill] sm:$0xff] %v7274_v33  ;;  %8308 = vst [vmem:[#allocation51_spill] sm:$0xff] %v7278_v58  ;;  %v6338_v34 = vld [vmem:[#allocation2 + $0x14] sm:$0xf]  ;;  %v2766_v12 = vshll.u32 %v6558_v62, 16 }
  0xd3   : > { %8305 = vst [vmem:[#allocation48_spill] sm:$0xff] %v7262_v61  ;;  %8306 = vst [vmem:[#allocation49_spill] sm:$0xff] %v7266_v32  ;;  %v7287_v2 = vcombine.low %v6338_v34, %v6339_v54  ;;  %v7291_v51 = vsel %vm2024_vm9, %v2066_v16, %v2068_v38  ;;  %v7296_v63 = vsel %vm2024_vm9, %v2068_v38, %v7285_v7  ;;  %v6340_v34 = vld [vmem:[#allocation2 + $0x1c] sm:$0xf]  ;;  %v6341_v54 = vld [vmem:[#allocation2 + $0x20] sm:$0xf] }
  0xd4   : > { %8309 = vst [vmem:[#allocation52_spill] sm:$0xff] %v7285_v7  ;;  %8310 = vst [vmem:[#allocation53_spill] sm:$0xff] %v7291_v51 }
  0xd5   : > { %8311 = vst [vmem:[#allocation54_spill] sm:$0xff] %v7296_v63  ;;  %v2775_v14 = vshrl.u32 %v7287_v2, 16 }
  0xd7   : > { %5733 = vmatmul.mubr.bf16.gmra.mxu1 %v7035_v18 }
  0xd8   : > { %5736 = vmatprep.mubr.bf16.mxu1 %v6572_v26 }
  0xd9   : > { %5801 = vmatmul.mubr.bf16.gmra.mxu0 %v7238_v6 }
  0xda   : > { %5804 = vmatprep.mubr.bf16.mxu0 %v7242_v53  ;;  %v6343_v53 = vld [vmem:[#allocation2 + $0x28] sm:$0xf] }
  0xdf   : > { %5737 = vmatmul.mubr.bf16.gmra.mxu1 %v6577_v35 }
  0xe0   : > { %5740 = vmatprep.mubr.bf16.mxu1 %v6595_v5 }
  0xe1   : > { %5805 = vmatmul.mubr.bf16.gmra.mxu0 %v7250_v13  ;;  %v6342_v13 = vld [vmem:[#allocation2 + $0x24] sm:$0xf] }
  0xe2   : > { %5808 = vmatprep.mubr.bf16.mxu0 %v7254_v20 }
  0xe7   : > { %5741 = vmatmul.mubr.bf16.gmra.mxu1 %v6721_v23 }
  0xe8   : > { %5744 = vmatprep.mubr.bf16.mxu1 %v6742_v3 }
  0xe9   : > { %5809 = vmatmul.mubr.bf16.gmra.mxu0 %v7262_v61  ;;  %v2072_v61 = vrot.slane %v7071_v11, 1 }
  0xea   : > { %5812 = vmatprep.mubr.bf16.mxu0 %v7266_v32  ;;  %v7302_v32 = vcombine.low %v6340_v34, %v6341_v54 }
  0xec   : > { %v2779_v6 = vshll.u32 %v7302_v32, 16  ;;  %v2783_v54 = vshrl.u32 %v7302_v32, 16 }
  0xef   : > { %5745 = vmatmul.mubr.bf16.gmra.mxu1 %v6820_v46 }
  0xf0   : > { %5748 = vmatprep.mubr.bf16.mxu1 %v6851_v40 }
  0xf1   : > { %5813 = vmatmul.mubr.bf16.gmra.mxu0 %v7274_v33  ;;  %v2771_v33 = vshll.u32 %v7287_v2, 16 }
  0xf2   : > { %5816 = vmatprep.mubr.bf16.mxu0 %v7278_v58  ;;  %v2768_v58 = vrot.slane %v2766_v12, 1  ;;  %v7306_v12 = vcombine.low %v6342_v13, %v6343_v53  ;;  %v6344_v53 = vld [vmem:[#allocation2 + $0x2c] sm:$0xf]  ;;  %v6345_v13 = vld [vmem:[#allocation2 + $0x30] sm:$0xf] }
  0xf3   : > { %v2773_v20 = vrot.slane %v2771_v33, 1  ;;  %v7317_v33 = vcombine.low %v6344_v53, %v6345_v13  ;;  %v6303_v13 = vld [vmem:[%s8188_s1 + $0x1a8] sm:$0xff]  }
  0xf4   : > { %v2769_v38 = vor.u32 %v2768_v58, %v2764_v10  ;;  %v2787_v11 = vshll.u32 %v7306_v12, 16  ;;  %v2781_v10 = vrot.slane %v2779_v6, 1  ;;  %v2791_v6 = vshrl.u32 %v7306_v12, 16 }
  0xf5   : > { %v2777_v58 = vor.u32 %v2775_v14, %v2773_v20  ;;  %v2795_v60 = vshll.u32 %v7317_v33, 16 }
  0xf6   : > { %v2774_v34 = vsel %vm1249_vm8, %v2769_v38, %v2773_v20  ;;  %v6301_v20 = vld [vmem:[%s8188_s1 + $0x1b0] sm:$0xff]  }
  0xf7   : > { %5749 = vmatmul.mubr.bf16.gmra.mxu1 %v6902_v52 }
  0xf8   : > { %5752 = vmatprep.mubr.bf16.mxu1 %v6928_v37 }
  0xf9   : > { %5817 = vmatmul.mubr.bf16.gmra.mxu0 %v7291_v51  ;;  %v2073_v51 = vsel %vm2024_vm9, %v7285_v7, %v2072_v61  ;;  %v6346_v7 = vld [vmem:[#allocation2 + $0x34] sm:$0xf] }
  0xfa   : > { %v5650_v16 = vpop.f32.mrf.mxu0  ;;  %5820 = vmatprep.mubr.bf16.mxu0 %v7296_v63  ;;  %v2789_v63 = vrot.slane %v2787_v11, 1  ;;  %v7320_v38 = vcombine.low %v6346_v7, %v6853_v43 }
  0xfb   : > { %v2785_v16 = vor.u32 %v2783_v54, %v2781_v10  ;;  %v2797_v54 = vrot.slane %v2795_v60, 1 }
  0xfc   : > { %v7322_v41 = vpop.f32.mrf.mxu0  ;;  %v2803_v43 = vshll.u32 %v7320_v38, 16  ;;  %v2793_v11 = vor.u32 %v2791_v6, %v2789_v63  ;;  %v2819_v6 = vshll.u32 %v7104_v28, 16 }
  0xfd   : > { %v2790_v14 = vsel %vm1249_vm8, %v2785_v16, %v2789_v63  ;;  %v2811_v16 = vshll.u32 %v7091_v19, 16 }
  0xfe   : > { %v7334_v7 = vpop.f32.mrf.mxu0  ;;  %v2805_v53 = vrot.slane %v2803_v43, 1  ;;  %v2798_v60 = vsel %vm1249_vm8, %v2793_v11, %v2797_v54  ;;  %v2821_v49 = vrot.slane %v2819_v6, 1  ;;  %v2835_v6 = vshll.u32 %v7122_v44, 16 }
  0xff   : > { %5753 = vmatmul.mubr.bf16.gmra.mxu1 %v7002_v55  ;;  %v2813_v43 = vrot.slane %v2811_v16, 1 }
 0x100   : > { %5756 = vmatprep.mubr.bf16.mxu1 %v7020_v39  ;;  %v2837_v36 = vrot.slane %v2835_v6, 1  ;;  %v6313_v6 = vld [vmem:[%s8188_s1 + $0x180] sm:$0xff]  }
 0x101   : > { %5821 = vmatmul.mubr.bf16.gmra.mxu0 %v2073_v51  ;;  %v5674_v61 = vpop.f32.mrf.mxu1  ;;  %v2782_v51 = vsel %vm1249_vm8, %v2777_v58, %v2781_v10  ;;  %v7341_v58 = vpop.f32.mrf.mxu0 }
 0x102   : > { %5904 = vmatprep.mubr.bf16.mxu0 %v2774_v34  ;;  %v2799_v34 = vshrl.u32 %v7317_v33, 16  ;;  %v6300_v61 = vld [vmem:[%s8188_s1 + $0x170] sm:$0xff]  }
 0x104   : > { %v2801_v10 = vor.u32 %v2799_v34, %v2797_v54  ;;  %v6302_v54 = vld [vmem:[%s8188_s1 + $0x168] sm:$0xff]  }
 0x106   : > { %v2806_v63 = vsel %vm1249_vm8, %v2801_v10, %v2805_v53 }
 0x107   : > { %5757 = vmatmul.mubr.bf16.gmra.mxu1 %v7053_v42 }
 0x108   : > { %5840 = vmatprep.mubr.bf16.mxu1 %v6558_v62 }
 0x109   : > { %5905 = vmatmul.mubr.bf16.vlgmr.msra.gmra.mxu0 %v2782_v51  ;;  %v2815_v51 = vshrl.u32 %v7091_v19, 16 }
 0x10a   : > { %6017 = vmatpush3.bf16.msra.mxu0 %v7185_v21  ;;  %5908 = vmatprep.mubr.bf16.mxu0 %v2790_v14  ;;  %v2807_v21 = vshrl.u32 %v7320_v38, 16  ;;  %v6305_v14 = vld [vmem:[%s8188_s1 + $0x1a0] sm:$0xff]  }
 0x10b   : > { %6018 = vmatprep.subr.bf16.mxu0 %v6301_v20  ;;  %v2817_v9 = vor.u32 %v2815_v51, %v2813_v43 }
 0x10c   : > { %v2809_v10 = vor.u32 %v2807_v21, %v2805_v53  ;;  %v6304_v53 = vld [vmem:[%s8188_s1 + $0x160] sm:$0xff]  }
 0x10d   : > { %v2822_v51 = vsel %vm1249_vm8, %v2817_v9, %v2821_v49  ;;  %v6306_v9 = vld [vmem:[%s8188_s1 + $0x158] sm:$0xff]  }
 0x10e   : > { %6019 = vmatpush3.bf16.msra.mxu0 %v6301_v20  ;;  %v7356_v34 = vpop.f32.mrf.mxu0  ;;  %v7360_v20 = vpop.f32.mrf.mxu1  ;;  %v2814_v21 = vsel %vm1249_vm8, %v2809_v10, %v2813_v43  ;;  %v6347_v10 = vld [vmem:[#allocation2 + $0x60] sm:$0xf] }
 0x10f   : > { %5841 = vmatmul.mubr.bf16.vlgmr.msra.gmra.mxu1 %v7287_v2  ;;  %6020 = vmatprep.subr.bf16.mxu0 %v6303_v13  ;;  %8312 = vst [vmem:[#allocation55_spill] sm:$0xff] %v7360_v20 }
 0x110   : > { %5953 = vmatpush3.bf16.msra.mxu1 %v7205_v22  ;;  %5844 = vmatprep.mubr.bf16.mxu1 %v7302_v32  ;;  %v7365_v11 = vpop.f32.mrf.mxu0  ;;  %v6307_v22 = vld [vmem:[%s8188_s1 + $0x198] sm:$0xff]   ;;  %v7372_v16 = vpop.f32.mrf.mxu1 }
 0x111   : > { %5909 = vmatmul.mubr.bf16.gmra.mxu0 %v2798_v60  ;;  %5954 = vmatprep.subr.bf16.mxu1 %v6300_v61  ;;  %8313 = vst [vmem:[#allocation56_spill] sm:$0xff] %v7372_v16  ;;  %v2827_v60 = vshll.u32 %v7111_v1, 16  ;;  %v6356_v16 = vld [vmem:[#allocation2 + $0x84] sm:$0xf] }
 0x112   : > { %5912 = vmatprep.mubr.bf16.mxu0 %v2806_v63  ;;  %6021 = vmatpush3.bf16.msra.mxu0 %v6303_v13  ;;  %v7370_v27 = vpop.f32.mrf.mxu0  ;;  %v2823_v63 = vshrl.u32 %v7104_v28, 16  ;;  %v7388_v43 = vpop.f32.mrf.mxu1 }
 0x113   : > { %6022 = vmatprep.subr.bf16.mxu0 %v6305_v14  ;;  %8314 = vst [vmem:[#allocation57_spill] sm:$0xff] %v7388_v43 }
 0x114   : > { %5955 = vmatpush3.bf16.msra.mxu1 %v6300_v61  ;;  %v1570_v13 = vpop.f32.mrf.mxu0  ;;  %v2831_v61 = vshrl.u32 %v7111_v1, 16  ;;  %v2825_v17 = vor.u32 %v2823_v63, %v2821_v49  ;;  %v6308_v49 = vld [vmem:[%s8188_s1 + $0x150] sm:$0xff]  }
 0x115   : > { %5956 = vmatprep.subr.bf16.mxu1 %v6302_v54  ;;  %v7391_v13 = vcombine.low %v7029_v48, %v6347_v10  ;;  %v6311_v48 = vld [vmem:[%s8188_s1 + $0x188] sm:$0xff]   ;;  %v6351_v10 = vld [vmem:[#allocation2 + $0x70] sm:$0xf] }
 0x116   : > { %6023 = vmatpush3.bf16.msra.mxu0 %v6305_v14  ;;  %v2829_v14 = vrot.slane %v2827_v60, 1 }
 0x117   : > { %5845 = vmatmul.mubr.bf16.gmra.mxu1 %v7306_v12  ;;  %6024 = vmatprep.subr.bf16.mxu0 %v6307_v22 }
 0x118   : > { %5848 = vmatprep.mubr.bf16.mxu1 %v7317_v33  ;;  %5957 = vmatpush3.bf16.msra.mxu1 %v6302_v54  ;;  %v2833_v45 = vor.u32 %v2831_v61, %v2829_v14  ;;  %v6349_v54 = vld [vmem:[#allocation2 + $0x68] sm:$0xf] }
 0x119   : > { %5913 = vmatmul.mubr.bf16.gmra.mxu0 %v2814_v21  ;;  %5958 = vmatprep.subr.bf16.mxu1 %v6304_v53  ;;  %v7396_v42 = vcombine.low %v6348_v59, %v6349_v54  ;;  %v2843_v21 = vshll.u32 %v7391_v13, 16  ;;  %v2839_v59 = vshrl.u32 %v7122_v44, 16 }
 0x11a   : > { %5916 = vmatprep.mubr.bf16.mxu0 %v2822_v51  ;;  %6025 = vmatpush3.bf16.msra.mxu0 %v6307_v22  ;;  %v2830_v22 = vsel %vm1249_vm8, %v2825_v17, %v2829_v14  ;;  %v2847_v51 = vshrl.u32 %v7391_v13, 16  ;;  %v6350_v14 = vld [vmem:[#allocation2 + $0x6c] sm:$0xf] }
 0x11b   : > { %6026 = vmatprep.subr.bf16.mxu0 %v6309_v24  ;;  %v7401_v60 = vpop.f32.mrf.mxu1  ;;  %v2851_v61 = vshll.u32 %v7396_v42, 16  ;;  %v7421_v54 = vcombine.low %v6350_v14, %v6351_v10  ;;  %v2841_v39 = vor.u32 %v2839_v59, %v2837_v36 }
 0x11c   : > { %5959 = vmatpush3.bf16.msra.mxu1 %v6304_v53  ;;  %8315 = vst [vmem:[#allocation58_spill] sm:$0xff] %v7401_v60  ;;  %v2838_v53 = vsel %vm1249_vm8, %v2833_v45, %v2837_v36  ;;  %v6310_v45 = vld [vmem:[%s8188_s1 + $0x148] sm:$0xff]   ;;  %v6353_v60 = vld [vmem:[#allocation2 + $0x78] sm:$0xf] }
 0x11d   : > { %5960 = vmatprep.subr.bf16.mxu1 %v6306_v9  ;;  %v7409_v63 = vpop.f32.mrf.mxu1  ;;  %v2853_v37 = vrot.slane %v2851_v61, 1  ;;  %v6354_v61 = vld [vmem:[#allocation2 + $0x7c] sm:$0xf] }
 0x11e   : > { %8316 = vst [vmem:[#allocation59_spill] sm:$0xff] %v7409_v63  ;;  %6027 = vmatpush3.bf16.msra.mxu0 %v6309_v24  ;;  %v2845_v24 = vrot.slane %v2843_v21, 1  ;;  %v7431_v21 = vld [vmem:[%s8188_s1 + $0x238] sm:$0xff]  }
 0x11f   : > { %5849 = vmatmul.mubr.bf16.gmra.mxu1 %v7320_v38  ;;  %6028 = vmatprep.subr.bf16.mxu0 %v6311_v48  ;;  %v7419_v17 = vpop.f32.mrf.mxu1 }
 0x120   : > { %5852 = vmatprep.mubr.bf16.mxu1 %v7091_v19  ;;  %5961 = vmatpush3.bf16.msra.mxu1 %v6306_v9  ;;  %8317 = vst [vmem:[#allocation60_spill] sm:$0xff] %v7419_v17  ;;  %v2849_v63 = vor.u32 %v2847_v51, %v2845_v24  ;;  %v6352_v9 = vld [vmem:[#allocation2 + $0x74] sm:$0xf]  ;;  %v2846_v36 = vsel %vm1249_vm8, %v2841_v39, %v2845_v24  ;;  %v6355_v24 = vld [vmem:[#allocation2 + $0x80] sm:$0xf] }
 0x121   : > { %5917 = vmatmul.mubr.bf16.gmra.mxu0 %v2830_v22  ;;  %5962 = vmatprep.subr.bf16.mxu1 %v6308_v49  ;;  %v1658_v55 = vpop.f32.mrf.mxu1  ;;  %v7426_v17 = vcombine.low %v6352_v9, %v6353_v60  ;;  %v2859_v22 = vshll.u32 %v7421_v54, 16  ;;  %v7447_v14 = vcombine.low %v6354_v61, %v6355_v24 }
 0x122   : > { %5920 = vmatprep.mubr.bf16.mxu0 %v2838_v53  ;;  %6029 = vmatpush3.bf16.msra.mxu0 %v6311_v48  ;;  %v6312_v55 = vld [vmem:[%s8188_s1 + $0x140] sm:$0xff]   ;;  %v2855_v48 = vshrl.u32 %v7396_v42, 16  ;;  %v2854_v59 = vsel %vm1249_vm8, %v2849_v63, %v2853_v37  ;;  %v7452_v63 = vld [vmem:[%s8188_s1 + $0x1f8] sm:$0xff]  }
 0x123   : > { %6030 = vmatprep.subr.bf16.mxu0 %v6313_v6  ;;  %v2867_v53 = vshll.u32 %v7426_v17, 16  ;;  %v2861_v39 = vrot.slane %v2859_v22, 1  ;;  %8318 = vst [vmem:[#allocation61_spill] sm:$0xff] %v7447_v14  ;;  %v2875_v22 = vshll.u32 %v7447_v14, 16  ;;  %v2871_v61 = vshrl.u32 %v7426_v17, 16 }
 0x124   : > { %5963 = vmatpush3.bf16.msra.mxu1 %v6308_v49  ;;  %v2863_v49 = vshrl.u32 %v7421_v54, 16 }
 0x125   : > { %5964 = vmatprep.subr.bf16.mxu1 %v6310_v45  ;;  %v2869_v43 = vrot.slane %v2867_v53, 1 }
 0x126   : > { %v7439_v60 = vpop.f32.mrf.mxu0  ;;  %6031 = vmatpush3.bf16.msra.mxu0 %v6313_v6  ;;  %v2857_v6 = vor.u32 %v2855_v48, %v2853_v37  ;;  %v2865_v9 = vor.u32 %v2863_v49, %v2861_v39  ;;  %v2879_v48 = vshrl.u32 %v7447_v14, 16  ;;  %v6359_v49 = vld [vmem:[#allocation2 + $0x90] sm:$0xf] }
 0x127   : > { %5853 = vmatmul.mubr.bf16.gmra.mxu1 %v7104_v28  ;;  %6144 = vmatprep.subr.bf16.mxu0 %v7431_v21 }
 0x128   : > { %5856 = vmatprep.mubr.bf16.mxu1 %v7111_v1  ;;  %v1582_v51 = vpop.f32.mrf.mxu0  ;;  %5965 = vmatpush3.bf16.msra.mxu1 %v6310_v45  ;;  %v2870_v37 = vsel %vm1249_vm8, %v2865_v9, %v2869_v43  ;;  %v6361_v9 = vld [vmem:[#allocation2 + $0x98] sm:$0xf] }
 0x129   : > { %5921 = vmatmul.mubr.bf16.gmra.mxu0 %v2846_v36  ;;  %5966 = vmatprep.subr.bf16.mxu1 %v6312_v55  ;;  %v6357_v51 = vld [vmem:[#allocation2 + $0x88] sm:$0xf]  ;;  %v2862_v36 = vsel %vm1249_vm8, %v2857_v6, %v2861_v39  ;;  %v2873_v39 = vor.u32 %v2871_v61, %v2869_v43 }
 0x12a   : > { %5924 = vmatprep.mubr.bf16.mxu0 %v2854_v59  ;;  %v5659_v10 = vpop.f32.mrf.mxu0  ;;  %v7454_v45 = vcombine.low %v6356_v16, %v6357_v51  ;;  %v2877_v16 = vrot.slane %v2875_v22, 1  ;;  %v6360_v51 = vld [vmem:[#allocation2 + $0x94] sm:$0xf] }
 0x12b   : > { %v7469_v52 = vcombine.low %v6360_v51, %v6361_v9  ;;  %v6364_v9 = vld [vmem:[#allocation2 + $0xa4] sm:$0xf] }
 0x12c   : > { %8319 = vst [vmem:[#allocation62_spill] sm:$0xff] %v7454_v45  ;;  %5967 = vmatpush3.bf16.msra.mxu1 %v6312_v55  ;;  %v2883_v59 = vshll.u32 %v7454_v45, 16  ;;  %v6358_v55 = vld [vmem:[#allocation2 + $0x8c] sm:$0xf]  ;;  %v2881_v6 = vor.u32 %v2879_v48, %v2877_v16  ;;  %v2887_v22 = vshrl.u32 %v7454_v45, 16 }
 0x12d   : > { %6080 = vmatprep.subr.bf16.mxu1 %v7452_v63  ;;  %v7465_v53 = vcombine.low %v6358_v55, %v6359_v49  ;;  %8322 = vst [vmem:[#allocation65_spill] sm:$0xff] %v7469_v52  ;;  %v7474_v55 = vpop.f32.mrf.mxu0  ;;  %v6362_v48 = vld [vmem:[#allocation2 + $0x9c] sm:$0xf] }
 0x12e   : > { %v2885_v10 = vrot.slane %v2883_v59, 1  ;;  %v6363_v59 = vld [vmem:[#allocation2 + $0xa0] sm:$0xf] }
 0x12f   : > { %5857 = vmatmul.mubr.bf16.gmra.mxu1 %v7122_v44  ;;  %8320 = vst [vmem:[#allocation63_spill] sm:$0xff] %v7465_v53  ;;  %v2891_v40 = vshll.u32 %v7465_v53, 16  ;;  %v2895_v61 = vshrl.u32 %v7465_v53, 16 }
 0x130   : > { %5860 = vmatprep.mubr.bf16.mxu1 %v7391_v13  ;;  %v2886_v43 = vsel %vm1249_vm8, %v2881_v6, %v2885_v10 }
 0x131   : > { %5925 = vmatmul.mubr.bf16.gmra.mxu0 %v2862_v36  ;;  %v7467_v24 = vpop.f32.mrf.mxu1  ;;  %v2878_v36 = vsel %vm1249_vm8, %v2873_v39, %v2877_v16  ;;  %v7481_v16 = vcombine.low %v6362_v48, %v6363_v59  ;;  %v2923_v59 = vshll.u32 %v7220_v47, 16 }
 0x132   : > { %5928 = vmatprep.mubr.bf16.mxu0 %v2870_v37  ;;  %8321 = vst [vmem:[#allocation64_spill] sm:$0xff] %v7467_v24  ;;  %v2899_v37 = vshll.u32 %v7469_v52, 16  ;;  %v8324_v24 = vld [vmem:[#allocation23_spill] sm:$0xff] }
 0x133   : > { %v1670_v20 = vpop.f32.mrf.mxu1  ;;  %8323 = vst [vmem:[#allocation66_spill] sm:$0xff] %v7481_v16  ;;  %v7484_v6 = vcombine.low %v6364_v9, %v8324_v24  ;;  %v2907_v3 = vshll.u32 %v7481_v16, 16  ;;  %v2927_v9 = vshrl.u32 %v7220_v47, 16 }
 0x134   : > { %v2893_v20 = vrot.slane %v2891_v40, 1  ;;  %v2901_v51 = vrot.slane %v2899_v37, 1 }
 0x135   : > { %v5683_v46 = vpop.f32.mrf.mxu1 }
 0x136   : > { %v2889_v46 = vor.u32 %v2887_v22, %v2885_v10  ;;  %v2897_v39 = vor.u32 %v2895_v61, %v2893_v20  ;;  %v2915_v10 = vshll.u32 %v7484_v6, 16  ;;  %v2909_v22 = vrot.slane %v2907_v3, 1 }
 0x137   : > { %5861 = vmatmul.mubr.bf16.gmra.mxu1 %v7396_v42  ;;  %v7494_v24 = vpop.f32.mrf.mxu1 }
 0x138   : > { %5864 = vmatprep.mubr.bf16.mxu1 %v7421_v54  ;;  %v2894_v23 = vsel %vm1249_vm8, %v2889_v46, %v2893_v20  ;;  %v2902_v40 = vsel %vm1249_vm8, %v2897_v39, %v2901_v51  ;;  %8325 = vst [vmem:[#allocation23_spill] sm:$0xff] %v7494_v24  ;;  %v2917_v20 = vrot.slane %v2915_v10, 1  ;;  %v2919_v39 = vshrl.u32 %v7484_v6, 16 }
 0x139   : > { %5929 = vmatmul.mubr.bf16.gmra.mxu0 %v2878_v36  ;;  %v5662_v49 = vpop.f32.mrf.mxu0  ;;  %v2903_v36 = vshrl.u32 %v7469_v52, 16  ;;  %v2925_v10 = vrot.slane %v2923_v59, 1 }
 0x13a   : > { %5932 = vmatprep.mubr.bf16.mxu0 %v2886_v43  ;;  %v2911_v43 = vshrl.u32 %v7481_v16, 16 }
 0x13b   : > { %v2905_v61 = vor.u32 %v2903_v36, %v2901_v51  ;;  %v7496_v48 = vpop.f32.mrf.mxu0  ;;  %v2931_v51 = vshll.u32 %v7234_v15, 16  ;;  %v7508_v36 = vld [vmem:[#allocation2 + $0xc4] sm:$0xf] }
 0x13c   : > { %v2913_v37 = vor.u32 %v2911_v43, %v2909_v22  ;;  %8326 = vst [vmem:[#allocation67_spill] sm:$0xff] %v7508_v36  ;;  %v7514_v43 = vcombine.low %v7048_v50, %v7066_v30 }
 0x13d   : > { %v2910_v49 = vsel %vm1249_vm8, %v2905_v61, %v2909_v22  ;;  %v7503_v3 = vpop.f32.mrf.mxu0  ;;  %v2921_v22 = vor.u32 %v2919_v39, %v2917_v20 }
 0x13f   : > { %5865 = vmatmul.mubr.bf16.gmra.mxu1 %v7426_v17  ;;  %v7516_v61 = vpop.f32.mrf.mxu0 }
 0x140   : > { %5868 = vmatprep.mubr.bf16.mxu1 %v7447_v14  ;;  %v2935_v14 = vshrl.u32 %v7234_v15, 16 }
 0x141   : > { %5933 = vmatmul.mubr.bf16.gmra.mxu0 %v2894_v23  ;;  %v2918_v23 = vsel %vm1249_vm8, %v2913_v37, %v2917_v20  ;;  %v2929_v37 = vor.u32 %v2927_v9, %v2925_v10  ;;  %v2943_v20 = vshrl.u32 %v7514_v43, 16 }
 0x142   : > { %5936 = vmatprep.mubr.bf16.mxu0 %v2902_v40  ;;  %v7510_v40 = vld [vmem:[#allocation2 + $0xc8] sm:$0xf] }
 0x143   : > { %8327 = vst [vmem:[#allocation68_spill] sm:$0xff] %v7510_v40  ;;  %v7520_v24 = vcombine.low %v7508_v36, %v7510_v40 }
 0x144   : > { %v5686_v46 = vpop.f32.mrf.mxu1 }
 0x145   : > { %v2933_v46 = vrot.slane %v2931_v51, 1  ;;  %v2947_v59 = vshll.u32 %v7520_v24, 16 }
 0x146   : > { %v7534_v39 = vpop.f32.mrf.mxu1 }
 0x147   : > { %5869 = vmatmul.mubr.bf16.gmra.mxu1 %v7454_v45  ;;  %v2926_v45 = vsel %vm1249_vm8, %v2921_v22, %v2925_v10  ;;  %v2934_v30 = vsel %vm1249_vm8, %v2929_v37, %v2933_v46  ;;  %v2937_v51 = vor.u32 %v2935_v14, %v2933_v46 }
 0x148   : > { %5872 = vmatprep.mubr.bf16.mxu1 %v7465_v53  ;;  %v2939_v53 = vshll.u32 %v7514_v43, 16  ;;  %v7544_v40 = vpop.f32.mrf.mxu1 }
 0x149   : > { %5937 = vmatmul.mubr.bf16.gmra.mxu0 %v2910_v49  ;;  %v7531_v49 = vld [vmem:[#allocation2 + $0xcc] sm:$0xf] }
 0x14a   : > { %5940 = vmatprep.mubr.bf16.mxu0 %v2918_v23  ;;  %v2941_v23 = vrot.slane %v2939_v53, 1  ;;  %v7540_v10 = vcombine.low %v7531_v49, %v7531_v49  ;;  %v7551_v46 = vpop.f32.mrf.mxu1 }
 0x14c   : > { %8328 = vst [vmem:[#allocation69_spill] sm:$0xff] %v7540_v10  ;;  %v2945_v37 = vor.u32 %v2943_v20, %v2941_v23  ;;  %v2955_v53 = vshll.u32 %v7540_v10, 16 }
 0x14e   : > { %v7527_v50 = vpop.f32.mrf.mxu0  ;;  %v2957_v20 = vrot.slane %v2955_v53, 1 }
 0x14f   : > { %5873 = vmatmul.mubr.bf16.gmra.mxu1 %v7469_v52  ;;  %v2949_v52 = vrot.slane %v2947_v59, 1 }
 0x150   : > { %5876 = vmatprep.mubr.bf16.mxu1 %v7481_v16  ;;  %v7536_v9 = vpop.f32.mrf.mxu0  ;;  %v2942_v16 = vsel %vm1249_vm8, %v2937_v51, %v2941_v23 }
 0x151   : > { %5941 = vmatmul.mubr.bf16.gmra.mxu0 %v2926_v45  ;;  %v2951_v45 = vshrl.u32 %v7520_v24, 16  ;;  %v2950_v14 = vsel %vm1249_vm8, %v2945_v37, %v2949_v52 }
 0x152   : > { %5944 = vmatprep.mubr.bf16.mxu0 %v2934_v30  ;;  %v7542_v22 = vpop.f32.mrf.mxu0 }
 0x153   : > { %v2953_v30 = vor.u32 %v2951_v45, %v2949_v52  ;;  %v3289_v52 = vrot.slane %v7287_v2, 1  ;;  %v3291_v2 = vrot.slane %v7302_v32, 1 }
 0x154   : > { %v1614_v36 = vpop.f32.mrf.mxu0 }
 0x155   : > { %v2958_v23 = vsel %vm1249_vm8, %v2953_v30, %v2957_v20 }
 0x157   : > { %5877 = vmatmul.mubr.bf16.gmra.mxu1 %v7484_v6 }
 0x158   : > { %5880 = vmatprep.mubr.bf16.mxu1 %v7220_v47 }
 0x159   : > { %5945 = vmatmul.mubr.bf16.gmra.mxu0 %v2942_v16  ;;  %v3288_v16 = vrot.slane %v6558_v62, 1 }
 0x15a   : > { %5948 = vmatprep.mubr.bf16.mxu0 %v2950_v14 }
 0x15b   : > { %v7554_v59 = vpop.f32.mrf.mxu1  ;;  %v3290_v14 = vsel %vm2024_vm9, %v3288_v16, %v3289_v52 }
 0x15d   : > { %v7556_v36 = vpop.f32.mrf.mxu1 }
 0x15f   : > { %5881 = vmatmul.mubr.bf16.gmra.mxu1 %v7234_v15  ;;  %v7560_v51 = vpop.f32.mrf.mxu1 }
 0x160   : > { %8329 = vst [vmem:[#allocation70_spill] sm:$0xff] %v7560_v51  ;;  %v7562_v10 = vpop.f32.mrf.mxu0  ;;  %5884 = vmatprep.mubr.bf16.mxu1 %v7514_v43 }
 0x161   : > { %5949 = vmatmul.mubr.bf16.gmra.mxu0 %v2958_v23  ;;  %v1702_v37 = vpop.f32.mrf.mxu1  ;;  %v6319_v23 = vld [vmem:[%s8188_s1 + $0x230] sm:$0xff]  }
 0x162   : > { %v1626_v45 = vpop.f32.mrf.mxu0  ;;  %6032 = vmatprep.mubr.bf16.mxu0 %v6656_v8  ;;  %v3293_v8 = vrot.slane %v7306_v12, 1  ;;  %v6318_v12 = vld [vmem:[%s8188_s1 + $0x1f0] sm:$0xff]  }
 0x164   : > { %v5671_v53 = vpop.f32.mrf.mxu0 }
 0x165   : > { %v6321_v53 = vld [vmem:[%s8188_s1 + $0x228] sm:$0xff]  }
 0x166   : > { %v7569_v30 = vpop.f32.mrf.mxu0 }
 0x167   : > { %v7571_v20 = vpop.f32.mrf.mxu1  ;;  %5885 = vmatmul.mubr.bf16.gmra.mxu1 %v7520_v24 }
 0x168   : > { %8330 = vst [vmem:[#allocation71_spill] sm:$0xff] %v7571_v20  ;;  %v5778_v62 = vpop.f32.mrf.mxu0  ;;  %5968 = vmatprep.mubr.bf16.mxu1 %v3290_v14  ;;  %v3292_v14 = vsel %vm2024_vm9, %v3289_v52, %v3291_v2  ;;  %v3295_v52 = vrot.slane %v7317_v33, 1  ;;  %v6325_v33 = vld [vmem:[%s8188_s1 + $0x218] sm:$0xff]  }
 0x169   : > { %v1714_v37 = vpop.f32.mrf.mxu1  ;;  %6033 = vmatmul.mubr.bf16.vlgmr.msra.gmra.mxu0 %v6666_v25  ;;  %v3294_v25 = vsel %vm2024_vm9, %v3291_v2, %v3293_v8 }
 0x16a   : > { %v2180_v16 = vpop.f32.mrf.mxu0  ;;  %6145 = vmatpush3.bf16.msra.mxu0 %v7431_v21  ;;  %6036 = vmatprep.mubr.bf16.mxu0 %v6745_v4  ;;  %v6323_v37 = vld [vmem:[%s8188_s1 + $0x220] sm:$0xff]  }
 0x16b   : > { %v5695_v45 = vpop.f32.mrf.mxu1  ;;  %6146 = vmatprep.subr.bf16.mxu0 %v6319_v23 }
 0x16c   : > { %v5779_v62 = vpop.f32.mrf.mxu0 }
 0x16d   : > { %v7586_v32 = vpop.f32.mrf.mxu1 }
 0x16e   : > { %8331 = vst [vmem:[#allocation72_spill] sm:$0xff] %v7586_v32  ;;  %v2183_v21 = vpop.f32.mrf.mxu0  ;;  %6147 = vmatpush3.bf16.msra.mxu0 %v6319_v23  ;;  %v3297_v32 = vrot.slane %v7320_v38, 1  ;;  %v6320_v23 = vld [vmem:[%s8188_s1 + $0x1e8] sm:$0xff]   ;;  %v3296_v38 = vsel %vm2024_vm9, %v3293_v8, %v3295_v52 }
 0x16f   : > { %v5714_v4 = vpop.f32.mrf.mxu1  ;;  %5969 = vmatmul.mubr.bf16.vlgmr.msra.gmra.mxu1 %v3292_v14  ;;  %6148 = vmatprep.subr.bf16.mxu0 %v6321_v53 }
 0x170   : > { %6081 = vmatpush3.bf16.msra.mxu1 %v7452_v63  ;;  %5972 = vmatprep.mubr.bf16.mxu1 %v3294_v25 }
 0x171   : > { %v1833_v45 = vpop.f32.mrf.mxu1  ;;  %v5782_v2 = vpop.f32.mrf.mxu0  ;;  %6037 = vmatmul.mubr.bf16.gmra.mxu0 %v6793_v29  ;;  %6082 = vmatprep.subr.bf16.mxu1 %v6318_v12 }
 0x172   : > { %v1834_v14 = vadd.f32 %v1833_v45, %v7322_v41  ;;  %6040 = vmatprep.mubr.bf16.mxu0 %v6868_v56  ;;  %6149 = vmatpush3.bf16.msra.mxu0 %v6321_v53  ;;  %v3298_v41 = vsel %vm2024_vm9, %v3295_v52, %v3297_v32  ;;  %v6322_v56 = vld [vmem:[%s8188_s1 + $0x1e0] sm:$0xff]   ;;  %v3299_v52 = vrot.slane %v7091_v19, 1 }
 0x173   : > { %v5715_v63 = vpop.f32.mrf.mxu1  ;;  %v2195_v25 = vpop.f32.mrf.mxu0  ;;  %6150 = vmatprep.subr.bf16.mxu0 %v6323_v37 }
 0x174   : > { %v1844_v29 = vadd.f32 %v5715_v63, %v7334_v7  ;;  %6083 = vmatpush3.bf16.msra.mxu1 %v6318_v12  ;;  %v7609_v4 = vadd.f32 %v2180_v16, %v1834_v14  ;;  %v6327_v16 = vld [vmem:[%s8188_s1 + $0x210] sm:$0xff]  }
 0x175   : > { %v1836_v20 = vpop.f32.mrf.mxu1  ;;  %v5783_v51 = vpop.f32.mrf.mxu0  ;;  %6084 = vmatprep.subr.bf16.mxu1 %v6320_v23 }
 0x176   : > { %v1837_v53 = vadd.f32 %v1836_v20, %v7341_v58  ;;  %6151 = vmatpush3.bf16.msra.mxu0 %v6323_v37  ;;  %v7616_v45 = vadd.f32 %v5779_v62, %v1844_v29  ;;  %v3301_v62 = vrot.slane %v7104_v28, 1  ;;  %v6324_v37 = vld [vmem:[%s8188_s1 + $0x1d8] sm:$0xff]  }
 0x177   : > { %v5718_v7 = vpop.f32.mrf.mxu1  ;;  %5973 = vmatmul.mubr.bf16.gmra.mxu1 %v3296_v38  ;;  %v2198_v8 = vpop.f32.mrf.mxu0  ;;  %6152 = vmatprep.subr.bf16.mxu0 %v6325_v33 }
 0x178   : > { %v1856_v12 = vadd.f32 %v5718_v7, %v7356_v34  ;;  %5976 = vmatprep.mubr.bf16.mxu1 %v3298_v41  ;;  %6085 = vmatpush3.bf16.msra.mxu1 %v6320_v23  ;;  %v7623_v14 = vadd.f32 %v2183_v21, %v1837_v53  ;;  %v3300_v23 = vsel %vm2024_vm9, %v3297_v32, %v3299_v52  ;;  %v6331_v32 = vld [vmem:[%s8188_s1 + $0x200] sm:$0xff]   ;;  %v6328_v8 = vld [vmem:[%s8188_s1 + $0x1c8] sm:$0xff]  }
 0x179   : > { %v1848_v58 = vpop.f32.mrf.mxu1  ;;  %v5786_v20 = vpop.f32.mrf.mxu0  ;;  %6041 = vmatmul.mubr.bf16.gmra.mxu0 %v6885_v0  ;;  %6086 = vmatprep.subr.bf16.mxu1 %v6322_v56  ;;  %v6329_v0 = vld [vmem:[%s8188_s1 + $0x208] sm:$0xff]  }
 0x17a   : > { %v1849_v63 = vadd.f32 %v1848_v58, %v7365_v11  ;;  %6044 = vmatprep.mubr.bf16.mxu0 %v6950_v31  ;;  %6153 = vmatpush3.bf16.msra.mxu0 %v6325_v33  ;;  %v7632_v19 = vadd.f32 %v5782_v2, %v1856_v12  ;;  %v3302_v31 = vsel %vm2024_vm9, %v3299_v52, %v3301_v62  ;;  %v6326_v2 = vld [vmem:[%s8188_s1 + $0x1d0] sm:$0xff]   ;;  %v6330_v58 = vld [vmem:[%s8188_s1 + $0x1c0] sm:$0xff]  }
 0x17b   : > { %v5719_v34 = vpop.f32.mrf.mxu1  ;;  %v2210_v21 = vpop.f32.mrf.mxu0  ;;  %6154 = vmatprep.subr.bf16.mxu0 %v6327_v16 }
 0x17c   : > { %v1859_v28 = vadd.f32 %v5719_v34, %v7370_v27  ;;  %6087 = vmatpush3.bf16.msra.mxu1 %v6322_v56  ;;  %v7639_v29 = vadd.f32 %v2195_v25, %v1849_v63  ;;  %v3303_v56 = vrot.slane %v7111_v1, 1  ;;  %v3307_v63 = vrot.slane %v7391_v13, 1 }
 0x17d   : > { %v1851_v11 = vpop.f32.mrf.mxu1  ;;  %v5787_v38 = vpop.f32.mrf.mxu0  ;;  %6088 = vmatprep.subr.bf16.mxu1 %v6324_v37 }
 0x17e   : > { %6155 = vmatpush3.bf16.msra.mxu0 %v6327_v16  ;;  %v7645_v33 = vadd.f32 %v5783_v51, %v1859_v28  ;;  %v3305_v51 = vrot.slane %v7122_v44, 1  ;;  %v3304_v1 = vsel %vm2024_vm9, %v3301_v62, %v3303_v56 }
 0x17f   : > { %v5722_v41 = vpop.f32.mrf.mxu1  ;;  %5977 = vmatmul.mubr.bf16.gmra.mxu1 %v3300_v23  ;;  %v2212_v27 = vpop.f32.mrf.mxu0  ;;  %6156 = vmatprep.subr.bf16.mxu0 %v6329_v0 }
 0x180   : > { %v1871_v25 = vadd.f32 %v5722_v41, %v7439_v60  ;;  %5980 = vmatprep.mubr.bf16.mxu1 %v3302_v31  ;;  %6089 = vmatpush3.bf16.msra.mxu1 %v6324_v37  ;;  %v3306_v44 = vsel %vm2024_vm9, %v3303_v56, %v3305_v51  ;;  %v3308_v13 = vsel %vm2024_vm9, %v3305_v51, %v3307_v63 }
 0x181   : > { %v1863_v53 = vpop.f32.mrf.mxu1  ;;  %v5790_v7 = vpop.f32.mrf.mxu0  ;;  %6045 = vmatmul.mubr.bf16.gmra.mxu0 %v6972_v57  ;;  %6090 = vmatprep.subr.bf16.mxu1 %v6326_v2 }
 0x182   : > { %6048 = vmatprep.mubr.bf16.mxu0 %v7035_v18  ;;  %6157 = vmatpush3.bf16.msra.mxu0 %v6329_v0  ;;  %v7658_v16 = vadd.f32 %v5786_v20, %v1871_v25  ;;  %v3309_v0 = vrot.slane %v7396_v42, 1  ;;  %v3313_v53 = vrot.slane %v7426_v17, 1  ;;  %v8332_v7 = vld [vmem:[#allocation6_spill] sm:$0xff]  ;;  %v8333_v17 = vld [vmem:[#allocation67_spill] sm:$0xff] }
 0x183   : > { %v5723_v60 = vpop.f32.mrf.mxu1  ;;  %v2224_v12 = vpop.f32.mrf.mxu0  ;;  %6158 = vmatprep.subr.bf16.mxu0 %v6331_v32 }
 0x184   : > { %6091 = vmatpush3.bf16.msra.mxu1 %v6326_v2 }
 0x185   : > { %v1865_v52 = vpop.f32.mrf.mxu1  ;;  %v5791_v57 = vpop.f32.mrf.mxu0  ;;  %6092 = vmatprep.subr.bf16.mxu1 %v6328_v8 }
 0x186   : > { %v1866_v18 = vadd.f32 %v1865_v52, %v7474_v55  ;;  %6159 = vmatpush3.bf16.msra.mxu0 %v6331_v32 }
 0x187   : > { %v5726_v20 = vpop.f32.mrf.mxu1  ;;  %5981 = vmatmul.mubr.bf16.gmra.mxu1 %v3304_v1  ;;  %v2227_v37 = vpop.f32.mrf.mxu0 }
 0x188   : > { %5984 = vmatprep.mubr.bf16.mxu1 %v3306_v44  ;;  %6093 = vmatpush3.bf16.msra.mxu1 %v6328_v8  ;;  %v7667_v62 = vadd.f32 %v2212_v27, %v1866_v18 }
 0x189   : > { %v1877_v34 = vpop.f32.mrf.mxu1  ;;  %v5794_v21 = vpop.f32.mrf.mxu0  ;;  %6049 = vmatmul.mubr.bf16.gmra.mxu0 %v6572_v26  ;;  %6094 = vmatprep.subr.bf16.mxu1 %v6330_v58  ;;  %v3310_v26 = vsel %vm2024_vm9, %v3307_v63, %v3309_v0 }
 0x18a   : > { %v1878_v28 = vadd.f32 %v1877_v34, %v7496_v48  ;;  %6052 = vmatprep.mubr.bf16.mxu0 %v6577_v35 }
 0x18b   : > { %v5727_v55 = vpop.f32.mrf.mxu1  ;;  %v2239_v23 = vpop.f32.mrf.mxu0 }
 0x18c   : > { %v1888_v11 = vadd.f32 %v5727_v55, %v7503_v3  ;;  %6095 = vmatpush3.bf16.msra.mxu1 %v6330_v58  ;;  %v7675_v38 = vadd.f32 %v2224_v12, %v1878_v28  ;;  %v3311_v3 = vrot.slane %v7421_v54, 1  ;;  %v8336_v28 = vld [vmem:[#allocation62_spill] sm:$0xff] }
 0x18d   : > { %v1880_v31 = vpop.f32.mrf.mxu1  ;;  %v5795_v2 = vpop.f32.mrf.mxu0  ;;  %v3317_v55 = vrot.slane %v8336_v28, 1 }
 0x18e   : > { %v1881_v42 = vadd.f32 %v1880_v31, %v7516_v61  ;;  %v7679_v41 = vadd.f32 %v5791_v57, %v1888_v11  ;;  %v3312_v54 = vsel %vm2024_vm9, %v3309_v0, %v3311_v3  ;;  %v6365_v57 = vld [vmem:[#allocation2 + $0xc0] sm:$0xf]  ;;  %v8335_v0 = vld [vmem:[#allocation7_spill] sm:$0xff] }
 0x18f   : > { %v5730_v48 = vpop.f32.mrf.mxu1  ;;  %5985 = vmatmul.mubr.bf16.gmra.mxu1 %v3308_v13  ;;  %v2242_v35 = vpop.f32.mrf.mxu0  ;;  %v7697_v44 = vcombine.low %v6365_v57, %v8333_v17  ;;  %v8338_v13 = vld [vmem:[#allocation11_spill] sm:$0xff] }
 0x190   : > { %v1900_v27 = vadd.f32 %v5730_v48, %v7527_v50  ;;  %5988 = vmatprep.mubr.bf16.mxu1 %v3310_v26  ;;  %v7683_v32 = vadd.f32 %v2227_v37, %v1881_v42 }
 0x191   : > { %v1892_v25 = vpop.f32.mrf.mxu1  ;;  %v5798_v56 = vpop.f32.mrf.mxu0  ;;  %6053 = vmatmul.mubr.bf16.gmra.mxu0 %v6595_v5  ;;  %v3314_v5 = vsel %vm2024_vm9, %v3311_v3, %v3313_v53  ;;  %v3985_v63 = vshll.u32 %v7697_v44, 16  ;;  %v3989_v26 = vshrl.u32 %v7697_v44, 16 }
 0x192   : > { %v1893_v61 = vadd.f32 %v1892_v25, %v7536_v9  ;;  %6056 = vmatprep.mubr.bf16.mxu0 %v8332_v7  ;;  %v7689_v51 = vadd.f32 %v5794_v21, %v1900_v27 }
 0x193   : > { %v5731_v8 = vpop.f32.mrf.mxu1  ;;  %v2254_v60 = vpop.f32.mrf.mxu0 }
 0x194   : > { %v1903_v50 = vadd.f32 %v5731_v8, %v7542_v22  ;;  %v7693_v12 = vadd.f32 %v2239_v23, %v1893_v61  ;;  %v8334_v22 = vld [vmem:[#allocation61_spill] sm:$0xff]  ;;  %v8337_v23 = vld [vmem:[#allocation68_spill] sm:$0xff] }
 0x195   : > { %v1895_v1 = vpop.f32.mrf.mxu1  ;;  %v5799_v52 = vpop.f32.mrf.mxu0  ;;  %v3315_v37 = vrot.slane %v8334_v22, 1  ;;  %v7708_v11 = vcombine.low %v8337_v23, %v7531_v49  ;;  %v8340_v22 = vld [vmem:[#allocation14_spill] sm:$0xff] }
 0x196   : > { %v7699_v9 = vadd.f32 %v5795_v2, %v1903_v50  ;;  %v7714_v2 = vrot.slane %v3985_v63, 1  ;;  %v7728_v50 = vld [vmem:[#allocation2 + $0xd0] sm:$0xff]   ;;  %v8339_v52 = vld [vmem:[#allocation63_spill] sm:$0xff] }
 0x197   : > { %v5734_v58 = vpop.f32.mrf.mxu1  ;;  %5989 = vmatmul.mubr.bf16.gmra.mxu1 %v3312_v54  ;;  %v2256_v18 = vpop.f32.mrf.mxu0  ;;  %v4324_v35 = vrot.slane %v7708_v11, 1  ;;  %v3993_v27 = vshll.u32 %v7708_v11, 16  ;;  %v3316_v3 = vsel %vm2024_vm9, %v3313_v53, %v3315_v37  ;;  %v4001_v17 = vshll.u32 %v7728_v50, 16 }
 0x198   : > { %v1915_v20 = vadd.f32 %v5734_v58, %v7562_v10  ;;  %5992 = vmatprep.mubr.bf16.mxu1 %v3314_v5  ;;  %v4322_v10 = vrot.slane %v7697_v44, 1  ;;  %v3991_v49 = vor.u32 %v3989_v26, %v7714_v2  ;;  %v3319_v5 = vrot.slane %v8339_v52, 1 }
 0x199   : > { %v1907_v34 = vpop.f32.mrf.mxu1  ;;  %v5802_v21 = vpop.f32.mrf.mxu0  ;;  %6057 = vmatmul.mubr.bf16.gmra.mxu0 %v8335_v0  ;;  %v3995_v8 = vrot.slane %v3993_v27, 1  ;;  %v3997_v63 = vshrl.u32 %v7708_v11, 16  ;;  %v8343_v0 = vld [vmem:[#allocation17_spill] sm:$0xff]  ;;  %v4326_v28 = vrot.slane %v7728_v50, 1  ;;  %v7743_v23 = vrot.slane %v4001_v17, 1 }
 0x19a   : > { %6060 = vmatprep.mubr.bf16.mxu0 %v8338_v13  ;;  %v7711_v31 = vadd.f32 %v5798_v56, %v1915_v20  ;;  %v3318_v56 = vsel %vm2024_vm9, %v3315_v37, %v3317_v55  ;;  %v7725_v7 = vsel %vm2024_vm9, %v4322_v10, %v4324_v35  ;;  %v8342_v34 = vld [vmem:[#allocation55_spill] sm:$0xff] }
 0x19b   : > { %v5735_v42 = vpop.f32.mrf.mxu1  ;;  %v2268_v48 = vpop.f32.mrf.mxu0  ;;  %v7731_v53 = vsel %vm1249_vm8, %v3991_v49, %v3995_v8  ;;  %v3999_v26 = vor.u32 %v3997_v63, %v3995_v8  ;;  %v8345_v8 = vld [vmem:[#allocation57_spill] sm:$0xff] }
 0x19c   : > { %v8344_v42 = vld [vmem:[#allocation56_spill] sm:$0xff] }
 0x19d   : > { %v1909_v25 = vpop.f32.mrf.mxu1  ;;  %v5803_v61 = vpop.f32.mrf.mxu0  ;;  %v7757_v52 = vsel %vm1249_vm8, %v3999_v26, %v7743_v23  ;;  %v8349_v26 = vld [vmem:[#allocation59_spill] sm:$0xff] }
 0x19e   : > { %v1910_v60 = vadd.f32 %v1909_v25, %v7569_v30  ;;  %v8341_v30 = vld [vmem:[#allocation65_spill] sm:$0xff]  ;;  %v7752_v25 = vsel %vm2024_vm9, %v4324_v35, %v4326_v28  ;;  %v8347_v35 = vld [vmem:[#allocation66_spill] sm:$0xff] }
 0x19f   : > { %v5738_v54 = vpop.f32.mrf.mxu1  ;;  %5993 = vmatmul.mubr.bf16.gmra.mxu1 %v3316_v3  ;;  %v2271_v1 = vpop.f32.mrf.mxu0  ;;  %v3321_v37 = vrot.slane %v8341_v30, 1  ;;  %v3320_v3 = vsel %vm2024_vm9, %v3317_v55, %v3319_v5  ;;  %v3323_v63 = vrot.slane %v8347_v35, 1 }
 0x1a0   : > { %5996 = vmatprep.mubr.bf16.mxu1 %v3318_v56  ;;  %v7734_v57 = vadd.f32 %v2256_v18, %v1910_v60 }
 0x1a1   : > { %v1921_v58 = vpop.f32.mrf.mxu1  ;;  %v5806_v20 = vpop.f32.mrf.mxu0  ;;  %6061 = vmatmul.mubr.bf16.gmra.mxu0 %v8340_v22  ;;  %v3322_v54 = vsel %vm2024_vm9, %v3319_v5, %v3321_v37  ;;  %v8346_v22 = vld [vmem:[#allocation58_spill] sm:$0xff] }
 0x1a2   : > { %v1922_v21 = vadd.f32 %v1921_v58, %v8342_v34  ;;  %6064 = vmatprep.mubr.bf16.mxu0 %v8343_v0  ;;  %v8348_v0 = vld [vmem:[#allocation20_spill] sm:$0xff] }
 0x1a3   : > { %v5739_v18 = vpop.f32.mrf.mxu1  ;;  %v2283_v13 = vpop.f32.mrf.mxu0 }
 0x1a4   : > { %v1932_v27 = vadd.f32 %v5739_v18, %v8344_v42  ;;  %v7747_v49 = vadd.f32 %v2268_v48, %v1922_v21  ;;  %v3325_v18 = vrot.slane %v7484_v6, 1 }
 0x1a5   : > { %v1924_v56 = vpop.f32.mrf.mxu1  ;;  %v5807_v60 = vpop.f32.mrf.mxu0 }
 0x1a6   : > { %v1925_v17 = vadd.f32 %v1924_v56, %v8345_v8  ;;  %v7760_v58 = vadd.f32 %v5803_v61, %v1932_v27  ;;  %v8350_v61 = vld [vmem:[#allocation25_spill] sm:$0xff]  ;;  %v8351_v8 = vld [vmem:[#allocation60_spill] sm:$0xff] }
 0x1a7   : > { %v5742_v55 = vpop.f32.mrf.mxu1  ;;  %5997 = vmatmul.mubr.bf16.gmra.mxu1 %v3320_v3  ;;  %v2286_v48 = vpop.f32.mrf.mxu0 }
 0x1a8   : > { %v1944_v30 = vadd.f32 %v5742_v55, %v8346_v22  ;;  %6000 = vmatprep.mubr.bf16.mxu1 %v3322_v54  ;;  %v7764_v34 = vadd.f32 %v2271_v1, %v1925_v17  ;;  %v3324_v55 = vsel %vm2024_vm9, %v3321_v37, %v3323_v63  ;;  %v3326_v22 = vsel %vm2024_vm9, %v3323_v63, %v3325_v18 }
 0x1a9   : > { %v1936_v21 = vpop.f32.mrf.mxu1  ;;  %v5810_v5 = vpop.f32.mrf.mxu0  ;;  %6065 = vmatmul.mubr.bf16.gmra.mxu0 %v8348_v0  ;;  %v8352_v0 = vld [vmem:[#allocation64_spill] sm:$0xff]  ;;  %v3329_v37 = vrot.slane %v7234_v15, 1  ;;  %v3331_v15 = vrot.slane %v7514_v43, 1 }
 0x1aa   : > { %v1937_v42 = vadd.f32 %v1936_v21, %v8349_v26  ;;  %6068 = vmatprep.mubr.bf16.mxu0 %v8350_v61  ;;  %v7770_v27 = vadd.f32 %v5806_v20, %v1944_v30  ;;  %v3327_v30 = vrot.slane %v7220_v47, 1 }
 0x1ab   : > { %v5743_v3 = vpop.f32.mrf.mxu1  ;;  %v2298_v56 = vpop.f32.mrf.mxu0 }
 0x1ac   : > { %v1947_v54 = vadd.f32 %v5743_v3, %v8351_v8  ;;  %v7774_v1 = vadd.f32 %v2283_v13, %v1937_v42  ;;  %v8353_v3 = vld [vmem:[#allocation26_spill] sm:$0xff]  ;;  %v8354_v13 = vld [vmem:[#allocation29_spill] sm:$0xff]  ;;  %v3328_v56 = vsel %vm2024_vm9, %v3325_v18, %v3327_v30  ;;  %v3333_v18 = vrot.slane %v7520_v24, 1 }
 0x1ad   : > { %v1939_v17 = vpop.f32.mrf.mxu1  ;;  %v5811_v48 = vpop.f32.mrf.mxu0 }
 0x1ae   : > { %v7777_v35 = vadd.f32 %v5807_v60, %v1947_v54  ;;  %v8355_v17 = vld [vmem:[#allocation23_spill] sm:$0xff] }
 0x1af   : > { %v5746_v6 = vpop.f32.mrf.mxu1  ;;  %6001 = vmatmul.mubr.bf16.gmra.mxu1 %v3324_v55  ;;  %v2300_v21 = vpop.f32.mrf.mxu0  ;;  %v3330_v55 = vsel %vm2024_vm9, %v3327_v30, %v3329_v37 }
 0x1b0   : > { %v1959_v20 = vadd.f32 %v5746_v6, %v8352_v0  ;;  %6004 = vmatprep.mubr.bf16.mxu1 %v3326_v22 }
 0x1b1   : > { %v1951_v26 = vpop.f32.mrf.mxu1  ;;  %v5814_v61 = vpop.f32.mrf.mxu0  ;;  %6069 = vmatmul.mubr.bf16.gmra.mxu0 %v8353_v3  ;;  %v3332_v3 = vsel %vm2024_vm9, %v3329_v37, %v3331_v15 }
 0x1b2   : > { %6072 = vmatprep.mubr.bf16.mxu0 %v8354_v13  ;;  %v7784_v42 = vadd.f32 %v5810_v5, %v1959_v20 }
 0x1b3   : > { %v5747_v60 = vpop.f32.mrf.mxu1  ;;  %v2312_v63 = vpop.f32.mrf.mxu0 }
 0x1b4   : > { %v3334_v60 = vsel %vm2024_vm9, %v3331_v15, %v3333_v18 }
 0x1b5   : > { %v1953_v8 = vpop.f32.mrf.mxu1  ;;  %v5815_v54 = vpop.f32.mrf.mxu0 }
 0x1b6   : > { %v1954_v47 = vadd.f32 %v1953_v8, %v8355_v17 }
 0x1b7   : > { %v5750_v48 = vpop.f32.mrf.mxu1  ;;  %6005 = vmatmul.mubr.bf16.gmra.mxu1 %v3328_v56  ;;  %v2315_v22 = vpop.f32.mrf.mxu0 }
 0x1b8   : > { %6008 = vmatprep.mubr.bf16.mxu1 %v3330_v55  ;;  %v7790_v6 = vadd.f32 %v2300_v21, %v1954_v47  ;;  %v8356_v55 = vld [vmem:[#allocation69_spill] sm:$0xff]  ;;  %v8357_v48 = vld [vmem:[#allocation34_spill] sm:$0xff] }
 0x1b9   : > { %v1965_v5 = vpop.f32.mrf.mxu1  ;;  %v5818_v0 = vpop.f32.mrf.mxu0  ;;  %6073 = vmatmul.mubr.bf16.gmra.mxu0 %v7697_v44  ;;  %v8400_v44 = vld [vmem:[#allocation33_spill] sm:$0xff] }
 0x1ba   : > { %v1966_v20 = vadd.f32 %v1965_v5, %v7534_v39  ;;  %6076 = vmatprep.mubr.bf16.mxu0 %v7708_v11  ;;  %v8358_v5 = vld [vmem:[#allocation70_spill] sm:$0xff] }
 0x1bb   : > { %v5751_v30 = vpop.f32.mrf.mxu1  ;;  %v2327_v26 = vpop.f32.mrf.mxu0 }
 0x1bc   : > { %v1976_v61 = vadd.f32 %v5751_v30, %v7544_v40  ;;  %v7798_v13 = vadd.f32 %v2312_v63, %v1966_v20  ;;  %v3335_v40 = vrot.slane %v8356_v55, 1  ;;  %v8362_v55 = vld [vmem:[#allocation36_spill] sm:$0xff] }
 0x1bd   : > { %v1968_v43 = vpop.f32.mrf.mxu1  ;;  %v5819_v21 = vpop.f32.mrf.mxu0 }
 0x1be   : > { %v1969_v56 = vadd.f32 %v1968_v43, %v7551_v46  ;;  %v7802_v8 = vadd.f32 %v5815_v54, %v1976_v61 }
 0x1bf   : > { %v5754_v24 = vpop.f32.mrf.mxu1  ;;  %6009 = vmatmul.mubr.bf16.gmra.mxu1 %v3332_v3  ;;  %v2330_v39 = vpop.f32.mrf.mxu0 }
 0x1c0   : > { %v1988_v11 = vadd.f32 %v5754_v24, %v7554_v59  ;;  %6012 = vmatprep.mubr.bf16.mxu1 %v3334_v60  ;;  %v7806_v17 = vadd.f32 %v2315_v22, %v1969_v56  ;;  %v3336_v59 = vsel %vm2024_vm9, %v3333_v18, %v3335_v40  ;;  %v8360_v24 = vld [vmem:[#allocation5_spill] sm:$0xff] }
 0x1c1   : > { %v1980_v37 = vpop.f32.mrf.mxu1  ;;  %v5822_v63 = vpop.f32.mrf.mxu0  ;;  %6077 = vmatmul.mubr.bf16.gmra.mxu0 %v7728_v50 }
 0x1c2   : > { %v1981_v47 = vadd.f32 %v1980_v37, %v7556_v36  ;;  %6160 = vmatprep.mubr.bf16.mxu0 %v8357_v48  ;;  %v7811_v46 = vadd.f32 %v5818_v0, %v1988_v11  ;;  %v8359_v36 = vld [vmem:[#allocation71_spill] sm:$0xff] }
 0x1c3   : > { %v5755_v54 = vpop.f32.mrf.mxu1  ;;  %v2342_v15 = vpop.f32.mrf.mxu0  ;;  %v8361_v11 = vld [vmem:[#allocation35_spill] sm:$0xff] }
 0x1c4   : > { %v1991_v20 = vadd.f32 %v5755_v54, %v8358_v5  ;;  %v7815_v30 = vadd.f32 %v2327_v26, %v1981_v47  ;;  %v8363_v47 = vld [vmem:[#allocation72_spill] sm:$0xff]  ;;  %v8364_v15 = vld [vmem:[#allocation10_spill] sm:$0xff] }
 0x1c5   : > { %v1983_v22 = vpop.f32.mrf.mxu1  ;;  %v5823_v61 = vpop.f32.mrf.mxu0 }
 0x1c6   : > { %v7817_v3 = vadd.f32 %v5819_v21, %v1991_v20  ;;  %v8365_v20 = vld [vmem:[#allocation12_spill] sm:$0xff] }
 0x1c7   : > { %v5758_v43 = vpop.f32.mrf.mxu1  ;;  %6013 = vmatmul.mubr.bf16.gmra.mxu1 %v3336_v59  ;;  %v2344_v60 = vpop.f32.mrf.mxu0 }
 0x1c8   : > { %v2003_v56 = vadd.f32 %v5758_v43, %v8359_v36  ;;  %6096 = vmatprep.mubr.bf16.mxu1 %v8360_v24  ;;  %v8366_v43 = vld [vmem:[#allocation37_spill] sm:$0xff]  ;;  %v8367_v36 = vld [vmem:[#allocation38_spill] sm:$0xff] }
 0x1c9   : > { %v1995_v0 = vpop.f32.mrf.mxu1  ;;  %v5906_v39 = vpop.f32.mrf.mxu0  ;;  %6161 = vmatmul.mubr.bf16.vlgmr.msra.gmra.mxu0 %v8361_v11 }
 0x1ca   : > { %6164 = vmatprep.mubr.bf16.mxu0 %v8362_v55  ;;  %v7823_v18 = vadd.f32 %v5822_v63, %v2003_v56 }
 0x1cb   : > { %v5759_v26 = vpop.f32.mrf.mxu1  ;;  %v3065_v40 = vpop.f32.mrf.mxu0 }
 0x1cd   : > { %v1997_v37 = vpop.f32.mrf.mxu1  ;;  %v5907_v21 = vpop.f32.mrf.mxu0 }
 0x1ce   : > { %v1998_v48 = vadd.f32 %v1997_v37, %v8363_v47  ;;  %v8368_v47 = vld [vmem:[#allocation16_spill] sm:$0xff] }
 0x1cf   : > { %v5842_v54 = vpop.f32.mrf.mxu1  ;;  %6097 = vmatmul.mubr.bf16.vlgmr.msra.gmra.mxu1 %v8364_v15  ;;  %v3068_v5 = vpop.f32.mrf.mxu0 }
 0x1d0   : > { %6100 = vmatprep.mubr.bf16.mxu1 %v8365_v20  ;;  %v7828_v59 = vadd.f32 %v2344_v60, %v1998_v48  ;;  %v8369_v54 = vld [vmem:[#allocation18_spill] sm:$0xff] }
 0x1d1   : > { %v2537_v22 = vpop.f32.mrf.mxu1  ;;  %v5910_v61 = vpop.f32.mrf.mxu0  ;;  %6165 = vmatmul.mubr.bf16.gmra.mxu0 %v8366_v43  ;;  %v8371_v43 = vld [vmem:[#allocation40_spill] sm:$0xff] }
 0x1d2   : > { %v2712_v63 = vadd.f32 %v2537_v22, %v7609_v4  ;;  %6168 = vmatprep.mubr.bf16.mxu0 %v8367_v36 }
 0x1d3   : > { %v5843_v56 = vpop.f32.mrf.mxu1  ;;  %v3080_v24 = vpop.f32.mrf.mxu0 }
 0x1d4   : > { %v2714_v0 = vadd.f32 %v5843_v56, %v7616_v45  ;;  %v7834_v39 = vadd.f32 %v3065_v40, %v2712_v63  ;;  %v8370_v40 = vld [vmem:[#allocation39_spill] sm:$0xff] }
 0x1d5   : > { %v2540_v11 = vpop.f32.mrf.mxu1  ;;  %v5911_v55 = vpop.f32.mrf.mxu0 }
 0x1d6   : > { %v2713_v26 = vadd.f32 %v2540_v11, %v7623_v14  ;;  %v7837_v60 = vadd.f32 %v5907_v21, %v2714_v0 }
 0x1d7   : > { %v5846_v37 = vpop.f32.mrf.mxu1  ;;  %6101 = vmatmul.mubr.bf16.gmra.mxu1 %v8368_v47  ;;  %v3083_v48 = vpop.f32.mrf.mxu0  ;;  %v8373_v47 = vld [vmem:[#allocation24_spill] sm:$0xff] }
 0x1d8   : > { %v2716_v4 = vadd.f32 %v5846_v37, %v7632_v19  ;;  %6104 = vmatprep.mubr.bf16.mxu1 %v8369_v54  ;;  %v7842_v15 = vadd.f32 %v3068_v5, %v2713_v26  ;;  %v8372_v26 = vld [vmem:[#allocation22_spill] sm:$0xff] }
 0x1d9   : > { %v2552_v20 = vpop.f32.mrf.mxu1  ;;  %v5914_v45 = vpop.f32.mrf.mxu0  ;;  %6169 = vmatmul.mubr.bf16.gmra.mxu0 %v8370_v40  ;;  %v8375_v54 = vld [vmem:[#allocation42_spill] sm:$0xff] }
 0x1da   : > { %v2715_v22 = vadd.f32 %v2552_v20, %v7639_v29  ;;  %6172 = vmatprep.mubr.bf16.mxu0 %v8371_v43  ;;  %v7847_v14 = vadd.f32 %v5910_v61, %v2716_v4  ;;  %v8374_v4 = vld [vmem:[#allocation41_spill] sm:$0xff] }
 0x1db   : > { %v5847_v21 = vpop.f32.mrf.mxu1  ;;  %v3095_v63 = vpop.f32.mrf.mxu0 }
 0x1dc   : > { %v2717_v36 = vadd.f32 %v5847_v21, %v7645_v33  ;;  %v7850_v56 = vadd.f32 %v3080_v24, %v2715_v22  ;;  %v8376_v21 = vld [vmem:[#allocation30_spill] sm:$0xff]  ;;  %v8377_v63 = vld [vmem:[#allocation31_spill] sm:$0xff] }
 0x1dd   : > { %v2555_v19 = vpop.f32.mrf.mxu1  ;;  %v5915_v0 = vpop.f32.mrf.mxu0 }
 0x1de   : > { %v7852_v5 = vadd.f32 %v5911_v55, %v2717_v36 }
 0x1df   : > { %v5850_v11 = vpop.f32.mrf.mxu1  ;;  %6105 = vmatmul.mubr.bf16.gmra.mxu1 %v8372_v26  ;;  %v3097_v37 = vpop.f32.mrf.mxu0  ;;  %v8379_v26 = vld [vmem:[#allocation44_spill] sm:$0xff] }
 0x1e0   : > { %v2719_v29 = vadd.f32 %v5850_v11, %v7658_v16  ;;  %6108 = vmatprep.mubr.bf16.mxu1 %v8373_v47  ;;  %v8378_v11 = vld [vmem:[#allocation43_spill] sm:$0xff] }
 0x1e1   : > { %v2567_v61 = vpop.f32.mrf.mxu1  ;;  %v5918_v48 = vpop.f32.mrf.mxu0  ;;  %6173 = vmatmul.mubr.bf16.gmra.mxu0 %v8374_v4 }
 0x1e2   : > { %6176 = vmatprep.mubr.bf16.mxu0 %v8375_v54  ;;  %v7859_v33 = vadd.f32 %v5914_v45, %v2719_v29 }
 0x1e3   : > { %v5851_v24 = vpop.f32.mrf.mxu1  ;;  %v3109_v20 = vpop.f32.mrf.mxu0 }
 0x1e5   : > { %v2569_v55 = vpop.f32.mrf.mxu1  ;;  %v5919_v40 = vpop.f32.mrf.mxu0 }
 0x1e6   : > { %v2718_v22 = vadd.f32 %v2569_v55, %v7667_v62  ;;  %v8380_v55 = vld [vmem:[#allocation3_spill] sm:$0xff] }
 0x1e7   : > { %v5854_v43 = vpop.f32.mrf.mxu1  ;;  %6109 = vmatmul.mubr.bf16.gmra.mxu1 %v8376_v21  ;;  %v3112_v16 = vpop.f32.mrf.mxu0 }
 0x1e8   : > { %6112 = vmatprep.mubr.bf16.mxu1 %v8377_v63  ;;  %v7864_v36 = vadd.f32 %v3097_v37, %v2718_v22  ;;  %v8381_v43 = vld [vmem:[#allocation4_spill] sm:$0xff] }
 0x1e9   : > { %v2581_v19 = vpop.f32.mrf.mxu1  ;;  %v5922_v0 = vpop.f32.mrf.mxu0  ;;  %6177 = vmatmul.mubr.bf16.gmra.mxu0 %v8378_v11  ;;  %v8383_v11 = vld [vmem:[#allocation46_spill] sm:$0xff] }
 0x1ea   : > { %v2720_v45 = vadd.f32 %v2581_v19, %v7675_v38  ;;  %6180 = vmatprep.mubr.bf16.mxu0 %v8379_v26 }
 0x1eb   : > { %v5855_v29 = vpop.f32.mrf.mxu1  ;;  %v3124_v47 = vpop.f32.mrf.mxu0 }
 0x1ec   : > { %v2722_v62 = vadd.f32 %v5855_v29, %v7679_v41  ;;  %v7870_v61 = vadd.f32 %v3109_v20, %v2720_v45  ;;  %v8382_v20 = vld [vmem:[#allocation45_spill] sm:$0xff] }
 0x1ed   : > { %v2584_v48 = vpop.f32.mrf.mxu1  ;;  %v5923_v4 = vpop.f32.mrf.mxu0 }
 0x1ee   : > { %v2721_v54 = vadd.f32 %v2584_v48, %v7683_v32  ;;  %v7873_v37 = vadd.f32 %v5919_v40, %v2722_v62 }
 0x1ef   : > { %v5858_v24 = vpop.f32.mrf.mxu1  ;;  %6113 = vmatmul.mubr.bf16.gmra.mxu1 %v8380_v55  ;;  %v3127_v22 = vpop.f32.mrf.mxu0  ;;  %v8385_v55 = vld [vmem:[#allocation9_spill] sm:$0xff] }
 0x1f0   : > { %v2724_v38 = vadd.f32 %v5858_v24, %v7689_v51  ;;  %6116 = vmatprep.mubr.bf16.mxu1 %v8381_v43  ;;  %v7878_v21 = vadd.f32 %v3112_v16, %v2721_v54  ;;  %v8384_v54 = vld [vmem:[#allocation8_spill] sm:$0xff] }
 0x1f1   : > { %v2596_v63 = vpop.f32.mrf.mxu1  ;;  %v5926_v41 = vpop.f32.mrf.mxu0  ;;  %6181 = vmatmul.mubr.bf16.gmra.mxu0 %v8382_v20  ;;  %v8387_v43 = vld [vmem:[#allocation48_spill] sm:$0xff] }
 0x1f2   : > { %v2723_v19 = vadd.f32 %v2596_v63, %v7693_v12  ;;  %6184 = vmatprep.mubr.bf16.mxu0 %v8383_v11  ;;  %v7883_v32 = vadd.f32 %v5922_v0, %v2724_v38  ;;  %v8386_v38 = vld [vmem:[#allocation47_spill] sm:$0xff] }
 0x1f3   : > { %v5859_v40 = vpop.f32.mrf.mxu1  ;;  %v3139_v45 = vpop.f32.mrf.mxu0 }
 0x1f4   : > { %v2725_v26 = vadd.f32 %v5859_v40, %v7699_v9  ;;  %v7886_v29 = vadd.f32 %v3124_v47, %v2723_v19  ;;  %v8388_v40 = vld [vmem:[#allocation13_spill] sm:$0xff]  ;;  %v8389_v45 = vld [vmem:[#allocation15_spill] sm:$0xff] }
 0x1f5   : > { %v2599_v51 = vpop.f32.mrf.mxu1  ;;  %v5927_v62 = vpop.f32.mrf.mxu0 }
 0x1f6   : > { %v7888_v16 = vadd.f32 %v5923_v4, %v2725_v26 }
 0x1f7   : > { %v5862_v48 = vpop.f32.mrf.mxu1  ;;  %6117 = vmatmul.mubr.bf16.gmra.mxu1 %v8384_v54  ;;  %v3141_v24 = vpop.f32.mrf.mxu0  ;;  %v8391_v54 = vld [vmem:[#allocation50_spill] sm:$0xff] }
 0x1f8   : > { %v2727_v12 = vadd.f32 %v5862_v48, %v7711_v31  ;;  %6120 = vmatprep.mubr.bf16.mxu1 %v8385_v55  ;;  %v8390_v48 = vld [vmem:[#allocation49_spill] sm:$0xff] }
 0x1f9   : > { %v2611_v0 = vpop.f32.mrf.mxu1  ;;  %v5930_v22 = vpop.f32.mrf.mxu0  ;;  %6185 = vmatmul.mubr.bf16.gmra.mxu0 %v8386_v38 }
 0x1fa   : > { %6188 = vmatprep.mubr.bf16.mxu0 %v8387_v43  ;;  %v7895_v9 = vadd.f32 %v5926_v41, %v2727_v12 }
 0x1fb   : > { %v5863_v47 = vpop.f32.mrf.mxu1  ;;  %v3153_v63 = vpop.f32.mrf.mxu0 }
 0x1fd   : > { %v2613_v4 = vpop.f32.mrf.mxu1  ;;  %v5931_v20 = vpop.f32.mrf.mxu0 }
 0x1fe   : > { %v2726_v19 = vadd.f32 %v2613_v4, %v7734_v57  ;;  %v8392_v4 = vld [vmem:[#allocation19_spill] sm:$0xff] }
 0x1ff   : > { %v5866_v11 = vpop.f32.mrf.mxu1  ;;  %6121 = vmatmul.mubr.bf16.gmra.mxu1 %v8388_v40  ;;  %v3156_v31 = vpop.f32.mrf.mxu0 }
 0x200   : > { %6124 = vmatprep.mubr.bf16.mxu1 %v8389_v45  ;;  %v7900_v26 = vadd.f32 %v3141_v24, %v2726_v19  ;;  %v8393_v11 = vld [vmem:[#allocation21_spill] sm:$0xff] }
 0x201   : > { %v2625_v51 = vpop.f32.mrf.mxu1  ;;  %v5934_v62 = vpop.f32.mrf.mxu0  ;;  %6189 = vmatmul.mubr.bf16.gmra.mxu0 %v8390_v48  ;;  %v8395_v48 = vld [vmem:[#allocation53_spill] sm:$0xff] }
 0x202   : > { %v2728_v41 = vadd.f32 %v2625_v51, %v7747_v49  ;;  %6192 = vmatprep.mubr.bf16.mxu0 %v8391_v54 }
 0x203   : > { %v5867_v12 = vpop.f32.mrf.mxu1  ;;  %v3168_v55 = vpop.f32.mrf.mxu0 }
 0x204   : > { %v2730_v57 = vadd.f32 %v5867_v12, %v7760_v58  ;;  %v7906_v0 = vadd.f32 %v3153_v63, %v2728_v41  ;;  %v8394_v63 = vld [vmem:[#allocation51_spill] sm:$0xff] }
 0x205   : > { %v2628_v22 = vpop.f32.mrf.mxu1  ;;  %v5935_v38 = vpop.f32.mrf.mxu0 }
 0x206   : > { %v2729_v43 = vadd.f32 %v2628_v22, %v7764_v34  ;;  %v7909_v24 = vadd.f32 %v5931_v20, %v2730_v57 }
 0x207   : > { %v5870_v47 = vpop.f32.mrf.mxu1  ;;  %6125 = vmatmul.mubr.bf16.gmra.mxu1 %v8392_v4  ;;  %v3171_v19 = vpop.f32.mrf.mxu0 }
 0x208   : > { %v2732_v49 = vadd.f32 %v5870_v47, %v7770_v27  ;;  %6128 = vmatprep.mubr.bf16.mxu1 %v8393_v11  ;;  %v7914_v40 = vadd.f32 %v3156_v31, %v2729_v43  ;;  %v8396_v43 = vld [vmem:[#allocation27_spill] sm:$0xff]  ;;  %v8398_v19 = vld [vmem:[#allocation28_spill] sm:$0xff] }
 0x209   : > { %v2640_v45 = vpop.f32.mrf.mxu1  ;;  %v5938_v58 = vpop.f32.mrf.mxu0  ;;  %6193 = vmatmul.mubr.bf16.gmra.mxu0 %v8394_v63 }
 0x20a   : > { %v2731_v51 = vadd.f32 %v2640_v45, %v7774_v1  ;;  %6196 = vmatprep.mubr.bf16.mxu0 %v8395_v48  ;;  %v7919_v34 = vadd.f32 %v5934_v62, %v2732_v49  ;;  %v8397_v1 = vld [vmem:[#allocation52_spill] sm:$0xff]  ;;  %v8399_v49 = vld [vmem:[#allocation54_spill] sm:$0xff]  ;;  %v3988_v48 = vsel %vm1249_vm8, %v8400_v44, %v7714_v2 }
 0x20b   : > { %v5871_v20 = vpop.f32.mrf.mxu1  ;;  %v3183_v41 = vpop.f32.mrf.mxu0  ;;  %v4323_v62 = vsel %vm2024_vm9, %v8397_v1, %v4322_v10 }
 0x20c   : > { %v2733_v54 = vadd.f32 %v5871_v20, %v7777_v35  ;;  %v7922_v12 = vadd.f32 %v3168_v55, %v2731_v51  ;;  %v8401_v41 = vld [vmem:[#allocation32_spill] sm:$0xff] }
 0x20d   : > { %v2643_v27 = vpop.f32.mrf.mxu1  ;;  %v5939_v57 = vpop.f32.mrf.mxu0 }
 0x20e   : > { %v7924_v31 = vadd.f32 %v5935_v38, %v2733_v54 }
 0x20f   : > { %v5874_v22 = vpop.f32.mrf.mxu1  ;;  %6129 = vmatmul.mubr.bf16.gmra.mxu1 %v8396_v43  ;;  %v3185_v47 = vpop.f32.mrf.mxu0 }
 0x210   : > { %v2735_v4 = vadd.f32 %v5874_v22, %v7784_v42  ;;  %6132 = vmatprep.mubr.bf16.mxu1 %v8398_v19  ;;  %v6334_v42 = vld [vmem:[#allocation2 + $0xd8] ss:$0 sps:$4 sm:$0xff]  }
 0x211   : > { %v2655_v35 = vpop.f32.mrf.mxu1  ;;  %v5942_v55 = vpop.f32.mrf.mxu0  ;;  %6197 = vmatmul.mubr.bf16.gmra.mxu0 %v8399_v49  ;;  %v4328_v43 = vrot.slane %v6334_v42, 1 }
 0x212   : > { %6200 = vmatprep.mubr.bf16.mxu0 %v4323_v62  ;;  %v7934_v38 = vadd.f32 %v5938_v58, %v2735_v4  ;;  %v4005_v62 = vshrl.u32 %v7728_v50, 16  ;;  %v4009_v4 = vshll.u32 %v6334_v42, 16 }
 0x213   : > { %v5875_v11 = vpop.f32.mrf.mxu1  ;;  %v3197_v45 = vpop.f32.mrf.mxu0 }
 0x214   : > { %v4007_v11 = vor.u32 %v4005_v62, %v7743_v23 }
 0x215   : > { %v2657_v63 = vpop.f32.mrf.mxu1  ;;  %v5943_v51 = vpop.f32.mrf.mxu0 }
 0x216   : > { %v2734_v10 = vadd.f32 %v2657_v63, %v7790_v6 }
 0x217   : > { %v5878_v20 = vpop.f32.mrf.mxu1  ;;  %6133 = vmatmul.mubr.bf16.gmra.mxu1 %v8401_v41  ;;  %v3200_v54 = vpop.f32.mrf.mxu0 }
 0x218   : > { %6136 = vmatprep.mubr.bf16.mxu1 %v3988_v48  ;;  %v7941_v27 = vadd.f32 %v3185_v47, %v2734_v10 }
 0x219   : > { %v2669_v58 = vpop.f32.mrf.mxu1  ;;  %v5946_v57 = vpop.f32.mrf.mxu0  ;;  %6201 = vmatmul.mubr.bf16.gmra.mxu0 %v7725_v7  ;;  %v4329_v7 = vsel %vm2024_vm9, %v4326_v28, %v4328_v43 }
 0x21a   : > { %v2736_v22 = vadd.f32 %v2669_v58, %v7798_v13  ;;  %6204 = vmatprep.mubr.bf16.mxu0 %v7752_v25 }
 0x21b   : > { %v5879_v2 = vpop.f32.mrf.mxu1  ;;  %v3212_v1 = vpop.f32.mrf.mxu0 }
 0x21c   : > { %v2738_v6 = vadd.f32 %v5879_v2, %v7802_v8  ;;  %v7948_v19 = vadd.f32 %v3197_v45, %v2736_v22  ;;  %v4011_v45 = vrot.slane %v4009_v4, 1 }
 0x21d   : > { %v2672_v47 = vpop.f32.mrf.mxu1  ;;  %v5947_v35 = vpop.f32.mrf.mxu0 }
 0x21e   : > { %v2737_v55 = vadd.f32 %v2672_v47, %v7806_v17  ;;  %v7954_v13 = vadd.f32 %v5943_v51, %v2738_v6 }
 0x21f   : > { %v5882_v25 = vpop.f32.mrf.mxu1  ;;  %6137 = vmatmul.mubr.bf16.gmra.mxu1 %v7731_v53  ;;  %v3215_v49 = vpop.f32.mrf.mxu0 }
 0x220   : > { %v2740_v8 = vadd.f32 %v5882_v25, %v7811_v46  ;;  %6140 = vmatprep.mubr.bf16.mxu1 %v7757_v52  ;;  %v7960_v63 = vadd.f32 %v3200_v54, %v2737_v55  ;;  %v4012_v46 = vsel %vm1249_vm8, %v4007_v11, %v4011_v45 }
 0x221   : > { %v2684_v17 = vpop.f32.mrf.mxu1  ;;  %v5950_v44 = vpop.f32.mrf.mxu0  ;;  %6205 = vmatmul.mubr.bf16.gmra.mxu0 %v4329_v7 }
 0x222   : > { %v2739_v50 = vadd.f32 %v2684_v17, %v7815_v30  ;;  %v7963_v28 = vadd.f32 %v5946_v57, %v2740_v8 }
 0x223   : > { %v5883_v51 = vpop.f32.mrf.mxu1  ;;  %v3227_v48 = vpop.f32.mrf.mxu0 }
 0x224   : > { %v2741_v53 = vadd.f32 %v5883_v51, %v7817_v3  ;;  %v7967_v10 = vadd.f32 %v3212_v1, %v2739_v50 }
 0x225   : > { %v2687_v52 = vpop.f32.mrf.mxu1  ;;  %v5951_v23 = vpop.f32.mrf.mxu0 }
 0x226   : > { %v7969_v42 = vadd.f32 %v5947_v35, %v2741_v53 }
 0x227   : > { %v5886_v20 = vpop.f32.mrf.mxu1  ;;  %6141 = vmatmul.mubr.bf16.gmra.mxu1 %v4012_v46  ;;  %v3229_v41 = vpop.f32.mrf.mxu0 }
 0x228   : > { %v2743_v54 = vadd.f32 %v5886_v20, %v7823_v18 }
 0x229   : > { %v2699_v30 = vpop.f32.mrf.mxu1  ;;  %v6034_v58 = vpop.f32.mrf.mxu0 }
 0x22a   : > { %v7972_v57 = vadd.f32 %v5950_v44, %v2743_v54 }
 0x22b   : > { %v5887_v22 = vpop.f32.mrf.mxu1  ;;  %v3758_v43 = vpop.f32.mrf.mxu0 }
 0x22d   : > { %v2701_v3 = vpop.f32.mrf.mxu1  ;;  %v6035_v2 = vpop.f32.mrf.mxu0 }
 0x22e   : > { %v2742_v1 = vadd.f32 %v2701_v3, %v7828_v59 }
 0x22f   : > { %v5970_v6 = vpop.f32.mrf.mxu1  ;;  %v3761_v62 = vpop.f32.mrf.mxu0 }
 0x230   : > { %v7975_v4 = vadd.f32 %v3229_v41, %v2742_v1 }
 0x231   : > { %v3443_v47 = vpop.f32.mrf.mxu1  ;;  %v6038_v35 = vpop.f32.mrf.mxu0 }
 0x232   : > { %v3618_v55 = vadd.f32 %v3443_v47, %v7834_v39 }
 0x233   : > { %v5971_v7 = vpop.f32.mrf.mxu1  ;;  %v3773_v18 = vpop.f32.mrf.mxu0 }
 0x234   : > { %v3620_v25 = vadd.f32 %v5971_v7, %v7837_v60  ;;  %v7979_v49 = vadd.f32 %v3758_v43, %v3618_v55 }
 0x235   : > { %v3446_v8 = vpop.f32.mrf.mxu1  ;;  %v6039_v11 = vpop.f32.mrf.mxu0 }
 0x236   : > { %v3619_v45 = vadd.f32 %v3446_v8, %v7842_v15  ;;  %v7982_v17 = vadd.f32 %v6035_v2, %v3620_v25 }
 0x237   : > { %v5974_v59 = vpop.f32.mrf.mxu1  ;;  %v3776_v44 = vpop.f32.mrf.mxu0 }
 0x238   : > { %v3622_v50 = vadd.f32 %v5974_v59, %v7847_v14  ;;  %v7985_v51 = vadd.f32 %v3761_v62, %v3619_v45 }
 0x239   : > { %v3458_v48 = vpop.f32.mrf.mxu1  ;;  %v6042_v39 = vpop.f32.mrf.mxu0 }
 0x23a   : > { %v3621_v53 = vadd.f32 %v3458_v48, %v7850_v56  ;;  %v7988_v46 = vadd.f32 %v6038_v35, %v3622_v50 }
 0x23b   : > { %v5975_v60 = vpop.f32.mrf.mxu1  ;;  %v3788_v52 = vpop.f32.mrf.mxu0 }
 0x23c   : > { %v3623_v23 = vadd.f32 %v5975_v60, %v7852_v5  ;;  %v7991_v20 = vadd.f32 %v3773_v18, %v3621_v53 }
 0x23d   : > { %v3461_v15 = vpop.f32.mrf.mxu1  ;;  %v6043_v41 = vpop.f32.mrf.mxu0 }
 0x23e   : > { %v7993_v54 = vadd.f32 %v6039_v11, %v3623_v23 }
 0x23f   : > { %v5978_v30 = vpop.f32.mrf.mxu1  ;;  %v3790_v14 = vpop.f32.mrf.mxu0 }
 0x240   : > { %v3625_v58 = vadd.f32 %v5978_v30, %v7859_v33 }
 0x241   : > { %v3473_v22 = vpop.f32.mrf.mxu1  ;;  %v6046_v43 = vpop.f32.mrf.mxu0 }
 0x242   : > { %v7996_v3 = vadd.f32 %v6042_v39, %v3625_v58 }
 0x243   : > { %v5979_v56 = vpop.f32.mrf.mxu1  ;;  %v3802_v2 = vpop.f32.mrf.mxu0 }
 0x245   : > { %v3475_v1 = vpop.f32.mrf.mxu1  ;;  %v6047_v6 = vpop.f32.mrf.mxu0 }
 0x246   : > { %v3624_v5 = vadd.f32 %v3475_v1, %v7864_v36 }
 0x247   : > { %v5982_v62 = vpop.f32.mrf.mxu1  ;;  %v3805_v47 = vpop.f32.mrf.mxu0 }
 0x248   : > { %v7999_v35 = vadd.f32 %v3790_v14, %v3624_v5 }
 0x249   : > { %v3487_v55 = vpop.f32.mrf.mxu1  ;;  %v6050_v7 = vpop.f32.mrf.mxu0 }
 0x24a   : > { %v3626_v18 = vadd.f32 %v3487_v55, %v7870_v61 }
 0x24b   : > { %v5983_v25 = vpop.f32.mrf.mxu1  ;;  %v3817_v33 = vpop.f32.mrf.mxu0 }
 0x24c   : > { %v3628_v8 = vadd.f32 %v5983_v25, %v7873_v37  ;;  %v8003_v11 = vadd.f32 %v3802_v2, %v3626_v18 }
 0x24d   : > { %v3490_v45 = vpop.f32.mrf.mxu1  ;;  %v6051_v59 = vpop.f32.mrf.mxu0 }
 0x24e   : > { %v3627_v44 = vadd.f32 %v3490_v45, %v7878_v21  ;;  %v8006_v50 = vadd.f32 %v6047_v6, %v3628_v8 }
 0x24f   : > { %v5986_v36 = vpop.f32.mrf.mxu1  ;;  %v3820_v48 = vpop.f32.mrf.mxu0 }
 0x250   : > { %v3630_v39 = vadd.f32 %v5986_v36, %v7883_v32  ;;  %v8009_v53 = vadd.f32 %v3805_v47, %v3627_v44 }
 0x251   : > { %v3502_v60 = vpop.f32.mrf.mxu1  ;;  %v6054_v61 = vpop.f32.mrf.mxu0 }
 0x252   : > { %v3629_v52 = vadd.f32 %v3502_v60, %v7886_v29  ;;  %v8012_v23 = vadd.f32 %v6050_v7, %v3630_v39 }
 0x253   : > { %v5987_v37 = vpop.f32.mrf.mxu1  ;;  %v3832_v15 = vpop.f32.mrf.mxu0 }
 0x254   : > { %v3631_v41 = vadd.f32 %v5987_v37, %v7888_v16  ;;  %v8015_v30 = vadd.f32 %v3817_v33, %v3629_v52 }
 0x255   : > { %v3505_v21 = vpop.f32.mrf.mxu1  ;;  %v6055_v14 = vpop.f32.mrf.mxu0 }
 0x256   : > { %v8017_v58 = vadd.f32 %v6051_v59, %v3631_v41 }
 0x257   : > { %v5990_v22 = vpop.f32.mrf.mxu1  ;;  %v3834_v32 = vpop.f32.mrf.mxu0 }
 0x258   : > { %v3633_v43 = vadd.f32 %v5990_v22, %v7895_v9 }
 0x259   : > { %v3517_v56 = vpop.f32.mrf.mxu1  ;;  %v6058_v2 = vpop.f32.mrf.mxu0 }
 0x25a   : > { %v8020_v1 = vadd.f32 %v6054_v61, %v3633_v43 }
 0x25b   : > { %v5991_v29 = vpop.f32.mrf.mxu1  ;;  %v3846_v6 = vpop.f32.mrf.mxu0 }
 0x25d   : > { %v3519_v5 = vpop.f32.mrf.mxu1  ;;  %v6059_v62 = vpop.f32.mrf.mxu0 }
 0x25e   : > { %v3632_v16 = vadd.f32 %v3519_v5, %v7900_v26 }
 0x25f   : > { %v5994_v47 = vpop.f32.mrf.mxu1  ;;  %v3849_v55 = vpop.f32.mrf.mxu0 }
 0x260   : > { %v8023_v7 = vadd.f32 %v3834_v32, %v3632_v16 }
 0x261   : > { %v3531_v18 = vpop.f32.mrf.mxu1  ;;  %v6062_v25 = vpop.f32.mrf.mxu0 }
 0x262   : > { %v3634_v33 = vadd.f32 %v3531_v18, %v7906_v0 }
 0x263   : > { %v5995_v8 = vpop.f32.mrf.mxu1  ;;  %v3861_v9 = vpop.f32.mrf.mxu0 }
 0x264   : > { %v3636_v45 = vadd.f32 %v5995_v8, %v7909_v24  ;;  %v8027_v59 = vadd.f32 %v3846_v6, %v3634_v33 }
 0x265   : > { %v3534_v44 = vpop.f32.mrf.mxu1  ;;  %v6063_v36 = vpop.f32.mrf.mxu0 }
 0x266   : > { %v3635_v48 = vadd.f32 %v3534_v44, %v7914_v40  ;;  %v8030_v39 = vadd.f32 %v6059_v62, %v3636_v45 }
 0x267   : > { %v5998_v26 = vpop.f32.mrf.mxu1  ;;  %v3864_v60 = vpop.f32.mrf.mxu0 }
 0x268   : > { %v3638_v61 = vadd.f32 %v5998_v26, %v7919_v34  ;;  %v8033_v52 = vadd.f32 %v3849_v55, %v3635_v48 }
 0x269   : > { %v3546_v37 = vpop.f32.mrf.mxu1  ;;  %v6066_v0 = vpop.f32.mrf.mxu0 }
 0x26a   : > { %v3637_v15 = vadd.f32 %v3546_v37, %v7922_v12  ;;  %v8036_v41 = vadd.f32 %v6062_v25, %v3638_v61 }
 0x26b   : > { %v5999_v24 = vpop.f32.mrf.mxu1  ;;  %v3876_v21 = vpop.f32.mrf.mxu0 }
 0x26c   : > { %v3639_v14 = vadd.f32 %v5999_v24, %v7924_v31  ;;  %v8039_v22 = vadd.f32 %v3861_v9, %v3637_v15 }
 0x26d   : > { %v3549_v40 = vpop.f32.mrf.mxu1  ;;  %v6067_v32 = vpop.f32.mrf.mxu0 }
 0x26e   : > { %v8041_v43 = vadd.f32 %v6063_v36, %v3639_v14 }
 0x26f   : > { %v6002_v56 = vpop.f32.mrf.mxu1  ;;  %v3878_v34 = vpop.f32.mrf.mxu0 }
 0x270   : > { %v3641_v2 = vadd.f32 %v6002_v56, %v7934_v38 }
 0x271   : > { %v3561_v29 = vpop.f32.mrf.mxu1  ;;  %v6070_v6 = vpop.f32.mrf.mxu0 }
 0x272   : > { %v8044_v5 = vadd.f32 %v6066_v0, %v3641_v2 }
 0x273   : > { %v6003_v12 = vpop.f32.mrf.mxu1  ;;  %v3890_v62 = vpop.f32.mrf.mxu0 }
 0x275   : > { %v3563_v16 = vpop.f32.mrf.mxu1  ;;  %v6071_v47 = vpop.f32.mrf.mxu0 }
 0x276   : > { %v3640_v31 = vadd.f32 %v3563_v16, %v7941_v27 }
 0x277   : > { %v6006_v55 = vpop.f32.mrf.mxu1  ;;  %v3893_v18 = vpop.f32.mrf.mxu0 }
 0x278   : > { %v8047_v25 = vadd.f32 %v3878_v34, %v3640_v31 }
 0x279   : > { %v3575_v33 = vpop.f32.mrf.mxu1  ;;  %v6074_v8 = vpop.f32.mrf.mxu0 }
 0x27a   : > { %v3642_v9 = vadd.f32 %v3575_v33, %v7948_v19 }
 0x27b   : > { %v6007_v45 = vpop.f32.mrf.mxu1  ;;  %v3905_v38 = vpop.f32.mrf.mxu0 }
 0x27c   : > { %v3644_v44 = vadd.f32 %v6007_v45, %v7954_v13  ;;  %v8051_v36 = vadd.f32 %v3890_v62, %v3642_v9 }
 0x27d   : > { %v3578_v48 = vpop.f32.mrf.mxu1  ;;  %v6075_v26 = vpop.f32.mrf.mxu0 }
 0x27e   : > { %v3643_v60 = vadd.f32 %v3578_v48, %v7960_v63  ;;  %v8054_v61 = vadd.f32 %v6071_v47, %v3644_v44 }
 0x27f   : > { %v6010_v27 = vpop.f32.mrf.mxu1  ;;  %v3908_v37 = vpop.f32.mrf.mxu0 }
 0x280   : > { %v3646_v0 = vadd.f32 %v6010_v27, %v7963_v28  ;;  %v8057_v15 = vadd.f32 %v3893_v18, %v3643_v60 }
 0x281   : > { %v3590_v24 = vpop.f32.mrf.mxu1  ;;  %v6078_v19 = vpop.f32.mrf.mxu0 }
 0x282   : > { %v3645_v21 = vadd.f32 %v3590_v24, %v7967_v10  ;;  %v8060_v14 = vadd.f32 %v6074_v8, %v3646_v0 }
 0x283   : > { %v6011_v13 = vpop.f32.mrf.mxu1  ;;  %v3920_v40 = vpop.f32.mrf.mxu0 }
 0x284   : > { %v3647_v32 = vadd.f32 %v6011_v13, %v7969_v42  ;;  %v8063_v56 = vadd.f32 %v3905_v38, %v3645_v21 }
 0x285   : > { %v3593_v63 = vpop.f32.mrf.mxu1  ;;  %v6079_v34 = vpop.f32.mrf.mxu0 }
 0x286   : > { %v8065_v2 = vadd.f32 %v6075_v26, %v3647_v32 }
 0x287   : > { %v6014_v29 = vpop.f32.mrf.mxu1  ;;  %v3922_v28 = vpop.f32.mrf.mxu0 }
 0x288   : > { %v3649_v6 = vadd.f32 %v6014_v29, %v7972_v57 }
 0x289   : > { %v3605_v12 = vpop.f32.mrf.mxu1  ;;  %v6162_v62 = vpop.f32.mrf.mxu0 }
 0x28a   : > { %v8068_v16 = vadd.f32 %v6078_v19, %v3649_v6 }
 0x28b   : > { %v6015_v10 = vpop.f32.mrf.mxu1  ;;  %v4416_v47 = vpop.f32.mrf.mxu0 }
 0x28d   : > { %v3607_v31 = vpop.f32.mrf.mxu1  ;;  %v6163_v55 = vpop.f32.mrf.mxu0 }
 0x28e   : > { %v3648_v42 = vadd.f32 %v3607_v31, %v7975_v4 }
 0x28f   : > { %v6098_v18 = vpop.f32.mrf.mxu1  ;;  %v4419_v33 = vpop.f32.mrf.mxu0 }
 0x290   : > { %v8071_v8 = vadd.f32 %v3922_v28, %v3648_v42 }
 0x291   : > { %v4099_v9 = vpop.f32.mrf.mxu1  ;;  %v6166_v45 = vpop.f32.mrf.mxu0 }
 0x292   : > { %v4274_v38 = vadd.f32 %v4099_v9, %v7979_v49 }
 0x293   : > { %v6099_v57 = vpop.f32.mrf.mxu1  ;;  %v4431_v44 = vpop.f32.mrf.mxu0 }
 0x294   : > { %v4591_v48 = vadd.f32 %v4416_v47, %v4274_v38  ;;  %v4276_v26 = vadd.f32 %v6099_v57, %v7982_v17 }
 0x295   : > { %v4102_v4 = vpop.f32.mrf.mxu1  ;;  %v6167_v60 = vpop.f32.mrf.mxu0 }
 0x296   : > { %v5233_v27 = vpack.c.bf16 %v4591_v48, %v4591_v48  ;;  %v4593_v37 = vadd.f32 %v6163_v55, %v4276_v26  ;;  %v4275_v0 = vadd.f32 %v4102_v4, %v7985_v51  ;;  %v4661_v13 = vmul.f32 %v4591_v48, %v4591_v48 }
 0x297   : > { %v6102_v49 = vpop.f32.mrf.mxu1  ;;  %v4434_v24 = vpop.f32.mrf.mxu0 }
 0x298   : > { %4859 = vst.msk [vmem:[%s8080_s12] sm:$0xf] %vm921_vm1, %v5233_v27  ;;  %v5235_v19 = vpack.c.bf16 %v4593_v37, %v4593_v37  ;;  %v4592_v17 = vadd.f32 %v4419_v33, %v4275_v0  ;;  %v4278_v21 = vadd.f32 %v6102_v49, %v7988_v46  ;;  %v4663_v62 = vmul.f32 %v4593_v37, %v4593_v37 }
 0x299   : > { %v4114_v40 = vpop.f32.mrf.mxu1  ;;  %v6170_v32 = vpop.f32.mrf.mxu0 }
 0x29a   : > { %4861 = vst.msk [vmem:[%s8080_s12 + $0x8] sm:$0xf] %vm921_vm1, %v5235_v19  ;;  %v4623_v63 = vadd.f32 %v4592_v17, %v4591_v48  ;;  %v4662_v34 = vmul.f32 %v4592_v17, %v4592_v17  ;;  %v5234_v29 = vpack.c.bf16 %v4592_v17, %v4592_v17  ;;  %v4595_v28 = vadd.f32 %v6166_v45, %v4278_v21 }
 0x29b   : > { %v4277_v51 = vadd.f32 %v4114_v40, %v7991_v20  ;;  %v6103_v6 = vpop.f32.mrf.mxu1  ;;  %v4446_v12 = vpop.f32.mrf.mxu0 }
 0x29c   : > { %v4693_v10 = vadd.f32 %v4662_v34, %v4661_v13  ;;  %4860 = vst.msk [vmem:[%s8080_s12 + $0x4] sm:$0xf] %vm921_vm1, %v5234_v29  ;;  %v5237_v47 = vpack.c.bf16 %v4595_v28, %v4595_v28  ;;  %v4624_v46 = vadd.f32 %v4623_v63, %v4593_v37  ;;  %v4279_v55 = vadd.f32 %v6103_v6, %v7993_v54 }
 0x29d   : > { %v4594_v31 = vadd.f32 %v4431_v44, %v4277_v51  ;;  %v4117_v42 = vpop.f32.mrf.mxu1  ;;  %v6171_v18 = vpop.f32.mrf.mxu0  ;;  %v4665_v4 = vmul.f32 %v4595_v28, %v4595_v28 }
 0x29e   : > { %4863 = vst.msk [vmem:[%s8080_s12 + $0x10] sm:$0xf] %vm921_vm1, %v5237_v47  ;;  %v4694_v33 = vadd.f32 %v4693_v10, %v4663_v62  ;;  %v4596_v38 = vadd.f32 %v6167_v60, %v4279_v55 }
 0x29f   : > { %v4625_v9 = vadd.f32 %v4624_v46, %v4594_v31  ;;  %v4664_v45 = vmul.f32 %v4594_v31, %v4594_v31  ;;  %v5236_v20 = vpack.c.bf16 %v4594_v31, %v4594_v31  ;;  %v6106_v57 = vpop.f32.mrf.mxu1  ;;  %v4448_v48 = vpop.f32.mrf.mxu0 }
 0x2a0   : > { %v4281_v26 = vadd.f32 %v6106_v57, %v7996_v3  ;;  %v5238_v44 = vpack.c.bf16 %v4596_v38, %v4596_v38  ;;  %v4666_v19 = vmul.f32 %v4596_v38, %v4596_v38 }
 0x2a1   : > { %v4695_v27 = vadd.f32 %v4694_v33, %v4664_v45  ;;  %4862 = vst.msk [vmem:[%s8080_s12 + $0xc] sm:$0xf] %vm921_vm1, %v5236_v20  ;;  %v4626_v54 = vadd.f32 %v4625_v9, %v4595_v28  ;;  %v4129_v37 = vpop.f32.mrf.mxu1  ;;  %v6174_v0 = vpop.f32.mrf.mxu0 }
 0x2a2   : > { %v4598_v49 = vadd.f32 %v6170_v32, %v4281_v26  ;;  %4864 = vst.msk [vmem:[%s8080_s12 + $0x14] sm:$0xf] %vm921_vm1, %v5238_v44 }
 0x2a3   : > { %v4627_v24 = vadd.f32 %v4626_v54, %v4596_v38  ;;  %v4696_v17 = vadd.f32 %v4695_v27, %v4665_v4  ;;  %v6107_v60 = vpop.f32.mrf.mxu1  ;;  %v4460_v21 = vpop.f32.mrf.mxu0 }
 0x2a4   : > { %v5240_v13 = vpack.c.bf16 %v4598_v49, %v4598_v49  ;;  %v4668_v46 = vmul.f32 %v4598_v49, %v4598_v49 }
 0x2a5   : > { %v4697_v40 = vadd.f32 %v4696_v17, %v4666_v19  ;;  %v4131_v3 = vpop.f32.mrf.mxu1  ;;  %v6175_v63 = vpop.f32.mrf.mxu0 }
 0x2a6   : > { %4866 = vst.msk [vmem:[%s8080_s12 + $0x1c] sm:$0xf] %vm921_vm1, %v5240_v13  ;;  %v4280_v34 = vadd.f32 %v4131_v3, %v7999_v35 }
 0x2a7   : > { %v6110_v29 = vpop.f32.mrf.mxu1  ;;  %v4463_v28 = vpop.f32.mrf.mxu0 }
 0x2a8   : > { %v4597_v51 = vadd.f32 %v4448_v48, %v4280_v34 }
 0x2a9   : > { %v4143_v32 = vpop.f32.mrf.mxu1  ;;  %v6178_v6 = vpop.f32.mrf.mxu0 }
 0x2aa   : > { %v4628_v12 = vadd.f32 %v4627_v24, %v4597_v51  ;;  %v4667_v62 = vmul.f32 %v4597_v51, %v4597_v51  ;;  %v5239_v10 = vpack.c.bf16 %v4597_v51, %v4597_v51  ;;  %v4282_v47 = vadd.f32 %v4143_v32, %v8003_v11 }
 0x2ab   : > { %v6111_v31 = vpop.f32.mrf.mxu1  ;;  %v4475_v55 = vpop.f32.mrf.mxu0 }
 0x2ac   : > { %v4698_v42 = vadd.f32 %v4697_v40, %v4667_v62  ;;  %4865 = vst.msk [vmem:[%s8080_s12 + $0x18] sm:$0xf] %vm921_vm1, %v5239_v10  ;;  %v4599_v18 = vadd.f32 %v4460_v21, %v4282_v47  ;;  %v4629_v33 = vadd.f32 %v4628_v12, %v4598_v49  ;;  %v4284_v35 = vadd.f32 %v6111_v31, %v8006_v50 }
 0x2ad   : > { %v4146_v9 = vpop.f32.mrf.mxu1  ;;  %v6179_v45 = vpop.f32.mrf.mxu0 }
 0x2ae   : > { %v4630_v20 = vadd.f32 %v4629_v33, %v4599_v18  ;;  %v4669_v38 = vmul.f32 %v4599_v18, %v4599_v18  ;;  %v4699_v57 = vadd.f32 %v4698_v42, %v4668_v46  ;;  %v5241_v48 = vpack.c.bf16 %v4599_v18, %v4599_v18 }
 0x2af   : > { %v4601_v26 = vadd.f32 %v6175_v63, %v4284_v35  ;;  %v4283_v11 = vadd.f32 %v4146_v9, %v8009_v53  ;;  %v6114_v4 = vpop.f32.mrf.mxu1  ;;  %v4478_v27 = vpop.f32.mrf.mxu0 }
 0x2b0   : > { %v4700_v54 = vadd.f32 %v4699_v57, %v4669_v38  ;;  %4867 = vst.msk [vmem:[%s8080_s12 + $0x20] sm:$0xf] %vm921_vm1, %v5241_v48  ;;  %v4286_v44 = vadd.f32 %v6114_v4, %v8012_v23 }
 0x2b1   : > { %v5243_v37 = vpack.c.bf16 %v4601_v26, %v4601_v26  ;;  %v4600_v0 = vadd.f32 %v4463_v28, %v4283_v11  ;;  %v4158_v50 = vpop.f32.mrf.mxu1  ;;  %v6182_v49 = vpop.f32.mrf.mxu0  ;;  %v4671_v63 = vmul.f32 %v4601_v26, %v4601_v26 }
 0x2b2   : > { %v4603_v24 = vadd.f32 %v6178_v6, %v4286_v44  ;;  %v4285_v19 = vadd.f32 %v4158_v50, %v8015_v30 }
 0x2b3   : > { %4869 = vst.msk [vmem:[%s8080_s12 + $0x28] sm:$0xf] %vm921_vm1, %v5243_v37  ;;  %v4631_v17 = vadd.f32 %v4630_v20, %v4600_v0  ;;  %v4670_v53 = vmul.f32 %v4600_v0, %v4600_v0  ;;  %v5242_v60 = vpack.c.bf16 %v4600_v0, %v4600_v0  ;;  %v6115_v21 = vpop.f32.mrf.mxu1  ;;  %v4490_v13 = vpop.f32.mrf.mxu0 }
 0x2b4   : > { %v5245_v40 = vpack.c.bf16 %v4603_v24, %v4603_v24  ;;  %v4602_v3 = vadd.f32 %v4475_v55, %v4285_v19  ;;  %v4287_v23 = vadd.f32 %v6115_v21, %v8017_v58  ;;  %v4673_v31 = vmul.f32 %v4603_v24, %v4603_v24 }
 0x2b5   : > { %v4701_v34 = vadd.f32 %v4700_v54, %v4670_v53  ;;  %4868 = vst.msk [vmem:[%s8080_s12 + $0x24] sm:$0xf] %vm921_vm1, %v5242_v60  ;;  %v4632_v29 = vadd.f32 %v4631_v17, %v4601_v26  ;;  %v4161_v28 = vpop.f32.mrf.mxu1  ;;  %v6183_v30 = vpop.f32.mrf.mxu0 }
 0x2b6   : > { %4871 = vst.msk [vmem:[%s8080_s12 + $0x30] sm:$0xf] %vm921_vm1, %v5245_v40  ;;  %v4672_v51 = vmul.f32 %v4602_v3, %v4602_v3  ;;  %v5244_v32 = vpack.c.bf16 %v4602_v3, %v4602_v3  ;;  %v4604_v6 = vadd.f32 %v6179_v45, %v4287_v23 }
 0x2b7   : > { %v4633_v12 = vadd.f32 %v4632_v29, %v4602_v3  ;;  %v4702_v62 = vadd.f32 %v4701_v34, %v4671_v63  ;;  %v6118_v10 = vpop.f32.mrf.mxu1  ;;  %v4492_v47 = vpop.f32.mrf.mxu0 }
 0x2b8   : > { %4870 = vst.msk [vmem:[%s8080_s12 + $0x2c] sm:$0xf] %vm921_vm1, %v5244_v32  ;;  %v5246_v58 = vpack.c.bf16 %v4604_v6, %v4604_v6  ;;  %v4289_v46 = vadd.f32 %v6118_v10, %v8020_v1  ;;  %v4674_v45 = vmul.f32 %v4604_v6, %v4604_v6 }
 0x2b9   : > { %v4703_v55 = vadd.f32 %v4702_v62, %v4672_v51  ;;  %v4634_v42 = vadd.f32 %v4633_v12, %v4603_v24  ;;  %v4173_v18 = vpop.f32.mrf.mxu1  ;;  %v6186_v33 = vpop.f32.mrf.mxu0 }
 0x2ba   : > { %4872 = vst.msk [vmem:[%s8080_s12 + $0x34] sm:$0xf] %vm921_vm1, %v5246_v58  ;;  %v4606_v35 = vadd.f32 %v6182_v49, %v4289_v46 }
 0x2bb   : > { %v4635_v9 = vadd.f32 %v4634_v42, %v4604_v6  ;;  %v4704_v20 = vadd.f32 %v4703_v55, %v4673_v31  ;;  %v6119_v38 = vpop.f32.mrf.mxu1  ;;  %v4504_v57 = vpop.f32.mrf.mxu0 }
 0x2bc   : > { %v5248_v48 = vpack.c.bf16 %v4606_v35, %v4606_v35  ;;  %v4676_v17 = vmul.f32 %v4606_v35, %v4606_v35 }
 0x2bd   : > { %v4705_v26 = vadd.f32 %v4704_v20, %v4674_v45  ;;  %v4175_v11 = vpop.f32.mrf.mxu1  ;;  %v6187_v4 = vpop.f32.mrf.mxu0 }
 0x2be   : > { %4874 = vst.msk [vmem:[%s8080_s12 + $0x3c] sm:$0xf] %vm921_vm1, %v5248_v48  ;;  %v4288_v1 = vadd.f32 %v4175_v11, %v8023_v7 }
 0x2bf   : > { %v6122_v27 = vpop.f32.mrf.mxu1  ;;  %v4507_v54 = vpop.f32.mrf.mxu0 }
 0x2c0   : > { %v4605_v44 = vadd.f32 %v4492_v47, %v4288_v1 }
 0x2c1   : > { %v4187_v37 = vpop.f32.mrf.mxu1  ;;  %v6190_v0 = vpop.f32.mrf.mxu0 }
 0x2c2   : > { %v4636_v50 = vadd.f32 %v4635_v9, %v4605_v44  ;;  %v4675_v49 = vmul.f32 %v4605_v44, %v4605_v44  ;;  %v5247_v24 = vpack.c.bf16 %v4605_v44, %v4605_v44  ;;  %v4290_v19 = vadd.f32 %v4187_v37, %v8027_v59 }
 0x2c3   : > { %v6123_v53 = vpop.f32.mrf.mxu1  ;;  %v4519_v60 = vpop.f32.mrf.mxu0 }
 0x2c4   : > { %v4706_v21 = vadd.f32 %v4705_v26, %v4675_v49  ;;  %4873 = vst.msk [vmem:[%s8080_s12 + $0x38] sm:$0xf] %vm921_vm1, %v5247_v24  ;;  %v4607_v13 = vadd.f32 %v4504_v57, %v4290_v19  ;;  %v4637_v40 = vadd.f32 %v4636_v50, %v4606_v35  ;;  %v4292_v7 = vadd.f32 %v6123_v53, %v8030_v39 }
 0x2c5   : > { %v4190_v3 = vpop.f32.mrf.mxu1  ;;  %v6191_v23 = vpop.f32.mrf.mxu0 }
 0x2c6   : > { %v4638_v63 = vadd.f32 %v4637_v40, %v4607_v13  ;;  %v4677_v34 = vmul.f32 %v4607_v13, %v4607_v13  ;;  %v4707_v29 = vadd.f32 %v4706_v21, %v4676_v17  ;;  %v5249_v28 = vpack.c.bf16 %v4607_v13, %v4607_v13 }
 0x2c7   : > { %v4609_v30 = vadd.f32 %v6187_v4, %v4292_v7  ;;  %v4291_v59 = vadd.f32 %v4190_v3, %v8033_v52  ;;  %v6126_v51 = vpop.f32.mrf.mxu1  ;;  %v4522_v32 = vpop.f32.mrf.mxu0 }
 0x2c8   : > { %v4708_v6 = vadd.f32 %v4707_v29, %v4677_v34  ;;  %4875 = vst.msk [vmem:[%s8080_s12 + $0x40] sm:$0xf] %vm921_vm1, %v5249_v28  ;;  %v4294_v12 = vadd.f32 %v6126_v51, %v8036_v41 }
 0x2c9   : > { %v5251_v62 = vpack.c.bf16 %v4609_v30, %v4609_v30  ;;  %v4608_v10 = vadd.f32 %v4507_v54, %v4291_v59  ;;  %v4202_v39 = vpop.f32.mrf.mxu1  ;;  %v6194_v47 = vpop.f32.mrf.mxu0  ;;  %v4679_v9 = vmul.f32 %v4609_v30, %v4609_v30 }
 0x2ca   : > { %v4611_v58 = vadd.f32 %v6190_v0, %v4294_v12  ;;  %v4293_v46 = vadd.f32 %v4202_v39, %v8039_v22 }
 0x2cb   : > { %4877 = vst.msk [vmem:[%s8080_s12 + $0x48] sm:$0xf] %vm921_vm1, %v5251_v62  ;;  %v4639_v31 = vadd.f32 %v4638_v63, %v4608_v10  ;;  %v4678_v52 = vmul.f32 %v4608_v10, %v4608_v10  ;;  %v5250_v55 = vpack.c.bf16 %v4608_v10, %v4608_v10  ;;  %v6127_v42 = vpop.f32.mrf.mxu1  ;;  %v4534_v18 = vpop.f32.mrf.mxu0 }
 0x2cc   : > { %v5253_v33 = vpack.c.bf16 %v4611_v58, %v4611_v58  ;;  %v4610_v35 = vadd.f32 %v4519_v60, %v4293_v46  ;;  %v4295_v41 = vadd.f32 %v6127_v42, %v8041_v43  ;;  %v4681_v44 = vmul.f32 %v4611_v58, %v4611_v58 }
 0x2cd   : > { %v4709_v45 = vadd.f32 %v4708_v6, %v4678_v52  ;;  %4876 = vst.msk [vmem:[%s8080_s12 + $0x44] sm:$0xf] %vm921_vm1, %v5250_v55  ;;  %v4640_v20 = vadd.f32 %v4639_v31, %v4609_v30  ;;  %v4205_v38 = vpop.f32.mrf.mxu1  ;;  %v6195_v22 = vpop.f32.mrf.mxu0 }
 0x2ce   : > { %4879 = vst.msk [vmem:[%s8080_s12 + $0x50] sm:$0xf] %vm921_vm1, %v5253_v33  ;;  %v4680_v57 = vmul.f32 %v4610_v35, %v4610_v35  ;;  %v5252_v48 = vpack.c.bf16 %v4610_v35, %v4610_v35  ;;  %v4612_v26 = vadd.f32 %v6191_v23, %v4295_v41 }
 0x2cf   : > { %v4641_v11 = vadd.f32 %v4640_v20, %v4610_v35  ;;  %v4710_v4 = vadd.f32 %v4709_v45, %v4679_v9  ;;  %v6130_v1 = vpop.f32.mrf.mxu1  ;;  %v4536_v27 = vpop.f32.mrf.mxu0 }
 0x2d0   : > { %4878 = vst.msk [vmem:[%s8080_s12 + $0x4c] sm:$0xf] %vm921_vm1, %v5252_v48  ;;  %v5254_v43 = vpack.c.bf16 %v4612_v26, %v4612_v26  ;;  %v4297_v54 = vadd.f32 %v6130_v1, %v8044_v5  ;;  %v4682_v17 = vmul.f32 %v4612_v26, %v4612_v26 }
 0x2d1   : > { %v4711_v37 = vadd.f32 %v4710_v4, %v4680_v57  ;;  %v4642_v0 = vadd.f32 %v4641_v11, %v4611_v58  ;;  %v4217_v50 = vpop.f32.mrf.mxu1  ;;  %v6198_v49 = vpop.f32.mrf.mxu0 }
 0x2d2   : > { %4880 = vst.msk [vmem:[%s8080_s12 + $0x54] sm:$0xf] %vm921_vm1, %v5254_v43  ;;  %v4614_v24 = vadd.f32 %v6194_v47, %v4297_v54 }
 0x2d3   : > { %v4643_v19 = vadd.f32 %v4642_v0, %v4612_v26  ;;  %v4712_v53 = vadd.f32 %v4711_v37, %v4681_v44  ;;  %v6131_v60 = vpop.f32.mrf.mxu1  ;;  %v4548_v21 = vpop.f32.mrf.mxu0 }
 0x2d4   : > { %v5256_v13 = vpack.c.bf16 %v4614_v24, %v4614_v24  ;;  %v4684_v6 = vmul.f32 %v4614_v24, %v4614_v24 }
 0x2d5   : > { %v4713_v40 = vadd.f32 %v4712_v53, %v4682_v17  ;;  %v4219_v7 = vpop.f32.mrf.mxu1  ;;  %v6199_v3 = vpop.f32.mrf.mxu0 }
 0x2d6   : > { %4882 = vst.msk [vmem:[%s8080_s12 + $0x5c] sm:$0xf] %vm921_vm1, %v5256_v13  ;;  %v4296_v5 = vadd.f32 %v4219_v7, %v8047_v25 }
 0x2d7   : > { %v6134_v23 = vpop.f32.mrf.mxu1  ;;  %v4551_v63 = vpop.f32.mrf.mxu0 }
 0x2d8   : > { %v4613_v34 = vadd.f32 %v4536_v27, %v4296_v5 }
 0x2d9   : > { %v4231_v29 = vpop.f32.mrf.mxu1  ;;  %v6202_v28 = vpop.f32.mrf.mxu0 }
 0x2da   : > { %v4644_v30 = vadd.f32 %v4643_v19, %v4613_v34  ;;  %v4683_v59 = vmul.f32 %v4613_v34, %v4613_v34  ;;  %v5255_v51 = vpack.c.bf16 %v4613_v34, %v4613_v34  ;;  %v4298_v32 = vadd.f32 %v4231_v29, %v8051_v36 }
 0x2db   : > { %v6135_v12 = vpop.f32.mrf.mxu1  ;;  %v4563_v62 = vpop.f32.mrf.mxu0 }
 0x2dc   : > { %v4714_v10 = vadd.f32 %v4713_v40, %v4683_v59  ;;  %4881 = vst.msk [vmem:[%s8080_s12 + $0x58] sm:$0xf] %vm921_vm1, %v5255_v51  ;;  %v4615_v39 = vadd.f32 %v4548_v21, %v4298_v32  ;;  %v4645_v47 = vadd.f32 %v4644_v30, %v4614_v24  ;;  %v4300_v25 = vadd.f32 %v6135_v12, %v8054_v61 }
 0x2dd   : > { %v4234_v58 = vpop.f32.mrf.mxu1  ;;  %v6203_v46 = vpop.f32.mrf.mxu0 }
 0x2de   : > { %v4646_v31 = vadd.f32 %v4645_v47, %v4615_v39  ;;  %v4685_v52 = vmul.f32 %v4615_v39, %v4615_v39  ;;  %v4715_v55 = vadd.f32 %v4714_v10, %v4684_v6  ;;  %v5257_v42 = vpack.c.bf16 %v4615_v39, %v4615_v39 }
 0x2df   : > { %v4617_v18 = vadd.f32 %v6199_v3, %v4300_v25  ;;  %v4299_v36 = vadd.f32 %v4234_v58, %v8057_v15  ;;  %v6138_v33 = vpop.f32.mrf.mxu1  ;;  %v4566_v35 = vpop.f32.mrf.mxu0 }
 0x2e0   : > { %v4716_v41 = vadd.f32 %v4715_v55, %v4685_v52  ;;  %4883 = vst.msk [vmem:[%s8080_s12 + $0x60] sm:$0xf] %vm921_vm1, %v5257_v42  ;;  %v4302_v9 = vadd.f32 %v6138_v33, %v8060_v14 }
 0x2e1   : > { %v5259_v45 = vpack.c.bf16 %v4617_v18, %v4617_v18  ;;  %v4616_v20 = vadd.f32 %v4551_v63, %v4299_v36  ;;  %v4246_v61 = vpop.f32.mrf.mxu1  ;;  %v6206_v38 = vpop.f32.mrf.mxu0  ;;  %v4687_v43 = vmul.f32 %v4617_v18, %v4617_v18 }
 0x2e2   : > { %v4619_v22 = vadd.f32 %v6202_v28, %v4302_v9  ;;  %v4301_v57 = vadd.f32 %v4246_v61, %v8063_v56 }
 0x2e3   : > { %4885 = vst.msk [vmem:[%s8080_s12 + $0x68] sm:$0xf] %vm921_vm1, %v5259_v45  ;;  %v4647_v48 = vadd.f32 %v4646_v31, %v4616_v20  ;;  %v4686_v15 = vmul.f32 %v4616_v20, %v4616_v20  ;;  %v5258_v26 = vpack.c.bf16 %v4616_v20, %v4616_v20  ;;  %v6139_v11 = vpop.f32.mrf.mxu1  ;;  %v4578_v4 = vpop.f32.mrf.mxu0 }
 0x2e4   : > { %v5261_v1 = vpack.c.bf16 %v4619_v22, %v4619_v22  ;;  %v4618_v27 = vadd.f32 %v4563_v62, %v4301_v57  ;;  %v4303_v14 = vadd.f32 %v6139_v11, %v8065_v2  ;;  %v4689_v60 = vmul.f32 %v4619_v22, %v4619_v22 }
 0x2e5   : > { %v4717_v54 = vadd.f32 %v4716_v41, %v4686_v15  ;;  %4884 = vst.msk [vmem:[%s8080_s12 + $0x64] sm:$0xf] %vm921_vm1, %v5258_v26  ;;  %v4648_v44 = vadd.f32 %v4647_v48, %v4617_v18  ;;  %v4249_v37 = vpop.f32.mrf.mxu1  ;;  %v6207_v56 = vpop.f32.mrf.mxu0 }
 0x2e6   : > { %4887 = vst.msk [vmem:[%s8080_s12 + $0x70] sm:$0xf] %vm921_vm1, %v5261_v1  ;;  %v4688_v0 = vmul.f32 %v4618_v27, %v4618_v27  ;;  %v5260_v50 = vpack.c.bf16 %v4618_v27, %v4618_v27  ;;  %v4620_v49 = vadd.f32 %v6203_v46, %v4303_v14 }
 0x2e7   : > { %v4649_v24 = vadd.f32 %v4648_v44, %v4618_v27  ;;  %v4718_v19 = vadd.f32 %v4717_v54, %v4687_v43  ;;  %v6142_v17 = vpop.f32.mrf.mxu1 }
 0x2e8   : > { %4886 = vst.msk [vmem:[%s8080_s12 + $0x6c] sm:$0xf] %vm921_vm1, %v5260_v50  ;;  %v5262_v2 = vpack.c.bf16 %v4620_v49, %v4620_v49  ;;  %v4305_v53 = vadd.f32 %v6142_v17, %v8068_v16  ;;  %v4690_v5 = vmul.f32 %v4620_v49, %v4620_v49  ;;  %v4580_v16 = vpop.f32.mrf.mxu0 }
 0x2e9   : > { %v4719_v21 = vadd.f32 %v4718_v19, %v4688_v0  ;;  %v4650_v13 = vadd.f32 %v4649_v24, %v4619_v22  ;;  %v4261_v40 = vpop.f32.mrf.mxu1 }
 0x2ea   : > { %4888 = vst.msk [vmem:[%s8080_s12 + $0x74] sm:$0xf] %vm921_vm1, %v5262_v2  ;;  %v4622_v7 = vadd.f32 %v6206_v38, %v4305_v53 }
 0x2eb   : > { %v4651_v3 = vadd.f32 %v4650_v13, %v4620_v49  ;;  %v4720_v23 = vadd.f32 %v4719_v21, %v4689_v60  ;;  %v6143_v63 = vpop.f32.mrf.mxu1 }
 0x2ec   : > { %v5264_v34 = vpack.c.bf16 %v4622_v7, %v4622_v7  ;;  %v4692_v12 = vmul.f32 %v4622_v7, %v4622_v7 }
 0x2ed   : > { %v4721_v29 = vadd.f32 %v4720_v23, %v4690_v5  ;;  %v4263_v28 = vpop.f32.mrf.mxu1 }
 0x2ee   : > { %4890 = vst.msk [vmem:[%s8080_s12 + $0x7c] sm:$0xf] %vm921_vm1, %v5264_v34  ;;  %v4304_v30 = vadd.f32 %v4263_v28, %v8071_v8 }
 0x2f0   : > { %v4621_v59 = vadd.f32 %v4580_v16, %v4304_v30 }
 0x2f2   : > { %v4652_v51 = vadd.f32 %v4651_v3, %v4621_v59  ;;  %v4691_v32 = vmul.f32 %v4621_v59, %v4621_v59  ;;  %v5263_v6 = vpack.c.bf16 %v4621_v59, %v4621_v59 }
 0x2f4   : > { %v4653_v62 = vadd.f32 %v4652_v51, %v4622_v7  ;;  %v4722_v10 = vadd.f32 %v4721_v29, %v4691_v32  ;;  %4889 = vst.msk [vmem:[%s8080_s12 + $0x78] sm:$0xf] %vm921_vm1, %v5263_v6 }
 0x2f6   : > { %v4654_v39 = vrot.slane %v4653_v62, 4  ;;  %v4723_v47 = vadd.f32 %v4722_v10, %v4692_v12 }
 0x2f8   : > { %v4655_v25 = vadd.f32 %v4654_v39, %v4653_v62  ;;  %v4724_v58 = vrot.slane %v4723_v47, 4 }
 0x2fa   : > { %v4656_v46 = vrot.slane %v4655_v25, 2  ;;  %v4725_v31 = vadd.f32 %v4724_v58, %v4723_v47 }
 0x2fc   : > { %v4657_v52 = vadd.f32 %v4656_v46, %v4655_v25  ;;  %v4726_v8 = vrot.slane %v4725_v31, 2 }
 0x2fe   : > { %v4658_v55 = vrot.slane %v4657_v52, 1  ;;  %v4727_v42 = vadd.f32 %v4726_v8, %v4725_v31 }
 0x300   : > { %v4659_v18 = vadd.f32 %v4658_v55, %v4657_v52  ;;  %v4728_v36 = vrot.slane %v4727_v42, 1 }
 0x302   : > { %4660 = vst [vmem:[%s265_s14] sm:$0x1] %v4659_v18  ;;  %v4729_v33 = vadd.f32 %v4728_v36, %v4727_v42 }
 0x304   : > { %4730 = vst [vmem:[%s268_s17] sm:$0x1] %v4729_v33 }
 0x305 PF: > { %s17_s21 = sadd.s32 1, %s6372_s21  }
 0x306   : > { %p14_p4 = scmp.ge.s32.totalorder %s17_s21, 4  }
 0x308   :  { %16 = sbr.rel (!%p14_p4) target bundleno = 1 (0x1), region = 91 }

// kernel: basic_block_forward.3
= control target key start
LH: loop header
LB: loop body
LE: loop exit
PB: predicated region body
PF: predicated region fallthrough
CT: control target
= control target key end

     0   :  { %s6122_s15 = smov 0   ;;  %s7836_s0 = inlined_call_operand.vmem [shape: f32[2,16,16,8], index: 0, kind: input, shape index: {}]   ;;  %s7837_s1 = inlined_call_operand.vmem [shape: bf16[1152,128], index: 1, kind: input, shape index: {}]   ;;  %s7838_s2 = inlined_call_operand.vmem [shape: bf16[2,16,16,8], index: 2, kind: output, shape index: {0}]   ;;  %s7839_s3 = inlined_call_operand.vmem [shape: f32[2,1,128], index: 3, kind: output, shape index: {1}]   ;;  %s7840_s4 = inlined_call_operand.vmem [shape: f32[2,1,128], index: 4, kind: output, shape index: {2}]  }
   0x1 LB: > { %s4800_s16 = sadd.s32 4294967295, %s6094_s15   ;;  %p4804_p0 = scmp.ge.s32.totalorder %s6094_s15, 1  ;;  %s6094_s15 = sphi %s6122_s15, %s15_s15  }
   0x2   : > { %p167_p1 = scmp.lt.s32.totalorder %s6094_s15, 3 }
   0x4   : > { %p168_p2 = pnand %p4804_p0, %p167_p1 }
   0x6   : > { %171 = sbr.rel (%p168_p2) target bundleno = 745 (0x2e9), region = 28 }
   0xb   : > { %v5956_v0 = vld [vmem:[%s7837_s1 + $0x78] sm:$0xff]   ;;  %p199_p3 = scmp.lt.s32.totalorder %s4800_s16, 1  ;;  %v6136_v1 = vld [vmem:[%s7837_s1 + $0x70] sm:$0xff]   ;;  %v6096_v2 = vmov 0   ;;  %v5958_v3 = vld [vmem:[%s7837_s1 + $0x68] sm:$0xff]   ;;  %vm725_vm0 = vcmask 60416  }
   0xc   : > { %5355 = vmatprep.subr.bf16.mxu0 %v5956_v0  ;;  %5931 = vmatprep.subr.bf16.mxu1 %v5956_v0  ;;  %216 = vst [vmem:[#allocation2] sm:$0xf] %v6096_v2  ;;  %217 = vst [vmem:[#allocation2 + $0x4] sm:$0xf] %v6096_v2  ;;  %v5959_v4 = vld [vmem:[%s7837_s1 + $0x60] sm:$0xff]   ;;  %vm733_vm2 = vcmask 57344  }
   0xd   : > { %s8043_s16 = smov (!%p199_p3, %s4800_s16), 1  ;;  %218 = vst [vmem:[#allocation2 + $0x8] sm:$0xf] %v6096_v2  ;;  %219 = vst [vmem:[#allocation2 + $0xc] sm:$0xf] %v6096_v2  ;;  %5356 = vmatpush3.bf16.msra.mxu0 %v5956_v0  ;;  %5939 = vmatpush3.bf16.msra.mxu1 %v5956_v0  ;;  %v5960_v14 = vld [vmem:[%s7837_s1 + $0x58] sm:$0xff]  }
   0xe   : > { %220 = vst [vmem:[#allocation2 + $0x10] sm:$0xf] %v6096_v2  ;;  %221 = vst [vmem:[#allocation2 + $0x14] sm:$0xf] %v6096_v2  ;;  %5357 = vmatprep.subr.bf16.mxu0 %v6136_v1  ;;  %5932 = vmatprep.subr.bf16.mxu1 %v6136_v1  ;;  %s5001_s23 = sshll.u32 %s8043_s16, 8  ;;  %v6169_v24 = vld [vmem:[%s7837_s1 + $0x50] sm:$0xff]   ;;  %s211_s30 = scalar_lea.vmem %s7839_s3, %s8043_s16 }
   0xf   : > { %222 = vst [vmem:[#allocation2 + $0x18] sm:$0xf] %v6096_v2  ;;  %223 = vst [vmem:[#allocation2 + $0x1c] sm:$0xf] %v6096_v2  ;;  %s6149_s26 = scalar_lea.vmem %s7836_s0, %s5001_s23  ;;  %vm726_vm1 = vsmask.f32 7938  ;;  %s214_s7 = scalar_lea.vmem %s7840_s4, %s8043_s16 }
  0x10   : > { %224 = vst [vmem:[#allocation2 + $0x20] sm:$0xf] %v6096_v2  ;;  %225 = vst [vmem:[#allocation2 + $0x24] sm:$0xf] %v6096_v2  ;;  %v273_v5 = vld [vmem:[%s6149_s26] sm:$0xff]  ;;  %v287_v6 = vld [vmem:[%s6149_s26 + $0x70] sm:$0xff] }
  0x11   : > { %226 = vst [vmem:[#allocation2 + $0x28] sm:$0xf] %v6096_v2  ;;  %227 = vst [vmem:[#allocation2 + $0x2c] sm:$0xf] %v6096_v2  ;;  %5358 = vmatpush3.bf16.msra.mxu0 %v6136_v1  ;;  %5940 = vmatpush3.bf16.msra.mxu1 %v6136_v1  ;;  %v5003_v7 = vpack.c.bf16 %v273_v5, %v273_v5  ;;  %v5017_v8 = vpack.c.bf16 %v287_v6, %v287_v6  ;;  %v288_v12 = vld [vmem:[%s6149_s26 + $0x78] sm:$0xff]  ;;  %v289_v13 = vld [vmem:[%s6149_s26 + $0x80] sm:$0xff] }
  0x12   : > { %228 = vst [vmem:[#allocation2 + $0x30] sm:$0xf] %v6096_v2  ;;  %229 = vst [vmem:[#allocation2 + $0x34] sm:$0xf] %v6096_v2  ;;  %5359 = vmatprep.subr.bf16.mxu0 %v5958_v3  ;;  %5933 = vmatprep.subr.bf16.mxu1 %v5958_v3  ;;  %vm401_vm3 = vsmask.f32 256  ;;  %v5018_v18 = vpack.c.bf16 %v288_v12, %v288_v12  ;;  %v5019_v19 = vpack.c.bf16 %v289_v13, %v289_v13 }
  0x13   : > { %230 = vst [vmem:[#allocation2 + $0x38] sm:$0xf] %v6096_v2  ;;  %231 = vst [vmem:[#allocation2 + $0x3c] sm:$0xf] %v6096_v2  ;;  %v5964_v9 = vld [vmem:[#allocation2] sm:$0xff]   ;;  %v405_v10 = vshrl.u32 %v5003_v7, 16 }
  0x14   : > { %232 = vst [vmem:[#allocation2 + $0x40] sm:$0xf] %v6096_v2  ;;  %233 = vst [vmem:[#allocation2 + $0x44] sm:$0xf] %v6096_v2  ;;  %v408_v11 = vshll.u32 %v5003_v7, 16  ;;  %v1055_v16 = vshrl.u32 %v5964_v9, 16 }
  0x15   : > { %234 = vst [vmem:[#allocation2 + $0x48] sm:$0xf] %v6096_v2  ;;  %235 = vst [vmem:[#allocation2 + $0x4c] sm:$0xf] %v6096_v2  ;;  %5360 = vmatpush3.bf16.msra.mxu0 %v5958_v3  ;;  %5941 = vmatpush3.bf16.msra.mxu1 %v5958_v3  ;;  %v728_v15 = vld [vmem:[#allocation2 + $0xc] sm:$0xf] }
  0x16   : > { %236 = vst [vmem:[#allocation2 + $0x50] sm:$0xf] %v6096_v2  ;;  %237 = vst [vmem:[#allocation2 + $0x54] sm:$0xf] %v6096_v2  ;;  %5361 = vmatprep.subr.bf16.mxu0 %v5959_v4  ;;  %5934 = vmatprep.subr.bf16.mxu1 %v5959_v4  ;;  %v1057_v17 = vshll.u32 %v5964_v9, 16  ;;  %v6163_v20 = vrot.slane %v405_v10, 7 }
  0x17   : > { %238 = vst [vmem:[#allocation2 + $0x58] sm:$0xf] %v6096_v2  ;;  %239 = vst [vmem:[#allocation2 + $0x5c] sm:$0xf] %v6096_v2  ;;  %vm402_vm4 = vsmask.f32 4368 }
  0x18   : > { %240 = vst [vmem:[#allocation2 + $0x60] sm:$0xf] %v6096_v2  ;;  %241 = vst [vmem:[#allocation2 + $0x64] sm:$0xf] %v6096_v2  ;;  %v524_v21 = vshrl.u32 %v5017_v8, 16  ;;  %v527_v22 = vshll.u32 %v5017_v8, 16  ;;  %v410_v31 = vor.u32 %v408_v11, %v6163_v20 }
  0x19   : > { %242 = vst [vmem:[#allocation2 + $0x68] sm:$0xf] %v6096_v2  ;;  %243 = vst [vmem:[#allocation2 + $0x6c] sm:$0xf] %v6096_v2  ;;  %v274_v23 = vld [vmem:[%s6149_s26 + $0x8] sm:$0xff]  ;;  %v1059_v26 = vrot.slane %v1057_v17, 1  ;;  %5362 = vmatpush3.bf16.msra.mxu0 %v5959_v4  ;;  %5942 = vmatpush3.bf16.msra.mxu1 %v5959_v4 }
  0x1a   : > { %244 = vst [vmem:[#allocation2 + $0x70] sm:$0xf] %v6096_v2  ;;  %245 = vst [vmem:[#allocation2 + $0x74] sm:$0xf] %v6096_v2  ;;  %v532_v27 = vshrl.u32 %v5018_v18, 16  ;;  %v535_v28 = vshll.u32 %v5018_v18, 16  ;;  %v5004_v36 = vpack.c.bf16 %v274_v23, %v274_v23  ;;  %5363 = vmatprep.subr.bf16.mxu0 %v5960_v14  ;;  %5935 = vmatprep.subr.bf16.mxu1 %v5960_v14 }
  0x1b   : > { %246 = vst [vmem:[#allocation2 + $0x78] sm:$0xf] %v6096_v2  ;;  %247 = vst [vmem:[#allocation2 + $0x7c] sm:$0xf] %v6096_v2  ;;  %v541_v29 = vshrl.u32 %v5019_v19, 16  ;;  %v526_v32 = vrot.slane %v524_v21, 7  ;;  %v6178_v37 = vor.u32 %v1059_v26, %v1055_v16 }
  0x1c   : > { %248 = vst [vmem:[#allocation2 + $0x80] sm:$0xf] %v6096_v2  ;;  %249 = vst [vmem:[#allocation2 + $0x84] sm:$0xf] %v6096_v2  ;;  %v544_v33 = vshll.u32 %v5019_v19, 16  ;;  %v534_v38 = vrot.slane %v532_v27, 7 }
  0x1d   : > { %250 = vst [vmem:[#allocation2 + $0x88] sm:$0xf] %v6096_v2  ;;  %251 = vst [vmem:[#allocation2 + $0x8c] sm:$0xf] %v6096_v2  ;;  %v6180_v39 = vrot.slane %v541_v29, 7  ;;  %v290_v41 = vld [vmem:[%s6149_s26 + $0x88] sm:$0xff]  ;;  %v529_v44 = vor.u32 %v527_v22, %v526_v32  ;;  %5364 = vmatpush3.bf16.msra.mxu0 %v5960_v14  ;;  %5943 = vmatpush3.bf16.msra.mxu1 %v5960_v14 }
  0x1e   : > { %252 = vst [vmem:[#allocation2 + $0x90] sm:$0xf] %v6096_v2  ;;  %253 = vst [vmem:[#allocation2 + $0x94] sm:$0xf] %v6096_v2  ;;  %v530_v45 = vrot.slane %v526_v32, 4  ;;  %v413_v46 = vshrl.u32 %v5004_v36, 16  ;;  %v537_v47 = vor.u32 %v535_v28, %v534_v38  ;;  %v5020_v55 = vpack.c.bf16 %v290_v41, %v290_v41  ;;  %5365 = vmatprep.subr.bf16.mxu0 %v6169_v24 }
  0x1f   : > { %254 = vst [vmem:[#allocation2 + $0x98] sm:$0xf] %v6096_v2  ;;  %255 = vst [vmem:[#allocation2 + $0x9c] sm:$0xf] %v6096_v2  ;;  %v780_v30 = vld [vmem:[#allocation2 + $0x60] sm:$0xf]  ;;  %v546_v49 = vor.u32 %v544_v33, %v6180_v39  ;;  %5936 = vmatprep.subr.bf16.mxu1 %v6169_v24 }
  0x20   : > { %256 = vst [vmem:[#allocation2 + $0xa0] sm:$0xf] %v6096_v2  ;;  %257 = vst [vmem:[#allocation2 + $0xa4] sm:$0xf] %v6096_v2  ;;  %v784_v34 = vld [vmem:[#allocation2 + $0x68] sm:$0x1] }
  0x21   : > { %258 = vst [vmem:[#allocation2 + $0xa8] sm:$0xf] %v6096_v2  ;;  %259 = vst [vmem:[#allocation2 + $0xac] sm:$0xf] %v6096_v2  ;;  %v787_v35 = vld [vmem:[#allocation2 + $0x6c] sm:$0xf]  ;;  %5366 = vmatpush3.bf16.msra.mxu0 %v6169_v24  ;;  %5944 = vmatpush3.bf16.msra.mxu1 %v6169_v24 }
  0x22   : > { %260 = vst [vmem:[#allocation2 + $0xb0] sm:$0xf] %v6096_v2  ;;  %261 = vst [vmem:[#allocation2 + $0xb4] sm:$0xf] %v6096_v2  ;;  %v539_v48 = vrot.slane %v534_v38, 4  ;;  %v416_v50 = vshll.u32 %v5004_v36, 16 }
  0x23   : > { %262 = vst [vmem:[#allocation2 + $0xb8] sm:$0xf] %v6096_v2  ;;  %263 = vst [vmem:[#allocation2 + $0xbc] sm:$0xf] %v6096_v2  ;;  %v5962_v51 = vld [vmem:[%s7837_s1 + $0x48] sm:$0xff]   ;;  %v411_v53 = vrot.slane %v6163_v20, 4 }
  0x24   : > { %264 = vst [vmem:[#allocation2 + $0xc0] sm:$0xf] %v6096_v2  ;;  %265 = vst [vmem:[#allocation2 + $0xc4] sm:$0xf] %v6096_v2  ;;  %v415_v54 = vrot.slane %v413_v46, 7  ;;  %v275_v56 = vld [vmem:[%s6149_s26 + $0x10] sm:$0xff]  ;;  %5367 = vmatprep.subr.bf16.mxu0 %v5962_v51  ;;  %5937 = vmatprep.subr.bf16.mxu1 %v5962_v51 }
  0x25   : > { %266 = vst [vmem:[#allocation2 + $0xc8] sm:$0xf] %v6096_v2  ;;  %267 = vst [vmem:[#allocation2 + $0xcc] sm:$0xf] %v6096_v2  ;;  %v735_v60 = vld [vmem:[#allocation2 + $0x14] sm:$0x1]  ;;  %v5005_v5 = vpack.c.bf16 %v275_v56, %v275_v56  ;;  %5368 = vmatpush3.bf16.msra.mxu0 %v5962_v51  ;;  %5945 = vmatpush3.bf16.msra.mxu1 %v5962_v51 }
  0x26   : > { %268 = vst [vmem:[#allocation2 + $0xd0] sm:$0xf] %v6096_v2  ;;  %269 = vst [vmem:[#allocation2 + $0xd4] sm:$0xf] %v6096_v2  ;;  %v547_v61 = vrot.slane %v6180_v39, 4  ;;  %v276_v62 = vld [vmem:[%s6149_s26 + $0x18] sm:$0xff]  ;;  %v418_v0 = vor.u32 %v416_v50, %v415_v54 }
  0x27   : > { %270 = vst [vmem:[#allocation2 + $0xd8] sm:$0xf] %v6096_v2  ;;  %vm6173_vm5 = vmand %vm725_vm0, %vm726_vm1  ;;  %v291_v63 = vld [vmem:[%s6149_s26 + $0x90] sm:$0xff]  ;;  %vm1053_vm8 = vsmask.f32 7424  ;;  %v420_v1 = vrot.slane %v415_v54, 4  ;;  %v5006_v6 = vpack.c.bf16 %v276_v62, %v276_v62 }
  0x28   : > { %vm6184_vm6 = vmand %vm733_vm2, %vm401_vm3  ;;  %v729_v42 = vsel %vm6173_vm5, %v410_v31, %v728_v15  ;;  %v781_v52 = vsel %vm6173_vm5, %v529_v44, %v780_v30  ;;  %v788_v59 = vsel %vm6173_vm5, %v546_v49, %v787_v35  ;;  %v549_v2 = vshrl.u32 %v5020_v55, 16  ;;  %v292_v4 = vld [vmem:[%s6149_s26 + $0x98] sm:$0xff]  ;;  %v277_v9 = vld [vmem:[%s6149_s26 + $0x20] sm:$0xff]  ;;  %s5002_s23 = sshll.u32 %s8043_s16, 7 }
  0x29   : > { %vm6193_vm7 = vmor %vm401_vm3, %vm402_vm4  ;;  %730 = vst [vmem:[#allocation2 + $0xc] sm:$0xf] %v729_v42  ;;  %v785_v58 = vsel %vm6184_vm6, %v539_v48, %v784_v34  ;;  %v552_v3 = vshll.u32 %v5020_v55, 16  ;;  %v5021_v7 = vpack.c.bf16 %v291_v63, %v291_v63  ;;  %v6218_v8 = vpack.c.bf16 %v292_v4, %v292_v4  ;;  %v5963_v10 = vld [vmem:[%s7837_s1 + $0x40] sm:$0xff]   ;;  %v845_v11 = vld [vmem:[#allocation2 + $0x8] sm:$0xf]  ;;  %s7729_s27 = scalar_lea.vmem %s7838_s2, %s5002_s23 }
  0x2a   : > { %v538_v57 = vsel %vm6193_vm7, %v530_v45, %v537_v47  ;;  %782 = vst [vmem:[#allocation2 + $0x60] sm:$0xf] %v781_v52  ;;  %786 = vst [vmem:[#allocation2 + $0x68] sm:$0x1] %v785_v58  ;;  %v419_v12 = vsel %vm6193_vm7, %v411_v53, %v418_v0  ;;  %v736_v13 = vsel %vm6184_vm6, %v420_v1, %v735_v60  ;;  %v551_v14 = vrot.slane %v549_v2, 7  ;;  %v6238_v29 = vld [vmem:[%s7837_s1 + $0x38] sm:$0xff]  }
  0x2b   : > { %783 = vst.msk [vmem:[#allocation2 + $0x64] sm:$0xf] %vm725_vm0, %v538_v57  ;;  %789 = vst [vmem:[#allocation2 + $0x6c] sm:$0xf] %v788_v59  ;;  %v791_v15 = vld [vmem:[#allocation2 + $0x74] sm:$0x1]  ;;  %v6230_v16 = vpack.c.bf16 %v277_v9, %v277_v9  ;;  %5369 = vmatprep.subr.bf16.mxu0 %v5963_v10  ;;  %5938 = vmatprep.subr.bf16.mxu1 %v5963_v10 }
  0x2c   : > { %732 = vst.msk [vmem:[#allocation2 + $0x10] sm:$0xf] %vm725_vm0, %v419_v12  ;;  %737 = vst [vmem:[#allocation2 + $0x14] sm:$0x1] %v736_v13  ;;  %v422_v17 = vshrl.u32 %v5005_v5, 16  ;;  %v425_v18 = vshll.u32 %v5005_v5, 16  ;;  %v554_v22 = vor.u32 %v552_v3, %v551_v14  ;;  %5370 = vmatpush3.bf16.msra.mxu0 %v5963_v10  ;;  %5946 = vmatpush3.bf16.msra.mxu1 %v5963_v10 }
  0x2d   : > { %v430_v19 = vshrl.u32 %v5006_v6, 16  ;;  %v433_v20 = vshll.u32 %v5006_v6, 16  ;;  %v556_v23 = vrot.slane %v551_v14, 4  ;;  %v738_v24 = vld [vmem:[#allocation2 + $0x18] sm:$0xf]  ;;  %v558_v26 = vshrl.u32 %v5021_v7, 16  ;;  %5419 = vmatprep.subr.bf16.mxu1 %v6238_v29 }
  0x2e   : > { %v561_v27 = vshll.u32 %v5021_v7, 16  ;;  %v6243_v30 = vld [vmem:[%s7837_s1 + $0xb8] sm:$0xff]   ;;  %v424_v31 = vrot.slane %v422_v17, 7  ;;  %v566_v33 = vshrl.u32 %v6218_v8, 16  ;;  %v555_v36 = vsel %vm6193_vm7, %v547_v61, %v554_v22  ;;  %v742_v4 = vld [vmem:[#allocation2 + $0x20] sm:$0x1] }
  0x2f   : > { %v6245_v32 = vrot.slane %v430_v19, 7  ;;  %v794_v34 = vld [vmem:[#allocation2 + $0x78] sm:$0xf]  ;;  %v792_v38 = vsel %vm6184_vm6, %v556_v23, %v791_v15  ;;  %v560_v39 = vrot.slane %v558_v26, 7  ;;  %v569_v41 = vshll.u32 %v6218_v8, 16  ;;  %5483 = vmatprep.subr.bf16.mxu0 %v6243_v30  ;;  %v293_v12 = vld [vmem:[%s6149_s26 + $0xa0] sm:$0xff] }
  0x30   : > { %v846_v21 = vld [vmem:[#allocation2 + $0xc] sm:$0xf]  ;;  %790 = vst.msk [vmem:[#allocation2 + $0x70] sm:$0xf] %vm725_vm0, %v555_v36  ;;  %793 = vst [vmem:[#allocation2 + $0x74] sm:$0x1] %v792_v38  ;;  %v427_v47 = vor.u32 %v425_v18, %v424_v31 }
  0x31   : > { %v6233_v28 = vcombine.low %v845_v11, %v846_v21  ;;  %v867_v35 = vld [vmem:[#allocation2 + $0x60] sm:$0xf]  ;;  %v869_v45 = vld [vmem:[#allocation2 + $0x68] sm:$0xf]  ;;  %v435_v48 = vor.u32 %v433_v20, %v6245_v32  ;;  %v428_v51 = vrot.slane %v424_v31, 4  ;;  %v563_v52 = vor.u32 %v561_v27, %v560_v39 }
  0x32   : > { %v868_v44 = vld [vmem:[#allocation2 + $0x64] sm:$0xf]  ;;  %v870_v49 = vld [vmem:[#allocation2 + $0x6c] sm:$0xf]  ;;  %v564_v53 = vrot.slane %v560_v39, 4  ;;  %v739_v56 = vsel %vm6173_vm5, %v427_v47, %v738_v24  ;;  %v6263_v57 = vrot.slane %v566_v33, 7 }
  0x33   : > { %v1062_v42 = vshll.u32 %v6233_v28, 16  ;;  %v1066_v46 = vshrl.u32 %v6233_v28, 16  ;;  %v6257_v50 = vcombine.low %v867_v35, %v868_v44  ;;  %v6259_v55 = vcombine.low %v869_v45, %v870_v49  ;;  %v847_v60 = vld [vmem:[#allocation2 + $0x10] sm:$0xf]  ;;  %v848_v61 = vld [vmem:[#allocation2 + $0x14] sm:$0xf] }
  0x34   : > { %v436_v62 = vsel %vm6193_vm7, %v428_v51, %v435_v48  ;;  %740 = vst [vmem:[#allocation2 + $0x18] sm:$0xf] %v739_v56  ;;  %v795_v63 = vsel %vm6173_vm5, %v563_v52, %v794_v34  ;;  %v6274_v2 = vcombine.low %v847_v60, %v848_v61  ;;  %v571_v6 = vor.u32 %v569_v41, %v6263_v57  ;;  %v278_v13 = vld [vmem:[%s6149_s26 + $0x28] sm:$0xff]  ;;  %v745_v26 = vld [vmem:[#allocation2 + $0x24] sm:$0xf]  ;;  %v5977_v33 = vld [vmem:[%s7837_s1 + $0xb0] sm:$0xff]  }
  0x35   : > { %v1064_v54 = vrot.slane %v1062_v42, 1  ;;  %v1150_v58 = vshll.u32 %v6257_v50, 16  ;;  %v1154_v59 = vshrl.u32 %v6257_v50, 16  ;;  %v1158_v1 = vshll.u32 %v6259_v55, 16  ;;  %741 = vst.msk [vmem:[#allocation2 + $0x1c] sm:$0xf] %vm725_vm0, %v436_v62 }
  0x36   : > { %796 = vst [vmem:[#allocation2 + $0x78] sm:$0xf] %v795_v63  ;;  %v437_v7 = vrot.slane %v6245_v32, 4  ;;  %v1070_v9 = vshll.u32 %v6274_v2, 16  ;;  %v1074_v10 = vshrl.u32 %v6274_v2, 16  ;;  %v439_v11 = vshrl.u32 %v6230_v16, 16 }
  0x37   : > { %v1065_v0 = vsel %vm1053_vm8, %v6178_v37, %v1064_v54  ;;  %v1068_v3 = vor.u32 %v1066_v46, %v1064_v54  ;;  %v6279_v5 = vrot.slane %v1150_v58, 1  ;;  %v1162_v37 = vshrl.u32 %v6259_v55, 16  ;;  %v871_v15 = vld [vmem:[#allocation2 + $0x70] sm:$0xf]  ;;  %v872_v17 = vld [vmem:[#allocation2 + $0x74] sm:$0xf] }
  0x38   : > { %5371 = vmatprep.mubr.bf16.mxu0 %v1065_v0  ;;  %v1160_v8 = vrot.slane %v1158_v1, 1  ;;  %v572_v18 = vsel %vm6193_vm7, %v564_v53, %v571_v6  ;;  %v442_v19 = vshll.u32 %v6230_v16, 16  ;;  %v743_v20 = vsel %vm6184_vm6, %v437_v7, %v742_v4  ;;  %v798_v27 = vld [vmem:[#allocation2 + $0x80] sm:$0x1]  ;;  %v294_v35 = vld [vmem:[%s6149_s26 + $0xa8] sm:$0xff]  ;;  %v6315_v44 = vld [vmem:[%s7837_s1 + $0x30] sm:$0xff]  }
  0x39   : > { %v1156_v14 = vor.u32 %v1154_v59, %v6279_v5  ;;  %v1072_v21 = vrot.slane %v1070_v9, 1  ;;  %v6295_v22 = vcombine.low %v871_v15, %v872_v17  ;;  %797 = vst.msk [vmem:[#allocation2 + $0x7c] sm:$0xf] %vm725_vm0, %v572_v18  ;;  %v6298_v24 = vrot.slane %v439_v11, 7  ;;  %744 = vst [vmem:[#allocation2 + $0x20] sm:$0x1] %v743_v20 }
  0x3a   : > { %v1164_v23 = vor.u32 %v1162_v37, %v1160_v8  ;;  %v5023_v32 = vpack.c.bf16 %v293_v12, %v293_v12  ;;  %v573_v16 = vrot.slane %v6263_v57, 4  ;;  %v5008_v34 = vpack.c.bf16 %v278_v13, %v278_v13  ;;  %v5979_v51 = vld [vmem:[%s7837_s1 + $0xa8] sm:$0xff]   ;;  %v279_v57 = vld [vmem:[%s6149_s26 + $0x30] sm:$0xff]  ;;  %v280_v4 = vld [vmem:[%s6149_s26 + $0x38] sm:$0xff] }
  0x3b   : > { %v6301_v31 = vsel %vm1053_vm8, %v1156_v14, %v1160_v8  ;;  %v1073_v36 = vsel %vm1053_vm8, %v1068_v3, %v1072_v21  ;;  %v1166_v38 = vshll.u32 %v6295_v22, 16  ;;  %v849_v39 = vld [vmem:[#allocation2 + $0x18] sm:$0xf]  ;;  %v1076_v41 = vor.u32 %v1074_v10, %v1072_v21  ;;  %v801_v3 = vld [vmem:[#allocation2 + $0x84] sm:$0xf]  ;;  %v5978_v17 = vld [vmem:[%s7837_s1 + $0x28] sm:$0xff]  }
  0x3c   : > { %7902 = vst [vmem:[#allocation3_spill] sm:$0xff] %v6301_v31  ;;  %5395 = vmatprep.mubr.bf16.mxu1 %v6301_v31  ;;  %v1170_v42 = vshrl.u32 %v6295_v22, 16  ;;  %5372 = vmatmul.mubr.bf16.vlgmr.msra.gmra.mxu0 %v1073_v36  ;;  %v850_v45 = vld [vmem:[#allocation2 + $0x1c] sm:$0xf]  ;;  %v444_v46 = vor.u32 %v442_v19, %v6298_v24  ;;  %v575_v47 = vshrl.u32 %v5023_v32, 16  ;;  %v578_v48 = vshll.u32 %v5023_v32, 16 }
  0x3d   : > { %v799_v49 = vsel %vm6184_vm6, %v573_v16, %v798_v27  ;;  %v1168_v52 = vrot.slane %v1166_v38, 1  ;;  %5484 = vmatpush3.bf16.msra.mxu0 %v6243_v30  ;;  %v6324_v53 = vcombine.low %v849_v39, %v850_v45  ;;  %v445_v54 = vrot.slane %v6298_v24, 4  ;;  %v873_v58 = vld [vmem:[#allocation2 + $0x78] sm:$0xf]  ;;  %v749_v12 = vld [vmem:[#allocation2 + $0x2c] sm:$0x1] }
  0x3e   : > { %800 = vst [vmem:[#allocation2 + $0x80] sm:$0x1] %v799_v49  ;;  %v447_v56 = vshrl.u32 %v5008_v34, 16  ;;  %v746_v59 = vsel %vm6173_vm5, %v444_v46, %v745_v26  ;;  %v6330_v60 = vrot.slane %v575_v47, 7  ;;  %5485 = vmatprep.subr.bf16.mxu0 %v5977_v33  ;;  %v450_v61 = vshll.u32 %v5008_v34, 16  ;;  %v5985_v20 = vld [vmem:[%s7837_s1 + $0xa0] sm:$0xff]  }
  0x3f   : > { %v5024_v62 = vpack.c.bf16 %v294_v35, %v294_v35  ;;  %v6333_v63 = vsel %vm1053_vm8, %v1164_v23, %v1168_v52  ;;  %v1078_v30 = vshll.u32 %v6324_v53, 16  ;;  %v1172_v0 = vor.u32 %v1170_v42, %v1168_v52  ;;  %747 = vst [vmem:[#allocation2 + $0x24] sm:$0xf] %v746_v59  ;;  %v805_v27 = vld [vmem:[#allocation2 + $0x8c] sm:$0x1]  ;;  %v295_v32 = vld [vmem:[%s6149_s26 + $0xb0] sm:$0xff] }
  0x40   : > { %7903 = vst [vmem:[#allocation4_spill] sm:$0xff] %v6333_v63  ;;  %v1082_v1 = vshrl.u32 %v6324_v53, 16  ;;  %5396 = vmatmul.mubr.bf16.vlgmr.msra.gmra.mxu1 %v6333_v63  ;;  %v874_v37 = vld [vmem:[#allocation2 + $0x7c] sm:$0xf]  ;;  %v580_v6 = vor.u32 %v578_v48, %v6330_v60  ;;  %v449_v7 = vrot.slane %v447_v56, 7  ;;  %v581_v8 = vrot.slane %v6330_v60, 4 }
  0x41   : > { %v5009_v9 = vpack.c.bf16 %v279_v57, %v279_v57  ;;  %5420 = vmatpush3.bf16.msra.mxu1 %v6238_v29  ;;  %v1080_v10 = vrot.slane %v1078_v30, 1  ;;  %v6342_v11 = vcombine.low %v873_v58, %v874_v37  ;;  %5486 = vmatpush3.bf16.msra.mxu0 %v5977_v33  ;;  %v583_v13 = vshrl.u32 %v5024_v62, 16  ;;  %v851_v16 = vld [vmem:[#allocation2 + $0x20] sm:$0xf]  ;;  %v296_v38 = vld [vmem:[%s6149_s26 + $0xb8] sm:$0xff] }
  0x42   : > { %v586_v14 = vshll.u32 %v5024_v62, 16  ;;  %5421 = vmatprep.subr.bf16.mxu1 %v6315_v44  ;;  %v802_v15 = vsel %vm6173_vm5, %v580_v6, %v801_v3  ;;  %5487 = vmatprep.subr.bf16.mxu0 %v5979_v51  ;;  %v452_v18 = vor.u32 %v450_v61, %v449_v7  ;;  %v454_v29 = vrot.slane %v449_v7, 4  ;;  %v6367_v39 = vld [vmem:[%s7837_s1 + $0x20] sm:$0xff]   ;;  %v752_v47 = vld [vmem:[#allocation2 + $0x30] sm:$0xf]  ;;  %v5991_v60 = vld [vmem:[%s7837_s1 + $0x98] sm:$0xff]  }
  0x43   : > { %7904 = vst [vmem:[#allocation5_spill] sm:$0xff] %v6342_v11  ;;  %v5010_v19 = vpack.c.bf16 %v280_v4, %v280_v4  ;;  %v1081_v21 = vsel %vm1053_vm8, %v1076_v41, %v1080_v10  ;;  %v1174_v23 = vshll.u32 %v6342_v11, 16  ;;  %v6355_v24 = vor.u32 %v1082_v1, %v1080_v10  ;;  %803 = vst [vmem:[#allocation2 + $0x84] sm:$0xf] %v802_v15  ;;  %v281_v48 = vld [vmem:[%s6149_s26 + $0x40] sm:$0xff]  ;;  %v5990_v15 = vld [vmem:[%s7837_s1 + $0x18] sm:$0xff]  }
  0x44   : > { %v1178_v26 = vshrl.u32 %v6342_v11, 16  ;;  %5375 = vmatprep.mubr.bf16.mxu0 %v1081_v21  ;;  %v453_v33 = vsel %vm6193_vm7, %v445_v54, %v452_v18  ;;  %v750_v34 = vsel %vm6184_vm6, %v454_v29, %v749_v12  ;;  %v585_v35 = vrot.slane %v583_v13, 7  ;;  %v297_v7 = vld [vmem:[%s6149_s26 + $0xc0] sm:$0xff] }
  0x45   : > { %v456_v36 = vshrl.u32 %v5009_v9, 16  ;;  %v1176_v41 = vrot.slane %v1174_v23, 1  ;;  %5422 = vmatpush3.bf16.msra.mxu1 %v6315_v44  ;;  %748 = vst.msk [vmem:[#allocation2 + $0x28] sm:$0xf] %vm725_vm0, %v453_v33  ;;  %751 = vst [vmem:[#allocation2 + $0x2c] sm:$0x1] %v750_v34  ;;  %5488 = vmatpush3.bf16.msra.mxu0 %v5979_v51  ;;  %v5025_v57 = vpack.c.bf16 %v295_v32, %v295_v32 }
  0x46   : > { %v459_v42 = vshll.u32 %v5009_v9, 16  ;;  %v464_v45 = vshrl.u32 %v5010_v19, 16  ;;  %v467_v46 = vshll.u32 %v5010_v19, 16  ;;  %v852_v49 = vld [vmem:[#allocation2 + $0x24] sm:$0xf]  ;;  %5423 = vmatprep.subr.bf16.mxu1 %v5978_v17  ;;  %v588_v52 = vor.u32 %v586_v14, %v585_v35  ;;  %5489 = vmatprep.subr.bf16.mxu0 %v5985_v20  ;;  %v282_v9 = vld [vmem:[%s6149_s26 + $0x48] sm:$0xff] }
  0x47   : > { %v590_v54 = vrot.slane %v585_v35, 4  ;;  %v458_v56 = vrot.slane %v456_v36, 7  ;;  %v6373_v58 = vsel %vm1053_vm8, %v1172_v0, %v1176_v41  ;;  %v6375_v44 = vcombine.low %v851_v16, %v852_v49  ;;  %v875_v61 = vld [vmem:[#allocation2 + $0x80] sm:$0xf]  ;;  %v808_v36 = vld [vmem:[#allocation2 + $0x90] sm:$0xf] }
  0x48   : > { %7905 = vst [vmem:[#allocation6_spill] sm:$0xff] %v6373_v58  ;;  %v6377_v59 = vor.u32 %v1178_v26, %v1176_v41  ;;  %v6379_v51 = vrot.slane %v464_v45, 7  ;;  %5399 = vmatprep.mubr.bf16.mxu1 %v6373_v58  ;;  %v589_v62 = vsel %vm6193_vm7, %v581_v8, %v588_v52  ;;  %v5026_v6 = vpack.c.bf16 %v296_v38, %v296_v38  ;;  %v5997_v38 = vld [vmem:[%s7837_s1 + $0x90] sm:$0xff]  }
  0x49   : > { %v806_v30 = vsel %vm6184_vm6, %v590_v54, %v805_v27  ;;  %v461_v0 = vor.u32 %v459_v42, %v458_v56  ;;  %v462_v1 = vrot.slane %v458_v56, 4  ;;  %v1086_v3 = vshll.u32 %v6375_v44, 16  ;;  %5424 = vmatpush3.bf16.msra.mxu1 %v5978_v17  ;;  %804 = vst.msk [vmem:[#allocation2 + $0x88] sm:$0xf] %vm725_vm0, %v589_v62  ;;  %5490 = vmatpush3.bf16.msra.mxu0 %v5985_v20  ;;  %v826_v58 = vld [vmem:[#allocation2 + $0xb0] sm:$0x1] }
  0x4a   : > { %v1090_v4 = vshrl.u32 %v6375_v44, 16  ;;  %807 = vst [vmem:[#allocation2 + $0x8c] sm:$0x1] %v806_v30  ;;  %v469_v37 = vor.u32 %v467_v46, %v6379_v51  ;;  %v876_v8 = vld [vmem:[#allocation2 + $0x84] sm:$0xf]  ;;  %v592_v12 = vshrl.u32 %v5025_v57, 16  ;;  %5425 = vmatprep.subr.bf16.mxu1 %v6367_v39  ;;  %v6398_v14 = vpack.c.bf16 %v281_v48, %v281_v48  ;;  %5491 = vmatprep.subr.bf16.mxu0 %v5991_v60 }
  0x4b   : > { %v753_v10 = vsel %vm6173_vm5, %v461_v0, %v752_v47  ;;  %v595_v13 = vshll.u32 %v5025_v57, 16  ;;  %v1088_v17 = vrot.slane %v1086_v3, 1  ;;  %v6403_v18 = vcombine.low %v875_v61, %v876_v8  ;;  %v756_v46 = vld [vmem:[#allocation2 + $0x38] sm:$0x1]  ;;  %v5992_v47 = vld [vmem:[%s7837_s1 + $0x10] sm:$0xff]   ;;  %v6441_v0 = vld [vmem:[%s7837_s1 + $0x8] sm:$0xff]  }
  0x4c   : > { %v470_v29 = vsel %vm6193_vm7, %v462_v1, %v469_v37  ;;  %754 = vst [vmem:[#allocation2 + $0x30] sm:$0xf] %v753_v10  ;;  %v600_v19 = vshrl.u32 %v5026_v6, 16  ;;  %v853_v20 = vld [vmem:[#allocation2 + $0x28] sm:$0xf]  ;;  %v594_v23 = vrot.slane %v592_v12, 7  ;;  %v6410_v27 = vpack.c.bf16 %v297_v7, %v297_v7 }
  0x4d   : > { %7906 = vst [vmem:[#allocation7_spill] sm:$0xff] %v6403_v18  ;;  %v6407_v21 = vld [vmem:[#allocation2 + $0x2c] sm:$0xf]  ;;  %755 = vst.msk [vmem:[#allocation2 + $0x34] sm:$0xf] %vm725_vm0, %v470_v29  ;;  %v603_v26 = vshll.u32 %v5026_v6, 16  ;;  %v6412_v32 = vpack.c.bf16 %v282_v9, %v282_v9  ;;  %v6416_v16 = vsel %vm1053_vm8, %v6355_v24, %v1088_v17  ;;  %v1092_v35 = vor.u32 %v1090_v4, %v1088_v17 }
  0x4e   : > { %7907 = vst [vmem:[#allocation8_spill] sm:$0xff] %v6416_v16  ;;  %v1182_v33 = vshll.u32 %v6403_v18, 16  ;;  %v6420_v34 = vcombine.low %v853_v20, %v6407_v21  ;;  %5426 = vmatpush3.bf16.msra.mxu1 %v6367_v39  ;;  %5492 = vmatpush3.bf16.msra.mxu0 %v5991_v60  ;;  %v1186_v41 = vshrl.u32 %v6403_v18, 16  ;;  %v597_v24 = vor.u32 %v595_v13, %v594_v23  ;;  %v812_v30 = vld [vmem:[#allocation2 + $0x98] sm:$0x1]  ;;  %v5999_v6 = vld [vmem:[%s7837_s1 + $0x88] sm:$0xff]  }
  0x4f   : > { %5376 = vmatmul.mubr.bf16.gmra.mxu0 %v6416_v16  ;;  %v598_v42 = vrot.slane %v594_v23, 4  ;;  %v602_v45 = vrot.slane %v600_v19, 7  ;;  %5427 = vmatprep.subr.bf16.mxu1 %v5990_v15  ;;  %v471_v52 = vrot.slane %v6379_v51, 4  ;;  %v473_v61 = vshrl.u32 %v6398_v14, 16  ;;  %v759_v37 = vld [vmem:[#allocation2 + $0x3c] sm:$0xf] }
  0x50   : > { %v1184_v48 = vrot.slane %v1182_v33, 1  ;;  %v1094_v39 = vshll.u32 %v6420_v34, 16  ;;  %v1098_v49 = vshrl.u32 %v6420_v34, 16  ;;  %5493 = vmatprep.subr.bf16.mxu0 %v5997_v38  ;;  %v877_v54 = vld [vmem:[#allocation2 + $0x88] sm:$0xf]  ;;  %v809_v60 = vsel %vm6173_vm5, %v597_v24, %v808_v36 }
  0x51   : > { %v878_v56 = vld [vmem:[#allocation2 + $0x8c] sm:$0xf]  ;;  %v605_v57 = vor.u32 %v603_v26, %v602_v45  ;;  %v476_v62 = vshll.u32 %v6398_v14, 16  ;;  %810 = vst [vmem:[#allocation2 + $0x90] sm:$0xf] %v809_v60  ;;  %v6457_v9 = vrot.slane %v473_v61, 7  ;;  %v757_v8 = vsel %vm6184_vm6, %v471_v52, %v756_v46 }
  0x52   : > { %v6445_v51 = vsel %vm1053_vm8, %v6377_v59, %v1184_v48  ;;  %v1096_v1 = vrot.slane %v1094_v39, 1  ;;  %v6447_v3 = vcombine.low %v877_v54, %v878_v56  ;;  %v1188_v4 = vor.u32 %v1186_v41, %v1184_v48  ;;  %5428 = vmatpush3.bf16.msra.mxu1 %v5990_v15  ;;  %5494 = vmatpush3.bf16.msra.mxu0 %v5997_v38  ;;  %v298_v41 = vld [vmem:[%s6149_s26 + $0xc8] sm:$0xff]  ;;  %v283_v46 = vld [vmem:[%s6149_s26 + $0x50] sm:$0xff]  ;;  %v284_v48 = vld [vmem:[%s6149_s26 + $0x58] sm:$0xff] }
  0x53   : > { %7908 = vst [vmem:[#allocation9_spill] sm:$0xff] %v6445_v51  ;;  %5400 = vmatmul.mubr.bf16.gmra.mxu1 %v6445_v51  ;;  %v6453_v7 = vld [vmem:[#allocation2 + $0x30] sm:$0xf]  ;;  %v606_v59 = vsel %vm6193_vm7, %v598_v42, %v605_v57  ;;  %v607_v10 = vrot.slane %v602_v45, 4  ;;  %5429 = vmatprep.subr.bf16.mxu1 %v5992_v47  ;;  %758 = vst [vmem:[#allocation2 + $0x38] sm:$0x1] %v757_v8  ;;  %v478_v19 = vor.u32 %v476_v62, %v6457_v9 }
  0x54   : > { %7909 = vst [vmem:[#allocation10_spill] sm:$0xff] %v6447_v3  ;;  %v6462_v12 = vsel %vm1053_vm8, %v1092_v35, %v1096_v1  ;;  %v1190_v13 = vshll.u32 %v6447_v3, 16  ;;  %v6465_v14 = vld [vmem:[#allocation2 + $0x34] sm:$0xf]  ;;  %v1100_v15 = vor.u32 %v1098_v49, %v1096_v1  ;;  %811 = vst.msk [vmem:[#allocation2 + $0x94] sm:$0xf] %vm725_vm0, %v606_v59  ;;  %5495 = vmatprep.subr.bf16.mxu0 %v5999_v6 }
  0x55   : > { %7910 = vst [vmem:[#allocation11_spill] sm:$0xff] %v6462_v12  ;;  %v1194_v17 = vshrl.u32 %v6447_v3, 16  ;;  %5379 = vmatprep.mubr.bf16.mxu0 %v6462_v12  ;;  %v6472_v29 = vcombine.low %v6453_v7, %v6465_v14  ;;  %v609_v20 = vshrl.u32 %v6410_v27, 16  ;;  %v612_v23 = vshll.u32 %v6410_v27, 16  ;;  %v815_v35 = vld [vmem:[#allocation2 + $0x9c] sm:$0xf] }
  0x56   : > { %v1192_v26 = vrot.slane %v1190_v13, 1  ;;  %v813_v33 = vsel %vm6184_vm6, %v607_v10, %v812_v30  ;;  %v479_v36 = vrot.slane %v6457_v9, 4  ;;  %v481_v38 = vshrl.u32 %v6412_v32, 16  ;;  %5430 = vmatpush3.bf16.msra.mxu1 %v5992_v47  ;;  %5496 = vmatpush3.bf16.msra.mxu0 %v5999_v6  ;;  %v6003_v47 = vld [vmem:[%s7837_s1] sm:$0xff]   ;;  %v299_v1 = vld [vmem:[%s6149_s26 + $0xd0] sm:$0xff] }
  0x57   : > { %v1102_v24 = vshll.u32 %v6472_v29, 16  ;;  %v760_v42 = vsel %vm6173_vm5, %v478_v19, %v759_v37  ;;  %v1106_v45 = vshrl.u32 %v6472_v29, 16  ;;  %v6486_v27 = vrot.slane %v609_v20, 7  ;;  %814 = vst [vmem:[#allocation2 + $0x98] sm:$0x1] %v813_v33  ;;  %5431 = vmatprep.subr.bf16.mxu1 %v6441_v0  ;;  %v300_v20 = vld [vmem:[%s6149_s26 + $0xd8] sm:$0xff] }
  0x58   : > { %v6495_v39 = vsel %vm1053_vm8, %v1188_v4, %v1192_v26  ;;  %v6497_v49 = vor.u32 %v1194_v17, %v1192_v26  ;;  %761 = vst [vmem:[#allocation2 + $0x3c] sm:$0xf] %v760_v42  ;;  %v483_v52 = vrot.slane %v481_v38, 7  ;;  %v484_v54 = vshll.u32 %v6412_v32, 16  ;;  %v763_v56 = vld [vmem:[#allocation2 + $0x44] sm:$0x1] }
  0x59   : > { %7911 = vst [vmem:[#allocation12_spill] sm:$0xff] %v6495_v39  ;;  %5403 = vmatprep.mubr.bf16.mxu1 %v6495_v39  ;;  %v1104_v57 = vrot.slane %v1102_v24, 1  ;;  %v879_v60 = vld [vmem:[#allocation2 + $0x90] sm:$0xf]  ;;  %v614_v61 = vor.u32 %v612_v23, %v6486_v27  ;;  %v5028_v62 = vpack.c.bf16 %v298_v41, %v298_v41  ;;  %v615_v30 = vrot.slane %v6486_v27, 4  ;;  %v6004_v32 = vld [vmem:[%s7837_s1 + $0x80] sm:$0xff]  }
  0x5a   : > { %v486_v4 = vor.u32 %v484_v54, %v483_v52  ;;  %v488_v37 = vrot.slane %v483_v52, 4  ;;  %v5013_v6 = vpack.c.bf16 %v283_v46, %v283_v46  ;;  %v5014_v59 = vpack.c.bf16 %v284_v48, %v284_v48  ;;  %5432 = vmatpush3.bf16.msra.mxu1 %v6441_v0  ;;  %v6511_v10 = vld [vmem:[#allocation2 + $0x38] sm:$0xf]  ;;  %5497 = vmatprep.subr.bf16.mxu0 %v6004_v32  ;;  %v766_v48 = vld [vmem:[#allocation2 + $0x48] sm:$0xf] }
  0x5b   : > { %v6509_v9 = vsel %vm1053_vm8, %v1100_v15, %v1104_v57  ;;  %v880_v8 = vld [vmem:[#allocation2 + $0x94] sm:$0xf]  ;;  %v6513_v13 = vor.u32 %v1106_v45, %v1104_v57  ;;  %v816_v17 = vsel %vm6173_vm5, %v614_v61, %v815_v35  ;;  %v617_v19 = vshrl.u32 %v5028_v62, 16  ;;  %5433 = vmatprep.subr.bf16.mxu1 %v6003_v47  ;;  %v6521_v0 = vld [vmem:[%s7837_s1 + $0xf8] sm:$0xff]   ;;  %v819_v35 = vld [vmem:[#allocation2 + $0xa4] sm:$0x1]  ;;  %5498 = vmatpush3.bf16.msra.mxu0 %v6004_v32 }
  0x5c   : > { %7912 = vst [vmem:[#allocation13_spill] sm:$0xff] %v6509_v9  ;;  %5380 = vmatmul.mubr.bf16.gmra.mxu0 %v6509_v9  ;;  %v6524_v15 = vcombine.low %v879_v60, %v880_v8  ;;  %817 = vst [vmem:[#allocation2 + $0x9c] sm:$0xf] %v816_v17  ;;  %v487_v23 = vsel %vm6193_vm7, %v479_v36, %v486_v4  ;;  %v764_v26 = vsel %vm6184_vm6, %v488_v37, %v763_v56  ;;  %v6533_v38 = vld [vmem:[%s7837_s1 + $0x138] sm:$0xff]   ;;  %v285_v17 = vld [vmem:[%s6149_s26 + $0x60] sm:$0xff]  ;;  %vm1828_vm9 = vcmask 1046528  }
  0x5d   : > { %v620_v33 = vshll.u32 %v5028_v62, 16  ;;  %762 = vst.msk [vmem:[#allocation2 + $0x40] sm:$0xf] %vm725_vm0, %v487_v23  ;;  %765 = vst [vmem:[#allocation2 + $0x44] sm:$0x1] %v764_v26  ;;  %v619_v41 = vrot.slane %v617_v19, 7  ;;  %v5029_v52 = vpack.c.bf16 %v299_v1, %v299_v1  ;;  %5611 = vmatprep.subr.bf16.mxu0 %v6533_v38  ;;  %v5030_v1 = vpack.c.bf16 %v300_v20, %v300_v20 }
  0x5e   : > { %7913 = vst [vmem:[#allocation14_spill] sm:$0xff] %v6524_v15  ;;  %v490_v24 = vshrl.u32 %v5013_v6, 16  ;;  %v493_v42 = vshll.u32 %v5013_v6, 16  ;;  %v498_v45 = vshrl.u32 %v5014_v59, 16  ;;  %v1198_v36 = vshll.u32 %v6524_v15, 16  ;;  %5434 = vmatpush3.bf16.msra.mxu1 %v6003_v47 }
  0x5f   : > { %v1202_v27 = vshrl.u32 %v6524_v15, 16  ;;  %v501_v46 = vshll.u32 %v5014_v59, 16  ;;  %v6539_v54 = vld [vmem:[#allocation2 + $0x3c] sm:$0xf]  ;;  %v881_v56 = vld [vmem:[#allocation2 + $0x98] sm:$0xf]  ;;  %v622_v57 = vor.u32 %v620_v33, %v619_v41  ;;  %5547 = vmatprep.subr.bf16.mxu1 %v6521_v0 }
  0x60   : > { %v624_v60 = vrot.slane %v619_v41, 4  ;;  %v492_v61 = vrot.slane %v490_v24, 7  ;;  %v6541_v62 = vrot.slane %v498_v45, 7  ;;  %v1200_v4 = vrot.slane %v1198_v36, 1  ;;  %v822_v24 = vld [vmem:[#allocation2 + $0xa8] sm:$0xf] }
  0x61   : > { %v6546_v37 = vcombine.low %v6511_v10, %v6539_v54  ;;  %v626_v47 = vshrl.u32 %v5029_v52, 16  ;;  %v623_v6 = vsel %vm6193_vm7, %v615_v30, %v622_v57  ;;  %v634_v57 = vshrl.u32 %v5030_v1, 16  ;;  %v773_v39 = vld [vmem:[#allocation2 + $0x54] sm:$0xf] }
  0x62   : > { %v820_v59 = vsel %vm6184_vm6, %v624_v60, %v819_v35  ;;  %v495_v32 = vor.u32 %v493_v42, %v492_v61  ;;  %v496_v8 = vrot.slane %v492_v61, 4  ;;  %v6555_v19 = vsel %vm1053_vm8, %v6497_v49, %v1200_v4  ;;  %818 = vst.msk [vmem:[#allocation2 + $0xa0] sm:$0xf] %vm725_vm0, %v623_v6 }
  0x63   : > { %7914 = vst [vmem:[#allocation15_spill] sm:$0xff] %v6555_v19  ;;  %v1110_v23 = vshll.u32 %v6546_v37, 16  ;;  %v1204_v26 = vor.u32 %v1202_v27, %v1200_v4  ;;  %v1114_v33 = vshrl.u32 %v6546_v37, 16  ;;  %821 = vst [vmem:[#allocation2 + $0xa4] sm:$0x1] %v820_v59  ;;  %5404 = vmatmul.mubr.bf16.gmra.mxu1 %v6555_v19  ;;  %v503_v20 = vor.u32 %v501_v46, %v6541_v62  ;;  %v301_v4 = vld [vmem:[%s6149_s26 + $0xe0] sm:$0xff] }
  0x64   : > { %v882_v30 = vld [vmem:[#allocation2 + $0x9c] sm:$0xf]  ;;  %v767_v35 = vsel %vm6173_vm5, %v495_v32, %v766_v48  ;;  %v628_v41 = vrot.slane %v626_v47, 7  ;;  %v629_v49 = vshll.u32 %v5029_v52, 16  ;;  %v6566_v36 = vld [vmem:[#allocation2 + $0x40] sm:$0xf]  ;;  %v5015_v60 = vpack.c.bf16 %v285_v17, %v285_v17 }
  0x65   : > { %v1112_v42 = vrot.slane %v1110_v23, 1  ;;  %v6564_v45 = vcombine.low %v881_v56, %v882_v30  ;;  %v6568_v27 = vld [vmem:[#allocation2 + $0x44] sm:$0xf]  ;;  %768 = vst [vmem:[#allocation2 + $0x48] sm:$0xf] %v767_v35  ;;  %v504_v48 = vsel %vm6193_vm7, %v496_v8, %v503_v20  ;;  %v636_v17 = vrot.slane %v634_v57, 7 }
  0x66   : > { %v6572_v46 = vcombine.low %v6566_v36, %v6568_v27  ;;  %v631_v61 = vor.u32 %v629_v49, %v628_v41  ;;  %v632_v52 = vrot.slane %v628_v41, 4  ;;  %769 = vst.msk [vmem:[#allocation2 + $0x4c] sm:$0xf] %vm725_vm0, %v504_v48  ;;  %v637_v23 = vshll.u32 %v5030_v1, 16  ;;  %v770_v30 = vld [vmem:[#allocation2 + $0x50] sm:$0x1] }
  0x67   : > { %7915 = vst [vmem:[#allocation16_spill] sm:$0xff] %v6564_v45  ;;  %v6579_v56 = vsel %vm1053_vm8, %v6513_v13, %v1112_v42  ;;  %v1206_v47 = vshll.u32 %v6564_v45, 16  ;;  %v1116_v6 = vor.u32 %v1114_v33, %v1112_v42  ;;  %v1210_v59 = vshrl.u32 %v6564_v45, 16 }
  0x68   : > { %7916 = vst [vmem:[#allocation17_spill] sm:$0xff] %v6579_v56  ;;  %5383 = vmatprep.mubr.bf16.mxu0 %v6579_v56  ;;  %v1118_v32 = vshll.u32 %v6572_v46, 16  ;;  %v1122_v8 = vshrl.u32 %v6572_v46, 16  ;;  %v823_v13 = vsel %vm6173_vm5, %v631_v61, %v822_v24  ;;  %v505_v33 = vrot.slane %v6541_v62, 4  ;;  %v286_v24 = vld [vmem:[%s6149_s26 + $0x68] sm:$0xff] }
  0x69   : > { %v1208_v20 = vrot.slane %v1206_v47, 1  ;;  %v507_v35 = vshrl.u32 %v5015_v60, 16  ;;  %v883_v49 = vld [vmem:[#allocation2 + $0xa0] sm:$0xf]  ;;  %v639_v48 = vor.u32 %v637_v23, %v636_v17  ;;  %824 = vst [vmem:[#allocation2 + $0xa8] sm:$0xf] %v823_v13  ;;  %v5031_v51 = vpack.c.bf16 %v301_v4, %v301_v4 }
  0x6a   : > { %v1120_v41 = vrot.slane %v1118_v32, 1  ;;  %v884_v42 = vld [vmem:[#allocation2 + $0xa4] sm:$0xf]  ;;  %v510_v19 = vshll.u32 %v5015_v60, 16  ;;  %v771_v4 = vsel %vm6184_vm6, %v505_v33, %v770_v30  ;;  %v641_v13 = vrot.slane %v636_v17, 4 }
  0x6b   : > { %v6591_v1 = vsel %vm1053_vm8, %v1204_v26, %v1208_v20  ;;  %v6593_v57 = vcombine.low %v883_v49, %v884_v42  ;;  %v509_v47 = vrot.slane %v507_v35, 7  ;;  %v640_v60 = vsel %vm6193_vm7, %v632_v52, %v639_v48  ;;  %772 = vst [vmem:[#allocation2 + $0x50] sm:$0x1] %v771_v4  ;;  %v829_v17 = vld [vmem:[#allocation2 + $0xb4] sm:$0xf] }
  0x6c   : > { %7917 = vst [vmem:[#allocation18_spill] sm:$0xff] %v6591_v1  ;;  %5407 = vmatprep.mubr.bf16.mxu1 %v6591_v1  ;;  %v6598_v62 = vsel %vm1053_vm8, %v1116_v6, %v1120_v41  ;;  %v6600_v61 = vld [vmem:[#allocation2 + $0x48] sm:$0xf]  ;;  %v1212_v26 = vor.u32 %v1210_v59, %v1208_v20  ;;  %825 = vst.msk [vmem:[#allocation2 + $0xac] sm:$0xf] %vm725_vm0, %v640_v60  ;;  %v1124_v49 = vor.u32 %v1122_v8, %v1120_v41 }
  0x6d   : > { %7918 = vst [vmem:[#allocation19_spill] sm:$0xff] %v6593_v57  ;;  %7919 = vst [vmem:[#allocation20_spill] sm:$0xff] %v6598_v62  ;;  %5384 = vmatmul.mubr.bf16.gmra.mxu0 %v6598_v62  ;;  %v1214_v32 = vshll.u32 %v6593_v57, 16  ;;  %v512_v23 = vor.u32 %v510_v19, %v509_v47  ;;  %v302_v6 = vld [vmem:[%s6149_s26 + $0xe8] sm:$0xff]  ;;  %v643_v42 = vshrl.u32 %v5031_v51, 16  ;;  %v646_v52 = vshll.u32 %v5031_v51, 16 }
  0x6e   : > { %v6610_v35 = vld [vmem:[#allocation2 + $0x4c] sm:$0xf]  ;;  %v5016_v48 = vpack.c.bf16 %v286_v24, %v286_v24  ;;  %v827_v19 = vsel %vm6184_vm6, %v641_v13, %v826_v58  ;;  %v5032_v41 = vpack.c.bf16 %v302_v6, %v302_v6  ;;  %v303_v51 = vld [vmem:[%s6149_s26 + $0xf0] sm:$0xff]  ;;  %v1218_v4 = vshrl.u32 %v6593_v57, 16  ;;  %v833_v6 = vld [vmem:[#allocation2 + $0xbc] sm:$0x1] }
  0x6f   : > { %v1216_v1 = vrot.slane %v1214_v32, 1  ;;  %v6614_v30 = vcombine.low %v6600_v61, %v6610_v35  ;;  %v774_v59 = vsel %vm6173_vm5, %v512_v23, %v773_v39  ;;  %v645_v20 = vrot.slane %v643_v42, 7  ;;  %828 = vst [vmem:[#allocation2 + $0xb0] sm:$0x1] %v827_v19  ;;  %v777_v39 = vld [vmem:[#allocation2 + $0x5c] sm:$0x1] }
  0x70   : > { %775 = vst [vmem:[#allocation2 + $0x54] sm:$0xf] %v774_v59  ;;  %v515_v33 = vshrl.u32 %v5016_v48, 16  ;;  %v518_v8 = vshll.u32 %v5016_v48, 16  ;;  %v513_v32 = vrot.slane %v509_v47, 4  ;;  %v651_v42 = vshrl.u32 %v5032_v41, 16 }
  0x71   : > { %v6622_v24 = vsel %vm1053_vm8, %v1212_v26, %v1216_v1  ;;  %v1126_v60 = vshll.u32 %v6614_v30, 16  ;;  %v885_v58 = vld [vmem:[#allocation2 + $0xa8] sm:$0xf]  ;;  %v648_v23 = vor.u32 %v646_v52, %v645_v20  ;;  %v649_v19 = vrot.slane %v645_v20, 4 }
  0x72   : > { %7920 = vst [vmem:[#allocation21_spill] sm:$0xff] %v6622_v24  ;;  %5408 = vmatmul.mubr.bf16.gmra.mxu1 %v6622_v24  ;;  %v517_v13 = vrot.slane %v515_v33, 7  ;;  %v654_v48 = vshll.u32 %v5032_v41, 16  ;;  %v5033_v63 = vpack.c.bf16 %v303_v51, %v303_v51  ;;  %v6627_v26 = vld [vmem:[#allocation2 + $0x50] sm:$0xf]  ;;  %v653_v9 = vrot.slane %v651_v42, 7 }
  0x73   : > { %v1128_v59 = vrot.slane %v1126_v60, 1  ;;  %v886_v31 = vld [vmem:[#allocation2 + $0xac] sm:$0xf]  ;;  %v830_v62 = vsel %vm6173_vm5, %v648_v23, %v829_v17  ;;  %v1130_v33 = vshrl.u32 %v6614_v30, 16  ;;  %v1220_v60 = vor.u32 %v1218_v4, %v1216_v1  ;;  %v836_v4 = vld [vmem:[#allocation2 + $0xc0] sm:$0xf] }
  0x74   : > { %v520_v56 = vor.u32 %v518_v8, %v517_v13  ;;  %v522_v47 = vrot.slane %v517_v13, 4  ;;  %v6634_v52 = vcombine.low %v885_v58, %v886_v31  ;;  %831 = vst [vmem:[#allocation2 + $0xb4] sm:$0xf] %v830_v62  ;;  %v660_v20 = vshrl.u32 %v5033_v63, 16 }
  0x75   : > { %v6632_v24 = vsel %vm1053_vm8, %v1124_v49, %v1128_v59  ;;  %v656_v8 = vor.u32 %v654_v48, %v653_v9  ;;  %v658_v51 = vrot.slane %v653_v9, 4  ;;  %v663_v1 = vshll.u32 %v5033_v63, 16 }
  0x76   : > { %7921 = vst [vmem:[#allocation22_spill] sm:$0xff] %v6632_v24  ;;  %7922 = vst [vmem:[#allocation23_spill] sm:$0xff] %v6634_v52  ;;  %5387 = vmatprep.mubr.bf16.mxu0 %v6632_v24  ;;  %v521_v41 = vsel %vm6193_vm7, %v513_v32, %v520_v56  ;;  %v778_v17 = vsel %vm6184_vm6, %v522_v47, %v777_v39  ;;  %v1222_v49 = vshll.u32 %v6634_v52, 16  ;;  %v6654_v32 = vrot.slane %v660_v20, 7  ;;  %v6658_v13 = vld [vmem:[#allocation2 + $0xb0] sm:$0xf] }
  0x77   : > { %v6643_v23 = vld [vmem:[#allocation2 + $0x54] sm:$0xf]  ;;  %776 = vst.msk [vmem:[#allocation2 + $0x58] sm:$0xf] %vm725_vm0, %v521_v41  ;;  %779 = vst [vmem:[#allocation2 + $0x5c] sm:$0x1] %v778_v17  ;;  %v657_v56 = vsel %vm6193_vm7, %v649_v19, %v656_v8  ;;  %v834_v62 = vsel %vm6184_vm6, %v658_v51, %v833_v6  ;;  %v1132_v39 = vor.u32 %v1130_v33, %v1128_v59 }
  0x78   : > { %v6648_v31 = vcombine.low %v6627_v26, %v6643_v23  ;;  %v1224_v9 = vrot.slane %v1222_v49, 1  ;;  %832 = vst.msk [vmem:[#allocation2 + $0xb8] sm:$0xf] %vm725_vm0, %v657_v56  ;;  %835 = vst [vmem:[#allocation2 + $0xbc] sm:$0x1] %v834_v62  ;;  %v1226_v42 = vshrl.u32 %v6634_v52, 16  ;;  %v665_v48 = vor.u32 %v663_v1, %v6654_v32 }
  0x79   : > { %v1860_v40 = vrot.slane %v6403_v18, 1 }
  0x7a   : > { %v1134_v58 = vshll.u32 %v6648_v31, 16  ;;  %v6662_v19 = vsel %vm1053_vm8, %v1220_v60, %v1224_v9  ;;  %v1138_v63 = vshrl.u32 %v6648_v31, 16  ;;  %v837_v33 = vsel %vm6173_vm5, %v665_v48, %v836_v4 }
  0x7b   : > { %7923 = vst [vmem:[#allocation24_spill] sm:$0xff] %v6662_v19  ;;  %5411 = vmatprep.mubr.bf16.mxu1 %v6662_v19  ;;  %v6666_v47 = vld [vmem:[#allocation2 + $0xb4] sm:$0xf]  ;;  %838 = vst [vmem:[#allocation2 + $0xc0] sm:$0xf] %v837_v33  ;;  %v1228_v8 = vor.u32 %v1226_v42, %v1224_v9  ;;  %v1830_v48 = vrot.slane %v6233_v28, 1 }
  0x7c   : > { %v1136_v6 = vrot.slane %v1134_v58, 1  ;;  %v6671_v59 = vcombine.low %v6658_v13, %v6666_v47  ;;  %v6058_v58 = vld [vmem:[#allocation2] sm:$0xff]  }
  0x7d   : > { %v1829_v42 = vrot.slane %v6058_v58, 1 }
  0x7e   : > { %7924 = vst [vmem:[#allocation25_spill] sm:$0xff] %v6671_v59  ;;  %v6676_v20 = vsel %vm1053_vm8, %v1132_v39, %v1136_v6  ;;  %v6678_v41 = vld [vmem:[#allocation2 + $0x58] sm:$0xf]  ;;  %v6680_v17 = vld [vmem:[#allocation2 + $0x5c] sm:$0xf]  ;;  %v1230_v51 = vshll.u32 %v6671_v59, 16  ;;  %v1140_v49 = vor.u32 %v1138_v63, %v1136_v6 }
  0x7f   : > { %7925 = vst [vmem:[#allocation26_spill] sm:$0xff] %v6676_v20  ;;  %5388 = vmatmul.mubr.bf16.gmra.mxu0 %v6676_v20  ;;  %v6686_v60 = vcombine.low %v6678_v41, %v6680_v17  ;;  %v1234_v25 = vshrl.u32 %v6671_v59, 16  ;;  %v6689_v56 = vld [vmem:[#allocation2 + $0xb8] sm:$0xf]  ;;  %v6691_v62 = vld [vmem:[#allocation2 + $0xbc] sm:$0xf] }
  0x80   : > { %v1232_v1 = vrot.slane %v1230_v51, 1  ;;  %v6696_v9 = vcombine.low %v6689_v56, %v6691_v62 }
  0x81   : > { %v1142_v4 = vshll.u32 %v6686_v60, 16  ;;  %v1146_v39 = vshrl.u32 %v6686_v60, 16 }
  0x82   : > { %7926 = vst [vmem:[#allocation27_spill] sm:$0xff] %v6696_v9  ;;  %v6701_v6 = vsel %vm1053_vm8, %v1228_v8, %v1232_v1  ;;  %v1236_v33 = vor.u32 %v1234_v25, %v1232_v1  ;;  %v1238_v19 = vshll.u32 %v6696_v9, 16  ;;  %v1242_v51 = vshrl.u32 %v6696_v9, 16  ;;  %v6709_v16 = vld [vmem:[#allocation2 + $0xc0] sm:$0xf] }
  0x83   : > { %7927 = vst [vmem:[#allocation28_spill] sm:$0xff] %v6701_v6  ;;  %v1144_v63 = vrot.slane %v1142_v4, 1  ;;  %5412 = vmatmul.mubr.bf16.gmra.mxu1 %v6701_v6  ;;  %v6714_v8 = vcombine.low %v6709_v16, %v6709_v16  ;;  %v1831_v25 = vsel %vm1828_vm9, %v1829_v42, %v1830_v48  ;;  %v1834_v42 = vrot.slane %v6324_v53, 1 }
  0x84   : > { %v1240_v24 = vrot.slane %v1238_v19, 1 }
  0x85   : > { %v6707_v20 = vsel %vm1053_vm8, %v1140_v49, %v1144_v63  ;;  %v1148_v12 = vor.u32 %v1146_v39, %v1144_v63  ;;  %v1246_v49 = vshll.u32 %v6714_v8, 16  ;;  %v1832_v39 = vrot.slane %v6274_v2, 1 }
  0x86   : > { %7928 = vst [vmem:[#allocation29_spill] sm:$0xff] %v6707_v20  ;;  %5391 = vmatprep.mubr.bf16.mxu0 %v6707_v20  ;;  %v6718_v1 = vsel %vm1053_vm8, %v1236_v33, %v1240_v24  ;;  %v6726_v19 = vor.u32 %v1242_v51, %v1240_v24  ;;  %v6740_v51 = vcombine.low %v6407_v21, %v6453_v7  ;;  %v6010_v7 = vld [vmem:[%s7837_s1 + $0x128] sm:$0xff]  }
  0x87   : > { %7929 = vst [vmem:[#allocation30_spill] sm:$0xff] %v6718_v1  ;;  %v6722_v4 = vsel %vm1053_vm8, %v1148_v12, %v6279_v5  ;;  %5415 = vmatprep.mubr.bf16.mxu1 %v6718_v1  ;;  %v1248_v63 = vrot.slane %v1246_v49, 1  ;;  %v1833_v5 = vsel %vm1828_vm9, %v1830_v48, %v1832_v39  ;;  %v6008_v12 = vld [vmem:[%s7837_s1 + $0x130] sm:$0xff]   ;;  %v1835_v24 = vsel %vm1828_vm9, %v1832_v39, %v1834_v42  ;;  %v6013_v39 = vld [vmem:[%s7837_s1 + $0xd8] sm:$0xff]   ;;  %v6069_v20 = vld [vmem:[#allocation2 + $0x68] sm:$0xf] }
  0x88   : > { %7930 = vst [vmem:[#allocation31_spill] sm:$0xff] %v6722_v4  ;;  %5392 = vmatmul.mubr.bf16.gmra.mxu0 %v6722_v4  ;;  %7931 = vst [vmem:[#allocation32_spill] sm:$0xff] %v6726_v19  ;;  %v6746_v48 = vcombine.low %v6465_v14, %v6511_v10  ;;  %v1838_v49 = vrot.slane %v6420_v34, 1  ;;  %v6754_v21 = vcombine.low %v6539_v54, %v6566_v36  ;;  %v6012_v54 = vld [vmem:[%s7837_s1 + $0x120] sm:$0xff]   ;;  %v6009_v36 = vld [vmem:[%s7837_s1 + $0xe8] sm:$0xff]  }
  0x89   : > { %5499 = vmatprep.mubr.bf16.mxu0 %v1831_v25  ;;  %v1249_v33 = vsel %vm1053_vm8, %v6726_v19, %v1248_v63  ;;  %v1836_v25 = vrot.slane %v6375_v44, 1  ;;  %v6765_v10 = vcombine.low %v6568_v27, %v6600_v61  ;;  %v1842_v27 = vrot.slane %v6546_v37, 1  ;;  %v6011_v61 = vld [vmem:[%s7837_s1 + $0xe0] sm:$0xff]   ;;  %v840_v19 = vld [vmem:[#allocation2 + $0xc8] sm:$0x1] }
  0x8a   : > { %v1844_v63 = vrot.slane %v6572_v46, 1 }
  0x8b   : > { %5416 = vmatmul.mubr.bf16.gmra.mxu1 %v1249_v33  ;;  %v6761_v14 = vsel %vm1828_vm9, %v1834_v42, %v1836_v25  ;;  %v1846_v42 = vrot.slane %v6614_v30, 1  ;;  %v6015_v33 = vld [vmem:[%s7837_s1 + $0xd0] sm:$0xff]  }
  0x8c   : > { %5435 = vmatprep.mubr.bf16.mxu1 %v6058_v58  ;;  %v6007_v58 = vld [vmem:[%s7837_s1 + $0xf0] sm:$0xff]   ;;  %7932 = vst [vmem:[#allocation33_spill] sm:$0xff] %v6761_v14 }
  0x90   : > { %5500 = vmatmul.mubr.bf16.vlgmr.msra.gmra.mxu0 %v1833_v5  ;;  %v6018_v5 = vld [vmem:[%s7837_s1 + $0x108] sm:$0xff]  }
  0x91   : > { %5612 = vmatpush3.bf16.msra.mxu0 %v6533_v38  ;;  %5503 = vmatprep.mubr.bf16.mxu0 %v1835_v24  ;;  %v6770_v38 = vsel %vm1828_vm9, %v1836_v25, %v1838_v49  ;;  %v6826_v24 = vsel %vm1828_vm9, %v1844_v63, %v1846_v42  ;;  %v6020_v25 = vld [vmem:[%s7837_s1 + $0x100] sm:$0xff]  }
  0x92   : > { %5613 = vmatprep.subr.bf16.mxu0 %v6008_v12  ;;  %7933 = vst [vmem:[#allocation34_spill] sm:$0xff] %v6770_v38  ;;  %7937 = vst [vmem:[#allocation38_spill] sm:$0xff] %v6826_v24 }
  0x93   : > { %5436 = vmatmul.mubr.bf16.vlgmr.msra.gmra.mxu1 %v6233_v28  ;;  %v6777_v28 = vcombine.low %v6610_v35, %v6627_v26  ;;  %v6014_v35 = vld [vmem:[%s7837_s1 + $0x118] sm:$0xff]  }
  0x94   : > { %5548 = vmatpush3.bf16.msra.mxu1 %v6521_v0  ;;  %5439 = vmatprep.mubr.bf16.mxu1 %v6274_v2  ;;  %v6785_v2 = vcombine.low %v6643_v23, %v6678_v41  ;;  %v1840_v0 = vrot.slane %v6472_v29, 1  ;;  %v6016_v41 = vld [vmem:[%s7837_s1 + $0x110] sm:$0xff]  }
  0x95   : > { %5614 = vmatpush3.bf16.msra.mxu0 %v6008_v12  ;;  %5549 = vmatprep.subr.bf16.mxu1 %v6007_v58  ;;  %v6822_v12 = vsel %vm1828_vm9, %v1842_v27, %v1844_v63  ;;  %v2631_v4 = vshll.u32 %v6777_v28, 16 }
  0x96   : > { %5615 = vmatprep.subr.bf16.mxu0 %v6010_v7  ;;  %v6798_v26 = vsel %vm1828_vm9, %v1838_v49, %v1840_v0  ;;  %v6802_v23 = vsel %vm1828_vm9, %v1840_v0, %v1842_v27  ;;  %7936 = vst [vmem:[#allocation37_spill] sm:$0xff] %v6822_v12  ;;  %v1848_v49 = vrot.slane %v6648_v31, 1 }
  0x97   : > { %7934 = vst [vmem:[#allocation35_spill] sm:$0xff] %v6798_v26  ;;  %7935 = vst [vmem:[#allocation36_spill] sm:$0xff] %v6802_v23 }
  0x98   : > { %5504 = vmatmul.mubr.bf16.gmra.mxu0 %v6761_v14  ;;  %5550 = vmatpush3.bf16.msra.mxu1 %v6007_v58  ;;  %v6017_v58 = vld [vmem:[%s7837_s1 + $0xc8] sm:$0xff]   ;;  %v6848_v0 = vsel %vm1828_vm9, %v1846_v42, %v1848_v49  ;;  %v6076_v14 = vld [vmem:[#allocation2 + $0x84] sm:$0xf] }
  0x99   : > { %5507 = vmatprep.mubr.bf16.mxu0 %v6770_v38  ;;  %5616 = vmatpush3.bf16.msra.mxu0 %v6010_v7  ;;  %v1850_v7 = vrot.slane %v6686_v60, 1  ;;  %7938 = vst [vmem:[#allocation39_spill] sm:$0xff] %v6848_v0 }
  0x9a   : > { %5617 = vmatprep.subr.bf16.mxu0 %v6012_v54  ;;  %5551 = vmatprep.subr.bf16.mxu1 %v6009_v36 }
  0x9b   : > { %5440 = vmatmul.mubr.bf16.gmra.mxu1 %v6324_v53  ;;  %v6852_v27 = vsel %vm1828_vm9, %v1848_v49, %v1850_v7 }
  0x9c   : > { %5443 = vmatprep.mubr.bf16.mxu1 %v6375_v44  ;;  %5552 = vmatpush3.bf16.msra.mxu1 %v6009_v36  ;;  %v6844_v36 = vld [vmem:[%s7837_s1 + $0x1b8] sm:$0xff]   ;;  %7939 = vst [vmem:[#allocation40_spill] sm:$0xff] %v6852_v27 }
  0x9d   : > { %5618 = vmatpush3.bf16.msra.mxu0 %v6012_v54  ;;  %5553 = vmatprep.subr.bf16.mxu1 %v6011_v61  ;;  %v6019_v54 = vld [vmem:[%s7837_s1 + $0xc0] sm:$0xff]  }
  0x9e   : > { %5619 = vmatprep.subr.bf16.mxu0 %v6014_v35 }
  0xa0   : > { %5508 = vmatmul.mubr.bf16.gmra.mxu0 %v6798_v26  ;;  %5554 = vmatpush3.bf16.msra.mxu1 %v6011_v61  ;;  %v6857_v61 = vld [vmem:[%s7837_s1 + $0x178] sm:$0xff]  }
  0xa1   : > { %5511 = vmatprep.mubr.bf16.mxu0 %v6802_v23  ;;  %5620 = vmatpush3.bf16.msra.mxu0 %v6014_v35  ;;  %v1852_v35 = vrot.slane %v6257_v50, 1 }
  0xa2   : > { %5621 = vmatprep.subr.bf16.mxu0 %v6016_v41  ;;  %5555 = vmatprep.subr.bf16.mxu1 %v6013_v39 }
  0xa3   : > { %5444 = vmatmul.mubr.bf16.gmra.mxu1 %v6420_v34  ;;  %v6868_v42 = vsel %vm1828_vm9, %v1850_v7, %v1852_v35  ;;  %v1858_v7 = vrot.slane %v6342_v11, 1 }
  0xa4   : > { %5447 = vmatprep.mubr.bf16.mxu1 %v6472_v29  ;;  %5556 = vmatpush3.bf16.msra.mxu1 %v6013_v39  ;;  %v304_v39 = vld [vmem:[%s6149_s26 + $0xf8] sm:$0xff]  ;;  %7940 = vst [vmem:[#allocation41_spill] sm:$0xff] %v6868_v42 }
  0xa5   : > { %5622 = vmatpush3.bf16.msra.mxu0 %v6016_v41  ;;  %5557 = vmatprep.subr.bf16.mxu1 %v6015_v33  ;;  %v1854_v41 = vrot.slane %v6259_v55, 1  ;;  %v5034_v63 = vpack.c.bf16 %v304_v39, %v304_v39 }
  0xa6   : > { %5623 = vmatprep.subr.bf16.mxu0 %v6018_v5 }
  0xa7   : > { %v671_v49 = vshll.u32 %v5034_v63, 16 }
  0xa8   : > { %5512 = vmatmul.mubr.bf16.gmra.mxu0 %v6822_v12  ;;  %5558 = vmatpush3.bf16.msra.mxu1 %v6015_v33  ;;  %v668_v33 = vshrl.u32 %v5034_v63, 16  ;;  %v6073_v12 = vld [vmem:[#allocation2 + $0x78] sm:$0xf] }
  0xa9   : > { %5515 = vmatprep.mubr.bf16.mxu0 %v6826_v24  ;;  %5624 = vmatpush3.bf16.msra.mxu0 %v6018_v5  ;;  %v6872_v5 = vsel %vm1828_vm9, %v1852_v35, %v1854_v41  ;;  %v6072_v24 = vld [vmem:[#allocation2 + $0x74] sm:$0xf] }
  0xaa   : > { %5625 = vmatprep.subr.bf16.mxu0 %v6020_v25  ;;  %5559 = vmatprep.subr.bf16.mxu1 %v6017_v58  ;;  %7941 = vst [vmem:[#allocation42_spill] sm:$0xff] %v6872_v5  ;;  %v7056_v23 = vcombine.low %v6072_v24, %v6073_v12 }
  0xab   : > { %5448 = vmatmul.mubr.bf16.gmra.mxu1 %v6546_v37 }
  0xac   : > { %5451 = vmatprep.mubr.bf16.mxu1 %v6572_v46  ;;  %5560 = vmatpush3.bf16.msra.mxu1 %v6017_v58  ;;  %v670_v58 = vrot.slane %v668_v33, 7 }
  0xad   : > { %5626 = vmatpush3.bf16.msra.mxu0 %v6020_v25  ;;  %5561 = vmatprep.subr.bf16.mxu1 %v6019_v54  ;;  %v666_v25 = vrot.slane %v6654_v32, 4  ;;  %v6885_v32 = vcombine.low %v6666_v47, %v6689_v56  ;;  %v1862_v47 = vrot.slane %v6447_v3, 1  ;;  %v6902_v56 = vsel %vm1828_vm9, %v1858_v7, %v1860_v40 }
  0xae   : > { %5739 = vmatprep.subr.bf16.mxu0 %v6844_v36  ;;  %v673_v39 = vor.u32 %v671_v49, %v670_v58  ;;  %v675_v1 = vrot.slane %v670_v58, 4  ;;  %7944 = vst [vmem:[#allocation45_spill] sm:$0xff] %v6902_v56  ;;  %v1870_v58 = vrot.slane %v6634_v52, 1 }
  0xb0   : > { %5516 = vmatmul.mubr.bf16.gmra.mxu0 %v6848_v0  ;;  %5562 = vmatpush3.bf16.msra.mxu1 %v6019_v54  ;;  %v1856_v54 = vrot.slane %v6295_v22, 1  ;;  %v674_v6 = vsel %vm6193_vm7, %v666_v25, %v673_v39  ;;  %v841_v35 = vsel %vm6184_vm6, %v675_v1, %v840_v19  ;;  %v1864_v1 = vrot.slane %v6524_v15, 1  ;;  %v6059_v39 = vld [vmem:[#allocation2 + $0xc] sm:$0xf] }
  0xb1   : > { %5519 = vmatprep.mubr.bf16.mxu0 %v6852_v27  ;;  %5675 = vmatprep.subr.bf16.mxu1 %v6857_v61  ;;  %839 = vst.msk [vmem:[#allocation2 + $0xc4] sm:$0xf] %vm725_vm0, %v674_v6  ;;  %842 = vst [vmem:[#allocation2 + $0xc8] sm:$0x1] %v841_v35  ;;  %v6906_v6 = vsel %vm1828_vm9, %v1860_v40, %v1862_v47  ;;  %v1866_v19 = vrot.slane %v6564_v45, 1  ;;  %v1868_v25 = vrot.slane %v6593_v57, 1 }
  0xb2   : > { %v6890_v63 = vsel %vm1828_vm9, %v1854_v41, %v1856_v54  ;;  %v6894_v43 = vsel %vm1828_vm9, %v1856_v54, %v1858_v7  ;;  %7945 = vst [vmem:[#allocation46_spill] sm:$0xff] %v6906_v6  ;;  %v6914_v41 = vsel %vm1828_vm9, %v1862_v47, %v1864_v1  ;;  %v6060_v7 = vld [vmem:[#allocation2 + $0x10] sm:$0xf]  ;;  %v1872_v40 = vrot.slane %v6671_v59, 1 }
  0xb3   : > { %5452 = vmatmul.mubr.bf16.gmra.mxu1 %v6614_v30  ;;  %7942 = vst [vmem:[#allocation43_spill] sm:$0xff] %v6890_v63  ;;  %7943 = vst [vmem:[#allocation44_spill] sm:$0xff] %v6894_v43  ;;  %v6918_v33 = vsel %vm1828_vm9, %v1864_v1, %v1866_v19  ;;  %v6926_v49 = vsel %vm1828_vm9, %v1866_v19, %v1868_v25  ;;  %v6930_v54 = vsel %vm1828_vm9, %v1868_v25, %v1870_v58  ;;  %v6061_v1 = vld [vmem:[#allocation2 + $0x14] sm:$0xf]  ;;  %v6062_v19 = vld [vmem:[#allocation2 + $0x18] sm:$0xf] }
  0xb4   : > { %5455 = vmatprep.mubr.bf16.mxu1 %v6648_v31  ;;  %7946 = vst [vmem:[#allocation47_spill] sm:$0xff] %v6914_v41  ;;  %7947 = vst [vmem:[#allocation48_spill] sm:$0xff] %v6918_v33  ;;  %v6932_v35 = vcombine.low %v6059_v39, %v6060_v7  ;;  %v6938_v47 = vrot.slane %v6696_v9, 1  ;;  %v6945_v39 = vsel %vm1828_vm9, %v1870_v58, %v1872_v40  ;;  %v1876_v58 = vrot.slane %v6714_v8, 1 }
  0xb5   : > { %7948 = vst [vmem:[#allocation49_spill] sm:$0xff] %v6926_v49  ;;  %7949 = vst [vmem:[#allocation50_spill] sm:$0xff] %v6930_v54 }
  0xb6   : > { %7950 = vst [vmem:[#allocation51_spill] sm:$0xff] %v6938_v47  ;;  %v2570_v25 = vshll.u32 %v6932_v35, 16  ;;  %7951 = vst [vmem:[#allocation52_spill] sm:$0xff] %v6945_v39  ;;  %v6950_v7 = vsel %vm1828_vm9, %v1872_v40, %v6938_v47  ;;  %v6066_v40 = vld [vmem:[#allocation2 + $0x28] sm:$0xf] }
  0xb7   : > { %7952 = vst [vmem:[#allocation53_spill] sm:$0xff] %v6950_v7 }
  0xb8   : > { %5520 = vmatmul.mubr.bf16.gmra.mxu0 %v6868_v42 }
  0xb9   : > { %5523 = vmatprep.mubr.bf16.mxu0 %v6872_v5 }
  0xbb   : > { %5456 = vmatmul.mubr.bf16.gmra.mxu1 %v6686_v60 }
  0xbc   : > { %5459 = vmatprep.mubr.bf16.mxu1 %v6257_v50 }
  0xc0   : > { %5524 = vmatmul.mubr.bf16.gmra.mxu0 %v6890_v63  ;;  %v6065_v63 = vld [vmem:[#allocation2 + $0x24] sm:$0xf] }
  0xc1   : > { %5527 = vmatprep.mubr.bf16.mxu0 %v6894_v43  ;;  %v6959_v5 = vcombine.low %v6065_v63, %v6066_v40 }
  0xc3   : > { %5460 = vmatmul.mubr.bf16.gmra.mxu1 %v6259_v55 }
  0xc4   : > { %5463 = vmatprep.mubr.bf16.mxu1 %v6295_v22 }
  0xc8   : > { %5528 = vmatmul.mubr.bf16.gmra.mxu0 %v6902_v56 }
  0xc9   : > { %5531 = vmatprep.mubr.bf16.mxu0 %v6906_v6 }
  0xcb   : > { %5464 = vmatmul.mubr.bf16.gmra.mxu1 %v6342_v11 }
  0xcc   : > { %5467 = vmatprep.mubr.bf16.mxu1 %v6403_v18 }
  0xd0   : > { %5532 = vmatmul.mubr.bf16.gmra.mxu0 %v6914_v41 }
  0xd1   : > { %5535 = vmatprep.mubr.bf16.mxu0 %v6918_v33  ;;  %v6940_v33 = vcombine.low %v6061_v1, %v6062_v19  ;;  %v6063_v1 = vld [vmem:[#allocation2 + $0x1c] sm:$0xf]  ;;  %v6064_v19 = vld [vmem:[#allocation2 + $0x20] sm:$0xf] }
  0xd2   : > { %v6955_v6 = vcombine.low %v6063_v1, %v6064_v19 }
  0xd3   : > { %5468 = vmatmul.mubr.bf16.gmra.mxu1 %v6447_v3  ;;  %v2575_v41 = vshll.u32 %v6940_v33, 16  ;;  %v2579_v1 = vshrl.u32 %v6940_v33, 16  ;;  %v6085_v3 = vld [vmem:[#allocation2 + $0xa8] sm:$0xf] }
  0xd4   : > { %5471 = vmatprep.mubr.bf16.mxu1 %v6524_v15  ;;  %v2587_v8 = vshrl.u32 %v6955_v6, 16  ;;  %v6081_v15 = vld [vmem:[#allocation2 + $0x98] sm:$0xf] }
  0xd5   : > { %v2577_v43 = vrot.slane %v2575_v41, 1  ;;  %v2591_v41 = vshll.u32 %v6959_v5, 16 }
  0xd7   : > { %v2593_v40 = vrot.slane %v2591_v41, 1 }
  0xd8   : > { %5536 = vmatmul.mubr.bf16.gmra.mxu0 %v6926_v49  ;;  %v2572_v49 = vrot.slane %v2570_v25, 1  ;;  %v2583_v25 = vshll.u32 %v6955_v6, 16 }
  0xd9   : > { %5539 = vmatprep.mubr.bf16.mxu0 %v6930_v54  ;;  %v2568_v54 = vshrl.u32 %v6932_v35, 16 }
  0xda   : > { %v2585_v63 = vrot.slane %v2583_v25, 1  ;;  %v2607_v25 = vshll.u32 %v6746_v48, 16 }
  0xdb   : > { %5472 = vmatmul.mubr.bf16.gmra.mxu1 %v6564_v45  ;;  %v2573_v56 = vor.u32 %v2572_v49, %v2568_v54  ;;  %v2581_v49 = vor.u32 %v2579_v1, %v2577_v43  ;;  %v6080_v45 = vld [vmem:[#allocation2 + $0x94] sm:$0xf] }
  0xdc   : > { %5475 = vmatprep.mubr.bf16.mxu1 %v6593_v57  ;;  %v2589_v54 = vor.u32 %v2587_v8, %v2585_v63  ;;  %v2609_v41 = vrot.slane %v2607_v25, 1  ;;  %v6079_v57 = vld [vmem:[#allocation2 + $0x90] sm:$0xf] }
  0xdd   : > { %v2578_v19 = vsel %vm1053_vm8, %v2573_v56, %v2577_v43  ;;  %v2603_v43 = vshrl.u32 %v6740_v51, 16 }
  0xde   : > { %v2594_v56 = vsel %vm1053_vm8, %v2589_v54, %v2593_v40  ;;  %v2615_v54 = vshll.u32 %v6754_v21, 16 }
  0xe0   : > { %5540 = vmatmul.mubr.bf16.gmra.mxu0 %v6945_v39  ;;  %v1877_v39 = vsel %vm1828_vm9, %v6938_v47, %v1876_v58  ;;  %v2586_v58 = vsel %vm1053_vm8, %v2581_v49, %v2585_v63  ;;  %v2595_v47 = vshrl.u32 %v6959_v5, 16  ;;  %v6023_v63 = vld [vmem:[%s7837_s1 + $0x170] sm:$0xff]   ;;  %v6026_v49 = vld [vmem:[%s7837_s1 + $0x1a8] sm:$0xff]  }
  0xe1   : > { %5543 = vmatprep.mubr.bf16.mxu0 %v6950_v7  ;;  %v2599_v7 = vshll.u32 %v6740_v51, 16 }
  0xe3   : > { %5476 = vmatmul.mubr.bf16.gmra.mxu1 %v6634_v52  ;;  %v2601_v1 = vrot.slane %v2599_v7, 1 }
  0xe4   : > { %5479 = vmatprep.mubr.bf16.mxu1 %v6671_v59 }
  0xe5   : > { %v2605_v8 = vor.u32 %v2603_v43, %v2601_v1 }
  0xe8   : > { %5544 = vmatmul.mubr.bf16.gmra.mxu0 %v1877_v39  ;;  %v6024_v39 = vld [vmem:[%s7837_s1 + $0x1b0] sm:$0xff]  }
  0xe9   : > { %5627 = vmatprep.mubr.bf16.mxu0 %v2578_v19  ;;  %v2597_v19 = vor.u32 %v2595_v47, %v2593_v40  ;;  %v2610_v47 = vsel %vm1053_vm8, %v2605_v8, %v2609_v41  ;;  %v2619_v40 = vshrl.u32 %v6754_v21, 16  ;;  %v6030_v8 = vld [vmem:[%s7837_s1 + $0x198] sm:$0xff]  }
  0xeb   : > { %5480 = vmatmul.mubr.bf16.gmra.mxu1 %v6696_v9  ;;  %v2602_v7 = vsel %vm1053_vm8, %v2597_v19, %v2601_v1  ;;  %v6027_v19 = vld [vmem:[%s7837_s1 + $0x160] sm:$0xff]   ;;  %v6077_v9 = vld [vmem:[#allocation2 + $0x88] sm:$0xf] }
  0xec   : > { %5563 = vmatprep.mubr.bf16.mxu1 %v6932_v35  ;;  %v7090_v59 = vcombine.low %v6076_v14, %v6077_v9 }
  0xf0   : > { %5628 = vmatmul.mubr.bf16.vlgmr.msra.gmra.mxu0 %v2586_v58  ;;  %v2623_v58 = vshll.u32 %v6765_v10, 16 }
  0xf1   : > { %5740 = vmatpush3.bf16.msra.mxu0 %v6844_v36  ;;  %5631 = vmatprep.mubr.bf16.mxu0 %v2594_v56  ;;  %v2611_v36 = vshrl.u32 %v6746_v48, 16  ;;  %v6028_v56 = vld [vmem:[%s7837_s1 + $0x1a0] sm:$0xff]  }
  0xf2   : > { %5741 = vmatprep.subr.bf16.mxu0 %v6024_v39  ;;  %v2625_v1 = vrot.slane %v2623_v58, 1  ;;  %v2633_v58 = vrot.slane %v2631_v4, 1  ;;  %v6031_v4 = vld [vmem:[%s7837_s1 + $0x150] sm:$0xff]  }
  0xf3   : > { %5564 = vmatmul.mubr.bf16.vlgmr.msra.gmra.mxu1 %v6940_v33  ;;  %v2613_v43 = vor.u32 %v2611_v36, %v2609_v41 }
  0xf4   : > { %5676 = vmatpush3.bf16.msra.mxu1 %v6857_v61  ;;  %5567 = vmatprep.mubr.bf16.mxu1 %v6955_v6  ;;  %v2617_v61 = vrot.slane %v2615_v54, 1  ;;  %v2635_v54 = vshrl.u32 %v6777_v28, 16 }
  0xf5   : > { %5742 = vmatpush3.bf16.msra.mxu0 %v6024_v39  ;;  %5677 = vmatprep.subr.bf16.mxu1 %v6023_v63  ;;  %v6025_v39 = vld [vmem:[%s7837_s1 + $0x168] sm:$0xff]  }
  0xf6   : > { %5743 = vmatprep.subr.bf16.mxu0 %v6026_v49  ;;  %v2621_v25 = vor.u32 %v2619_v40, %v2617_v61  ;;  %v2618_v41 = vsel %vm1053_vm8, %v2613_v43, %v2617_v61  ;;  %v6029_v40 = vld [vmem:[%s7837_s1 + $0x158] sm:$0xff]   ;;  %v2637_v43 = vor.u32 %v2635_v54, %v2633_v58  ;;  %v6033_v54 = vld [vmem:[%s7837_s1 + $0x148] sm:$0xff]  }
  0xf8   : > { %5632 = vmatmul.mubr.bf16.gmra.mxu0 %v2602_v7  ;;  %5678 = vmatpush3.bf16.msra.mxu1 %v6023_v63  ;;  %v2627_v63 = vshrl.u32 %v6765_v10, 16  ;;  %v2639_v7 = vshll.u32 %v6785_v2, 16 }
  0xf9   : > { %5635 = vmatprep.mubr.bf16.mxu0 %v2610_v47  ;;  %5744 = vmatpush3.bf16.msra.mxu0 %v6026_v49  ;;  %v2626_v49 = vsel %vm1053_vm8, %v2621_v25, %v2625_v1  ;;  %v6032_v47 = vld [vmem:[%s7837_s1 + $0x190] sm:$0xff]  }
  0xfa   : > { %5745 = vmatprep.subr.bf16.mxu0 %v6028_v56  ;;  %5679 = vmatprep.subr.bf16.mxu1 %v6025_v39  ;;  %v2629_v61 = vor.u32 %v2627_v63, %v2625_v1  ;;  %v2641_v25 = vrot.slane %v2639_v7, 1 }
  0xfb   : > { %5568 = vmatmul.mubr.bf16.gmra.mxu1 %v6959_v5 }
  0xfc   : > { %5571 = vmatprep.mubr.bf16.mxu1 %v6740_v51  ;;  %5680 = vmatpush3.bf16.msra.mxu1 %v6025_v39  ;;  %v5373_v36 = vpop.f32.mrf.mxu0 }
  0xfd   : > { %5746 = vmatpush3.bf16.msra.mxu0 %v6028_v56  ;;  %5681 = vmatprep.subr.bf16.mxu1 %v6027_v19  ;;  %v6067_v56 = vld [vmem:[#allocation2 + $0x60] sm:$0xf]  ;;  %v6068_v36 = vld [vmem:[#allocation2 + $0x64] sm:$0xf] }
  0xfe   : > { %5747 = vmatprep.subr.bf16.mxu0 %v6030_v8  ;;  %v7024_v39 = vcombine.low %v6680_v17, %v6067_v56  ;;  %v7026_v42 = vcombine.low %v6068_v36, %v6069_v20  ;;  %v6034_v17 = vld [vmem:[%s7837_s1 + $0x188] sm:$0xff]   ;;  %v2634_v20 = vsel %vm1053_vm8, %v2629_v61, %v2633_v58  ;;  %v6071_v58 = vld [vmem:[#allocation2 + $0x70] sm:$0xf] }
 0x100   : > { %5636 = vmatmul.mubr.bf16.gmra.mxu0 %v2618_v41  ;;  %5682 = vmatpush3.bf16.msra.mxu1 %v6027_v19  ;;  %v5397_v27 = vpop.f32.mrf.mxu1  ;;  %v2647_v1 = vshll.u32 %v7024_v39, 16  ;;  %v2642_v19 = vsel %vm1053_vm8, %v2637_v43, %v2641_v25  ;;  %v2651_v41 = vshrl.u32 %v7024_v39, 16  ;;  %v2655_v63 = vshll.u32 %v7026_v42, 16 }
 0x101   : > { %5639 = vmatprep.mubr.bf16.mxu0 %v2626_v49  ;;  %5748 = vmatpush3.bf16.msra.mxu0 %v6030_v8  ;;  %v7035_v8 = vpop.f32.mrf.mxu0  ;;  %v2643_v27 = vshrl.u32 %v6785_v2, 16  ;;  %v6036_v49 = vld [vmem:[%s7837_s1 + $0x180] sm:$0xff]   ;;  %v2659_v24 = vshrl.u32 %v7026_v42, 16 }
 0x102   : > { %5749 = vmatprep.subr.bf16.mxu0 %v6032_v47  ;;  %5683 = vmatprep.subr.bf16.mxu1 %v6029_v40  ;;  %v2649_v7 = vrot.slane %v2647_v1, 1  ;;  %v7052_v61 = vpop.f32.mrf.mxu1  ;;  %v2657_v0 = vrot.slane %v2655_v63, 1  ;;  %v6035_v1 = vld [vmem:[%s7837_s1 + $0x140] sm:$0xff]   ;;  %v7081_v63 = vld [vmem:[%s7837_s1 + $0x1f8] sm:$0xff]  }
 0x103   : > { %5572 = vmatmul.mubr.bf16.gmra.mxu1 %v6746_v48  ;;  %7953 = vst [vmem:[#allocation54_spill] sm:$0xff] %v7052_v61  ;;  %v7054_v43 = vpop.f32.mrf.mxu0  ;;  %v7113_v61 = vcombine.low %v6080_v45, %v6081_v15 }
 0x104   : > { %5575 = vmatprep.mubr.bf16.mxu1 %v6754_v21  ;;  %5684 = vmatpush3.bf16.msra.mxu1 %v6029_v40  ;;  %v2645_v40 = vor.u32 %v2643_v27, %v2641_v25  ;;  %v2653_v36 = vor.u32 %v2651_v41, %v2649_v7  ;;  %v2671_v41 = vshll.u32 %v7056_v23, 16 }
 0x105   : > { %5750 = vmatpush3.bf16.msra.mxu0 %v6032_v47  ;;  %5685 = vmatprep.subr.bf16.mxu1 %v6031_v4  ;;  %v6070_v47 = vld [vmem:[#allocation2 + $0x6c] sm:$0xf]  ;;  %v7069_v27 = vpop.f32.mrf.mxu0  ;;  %7960 = vst [vmem:[#allocation61_spill] sm:$0xff] %v7113_v61 }
 0x106   : > { %5751 = vmatprep.subr.bf16.mxu0 %v6034_v17  ;;  %v7050_v56 = vcombine.low %v6070_v47, %v6071_v58  ;;  %v2650_v12 = vsel %vm1053_vm8, %v2645_v40, %v2649_v7  ;;  %v6075_v47 = vld [vmem:[#allocation2 + $0x80] sm:$0xf]  ;;  %v2673_v38 = vrot.slane %v2671_v41, 1 }
 0x108   : > { %5640 = vmatmul.mubr.bf16.gmra.mxu0 %v2634_v20  ;;  %5686 = vmatpush3.bf16.msra.mxu1 %v6031_v4  ;;  %v7064_v20 = vld [vmem:[%s7837_s1 + $0x238] sm:$0xff]   ;;  %v2663_v25 = vshll.u32 %v7050_v56, 16  ;;  %v2658_v4 = vsel %vm1053_vm8, %v2653_v36, %v2657_v0 }
 0x109   : > { %5643 = vmatprep.mubr.bf16.mxu0 %v2642_v19  ;;  %5752 = vmatpush3.bf16.msra.mxu0 %v6034_v17  ;;  %v7067_v17 = vpop.f32.mrf.mxu1  ;;  %v2667_v19 = vshrl.u32 %v7050_v56, 16 }
 0x10a   : > { %5753 = vmatprep.subr.bf16.mxu0 %v6036_v49  ;;  %5687 = vmatprep.subr.bf16.mxu1 %v6033_v54  ;;  %7954 = vst [vmem:[#allocation55_spill] sm:$0xff] %v7067_v17  ;;  %v2665_v7 = vrot.slane %v2663_v25, 1 }
 0x10b   : > { %5576 = vmatmul.mubr.bf16.gmra.mxu1 %v6765_v10  ;;  %v7086_v40 = vpop.f32.mrf.mxu1 }
 0x10c   : > { %5579 = vmatprep.mubr.bf16.mxu1 %v6777_v28  ;;  %5688 = vmatpush3.bf16.msra.mxu1 %v6033_v54  ;;  %7955 = vst [vmem:[#allocation56_spill] sm:$0xff] %v7086_v40  ;;  %v2661_v54 = vor.u32 %v2659_v24, %v2657_v0  ;;  %v2669_v26 = vor.u32 %v2667_v19, %v2665_v7  ;;  %v2675_v24 = vshrl.u32 %v7056_v23, 16 }
 0x10d   : > { %5754 = vmatpush3.bf16.msra.mxu0 %v6036_v49  ;;  %5689 = vmatprep.subr.bf16.mxu1 %v6035_v1  ;;  %v6074_v49 = vld [vmem:[#allocation2 + $0x7c] sm:$0xf] }
 0x10e   : > { %5867 = vmatprep.subr.bf16.mxu0 %v7064_v20  ;;  %v7084_v58 = vcombine.low %v6074_v49, %v6075_v47  ;;  %v2666_v0 = vsel %vm1053_vm8, %v2661_v54, %v2665_v7  ;;  %v2674_v9 = vsel %vm1053_vm8, %v2669_v26, %v2673_v38  ;;  %v6078_v47 = vld [vmem:[#allocation2 + $0x8c] sm:$0xf]  ;;  %v2677_v54 = vor.u32 %v2675_v24, %v2673_v38 }
 0x10f   : > { %v7088_v36 = vpop.f32.mrf.mxu0 }
 0x110   : > { %5644 = vmatmul.mubr.bf16.gmra.mxu0 %v2650_v12  ;;  %5690 = vmatpush3.bf16.msra.mxu1 %v6035_v1  ;;  %v2679_v25 = vshll.u32 %v7084_v58, 16  ;;  %v2683_v14 = vshrl.u32 %v7084_v58, 16  ;;  %v2687_v1 = vshll.u32 %v7090_v59, 16 }
 0x111   : > { %5647 = vmatprep.mubr.bf16.mxu0 %v2658_v4  ;;  %v7092_v52 = vpop.f32.mrf.mxu0  ;;  %5803 = vmatprep.subr.bf16.mxu1 %v7081_v63 }
 0x112   : > { %v2681_v41 = vrot.slane %v2679_v25, 1  ;;  %v2689_v17 = vrot.slane %v2687_v1, 1  ;;  %v6083_v1 = vld [vmem:[#allocation2 + $0xa0] sm:$0xf] }
 0x113   : > { %v7096_v12 = vpop.f32.mrf.mxu1  ;;  %v7098_v49 = vpop.f32.mrf.mxu0  ;;  %5580 = vmatmul.mubr.bf16.gmra.mxu1 %v6785_v2 }
 0x114   : > { %7956 = vst [vmem:[#allocation57_spill] sm:$0xff] %v7096_v12  ;;  %5583 = vmatprep.mubr.bf16.mxu1 %v7024_v39  ;;  %v7109_v12 = vcombine.low %v6078_v47, %v6079_v57  ;;  %v2685_v40 = vor.u32 %v2683_v14, %v2681_v41  ;;  %v2682_v25 = vsel %vm1053_vm8, %v2677_v54, %v2681_v41  ;;  %v2691_v57 = vshrl.u32 %v7090_v59, 16  ;;  %v6082_v14 = vld [vmem:[#allocation2 + $0x9c] sm:$0xf] }
 0x115   : > { %v7107_v4 = vpop.f32.mrf.mxu1  ;;  %v1374_v19 = vpop.f32.mrf.mxu0 }
 0x116   : > { %7957 = vst [vmem:[#allocation58_spill] sm:$0xff] %v7107_v4  ;;  %7958 = vst [vmem:[#allocation59_spill] sm:$0xff] %v7109_v12  ;;  %v2695_v4 = vshll.u32 %v7109_v12, 16  ;;  %v2690_v38 = vsel %vm1053_vm8, %v2685_v40, %v2689_v17  ;;  %v2699_v24 = vshrl.u32 %v7109_v12, 16  ;;  %v7125_v19 = vcombine.low %v6082_v14, %v6083_v1 }
 0x117   : > { %v7111_v7 = vpop.f32.mrf.mxu1  ;;  %v2693_v41 = vor.u32 %v2691_v57, %v2689_v17 }
 0x118   : > { %5648 = vmatmul.mubr.bf16.gmra.mxu0 %v2666_v0  ;;  %7959 = vst [vmem:[#allocation60_spill] sm:$0xff] %v7111_v7  ;;  %v2697_v45 = vrot.slane %v2695_v4, 1  ;;  %7961 = vst [vmem:[#allocation62_spill] sm:$0xff] %v7125_v19  ;;  %v6084_v7 = vld [vmem:[#allocation2 + $0xa4] sm:$0xf]  ;;  %v2711_v11 = vshll.u32 %v7125_v19, 16 }
 0x119   : > { %5651 = vmatprep.mubr.bf16.mxu0 %v2674_v9  ;;  %v1462_v26 = vpop.f32.mrf.mxu1  ;;  %v2703_v9 = vshll.u32 %v7113_v61, 16  ;;  %v7127_v18 = vcombine.low %v6084_v7, %v6085_v3 }
 0x11a   : > { %v2701_v54 = vor.u32 %v2699_v24, %v2697_v45  ;;  %v2698_v4 = vsel %vm1053_vm8, %v2693_v41, %v2697_v45  ;;  %v2713_v7 = vrot.slane %v2711_v11, 1 }
 0x11b   : > { %5584 = vmatmul.mubr.bf16.gmra.mxu1 %v7026_v42  ;;  %v2705_v26 = vrot.slane %v2703_v9, 1  ;;  %v2719_v3 = vshll.u32 %v7127_v18, 16  ;;  %v6086_v9 = vld [vmem:[#allocation2 + $0xac] sm:$0xf]  ;;  %v2723_v11 = vshrl.u32 %v7127_v18, 16 }
 0x11c   : > { %v7119_v0 = vpop.f32.mrf.mxu0  ;;  %5587 = vmatprep.mubr.bf16.mxu1 %v7050_v56 }
 0x11d   : > { %v2706_v17 = vsel %vm1053_vm8, %v2701_v54, %v2705_v26  ;;  %v2721_v41 = vrot.slane %v2719_v3, 1  ;;  %v7160_v3 = vcombine.low %v6691_v62, %v6709_v16  ;;  %v2739_v62 = vshrl.u32 %v6885_v32, 16 }
 0x11e   : > { %v1386_v15 = vpop.f32.mrf.mxu0 }
 0x11f   : > { %v7140_v15 = vcombine.low %v6086_v9, %v6658_v13 }
 0x120   : > { %5652 = vmatmul.mubr.bf16.gmra.mxu0 %v2682_v25  ;;  %v5382_v47 = vpop.f32.mrf.mxu0  ;;  %v2707_v25 = vshrl.u32 %v7113_v61, 16 }
 0x121   : > { %5655 = vmatprep.mubr.bf16.mxu0 %v2690_v38  ;;  %v2715_v38 = vshrl.u32 %v7125_v19, 16  ;;  %v2727_v47 = vshll.u32 %v7140_v15, 16 }
 0x122   : > { %v2709_v45 = vor.u32 %v2707_v25, %v2705_v26  ;;  %v7142_v14 = vpop.f32.mrf.mxu0  ;;  %v2731_v26 = vshrl.u32 %v7140_v15, 16  ;;  %v2735_v25 = vshll.u32 %v6885_v32, 16 }
 0x123   : > { %v7129_v40 = vpop.f32.mrf.mxu1  ;;  %5588 = vmatmul.mubr.bf16.gmra.mxu1 %v7056_v23  ;;  %v2717_v1 = vor.u32 %v2715_v38, %v2713_v7  ;;  %v7156_v38 = vld [vmem:[#allocation2 + $0xc8] sm:$0xf] }
 0x124   : > { %7962 = vst [vmem:[#allocation63_spill] sm:$0xff] %v7129_v40  ;;  %5591 = vmatprep.mubr.bf16.mxu1 %v7084_v58  ;;  %v2714_v54 = vsel %vm1053_vm8, %v2709_v45, %v2713_v7  ;;  %v2729_v7 = vrot.slane %v2727_v47, 1  ;;  %v2743_v40 = vshll.u32 %v7160_v3, 16  ;;  %v2747_v47 = vshrl.u32 %v7160_v3, 16 }
 0x125   : > { %v1474_v57 = vpop.f32.mrf.mxu1  ;;  %v2722_v13 = vsel %vm1053_vm8, %v2717_v1, %v2721_v41 }
 0x126   : > { %v2733_v45 = vor.u32 %v2731_v26, %v2729_v7 }
 0x127   : > { %v5406_v24 = vpop.f32.mrf.mxu1 }
 0x128   : > { %5656 = vmatmul.mubr.bf16.gmra.mxu0 %v2698_v4  ;;  %v2725_v24 = vor.u32 %v2723_v11, %v2721_v41  ;;  %v7176_v11 = vld [vmem:[#allocation2 + $0xcc] sm:$0xf] }
 0x129   : > { %5659 = vmatprep.mubr.bf16.mxu0 %v2706_v17  ;;  %v7149_v4 = vpop.f32.mrf.mxu1  ;;  %v7154_v17 = vld [vmem:[#allocation2 + $0xc4] sm:$0xf] }
 0x12a   : > { %7963 = vst [vmem:[#allocation64_spill] sm:$0xff] %v7149_v4  ;;  %v7164_v1 = vcombine.low %v7154_v17, %v7156_v38  ;;  %v2730_v16 = vsel %vm1053_vm8, %v2725_v24, %v2729_v7  ;;  %v7184_v24 = vcombine.low %v7176_v11, %v7176_v11 }
 0x12b   : > { %5592 = vmatmul.mubr.bf16.gmra.mxu1 %v7090_v59 }
 0x12c   : > { %5595 = vmatprep.mubr.bf16.mxu1 %v7109_v12  ;;  %7965 = vst [vmem:[#allocation66_spill] sm:$0xff] %v7184_v24 }
 0x12d   : > { %v5385_v57 = vpop.f32.mrf.mxu0 }
 0x12e   : > { %v2737_v57 = vrot.slane %v2735_v25, 1  ;;  %v2745_v25 = vrot.slane %v2743_v40, 1  ;;  %v2759_v40 = vshll.u32 %v7184_v24, 16 }
 0x12f   : > { %v7166_v4 = vpop.f32.mrf.mxu0 }
 0x130   : > { %5660 = vmatmul.mubr.bf16.gmra.mxu0 %v2714_v54  ;;  %v2738_v41 = vsel %vm1053_vm8, %v2733_v45, %v2737_v57  ;;  %v2751_v54 = vshll.u32 %v7164_v1, 16  ;;  %v2741_v7 = vor.u32 %v2739_v62, %v2737_v57 }
 0x131   : > { %5663 = vmatprep.mubr.bf16.mxu0 %v2722_v13  ;;  %v7178_v13 = vpop.f32.mrf.mxu0 }
 0x132   : > { %v5409_v9 = vpop.f32.mrf.mxu1  ;;  %v2753_v45 = vrot.slane %v2751_v54, 1  ;;  %v2746_v12 = vsel %vm1053_vm8, %v2741_v7, %v2745_v25 }
 0x133   : > { %5596 = vmatmul.mubr.bf16.gmra.mxu1 %v7113_v61  ;;  %v2749_v9 = vor.u32 %v2747_v47, %v2745_v25 }
 0x134   : > { %5599 = vmatprep.mubr.bf16.mxu1 %v7125_v19  ;;  %v7180_v26 = vpop.f32.mrf.mxu1  ;;  %v7186_v19 = vpop.f32.mrf.mxu0 }
 0x135   : > { %7964 = vst [vmem:[#allocation65_spill] sm:$0xff] %v7180_v26  ;;  %v2754_v57 = vsel %vm1053_vm8, %v2749_v9, %v2753_v45 }
 0x136   : > { %v7188_v61 = vpop.f32.mrf.mxu1 }
 0x137   : > { %7966 = vst [vmem:[#allocation67_spill] sm:$0xff] %v7188_v61  ;;  %v2761_v61 = vrot.slane %v2759_v40, 1 }
 0x138   : > { %5664 = vmatmul.mubr.bf16.gmra.mxu0 %v2730_v16  ;;  %v2755_v16 = vshrl.u32 %v7164_v1, 16 }
 0x139   : > { %5667 = vmatprep.mubr.bf16.mxu0 %v2738_v41  ;;  %v7198_v41 = vpop.f32.mrf.mxu1 }
 0x13a   : > { %7967 = vst [vmem:[#allocation68_spill] sm:$0xff] %v7198_v41  ;;  %v2757_v54 = vor.u32 %v2755_v16, %v2753_v45  ;;  %v3093_v41 = vrot.slane %v6940_v33, 1  ;;  %v3095_v33 = vrot.slane %v6955_v6, 1 }
 0x13b   : > { %5600 = vmatmul.mubr.bf16.gmra.mxu1 %v7127_v18 }
 0x13c   : > { %5603 = vmatprep.mubr.bf16.mxu1 %v7140_v15  ;;  %v2762_v24 = vsel %vm1053_vm8, %v2757_v54, %v2761_v61 }
 0x13f   : > { %v7196_v62 = vpop.f32.mrf.mxu0 }
 0x140   : > { %5668 = vmatmul.mubr.bf16.gmra.mxu0 %v2746_v12  ;;  %v3092_v12 = vrot.slane %v6932_v35, 1  ;;  %v6042_v35 = vld [vmem:[%s7837_s1 + $0x230] sm:$0xff]  }
 0x141   : > { %v7200_v47 = vpop.f32.mrf.mxu0  ;;  %5671 = vmatprep.mubr.bf16.mxu0 %v2754_v57 }
 0x143   : > { %v7202_v26 = vpop.f32.mrf.mxu0  ;;  %v7204_v25 = vpop.f32.mrf.mxu1  ;;  %5604 = vmatmul.mubr.bf16.gmra.mxu1 %v6885_v32 }
 0x144   : > { %5607 = vmatprep.mubr.bf16.mxu1 %v7160_v3 }
 0x145   : > { %v1418_v7 = vpop.f32.mrf.mxu0  ;;  %v7208_v9 = vpop.f32.mrf.mxu1 }
 0x146   : > { %7968 = vst [vmem:[#allocation69_spill] sm:$0xff] %v7208_v9  ;;  %v3094_v7 = vsel %vm1828_vm9, %v3092_v12, %v3093_v41 }
 0x147   : > { %v7213_v57 = vpop.f32.mrf.mxu1 }
 0x148   : > { %7969 = vst [vmem:[#allocation70_spill] sm:$0xff] %v7213_v57  ;;  %v7215_v45 = vpop.f32.mrf.mxu0  ;;  %5672 = vmatmul.mubr.bf16.gmra.mxu0 %v2762_v24 }
 0x149   : > { %5755 = vmatprep.mubr.bf16.mxu0 %v6324_v53  ;;  %v1506_v16 = vpop.f32.mrf.mxu1  ;;  %v3097_v53 = vrot.slane %v6959_v5, 1  ;;  %v6041_v5 = vld [vmem:[%s7837_s1 + $0x1f0] sm:$0xff]  }
 0x14a   : > { %v1430_v40 = vpop.f32.mrf.mxu0 }
 0x14b   : > { %v7219_v54 = vpop.f32.mrf.mxu1  ;;  %5608 = vmatmul.mubr.bf16.gmra.mxu1 %v7164_v1  ;;  %v3096_v40 = vsel %vm1828_vm9, %v3093_v41, %v3095_v33  ;;  %v3099_v41 = vrot.slane %v6740_v51, 1 }
 0x14c   : > { %v5394_v61 = vpop.f32.mrf.mxu0  ;;  %7970 = vst [vmem:[#allocation71_spill] sm:$0xff] %v7219_v54  ;;  %5691 = vmatprep.mubr.bf16.mxu1 %v3094_v7 }
 0x14d   : > { %v1518_v24 = vpop.f32.mrf.mxu1  ;;  %v3098_v61 = vsel %vm1828_vm9, %v3095_v33, %v3097_v53  ;;  %v6046_v33 = vld [vmem:[%s7837_s1 + $0x220] sm:$0xff]  }
 0x14e   : > { %v7222_v9 = vpop.f32.mrf.mxu0 }
 0x14f   : > { %v5418_v12 = vpop.f32.mrf.mxu1 }
 0x150   : > { %v5501_v16 = vpop.f32.mrf.mxu0  ;;  %5756 = vmatmul.mubr.bf16.vlgmr.msra.gmra.mxu0 %v6375_v44  ;;  %v6044_v44 = vld [vmem:[%s7837_s1 + $0x228] sm:$0xff]   ;;  %v3101_v12 = vrot.slane %v6746_v48, 1  ;;  %v3100_v48 = vsel %vm1828_vm9, %v3097_v53, %v3099_v41 }
 0x151   : > { %5868 = vmatpush3.bf16.msra.mxu0 %v7064_v20  ;;  %5759 = vmatprep.mubr.bf16.mxu0 %v6420_v34  ;;  %v7233_v6 = vpop.f32.mrf.mxu1 }
 0x152   : > { %v1984_v7 = vpop.f32.mrf.mxu0  ;;  %5869 = vmatprep.subr.bf16.mxu0 %v6042_v35  ;;  %7971 = vst [vmem:[#allocation72_spill] sm:$0xff] %v7233_v6  ;;  %v3102_v57 = vsel %vm1828_vm9, %v3099_v41, %v3101_v12 }
 0x153   : > { %v5437_v20 = vpop.f32.mrf.mxu1  ;;  %5692 = vmatmul.mubr.bf16.vlgmr.msra.gmra.mxu1 %v3096_v40 }
 0x154   : > { %v5502_v24 = vpop.f32.mrf.mxu0  ;;  %5804 = vmatpush3.bf16.msra.mxu1 %v7081_v63  ;;  %5695 = vmatprep.mubr.bf16.mxu1 %v3098_v61  ;;  %v6043_v20 = vld [vmem:[%s7837_s1 + $0x1e8] sm:$0xff]  }
 0x155   : > { %5870 = vmatpush3.bf16.msra.mxu0 %v6042_v35  ;;  %v1637_v16 = vpop.f32.mrf.mxu1  ;;  %5805 = vmatprep.subr.bf16.mxu1 %v6041_v5 }
 0x156   : > { %v1987_v34 = vpop.f32.mrf.mxu0  ;;  %5871 = vmatprep.subr.bf16.mxu0 %v6044_v44  ;;  %v1638_v35 = vadd.f32 %v1637_v16, %v7035_v8  ;;  %v3103_v16 = vrot.slane %v6754_v21, 1 }
 0x157   : > { %v5438_v40 = vpop.f32.mrf.mxu1 }
 0x158   : > { %v5505_v63 = vpop.f32.mrf.mxu0  ;;  %5760 = vmatmul.mubr.bf16.gmra.mxu0 %v6472_v29  ;;  %v7254_v51 = vadd.f32 %v1984_v7, %v1638_v35  ;;  %v1648_v61 = vadd.f32 %v5438_v40, %v7054_v43  ;;  %5806 = vmatpush3.bf16.msra.mxu1 %v6041_v5  ;;  %v6045_v29 = vld [vmem:[%s7837_s1 + $0x1e0] sm:$0xff]  }
 0x159   : > { %5763 = vmatprep.mubr.bf16.mxu0 %v6546_v37  ;;  %5872 = vmatpush3.bf16.msra.mxu0 %v6044_v44  ;;  %v1640_v54 = vpop.f32.mrf.mxu1  ;;  %v6048_v37 = vld [vmem:[%s7837_s1 + $0x218] sm:$0xff]  }
 0x15a   : > { %v1999_v6 = vpop.f32.mrf.mxu0  ;;  %5873 = vmatprep.subr.bf16.mxu0 %v6046_v33  ;;  %5807 = vmatprep.subr.bf16.mxu1 %v6043_v20  ;;  %v7265_v8 = vadd.f32 %v5502_v24, %v1648_v61  ;;  %v1641_v43 = vadd.f32 %v1640_v54, %v7069_v27  ;;  %v6050_v24 = vld [vmem:[%s7837_s1 + $0x210] sm:$0xff]   ;;  %v3105_v27 = vrot.slane %v6765_v10, 1  ;;  %v6047_v54 = vld [vmem:[%s7837_s1 + $0x1d8] sm:$0xff]  }
 0x15b   : > { %v5441_v7 = vpop.f32.mrf.mxu1  ;;  %5696 = vmatmul.mubr.bf16.gmra.mxu1 %v3100_v48 }
 0x15c   : > { %v5506_v53 = vpop.f32.mrf.mxu0  ;;  %v7268_v5 = vadd.f32 %v1987_v34, %v1641_v43  ;;  %v1660_v44 = vadd.f32 %v5441_v7, %v7088_v36  ;;  %5699 = vmatprep.mubr.bf16.mxu1 %v3102_v57  ;;  %5808 = vmatpush3.bf16.msra.mxu1 %v6043_v20  ;;  %v3104_v20 = vsel %vm1828_vm9, %v3101_v12, %v3103_v16  ;;  %v3109_v7 = vrot.slane %v6785_v2, 1 }
 0x15d   : > { %5874 = vmatpush3.bf16.msra.mxu0 %v6046_v33  ;;  %v1652_v35 = vpop.f32.mrf.mxu1  ;;  %5809 = vmatprep.subr.bf16.mxu1 %v6045_v29  ;;  %v3106_v61 = vsel %vm1828_vm9, %v3103_v16, %v3105_v27 }
 0x15e   : > { %v2002_v41 = vpop.f32.mrf.mxu0  ;;  %5875 = vmatprep.subr.bf16.mxu0 %v6048_v37  ;;  %v7279_v34 = vadd.f32 %v5505_v63, %v1660_v44  ;;  %v1653_v36 = vadd.f32 %v1652_v35, %v7092_v52  ;;  %v6053_v35 = vld [vmem:[%s7837_s1 + $0x1c0] sm:$0xff]  }
 0x15f   : > { %v5442_v21 = vpop.f32.mrf.mxu1 }
 0x160   : > { %v5509_v57 = vpop.f32.mrf.mxu0  ;;  %5764 = vmatmul.mubr.bf16.gmra.mxu0 %v6572_v46  ;;  %v7284_v33 = vadd.f32 %v1999_v6, %v1653_v36  ;;  %v1663_v10 = vadd.f32 %v5442_v21, %v7098_v49  ;;  %5810 = vmatpush3.bf16.msra.mxu1 %v6045_v29  ;;  %v6049_v46 = vld [vmem:[%s7837_s1 + $0x1d0] sm:$0xff]   ;;  %v3107_v29 = vrot.slane %v6777_v28, 1 }
 0x161   : > { %5767 = vmatprep.mubr.bf16.mxu0 %v6614_v30  ;;  %5876 = vmatpush3.bf16.msra.mxu0 %v6048_v37  ;;  %v1655_v63 = vpop.f32.mrf.mxu1  ;;  %v6052_v30 = vld [vmem:[%s7837_s1 + $0x208] sm:$0xff]   ;;  %v6054_v37 = vld [vmem:[%s7837_s1 + $0x200] sm:$0xff]  }
 0x162   : > { %v2014_v40 = vpop.f32.mrf.mxu0  ;;  %5877 = vmatprep.subr.bf16.mxu0 %v6050_v24  ;;  %5811 = vmatprep.subr.bf16.mxu1 %v6047_v54  ;;  %v7295_v52 = vadd.f32 %v5506_v53, %v1663_v10  ;;  %v6051_v53 = vld [vmem:[%s7837_s1 + $0x1c8] sm:$0xff]   ;;  %v3108_v41 = vsel %vm1828_vm9, %v3105_v27, %v3107_v29  ;;  %v3113_v10 = vrot.slane %v7026_v42, 1 }
 0x163   : > { %v5445_v6 = vpop.f32.mrf.mxu1  ;;  %5700 = vmatmul.mubr.bf16.gmra.mxu1 %v3104_v20 }
 0x164   : > { %v5510_v49 = vpop.f32.mrf.mxu0  ;;  %v1675_v12 = vadd.f32 %v5445_v6, %v7119_v0  ;;  %5703 = vmatprep.mubr.bf16.mxu1 %v3106_v61  ;;  %5812 = vmatpush3.bf16.msra.mxu1 %v6047_v54 }
 0x165   : > { %5878 = vmatpush3.bf16.msra.mxu0 %v6050_v24  ;;  %v1667_v43 = vpop.f32.mrf.mxu1  ;;  %5813 = vmatprep.subr.bf16.mxu1 %v6049_v46  ;;  %v3110_v24 = vsel %vm1828_vm9, %v3107_v29, %v3109_v7 }
 0x166   : > { %v2016_v48 = vpop.f32.mrf.mxu0  ;;  %5879 = vmatprep.subr.bf16.mxu0 %v6052_v30  ;;  %v7306_v44 = vadd.f32 %v5509_v57, %v1675_v12  ;;  %v3111_v57 = vrot.slane %v7024_v39, 1 }
 0x167   : > { %v5446_v28 = vpop.f32.mrf.mxu1 }
 0x168   : > { %v5513_v0 = vpop.f32.mrf.mxu0  ;;  %5768 = vmatmul.mubr.bf16.gmra.mxu0 %v6648_v31  ;;  %5814 = vmatpush3.bf16.msra.mxu1 %v6049_v46  ;;  %v3112_v46 = vsel %vm1828_vm9, %v3109_v7, %v3111_v57  ;;  %v3114_v42 = vsel %vm1828_vm9, %v3111_v57, %v3113_v10 }
 0x169   : > { %5771 = vmatprep.mubr.bf16.mxu0 %v6686_v60  ;;  %5880 = vmatpush3.bf16.msra.mxu0 %v6052_v30  ;;  %v1669_v2 = vpop.f32.mrf.mxu1  ;;  %v7972_v0 = vld [vmem:[#allocation5_spill] sm:$0xff] }
 0x16a   : > { %v2028_v16 = vpop.f32.mrf.mxu0  ;;  %5881 = vmatprep.subr.bf16.mxu0 %v6054_v37  ;;  %5815 = vmatprep.subr.bf16.mxu1 %v6051_v53  ;;  %v1670_v54 = vadd.f32 %v1669_v2, %v7142_v14 }
 0x16b   : > { %v5449_v36 = vpop.f32.mrf.mxu1  ;;  %5704 = vmatmul.mubr.bf16.gmra.mxu1 %v3108_v41 }
 0x16c   : > { %v5514_v31 = vpop.f32.mrf.mxu0  ;;  %v7316_v60 = vadd.f32 %v2016_v48, %v1670_v54  ;;  %5707 = vmatprep.mubr.bf16.mxu1 %v3110_v24  ;;  %5816 = vmatpush3.bf16.msra.mxu1 %v6051_v53  ;;  %v7355_v36 = vcombine.low %v7156_v38, %v7176_v11 }
 0x16d   : > { %5882 = vmatpush3.bf16.msra.mxu0 %v6054_v37  ;;  %v1681_v21 = vpop.f32.mrf.mxu1  ;;  %5817 = vmatprep.subr.bf16.mxu1 %v6053_v35  ;;  %v3117_v37 = vrot.slane %v7056_v23, 1 }
 0x16e   : > { %v2031_v27 = vpop.f32.mrf.mxu0  ;;  %v1682_v20 = vadd.f32 %v1681_v21, %v7166_v4  ;;  %v3121_v21 = vrot.slane %v7090_v59, 1 }
 0x16f   : > { %v5450_v14 = vpop.f32.mrf.mxu1 }
 0x170   : > { %v5517_v40 = vpop.f32.mrf.mxu0  ;;  %5772 = vmatmul.mubr.bf16.gmra.mxu0 %v6257_v50  ;;  %v7323_v63 = vadd.f32 %v2028_v16, %v1682_v20  ;;  %v1692_v61 = vadd.f32 %v5450_v14, %v7178_v13  ;;  %5818 = vmatpush3.bf16.msra.mxu1 %v6053_v35  ;;  %v3115_v13 = vrot.slane %v7050_v56, 1  ;;  %v7973_v20 = vld [vmem:[#allocation7_spill] sm:$0xff] }
 0x171   : > { %5775 = vmatprep.mubr.bf16.mxu0 %v6259_v55  ;;  %v1684_v30 = vpop.f32.mrf.mxu1 }
 0x172   : > { %v2043_v39 = vpop.f32.mrf.mxu0  ;;  %v7328_v49 = vadd.f32 %v5514_v31, %v1692_v61  ;;  %v1685_v4 = vadd.f32 %v1684_v30, %v7186_v19  ;;  %v3116_v41 = vsel %vm1828_vm9, %v3113_v10, %v3115_v13  ;;  %v3118_v23 = vsel %vm1828_vm9, %v3115_v13, %v3117_v37  ;;  %v7974_v61 = vld [vmem:[#allocation10_spill] sm:$0xff] }
 0x173   : > { %v5453_v50 = vpop.f32.mrf.mxu1  ;;  %5708 = vmatmul.mubr.bf16.gmra.mxu1 %v3112_v46  ;;  %v4128_v30 = vrot.slane %v7355_v36, 1 }
 0x174   : > { %v5518_v6 = vpop.f32.mrf.mxu0  ;;  %v7331_v12 = vadd.f32 %v2031_v27, %v1685_v4  ;;  %v1704_v55 = vadd.f32 %v5453_v50, %v7196_v62  ;;  %5711 = vmatprep.mubr.bf16.mxu1 %v3114_v42 }
 0x175   : > { %v1696_v29 = vpop.f32.mrf.mxu1 }
 0x176   : > { %v2046_v48 = vpop.f32.mrf.mxu0  ;;  %v7336_v43 = vadd.f32 %v5517_v40, %v1704_v55  ;;  %v1697_v7 = vadd.f32 %v1696_v29, %v7200_v47  ;;  %v6087_v47 = vld [vmem:[#allocation2 + $0xc0] sm:$0xf]  ;;  %v7373_v55 = vld [vmem:[#allocation2 + $0xd0] sm:$0xff]  }
 0x177   : > { %v5454_v19 = vpop.f32.mrf.mxu1  ;;  %v7349_v35 = vcombine.low %v6087_v47, %v7154_v17  ;;  %v7978_v47 = vld [vmem:[#allocation14_spill] sm:$0xff] }
 0x178   : > { %v5521_v53 = vpop.f32.mrf.mxu0  ;;  %5776 = vmatmul.mubr.bf16.gmra.mxu0 %v6295_v22  ;;  %v7341_v28 = vadd.f32 %v2043_v39, %v1697_v7  ;;  %v1707_v62 = vadd.f32 %v5454_v19, %v7202_v26  ;;  %v3119_v26 = vrot.slane %v7084_v58, 1  ;;  %v3797_v58 = vshll.u32 %v7355_v36, 16 }
 0x179   : > { %5779 = vmatprep.mubr.bf16.mxu0 %v7972_v0  ;;  %v1699_v16 = vpop.f32.mrf.mxu1  ;;  %v3789_v27 = vshll.u32 %v7349_v35, 16  ;;  %v4126_v38 = vrot.slane %v7349_v35, 1 }
 0x17a   : > { %v2058_v56 = vpop.f32.mrf.mxu0  ;;  %v7346_v2 = vadd.f32 %v5518_v6, %v1707_v62  ;;  %v3120_v11 = vsel %vm1828_vm9, %v3117_v37, %v3119_v26  ;;  %v3799_v39 = vrot.slane %v3797_v58, 1  ;;  %v3122_v4 = vsel %vm1828_vm9, %v3119_v26, %v3121_v21  ;;  %v7976_v62 = vld [vmem:[#allocation61_spill] sm:$0xff]  ;;  %v7977_v16 = vld [vmem:[#allocation54_spill] sm:$0xff] }
 0x17b   : > { %v5457_v22 = vpop.f32.mrf.mxu1  ;;  %5712 = vmatmul.mubr.bf16.gmra.mxu1 %v3116_v41  ;;  %v7362_v40 = vrot.slane %v3789_v27, 1  ;;  %v7381_v13 = vsel %vm1828_vm9, %v4126_v38, %v4128_v30  ;;  %v3125_v41 = vrot.slane %v7976_v62, 1  ;;  %v3801_v56 = vshrl.u32 %v7355_v36, 16 }
 0x17c   : > { %v5522_v24 = vpop.f32.mrf.mxu0  ;;  %v1719_v54 = vadd.f32 %v5457_v22, %v7215_v45  ;;  %5715 = vmatprep.mubr.bf16.mxu1 %v3118_v23  ;;  %v3793_v45 = vshrl.u32 %v7349_v35, 16  ;;  %v4130_v27 = vrot.slane %v7373_v55, 1 }
 0x17d   : > { %v1711_v57 = vpop.f32.mrf.mxu1  ;;  %v3803_v26 = vor.u32 %v3801_v56, %v3799_v39  ;;  %v3129_v56 = vrot.slane %v7127_v18, 1 }
 0x17e   : > { %v2060_v31 = vpop.f32.mrf.mxu0  ;;  %v7359_v10 = vadd.f32 %v5521_v53, %v1719_v54  ;;  %v3795_v59 = vor.u32 %v3793_v45, %v7362_v40  ;;  %v7975_v53 = vld [vmem:[#allocation59_spill] sm:$0xff] }
 0x17f   : > { %v5458_v14 = vpop.f32.mrf.mxu1  ;;  %v3123_v19 = vrot.slane %v7975_v53, 1 }
 0x180   : > { %v5525_v17 = vpop.f32.mrf.mxu0  ;;  %5780 = vmatmul.mubr.bf16.gmra.mxu0 %v7973_v20  ;;  %v7376_v48 = vsel %vm1053_vm8, %v3795_v59, %v3799_v39  ;;  %v7407_v59 = vsel %vm1828_vm9, %v4128_v30, %v4130_v27 }
 0x181   : > { %5783 = vmatprep.mubr.bf16.mxu0 %v7974_v61  ;;  %v1713_v42 = vpop.f32.mrf.mxu1  ;;  %v7980_v17 = vld [vmem:[#allocation55_spill] sm:$0xff]  ;;  %v3124_v45 = vsel %vm1828_vm9, %v3121_v21, %v3123_v19  ;;  %v3126_v61 = vsel %vm1828_vm9, %v3123_v19, %v3125_v41 }
 0x182   : > { %v2072_v46 = vpop.f32.mrf.mxu0  ;;  %v1714_v6 = vadd.f32 %v1713_v42, %v7222_v9  ;;  %v3805_v9 = vshll.u32 %v7373_v55, 16 }
 0x183   : > { %v5461_v29 = vpop.f32.mrf.mxu1  ;;  %5716 = vmatmul.mubr.bf16.gmra.mxu1 %v3120_v11 }
 0x184   : > { %v5526_v50 = vpop.f32.mrf.mxu0  ;;  %v7383_v37 = vadd.f32 %v2060_v31, %v1714_v6  ;;  %5719 = vmatprep.mubr.bf16.mxu1 %v3122_v4  ;;  %v7391_v22 = vrot.slane %v3805_v9, 1  ;;  %v7979_v31 = vld [vmem:[#allocation16_spill] sm:$0xff]  ;;  %v7982_v29 = vld [vmem:[#allocation57_spill] sm:$0xff]  ;;  %v7983_v9 = vld [vmem:[#allocation62_spill] sm:$0xff] }
 0x185   : > { %v1725_v0 = vpop.f32.mrf.mxu1 }
 0x186   : > { %v2075_v7 = vpop.f32.mrf.mxu0  ;;  %v1726_v23 = vadd.f32 %v1725_v0, %v7977_v16  ;;  %v7402_v11 = vsel %vm1053_vm8, %v3803_v26, %v7391_v22  ;;  %v3127_v0 = vrot.slane %v7983_v9, 1  ;;  %v7987_v26 = vld [vmem:[#allocation60_spill] sm:$0xff] }
 0x187   : > { %v5462_v54 = vpop.f32.mrf.mxu1 }
 0x188   : > { %v5529_v24 = vpop.f32.mrf.mxu0  ;;  %5784 = vmatmul.mubr.bf16.gmra.mxu0 %v7978_v47  ;;  %v7395_v57 = vadd.f32 %v2072_v46, %v1726_v23  ;;  %v1736_v20 = vadd.f32 %v5462_v54, %v7980_v17  ;;  %v7981_v46 = vld [vmem:[#allocation56_spill] sm:$0xff]  ;;  %v7985_v47 = vld [vmem:[#allocation19_spill] sm:$0xff]  ;;  %v3130_v18 = vsel %vm1828_vm9, %v3127_v0, %v3129_v56 }
 0x189   : > { %5787 = vmatprep.mubr.bf16.mxu0 %v7979_v31  ;;  %v1728_v14 = vpop.f32.mrf.mxu1  ;;  %v7986_v31 = vld [vmem:[#allocation23_spill] sm:$0xff] }
 0x18a   : > { %v2087_v58 = vpop.f32.mrf.mxu0  ;;  %v7409_v39 = vadd.f32 %v5526_v50, %v1736_v20  ;;  %v1729_v42 = vadd.f32 %v1728_v14, %v7981_v46  ;;  %v7984_v50 = vld [vmem:[#allocation58_spill] sm:$0xff]  ;;  %v3128_v20 = vsel %vm1828_vm9, %v3125_v41, %v3127_v0 }
 0x18b   : > { %v5465_v6 = vpop.f32.mrf.mxu1  ;;  %5720 = vmatmul.mubr.bf16.gmra.mxu1 %v3124_v45 }
 0x18c   : > { %v5530_v4 = vpop.f32.mrf.mxu0  ;;  %v7412_v21 = vadd.f32 %v2075_v7, %v1729_v42  ;;  %v1748_v53 = vadd.f32 %v5465_v6, %v7982_v29  ;;  %5723 = vmatprep.mubr.bf16.mxu1 %v3126_v61  ;;  %v7988_v42 = vld [vmem:[#allocation63_spill] sm:$0xff] }
 0x18d   : > { %v1740_v62 = vpop.f32.mrf.mxu1 }
 0x18e   : > { %v2090_v19 = vpop.f32.mrf.mxu0  ;;  %v7417_v30 = vadd.f32 %v5529_v24, %v1748_v53  ;;  %v1741_v16 = vadd.f32 %v1740_v62, %v7984_v50  ;;  %v7989_v62 = vld [vmem:[#allocation25_spill] sm:$0xff] }
 0x18f   : > { %v5466_v54 = vpop.f32.mrf.mxu1  ;;  %v3133_v19 = vrot.slane %v6885_v32, 1 }
 0x190   : > { %v5533_v23 = vpop.f32.mrf.mxu0  ;;  %5788 = vmatmul.mubr.bf16.gmra.mxu0 %v7985_v47  ;;  %v7422_v7 = vadd.f32 %v2087_v58, %v1741_v16  ;;  %v1751_v17 = vadd.f32 %v5466_v54, %v7987_v26  ;;  %v3131_v58 = vrot.slane %v7140_v15, 1 }
 0x191   : > { %5791 = vmatprep.mubr.bf16.mxu0 %v7986_v31  ;;  %v1743_v14 = vpop.f32.mrf.mxu1  ;;  %v7991_v31 = vld [vmem:[#allocation64_spill] sm:$0xff] }
 0x192   : > { %v2102_v45 = vpop.f32.mrf.mxu0  ;;  %v7427_v24 = vadd.f32 %v5530_v4, %v1751_v17  ;;  %v7990_v4 = vld [vmem:[#allocation27_spill] sm:$0xff]  ;;  %v3132_v50 = vsel %vm1828_vm9, %v3129_v56, %v3131_v58  ;;  %v3134_v54 = vsel %vm1828_vm9, %v3131_v58, %v3133_v19  ;;  %v3137_v14 = vrot.slane %v7164_v1, 1  ;;  %v7994_v1 = vld [vmem:[#allocation68_spill] sm:$0xff] }
 0x193   : > { %v5469_v46 = vpop.f32.mrf.mxu1  ;;  %5724 = vmatmul.mubr.bf16.gmra.mxu1 %v3128_v20  ;;  %v3135_v20 = vrot.slane %v7160_v3, 1 }
 0x194   : > { %v5534_v61 = vpop.f32.mrf.mxu0  ;;  %v1763_v6 = vadd.f32 %v5469_v46, %v7988_v42  ;;  %5727 = vmatprep.mubr.bf16.mxu1 %v3130_v18  ;;  %v7992_v18 = vld [vmem:[#allocation65_spill] sm:$0xff] }
 0x195   : > { %v1755_v53 = vpop.f32.mrf.mxu1  ;;  %v3136_v58 = vsel %vm1828_vm9, %v3133_v19, %v3135_v20  ;;  %v3138_v3 = vsel %vm1828_vm9, %v3135_v20, %v3137_v14 }
 0x196   : > { %v2104_v29 = vpop.f32.mrf.mxu0  ;;  %v7432_v9 = vadd.f32 %v5533_v23, %v1763_v6  ;;  %v7993_v6 = vld [vmem:[#allocation67_spill] sm:$0xff] }
 0x197   : > { %v5470_v0 = vpop.f32.mrf.mxu1 }
 0x198   : > { %v5537_v41 = vpop.f32.mrf.mxu0  ;;  %5792 = vmatmul.mubr.bf16.gmra.mxu0 %v7989_v62 }
 0x199   : > { %5795 = vmatprep.mubr.bf16.mxu0 %v7990_v4  ;;  %v1757_v47 = vpop.f32.mrf.mxu1 }
 0x19a   : > { %v2116_v16 = vpop.f32.mrf.mxu0  ;;  %v1758_v26 = vadd.f32 %v1757_v47, %v7991_v31 }
 0x19b   : > { %v5473_v17 = vpop.f32.mrf.mxu1  ;;  %5728 = vmatmul.mubr.bf16.gmra.mxu1 %v3132_v50 }
 0x19c   : > { %v5538_v15 = vpop.f32.mrf.mxu0  ;;  %v7439_v32 = vadd.f32 %v2104_v29, %v1758_v26  ;;  %5731 = vmatprep.mubr.bf16.mxu1 %v3134_v54  ;;  %v7995_v54 = vld [vmem:[#allocation66_spill] sm:$0xff]  ;;  %v7996_v17 = vld [vmem:[#allocation69_spill] sm:$0xff] }
 0x19d   : > { %v1769_v45 = vpop.f32.mrf.mxu1  ;;  %v3139_v31 = vrot.slane %v7995_v54, 1  ;;  %v8001_v54 = vld [vmem:[#allocation34_spill] sm:$0xff] }
 0x19e   : > { %v2119_v23 = vpop.f32.mrf.mxu0  ;;  %v1770_v56 = vadd.f32 %v1769_v45, %v7992_v18  ;;  %v7997_v18 = vld [vmem:[#allocation33_spill] sm:$0xff] }
 0x19f   : > { %v5474_v46 = vpop.f32.mrf.mxu1 }
 0x1a0   : > { %v5541_v61 = vpop.f32.mrf.mxu0  ;;  %5796 = vmatmul.mubr.bf16.gmra.mxu0 %v7349_v35  ;;  %v7446_v42 = vadd.f32 %v2116_v16, %v1770_v56  ;;  %v1780_v29 = vadd.f32 %v5474_v46, %v7993_v6 }
 0x1a1   : > { %5799 = vmatprep.mubr.bf16.mxu0 %v7355_v36  ;;  %v1772_v41 = vpop.f32.mrf.mxu1 }
 0x1a2   : > { %v2131_v53 = vpop.f32.mrf.mxu0  ;;  %v7451_v62 = vadd.f32 %v5538_v15, %v1780_v29  ;;  %v1773_v0 = vadd.f32 %v1772_v41, %v7994_v1 }
 0x1a3   : > { %v5477_v50 = vpop.f32.mrf.mxu1  ;;  %5732 = vmatmul.mubr.bf16.gmra.mxu1 %v3136_v58 }
 0x1a4   : > { %v5542_v4 = vpop.f32.mrf.mxu0  ;;  %v7454_v47 = vadd.f32 %v2119_v23, %v1773_v0  ;;  %v1792_v36 = vadd.f32 %v5477_v50, %v7204_v25  ;;  %5735 = vmatprep.mubr.bf16.mxu1 %v3138_v3  ;;  %v7998_v23 = vld [vmem:[#allocation70_spill] sm:$0xff]  ;;  %v3140_v25 = vsel %vm1828_vm9, %v3137_v14, %v3139_v31  ;;  %v7999_v3 = vld [vmem:[#allocation71_spill] sm:$0xff]  ;;  %v8000_v50 = vld [vmem:[#allocation8_spill] sm:$0xff] }
 0x1a5   : > { %v1784_v19 = vpop.f32.mrf.mxu1  ;;  %v8002_v14 = vld [vmem:[#allocation35_spill] sm:$0xff] }
 0x1a6   : > { %v2134_v16 = vpop.f32.mrf.mxu0  ;;  %v7458_v26 = vadd.f32 %v5541_v61, %v1792_v36  ;;  %v1785_v20 = vadd.f32 %v1784_v19, %v7996_v17  ;;  %v8003_v17 = vld [vmem:[#allocation72_spill] sm:$0xff] }
 0x1a7   : > { %v5478_v45 = vpop.f32.mrf.mxu1 }
 0x1a8   : > { %v5545_v15 = vpop.f32.mrf.mxu0  ;;  %5800 = vmatmul.mubr.bf16.gmra.mxu0 %v7373_v55  ;;  %v7463_v56 = vadd.f32 %v2131_v53, %v1785_v20  ;;  %v1795_v46 = vadd.f32 %v5478_v45, %v7998_v23  ;;  %v8004_v23 = vld [vmem:[#allocation11_spill] sm:$0xff] }
 0x1a9   : > { %5883 = vmatprep.mubr.bf16.mxu0 %v7997_v18  ;;  %v1787_v29 = vpop.f32.mrf.mxu1 }
 0x1aa   : > { %v2146_v6 = vpop.f32.mrf.mxu0  ;;  %v7467_v58 = vadd.f32 %v5542_v4, %v1795_v46 }
 0x1ab   : > { %v5481_v41 = vpop.f32.mrf.mxu1  ;;  %5736 = vmatmul.mubr.bf16.gmra.mxu1 %v3140_v25  ;;  %v8005_v6 = vld [vmem:[#allocation13_spill] sm:$0xff] }
 0x1ac   : > { %v5546_v61 = vpop.f32.mrf.mxu0  ;;  %v1807_v1 = vadd.f32 %v5481_v41, %v7999_v3  ;;  %5819 = vmatprep.mubr.bf16.mxu1 %v8000_v50  ;;  %v8006_v41 = vld [vmem:[#allocation36_spill] sm:$0xff] }
 0x1ad   : > { %v1799_v36 = vpop.f32.mrf.mxu1 }
 0x1ae   : > { %v2148_v0 = vpop.f32.mrf.mxu0  ;;  %v7471_v16 = vadd.f32 %v5545_v15, %v1807_v1  ;;  %v8007_v1 = vld [vmem:[#allocation37_spill] sm:$0xff] }
 0x1af   : > { %v5482_v19 = vpop.f32.mrf.mxu1 }
 0x1b0   : > { %v5629_v53 = vpop.f32.mrf.mxu0  ;;  %5884 = vmatmul.mubr.bf16.vlgmr.msra.gmra.mxu0 %v8001_v54 }
 0x1b1   : > { %5887 = vmatprep.mubr.bf16.mxu0 %v8002_v14  ;;  %v1801_v4 = vpop.f32.mrf.mxu1 }
 0x1b2   : > { %v2869_v31 = vpop.f32.mrf.mxu0  ;;  %v1802_v20 = vadd.f32 %v1801_v4, %v8003_v17  ;;  %v8008_v17 = vld [vmem:[#allocation17_spill] sm:$0xff] }
 0x1b3   : > { %v5565_v18 = vpop.f32.mrf.mxu1  ;;  %5820 = vmatmul.mubr.bf16.vlgmr.msra.gmra.mxu1 %v8004_v23  ;;  %v8009_v23 = vld [vmem:[#allocation20_spill] sm:$0xff] }
 0x1b4   : > { %v5630_v45 = vpop.f32.mrf.mxu0  ;;  %v7477_v46 = vadd.f32 %v2148_v0, %v1802_v20  ;;  %5823 = vmatprep.mubr.bf16.mxu1 %v8005_v6 }
 0x1b5   : > { %v2341_v15 = vpop.f32.mrf.mxu1 }
 0x1b6   : > { %v2872_v25 = vpop.f32.mrf.mxu0  ;;  %v2516_v29 = vadd.f32 %v2341_v15, %v7254_v51  ;;  %v8010_v15 = vld [vmem:[#allocation38_spill] sm:$0xff] }
 0x1b7   : > { %v5566_v3 = vpop.f32.mrf.mxu1 }
 0x1b8   : > { %v5633_v61 = vpop.f32.mrf.mxu0  ;;  %5888 = vmatmul.mubr.bf16.gmra.mxu0 %v8006_v41  ;;  %v7483_v50 = vadd.f32 %v2869_v31, %v2516_v29  ;;  %v2518_v36 = vadd.f32 %v5566_v3, %v7265_v8  ;;  %v8011_v29 = vld [vmem:[#allocation39_spill] sm:$0xff] }
 0x1b9   : > { %5891 = vmatprep.mubr.bf16.mxu0 %v8007_v1  ;;  %v2344_v54 = vpop.f32.mrf.mxu1 }
 0x1ba   : > { %v2884_v53 = vpop.f32.mrf.mxu0  ;;  %v7486_v0 = vadd.f32 %v5630_v45, %v2518_v36  ;;  %v2517_v19 = vadd.f32 %v2344_v54, %v7268_v5 }
 0x1bb   : > { %v5569_v4 = vpop.f32.mrf.mxu1  ;;  %5824 = vmatmul.mubr.bf16.gmra.mxu1 %v8008_v17 }
 0x1bc   : > { %v5634_v14 = vpop.f32.mrf.mxu0  ;;  %v7490_v51 = vadd.f32 %v2872_v25, %v2517_v19  ;;  %v2520_v20 = vadd.f32 %v5569_v4, %v7279_v34  ;;  %5827 = vmatprep.mubr.bf16.mxu1 %v8009_v23  ;;  %v8013_v4 = vld [vmem:[#allocation26_spill] sm:$0xff]  ;;  %v8015_v23 = vld [vmem:[#allocation41_spill] sm:$0xff] }
 0x1bd   : > { %v2356_v31 = vpop.f32.mrf.mxu1 }
 0x1be   : > { %v2887_v18 = vpop.f32.mrf.mxu0  ;;  %v7494_v6 = vadd.f32 %v5633_v61, %v2520_v20  ;;  %v2519_v8 = vadd.f32 %v2356_v31, %v7284_v33  ;;  %v8012_v61 = vld [vmem:[#allocation22_spill] sm:$0xff] }
 0x1bf   : > { %v5570_v5 = vpop.f32.mrf.mxu1  ;;  %v8014_v18 = vld [vmem:[#allocation40_spill] sm:$0xff] }
 0x1c0   : > { %v5637_v45 = vpop.f32.mrf.mxu0  ;;  %5892 = vmatmul.mubr.bf16.gmra.mxu0 %v8010_v15  ;;  %v7499_v41 = vadd.f32 %v2884_v53, %v2519_v8  ;;  %v2521_v25 = vadd.f32 %v5570_v5, %v7295_v52 }
 0x1c1   : > { %5895 = vmatprep.mubr.bf16.mxu0 %v8011_v29  ;;  %v2359_v34 = vpop.f32.mrf.mxu1  ;;  %v8016_v29 = vld [vmem:[#allocation29_spill] sm:$0xff] }
 0x1c2   : > { %v2899_v3 = vpop.f32.mrf.mxu0  ;;  %v7502_v1 = vadd.f32 %v5634_v14, %v2521_v25 }
 0x1c3   : > { %v5573_v54 = vpop.f32.mrf.mxu1  ;;  %5828 = vmatmul.mubr.bf16.gmra.mxu1 %v8012_v61  ;;  %v8017_v3 = vld [vmem:[#allocation31_spill] sm:$0xff] }
 0x1c4   : > { %v5638_v36 = vpop.f32.mrf.mxu0  ;;  %v2523_v33 = vadd.f32 %v5573_v54, %v7306_v44  ;;  %5831 = vmatprep.mubr.bf16.mxu1 %v8013_v4  ;;  %v8018_v54 = vld [vmem:[#allocation42_spill] sm:$0xff] }
 0x1c5   : > { %v2371_v17 = vpop.f32.mrf.mxu1 }
 0x1c6   : > { %v2901_v19 = vpop.f32.mrf.mxu0  ;;  %v7507_v20 = vadd.f32 %v5637_v45, %v2523_v33  ;;  %v8019_v33 = vld [vmem:[#allocation43_spill] sm:$0xff] }
 0x1c7   : > { %v5574_v52 = vpop.f32.mrf.mxu1 }
 0x1c8   : > { %v5641_v53 = vpop.f32.mrf.mxu0  ;;  %5896 = vmatmul.mubr.bf16.gmra.mxu0 %v8014_v18 }
 0x1c9   : > { %5899 = vmatprep.mubr.bf16.mxu0 %v8015_v23  ;;  %v2373_v31 = vpop.f32.mrf.mxu1 }
 0x1ca   : > { %v2913_v14 = vpop.f32.mrf.mxu0  ;;  %v2522_v8 = vadd.f32 %v2373_v31, %v7316_v60  ;;  %v8020_v31 = vld [vmem:[#allocation3_spill] sm:$0xff] }
 0x1cb   : > { %v5577_v5 = vpop.f32.mrf.mxu1  ;;  %5832 = vmatmul.mubr.bf16.gmra.mxu1 %v8016_v29  ;;  %v8021_v29 = vld [vmem:[#allocation4_spill] sm:$0xff] }
 0x1cc   : > { %v5642_v15 = vpop.f32.mrf.mxu0  ;;  %v7513_v44 = vadd.f32 %v2901_v19, %v2522_v8  ;;  %5835 = vmatprep.mubr.bf16.mxu1 %v8017_v3 }
 0x1cd   : > { %v2385_v45 = vpop.f32.mrf.mxu1 }
 0x1ce   : > { %v2916_v25 = vpop.f32.mrf.mxu0  ;;  %v2524_v34 = vadd.f32 %v2385_v45, %v7323_v63  ;;  %v8022_v45 = vld [vmem:[#allocation44_spill] sm:$0xff] }
 0x1cf   : > { %v5578_v61 = vpop.f32.mrf.mxu1 }
 0x1d0   : > { %v5645_v36 = vpop.f32.mrf.mxu0  ;;  %5900 = vmatmul.mubr.bf16.gmra.mxu0 %v8018_v54  ;;  %v7519_v4 = vadd.f32 %v2913_v14, %v2524_v34  ;;  %v2526_v60 = vadd.f32 %v5578_v61, %v7328_v49  ;;  %v8023_v34 = vld [vmem:[#allocation45_spill] sm:$0xff] }
 0x1d1   : > { %5903 = vmatprep.mubr.bf16.mxu0 %v8019_v33  ;;  %v2388_v53 = vpop.f32.mrf.mxu1 }
 0x1d2   : > { %v2928_v17 = vpop.f32.mrf.mxu0  ;;  %v7522_v19 = vadd.f32 %v5642_v15, %v2526_v60  ;;  %v2525_v18 = vadd.f32 %v2388_v53, %v7331_v12 }
 0x1d3   : > { %v5581_v23 = vpop.f32.mrf.mxu1  ;;  %5836 = vmatmul.mubr.bf16.gmra.mxu1 %v8020_v31 }
 0x1d4   : > { %v5646_v52 = vpop.f32.mrf.mxu0  ;;  %v7526_v63 = vadd.f32 %v2916_v25, %v2525_v18  ;;  %v2528_v8 = vadd.f32 %v5581_v23, %v7336_v43  ;;  %5839 = vmatprep.mubr.bf16.mxu1 %v8021_v29  ;;  %v8025_v23 = vld [vmem:[#allocation9_spill] sm:$0xff]  ;;  %v8027_v29 = vld [vmem:[#allocation47_spill] sm:$0xff] }
 0x1d5   : > { %v2400_v14 = vpop.f32.mrf.mxu1 }
 0x1d6   : > { %v2931_v5 = vpop.f32.mrf.mxu0  ;;  %v7530_v3 = vadd.f32 %v5645_v36, %v2528_v8  ;;  %v2527_v49 = vadd.f32 %v2400_v14, %v7341_v28  ;;  %v8024_v36 = vld [vmem:[#allocation6_spill] sm:$0xff] }
 0x1d7   : > { %v5582_v12 = vpop.f32.mrf.mxu1  ;;  %v8026_v5 = vld [vmem:[#allocation46_spill] sm:$0xff] }
 0x1d8   : > { %v5649_v15 = vpop.f32.mrf.mxu0  ;;  %5904 = vmatmul.mubr.bf16.gmra.mxu0 %v8022_v45  ;;  %v7535_v54 = vadd.f32 %v2928_v17, %v2527_v49  ;;  %v2529_v25 = vadd.f32 %v5582_v12, %v7346_v2 }
 0x1d9   : > { %5907 = vmatprep.mubr.bf16.mxu0 %v8023_v34  ;;  %v2403_v43 = vpop.f32.mrf.mxu1  ;;  %v8028_v34 = vld [vmem:[#allocation12_spill] sm:$0xff] }
 0x1da   : > { %v2943_v61 = vpop.f32.mrf.mxu0  ;;  %v7538_v33 = vadd.f32 %v5646_v52, %v2529_v25 }
 0x1db   : > { %v5585_v53 = vpop.f32.mrf.mxu1  ;;  %5840 = vmatmul.mubr.bf16.gmra.mxu1 %v8024_v36  ;;  %v8029_v61 = vld [vmem:[#allocation15_spill] sm:$0xff] }
 0x1dc   : > { %v5650_v60 = vpop.f32.mrf.mxu0  ;;  %v2531_v28 = vadd.f32 %v5585_v53, %v7359_v10  ;;  %5843 = vmatprep.mubr.bf16.mxu1 %v8025_v23  ;;  %v8030_v53 = vld [vmem:[#allocation48_spill] sm:$0xff] }
 0x1dd   : > { %v2415_v31 = vpop.f32.mrf.mxu1 }
 0x1de   : > { %v2945_v18 = vpop.f32.mrf.mxu0  ;;  %v7543_v8 = vadd.f32 %v5649_v15, %v2531_v28  ;;  %v8031_v28 = vld [vmem:[#allocation49_spill] sm:$0xff] }
 0x1df   : > { %v5586_v2 = vpop.f32.mrf.mxu1 }
 0x1e0   : > { %v5653_v17 = vpop.f32.mrf.mxu0  ;;  %5908 = vmatmul.mubr.bf16.gmra.mxu0 %v8026_v5 }
 0x1e1   : > { %5911 = vmatprep.mubr.bf16.mxu0 %v8027_v29  ;;  %v2417_v14 = vpop.f32.mrf.mxu1 }
 0x1e2   : > { %v2957_v52 = vpop.f32.mrf.mxu0  ;;  %v2530_v49 = vadd.f32 %v2417_v14, %v7383_v37  ;;  %v8032_v14 = vld [vmem:[#allocation18_spill] sm:$0xff] }
 0x1e3   : > { %v5589_v12 = vpop.f32.mrf.mxu1  ;;  %5844 = vmatmul.mubr.bf16.gmra.mxu1 %v8028_v34  ;;  %v8033_v34 = vld [vmem:[#allocation21_spill] sm:$0xff] }
 0x1e4   : > { %v5654_v45 = vpop.f32.mrf.mxu0  ;;  %v7549_v10 = vadd.f32 %v2945_v18, %v2530_v49  ;;  %5847 = vmatprep.mubr.bf16.mxu1 %v8029_v61 }
 0x1e5   : > { %v2429_v15 = vpop.f32.mrf.mxu1 }
 0x1e6   : > { %v2960_v25 = vpop.f32.mrf.mxu0  ;;  %v2532_v43 = vadd.f32 %v2429_v15, %v7395_v57  ;;  %v8034_v15 = vld [vmem:[#allocation50_spill] sm:$0xff] }
 0x1e7   : > { %v5590_v36 = vpop.f32.mrf.mxu1 }
 0x1e8   : > { %v5657_v60 = vpop.f32.mrf.mxu0  ;;  %5912 = vmatmul.mubr.bf16.gmra.mxu0 %v8030_v53  ;;  %v7555_v23 = vadd.f32 %v2957_v52, %v2532_v43  ;;  %v2534_v37 = vadd.f32 %v5590_v36, %v7409_v39  ;;  %v8035_v43 = vld [vmem:[#allocation52_spill] sm:$0xff] }
 0x1e9   : > { %5915 = vmatprep.mubr.bf16.mxu0 %v8031_v28  ;;  %v2432_v17 = vpop.f32.mrf.mxu1 }
 0x1ea   : > { %v2972_v31 = vpop.f32.mrf.mxu0  ;;  %v7558_v18 = vadd.f32 %v5654_v45, %v2534_v37  ;;  %v2533_v5 = vadd.f32 %v2432_v17, %v7412_v21 }
 0x1eb   : > { %v5593_v29 = vpop.f32.mrf.mxu1  ;;  %5848 = vmatmul.mubr.bf16.gmra.mxu1 %v8032_v14  ;;  %v8038_v14 = vld [vmem:[#allocation51_spill] sm:$0xff] }
 0x1ec   : > { %v5658_v2 = vpop.f32.mrf.mxu0  ;;  %v7562_v57 = vadd.f32 %v2960_v25, %v2533_v5  ;;  %v2536_v49 = vadd.f32 %v5593_v29, %v7417_v30  ;;  %5851 = vmatprep.mubr.bf16.mxu1 %v8033_v34  ;;  %v8037_v29 = vld [vmem:[#allocation28_spill] sm:$0xff] }
 0x1ed   : > { %v2444_v52 = vpop.f32.mrf.mxu1 }
 0x1ee   : > { %v2975_v12 = vpop.f32.mrf.mxu0  ;;  %v7566_v61 = vadd.f32 %v5657_v60, %v2536_v49  ;;  %v2535_v39 = vadd.f32 %v2444_v52, %v7422_v7  ;;  %v8036_v60 = vld [vmem:[#allocation24_spill] sm:$0xff] }
 0x1ef   : > { %v5594_v21 = vpop.f32.mrf.mxu1 }
 0x1f0   : > { %v5661_v45 = vpop.f32.mrf.mxu0  ;;  %5916 = vmatmul.mubr.bf16.gmra.mxu0 %v8034_v15  ;;  %v7571_v53 = vadd.f32 %v2972_v31, %v2535_v39  ;;  %v2537_v25 = vadd.f32 %v5594_v21, %v7427_v24  ;;  %v4127_v31 = vsel %vm1828_vm9, %v8038_v14, %v4126_v38 }
 0x1f1   : > { %5919 = vmatprep.mubr.bf16.mxu0 %v8035_v43  ;;  %v2447_v30 = vpop.f32.mrf.mxu1 }
 0x1f2   : > { %v2987_v36 = vpop.f32.mrf.mxu0  ;;  %v7574_v28 = vadd.f32 %v5658_v2, %v2537_v25  ;;  %v8039_v2 = vld [vmem:[#allocation53_spill] sm:$0xff]  ;;  %v8041_v25 = vld [vmem:[#allocation30_spill] sm:$0xff] }
 0x1f3   : > { %v5597_v17 = vpop.f32.mrf.mxu1  ;;  %5852 = vmatmul.mubr.bf16.gmra.mxu1 %v8036_v60  ;;  %v6057_v36 = vld [vmem:[#allocation2 + $0xd8] ss:$0 sps:$4 sm:$0xff]  }
 0x1f4   : > { %v5662_v37 = vpop.f32.mrf.mxu0  ;;  %v2539_v7 = vadd.f32 %v5597_v17, %v7432_v9  ;;  %5855 = vmatprep.mubr.bf16.mxu1 %v8037_v29  ;;  %v8040_v9 = vld [vmem:[#allocation32_spill] sm:$0xff]  ;;  %v3813_v14 = vshll.u32 %v6057_v36, 16 }
 0x1f5   : > { %v2459_v49 = vpop.f32.mrf.mxu1  ;;  %v3792_v15 = vsel %vm1053_vm8, %v8040_v9, %v7362_v40  ;;  %v4132_v40 = vrot.slane %v6057_v36, 1 }
 0x1f6   : > { %v2989_v5 = vpop.f32.mrf.mxu0  ;;  %v7583_v24 = vadd.f32 %v5661_v45, %v2539_v7 }
 0x1f7   : > { %v5598_v34 = vpop.f32.mrf.mxu1 }
 0x1f8   : > { %v5665_v12 = vpop.f32.mrf.mxu0  ;;  %5920 = vmatmul.mubr.bf16.gmra.mxu0 %v8039_v2 }
 0x1f9   : > { %5923 = vmatprep.mubr.bf16.mxu0 %v4127_v31  ;;  %v2461_v39 = vpop.f32.mrf.mxu1 }
 0x1fa   : > { %v3001_v52 = vpop.f32.mrf.mxu0  ;;  %v2538_v21 = vadd.f32 %v2461_v39, %v7439_v32  ;;  %v3815_v39 = vrot.slane %v3813_v14, 1 }
 0x1fb   : > { %v5601_v43 = vpop.f32.mrf.mxu1  ;;  %5856 = vmatmul.mubr.bf16.gmra.mxu1 %v8041_v25 }
 0x1fc   : > { %v5666_v35 = vpop.f32.mrf.mxu0  ;;  %v7591_v38 = vadd.f32 %v2989_v5, %v2538_v21  ;;  %5859 = vmatprep.mubr.bf16.mxu1 %v3792_v15  ;;  %v3809_v5 = vshrl.u32 %v7373_v55, 16 }
 0x1fd   : > { %v2473_v30 = vpop.f32.mrf.mxu1 }
 0x1fe   : > { %v3004_v45 = vpop.f32.mrf.mxu0  ;;  %v2540_v37 = vadd.f32 %v2473_v30, %v7446_v42 }
 0x1ff   : > { %v5602_v60 = vpop.f32.mrf.mxu1 }
 0x200   : > { %v5669_v17 = vpop.f32.mrf.mxu0  ;;  %5924 = vmatmul.mubr.bf16.gmra.mxu0 %v7381_v13  ;;  %v7596_v32 = vadd.f32 %v3001_v52, %v2540_v37  ;;  %v2542_v7 = vadd.f32 %v5602_v60, %v7451_v62  ;;  %v4133_v13 = vsel %vm1828_vm9, %v4130_v27, %v4132_v40  ;;  %v3811_v52 = vor.u32 %v3809_v5, %v7391_v22 }
 0x201   : > { %5927 = vmatprep.mubr.bf16.mxu0 %v7407_v59  ;;  %v2476_v31 = vpop.f32.mrf.mxu1 }
 0x202   : > { %v3016_v29 = vpop.f32.mrf.mxu0  ;;  %v7600_v49 = vadd.f32 %v5666_v35, %v2542_v7  ;;  %v2541_v42 = vadd.f32 %v2476_v31, %v7454_v47 }
 0x203   : > { %v5605_v2 = vpop.f32.mrf.mxu1  ;;  %5860 = vmatmul.mubr.bf16.gmra.mxu1 %v7376_v48 }
 0x204   : > { %v5670_v12 = vpop.f32.mrf.mxu0  ;;  %v7607_v59 = vadd.f32 %v3004_v45, %v2541_v42  ;;  %v2544_v62 = vadd.f32 %v5605_v2, %v7458_v26  ;;  %5863 = vmatprep.mubr.bf16.mxu1 %v7402_v11  ;;  %v3816_v26 = vsel %vm1053_vm8, %v3811_v52, %v3815_v39 }
 0x205   : > { %v2488_v9 = vpop.f32.mrf.mxu1 }
 0x206   : > { %v3019_v34 = vpop.f32.mrf.mxu0  ;;  %v7612_v47 = vadd.f32 %v5669_v17, %v2544_v62  ;;  %v2543_v15 = vadd.f32 %v2488_v9, %v7463_v56 }
 0x207   : > { %v5606_v55 = vpop.f32.mrf.mxu1 }
 0x208   : > { %v5673_v48 = vpop.f32.mrf.mxu0  ;;  %5928 = vmatmul.mubr.bf16.gmra.mxu0 %v4133_v13  ;;  %v7615_v21 = vadd.f32 %v3016_v29, %v2543_v15  ;;  %v2545_v27 = vadd.f32 %v5606_v55, %v7467_v58 }
 0x209   : > { %v2491_v43 = vpop.f32.mrf.mxu1 }
 0x20a   : > { %v3031_v35 = vpop.f32.mrf.mxu0  ;;  %v7619_v11 = vadd.f32 %v5670_v12, %v2545_v27 }
 0x20b   : > { %v5609_v25 = vpop.f32.mrf.mxu1  ;;  %5864 = vmatmul.mubr.bf16.gmra.mxu1 %v3816_v26 }
 0x20c   : > { %v5674_v22 = vpop.f32.mrf.mxu0  ;;  %v2547_v45 = vadd.f32 %v5609_v25, %v7471_v16 }
 0x20d   : > { %v2503_v56 = vpop.f32.mrf.mxu1 }
 0x20e   : > { %v3033_v36 = vpop.f32.mrf.mxu0  ;;  %v7622_v30 = vadd.f32 %v5673_v48, %v2547_v45 }
 0x20f   : > { %v5610_v17 = vpop.f32.mrf.mxu1 }
 0x210   : > { %v5757_v37 = vpop.f32.mrf.mxu0 }
 0x211   : > { %v2505_v40 = vpop.f32.mrf.mxu1 }
 0x212   : > { %v3562_v60 = vpop.f32.mrf.mxu0  ;;  %v2546_v58 = vadd.f32 %v2505_v40, %v7477_v46 }
 0x213   : > { %v5693_v29 = vpop.f32.mrf.mxu1 }
 0x214   : > { %v5758_v7 = vpop.f32.mrf.mxu0  ;;  %v7625_v5 = vadd.f32 %v3033_v36, %v2546_v58 }
 0x215   : > { %v3247_v31 = vpop.f32.mrf.mxu1 }
 0x216   : > { %v3565_v14 = vpop.f32.mrf.mxu0  ;;  %v3422_v42 = vadd.f32 %v3247_v31, %v7483_v50 }
 0x217   : > { %v5694_v16 = vpop.f32.mrf.mxu1 }
 0x218   : > { %v5761_v12 = vpop.f32.mrf.mxu0  ;;  %v7628_v2 = vadd.f32 %v3562_v60, %v3422_v42  ;;  %v3424_v13 = vadd.f32 %v5694_v16, %v7486_v0 }
 0x219   : > { %v3250_v34 = vpop.f32.mrf.mxu1 }
 0x21a   : > { %v3577_v62 = vpop.f32.mrf.mxu0  ;;  %v7631_v52 = vadd.f32 %v5758_v7, %v3424_v13  ;;  %v3423_v46 = vadd.f32 %v3250_v34, %v7490_v51 }
 0x21b   : > { %v5697_v9 = vpop.f32.mrf.mxu1 }
 0x21c   : > { %v5762_v39 = vpop.f32.mrf.mxu0  ;;  %v7634_v15 = vadd.f32 %v3565_v14, %v3423_v46  ;;  %v3426_v48 = vadd.f32 %v5697_v9, %v7494_v6 }
 0x21d   : > { %v3262_v50 = vpop.f32.mrf.mxu1 }
 0x21e   : > { %v3580_v55 = vpop.f32.mrf.mxu0  ;;  %v7637_v27 = vadd.f32 %v5761_v12, %v3426_v48  ;;  %v3425_v26 = vadd.f32 %v3262_v50, %v7499_v41 }
 0x21f   : > { %v5698_v0 = vpop.f32.mrf.mxu1 }
 0x220   : > { %v5765_v35 = vpop.f32.mrf.mxu0  ;;  %v7640_v43 = vadd.f32 %v3577_v62, %v3425_v26  ;;  %v3427_v22 = vadd.f32 %v5698_v0, %v7502_v1 }
 0x221   : > { %v3265_v51 = vpop.f32.mrf.mxu1 }
 0x222   : > { %v3592_v25 = vpop.f32.mrf.mxu0  ;;  %v7643_v45 = vadd.f32 %v5762_v39, %v3427_v22 }
 0x223   : > { %v5701_v56 = vpop.f32.mrf.mxu1 }
 0x224   : > { %v5766_v36 = vpop.f32.mrf.mxu0  ;;  %v3429_v6 = vadd.f32 %v5701_v56, %v7507_v20 }
 0x225   : > { %v3277_v17 = vpop.f32.mrf.mxu1 }
 0x226   : > { %v3594_v37 = vpop.f32.mrf.mxu0  ;;  %v7646_v60 = vadd.f32 %v5765_v35, %v3429_v6 }
 0x227   : > { %v5702_v41 = vpop.f32.mrf.mxu1 }
 0x228   : > { %v5769_v40 = vpop.f32.mrf.mxu0 }
 0x229   : > { %v3279_v7 = vpop.f32.mrf.mxu1 }
 0x22a   : > { %v3606_v58 = vpop.f32.mrf.mxu0  ;;  %v3428_v29 = vadd.f32 %v3279_v7, %v7513_v44 }
 0x22b   : > { %v5705_v1 = vpop.f32.mrf.mxu1 }
 0x22c   : > { %v5770_v14 = vpop.f32.mrf.mxu0  ;;  %v7649_v31 = vadd.f32 %v3594_v37, %v3428_v29 }
 0x22d   : > { %v3291_v12 = vpop.f32.mrf.mxu1 }
 0x22e   : > { %v3609_v42 = vpop.f32.mrf.mxu0  ;;  %v3430_v16 = vadd.f32 %v3291_v12, %v7519_v4 }
 0x22f   : > { %v5706_v20 = vpop.f32.mrf.mxu1 }
 0x230   : > { %v5773_v13 = vpop.f32.mrf.mxu0  ;;  %v7652_v62 = vadd.f32 %v3606_v58, %v3430_v16  ;;  %v3432_v34 = vadd.f32 %v5706_v20, %v7522_v19 }
 0x231   : > { %v3294_v39 = vpop.f32.mrf.mxu1 }
 0x232   : > { %v3621_v46 = vpop.f32.mrf.mxu0  ;;  %v7655_v9 = vadd.f32 %v5770_v14, %v3432_v34  ;;  %v3431_v44 = vadd.f32 %v3294_v39, %v7526_v63 }
 0x233   : > { %v5709_v55 = vpop.f32.mrf.mxu1 }
 0x234   : > { %v5774_v48 = vpop.f32.mrf.mxu0  ;;  %v7658_v50 = vadd.f32 %v3609_v42, %v3431_v44  ;;  %v3434_v26 = vadd.f32 %v5709_v55, %v7530_v3 }
 0x235   : > { %v3306_v4 = vpop.f32.mrf.mxu1 }
 0x236   : > { %v3624_v35 = vpop.f32.mrf.mxu0  ;;  %v7661_v0 = vadd.f32 %v5773_v13, %v3434_v26  ;;  %v3433_v22 = vadd.f32 %v3306_v4, %v7535_v54 }
 0x237   : > { %v5710_v19 = vpop.f32.mrf.mxu1 }
 0x238   : > { %v5777_v25 = vpop.f32.mrf.mxu0  ;;  %v7664_v51 = vadd.f32 %v3621_v46, %v3433_v22  ;;  %v3435_v36 = vadd.f32 %v5710_v19, %v7538_v33 }
 0x239   : > { %v3309_v63 = vpop.f32.mrf.mxu1 }
 0x23a   : > { %v3636_v56 = vpop.f32.mrf.mxu0  ;;  %v7667_v6 = vadd.f32 %v5774_v48, %v3435_v36 }
 0x23b   : > { %v5713_v17 = vpop.f32.mrf.mxu1 }
 0x23c   : > { %v5778_v37 = vpop.f32.mrf.mxu0  ;;  %v3437_v3 = vadd.f32 %v5713_v17, %v7543_v8 }
 0x23d   : > { %v3321_v41 = vpop.f32.mrf.mxu1 }
 0x23e   : > { %v3638_v40 = vpop.f32.mrf.mxu0  ;;  %v7670_v58 = vadd.f32 %v5777_v25, %v3437_v3 }
 0x23f   : > { %v5714_v54 = vpop.f32.mrf.mxu1 }
 0x240   : > { %v5781_v7 = vpop.f32.mrf.mxu0 }
 0x241   : > { %v3323_v14 = vpop.f32.mrf.mxu1 }
 0x242   : > { %v3650_v29 = vpop.f32.mrf.mxu0  ;;  %v3436_v1 = vadd.f32 %v3323_v14, %v7549_v10 }
 0x243   : > { %v5717_v33 = vpop.f32.mrf.mxu1 }
 0x244   : > { %v5782_v42 = vpop.f32.mrf.mxu0  ;;  %v7673_v12 = vadd.f32 %v3638_v40, %v3436_v1 }
 0x245   : > { %v3335_v13 = vpop.f32.mrf.mxu1 }
 0x246   : > { %v3653_v16 = vpop.f32.mrf.mxu0  ;;  %v3438_v20 = vadd.f32 %v3335_v13, %v7555_v23 }
 0x247   : > { %v5718_v8 = vpop.f32.mrf.mxu1 }
 0x248   : > { %v5785_v34 = vpop.f32.mrf.mxu0  ;;  %v7676_v46 = vadd.f32 %v3650_v29, %v3438_v20  ;;  %v3440_v39 = vadd.f32 %v5718_v8, %v7558_v18 }
 0x249   : > { %v3338_v48 = vpop.f32.mrf.mxu1 }
 0x24a   : > { %v3665_v44 = vpop.f32.mrf.mxu0  ;;  %v7679_v55 = vadd.f32 %v5782_v42, %v3440_v39  ;;  %v3439_v10 = vadd.f32 %v3338_v48, %v7562_v57 }
 0x24b   : > { %v5721_v35 = vpop.f32.mrf.mxu1 }
 0x24c   : > { %v5786_v26 = vpop.f32.mrf.mxu0  ;;  %v7682_v4 = vadd.f32 %v3653_v16, %v3439_v10  ;;  %v3442_v22 = vadd.f32 %v5721_v35, %v7566_v61 }
 0x24d   : > { %v3350_v23 = vpop.f32.mrf.mxu1 }
 0x24e   : > { %v3668_v25 = vpop.f32.mrf.mxu0  ;;  %v7685_v19 = vadd.f32 %v5785_v34, %v3442_v22  ;;  %v3441_v36 = vadd.f32 %v3350_v23, %v7571_v53 }
 0x24f   : > { %v5722_v18 = vpop.f32.mrf.mxu1 }
 0x250   : > { %v5789_v56 = vpop.f32.mrf.mxu0  ;;  %v7688_v63 = vadd.f32 %v3665_v44, %v3441_v36  ;;  %v3443_v37 = vadd.f32 %v5722_v18, %v7574_v28 }
 0x251   : > { %v3353_v57 = vpop.f32.mrf.mxu1 }
 0x252   : > { %v3680_v17 = vpop.f32.mrf.mxu0  ;;  %v7691_v3 = vadd.f32 %v5786_v26, %v3443_v37 }
 0x253   : > { %v5725_v41 = vpop.f32.mrf.mxu1 }
 0x254   : > { %v5790_v40 = vpop.f32.mrf.mxu0  ;;  %v3445_v61 = vadd.f32 %v5725_v41, %v7583_v24 }
 0x255   : > { %v3365_v54 = vpop.f32.mrf.mxu1 }
 0x256   : > { %v3682_v7 = vpop.f32.mrf.mxu0  ;;  %v7694_v29 = vadd.f32 %v5789_v56, %v3445_v61 }
 0x257   : > { %v5726_v53 = vpop.f32.mrf.mxu1 }
 0x258   : > { %v5793_v14 = vpop.f32.mrf.mxu0 }
 0x259   : > { %v3367_v42 = vpop.f32.mrf.mxu1 }
 0x25a   : > { %v3694_v1 = vpop.f32.mrf.mxu0  ;;  %v3444_v33 = vadd.f32 %v3367_v42, %v7591_v38 }
 0x25b   : > { %v5729_v28 = vpop.f32.mrf.mxu1 }
 0x25c   : > { %v5794_v16 = vpop.f32.mrf.mxu0  ;;  %v7697_v13 = vadd.f32 %v3682_v7, %v3444_v33 }
 0x25d   : > { %v3379_v34 = vpop.f32.mrf.mxu1 }
 0x25e   : > { %v3697_v20 = vpop.f32.mrf.mxu0  ;;  %v3446_v8 = vadd.f32 %v3379_v34, %v7596_v32 }
 0x25f   : > { %v5730_v24 = vpop.f32.mrf.mxu1 }
 0x260   : > { %v5797_v39 = vpop.f32.mrf.mxu0  ;;  %v7700_v44 = vadd.f32 %v3694_v1, %v3446_v8  ;;  %v3448_v48 = vadd.f32 %v5730_v24, %v7600_v49 }
 0x261   : > { %v3382_v26 = vpop.f32.mrf.mxu1 }
 0x262   : > { %v3709_v10 = vpop.f32.mrf.mxu0  ;;  %v7703_v35 = vadd.f32 %v5794_v16, %v3448_v48  ;;  %v3447_v38 = vadd.f32 %v3382_v26, %v7607_v59 }
 0x263   : > { %v5733_v25 = vpop.f32.mrf.mxu1 }
 0x264   : > { %v5798_v22 = vpop.f32.mrf.mxu0  ;;  %v7706_v23 = vadd.f32 %v3697_v20, %v3447_v38  ;;  %v3450_v36 = vadd.f32 %v5733_v25, %v7612_v47 }
 0x265   : > { %v3394_v32 = vpop.f32.mrf.mxu1 }
 0x266   : > { %v3712_v56 = vpop.f32.mrf.mxu0  ;;  %v7709_v18 = vadd.f32 %v5797_v39, %v3450_v36  ;;  %v3449_v37 = vadd.f32 %v3394_v32, %v7615_v21 }
 0x267   : > { %v5734_v49 = vpop.f32.mrf.mxu1 }
 0x268   : > { %v5801_v17 = vpop.f32.mrf.mxu0  ;;  %v7712_v57 = vadd.f32 %v3709_v10, %v3449_v37  ;;  %v3451_v40 = vadd.f32 %v5734_v49, %v7619_v11 }
 0x269   : > { %v3397_v59 = vpop.f32.mrf.mxu1 }
 0x26a   : > { %v3724_v41 = vpop.f32.mrf.mxu0  ;;  %v7715_v61 = vadd.f32 %v5798_v22, %v3451_v40 }
 0x26b   : > { %v5737_v54 = vpop.f32.mrf.mxu1 }
 0x26c   : > { %v5802_v7 = vpop.f32.mrf.mxu0  ;;  %v3453_v47 = vadd.f32 %v5737_v54, %v7622_v30 }
 0x26d   : > { %v3409_v53 = vpop.f32.mrf.mxu1 }
 0x26e   : > { %v3726_v14 = vpop.f32.mrf.mxu0  ;;  %v7718_v1 = vadd.f32 %v5801_v17, %v3453_v47 }
 0x26f   : > { %v5738_v42 = vpop.f32.mrf.mxu1 }
 0x270   : > { %v5885_v21 = vpop.f32.mrf.mxu0 }
 0x271   : > { %v3411_v16 = vpop.f32.mrf.mxu1 }
 0x272   : > { %v4220_v33 = vpop.f32.mrf.mxu0  ;;  %v3452_v28 = vadd.f32 %v3411_v16, %v7625_v5 }
 0x273   : > { %v5821_v20 = vpop.f32.mrf.mxu1 }
 0x274   : > { %v5886_v11 = vpop.f32.mrf.mxu0  ;;  %v7721_v34 = vadd.f32 %v3726_v14, %v3452_v28 }
 0x275   : > { %v3903_v39 = vpop.f32.mrf.mxu1 }
 0x276   : > { %v4223_v8 = vpop.f32.mrf.mxu0  ;;  %v4078_v24 = vadd.f32 %v3903_v39, %v7628_v2 }
 0x277   : > { %v5822_v48 = vpop.f32.mrf.mxu1 }
 0x278   : > { %v5889_v30 = vpop.f32.mrf.mxu0  ;;  %v4395_v10 = vadd.f32 %v4220_v33, %v4078_v24  ;;  %v4080_v26 = vadd.f32 %v5822_v48, %v7631_v52 }
 0x279   : > { %v3906_v5 = vpop.f32.mrf.mxu1 }
 0x27a   : > { %v4235_v38 = vpop.f32.mrf.mxu0  ;;  %v5035_v22 = vpack.c.bf16 %v4395_v10, %v4395_v10  ;;  %v4397_v25 = vadd.f32 %v5886_v11, %v4080_v26  ;;  %v4079_v36 = vadd.f32 %v3906_v5, %v7634_v15  ;;  %v4465_v49 = vmul.f32 %v4395_v10, %v4395_v10 }
 0x27b   : > { %v5825_v56 = vpop.f32.mrf.mxu1 }
 0x27c   : > { %v5890_v2 = vpop.f32.mrf.mxu0  ;;  %4663 = vst.msk [vmem:[%s7729_s27] sm:$0xf] %vm725_vm0, %v5035_v22  ;;  %v5037_v32 = vpack.c.bf16 %v4397_v25, %v4397_v25  ;;  %v4396_v52 = vadd.f32 %v4223_v8, %v4079_v36  ;;  %v4082_v37 = vadd.f32 %v5825_v56, %v7637_v27  ;;  %v4467_v53 = vmul.f32 %v4397_v25, %v4397_v25 }
 0x27d   : > { %v3918_v40 = vpop.f32.mrf.mxu1 }
 0x27e   : > { %v4238_v17 = vpop.f32.mrf.mxu0  ;;  %4665 = vst.msk [vmem:[%s7729_s27 + $0x8] sm:$0xf] %vm725_vm0, %v5037_v32  ;;  %v4427_v41 = vadd.f32 %v4396_v52, %v4395_v10  ;;  %v4466_v59 = vmul.f32 %v4396_v52, %v4396_v52  ;;  %v5036_v7 = vpack.c.bf16 %v4396_v52, %v4396_v52  ;;  %v4399_v54 = vadd.f32 %v5889_v30, %v4082_v37 }
 0x27f   : > { %v4081_v47 = vadd.f32 %v3918_v40, %v7640_v43  ;;  %v5826_v14 = vpop.f32.mrf.mxu1 }
 0x280   : > { %v5893_v15 = vpop.f32.mrf.mxu0  ;;  %v4497_v21 = vadd.f32 %v4466_v59, %v4465_v49  ;;  %4664 = vst.msk [vmem:[%s7729_s27 + $0x4] sm:$0xf] %vm725_vm0, %v5036_v7  ;;  %v5039_v42 = vpack.c.bf16 %v4399_v54, %v4399_v54  ;;  %v4428_v27 = vadd.f32 %v4427_v41, %v4397_v25  ;;  %v4083_v28 = vadd.f32 %v5826_v14, %v7643_v45 }
 0x281   : > { %v4398_v16 = vadd.f32 %v4235_v38, %v4081_v47  ;;  %v3921_v11 = vpop.f32.mrf.mxu1  ;;  %v4469_v5 = vmul.f32 %v4399_v54, %v4399_v54 }
 0x282   : > { %v4250_v33 = vpop.f32.mrf.mxu0  ;;  %4667 = vst.msk [vmem:[%s7729_s27 + $0x10] sm:$0xf] %vm725_vm0, %v5039_v42  ;;  %v4498_v20 = vadd.f32 %v4497_v21, %v4467_v53  ;;  %v4400_v30 = vadd.f32 %v5890_v2, %v4083_v28 }
 0x283   : > { %v4429_v39 = vadd.f32 %v4428_v27, %v4398_v16  ;;  %v4468_v24 = vmul.f32 %v4398_v16, %v4398_v16  ;;  %v5038_v43 = vpack.c.bf16 %v4398_v16, %v4398_v16  ;;  %v5829_v48 = vpop.f32.mrf.mxu1 }
 0x284   : > { %v5894_v8 = vpop.f32.mrf.mxu0  ;;  %v4085_v10 = vadd.f32 %v5829_v48, %v7646_v60  ;;  %v5040_v38 = vpack.c.bf16 %v4400_v30, %v4400_v30  ;;  %v4470_v52 = vmul.f32 %v4400_v30, %v4400_v30 }
 0x285   : > { %v4499_v22 = vadd.f32 %v4498_v20, %v4468_v24  ;;  %4666 = vst.msk [vmem:[%s7729_s27 + $0xc] sm:$0xf] %vm725_vm0, %v5038_v43  ;;  %v4430_v45 = vadd.f32 %v4429_v39, %v4399_v54  ;;  %v3933_v25 = vpop.f32.mrf.mxu1 }
 0x286   : > { %v4252_v26 = vpop.f32.mrf.mxu0  ;;  %v4402_v36 = vadd.f32 %v5893_v15, %v4085_v10  ;;  %4668 = vst.msk [vmem:[%s7729_s27 + $0x14] sm:$0xf] %vm725_vm0, %v5040_v38 }
 0x287   : > { %v4431_v32 = vadd.f32 %v4430_v45, %v4400_v30  ;;  %v4500_v37 = vadd.f32 %v4499_v22, %v4469_v5  ;;  %v5830_v2 = vpop.f32.mrf.mxu1 }
 0x288   : > { %v5897_v56 = vpop.f32.mrf.mxu0  ;;  %v5042_v17 = vpack.c.bf16 %v4402_v36, %v4402_v36  ;;  %v4472_v33 = vmul.f32 %v4402_v36, %v4402_v36 }
 0x289   : > { %v4501_v60 = vadd.f32 %v4500_v37, %v4470_v52  ;;  %v3935_v40 = vpop.f32.mrf.mxu1 }
 0x28a   : > { %v4264_v49 = vpop.f32.mrf.mxu0  ;;  %4670 = vst.msk [vmem:[%s7729_s27 + $0x1c] sm:$0xf] %vm725_vm0, %v5042_v17  ;;  %v4084_v41 = vadd.f32 %v3935_v40, %v7649_v31 }
 0x28b   : > { %v5833_v7 = vpop.f32.mrf.mxu1 }
 0x28c   : > { %v5898_v59 = vpop.f32.mrf.mxu0  ;;  %v4401_v54 = vadd.f32 %v4252_v26, %v4084_v41 }
 0x28d   : > { %v3947_v47 = vpop.f32.mrf.mxu1 }
 0x28e   : > { %v4267_v15 = vpop.f32.mrf.mxu0  ;;  %v4432_v14 = vadd.f32 %v4431_v32, %v4401_v54  ;;  %v4471_v53 = vmul.f32 %v4401_v54, %v4401_v54  ;;  %v5041_v21 = vpack.c.bf16 %v4401_v54, %v4401_v54  ;;  %v4086_v42 = vadd.f32 %v3947_v47, %v7652_v62 }
 0x28f   : > { %v5834_v16 = vpop.f32.mrf.mxu1 }
 0x290   : > { %v5901_v27 = vpop.f32.mrf.mxu0  ;;  %v4502_v28 = vadd.f32 %v4501_v60, %v4471_v53  ;;  %4669 = vst.msk [vmem:[%s7729_s27 + $0x18] sm:$0xf] %vm725_vm0, %v5041_v21  ;;  %v4403_v11 = vadd.f32 %v4264_v49, %v4086_v42  ;;  %v4433_v20 = vadd.f32 %v4432_v14, %v4402_v36  ;;  %v4088_v31 = vadd.f32 %v5834_v16, %v7655_v9 }
 0x291   : > { %v3950_v39 = vpop.f32.mrf.mxu1 }
 0x292   : > { %v4279_v8 = vpop.f32.mrf.mxu0  ;;  %v4434_v24 = vadd.f32 %v4433_v20, %v4403_v11  ;;  %v4473_v43 = vmul.f32 %v4403_v11, %v4403_v11  ;;  %v4503_v30 = vadd.f32 %v4502_v28, %v4472_v33  ;;  %v5043_v48 = vpack.c.bf16 %v4403_v11, %v4403_v11 }
 0x293   : > { %v4405_v62 = vadd.f32 %v5898_v59, %v4088_v31  ;;  %v4087_v26 = vadd.f32 %v3950_v39, %v7658_v50  ;;  %v5837_v5 = vpop.f32.mrf.mxu1 }
 0x294   : > { %v5902_v10 = vpop.f32.mrf.mxu0  ;;  %v4504_v22 = vadd.f32 %v4503_v30, %v4473_v43  ;;  %4671 = vst.msk [vmem:[%s7729_s27 + $0x20] sm:$0xf] %vm725_vm0, %v5043_v48  ;;  %v4090_v45 = vadd.f32 %v5837_v5, %v7661_v0 }
 0x295   : > { %v5045_v25 = vpack.c.bf16 %v4405_v62, %v4405_v62  ;;  %v4404_v9 = vadd.f32 %v4267_v15, %v4087_v26  ;;  %v3962_v36 = vpop.f32.mrf.mxu1  ;;  %v4475_v41 = vmul.f32 %v4405_v62, %v4405_v62 }
 0x296   : > { %v4282_v38 = vpop.f32.mrf.mxu0  ;;  %v4407_v56 = vadd.f32 %v5901_v27, %v4090_v45  ;;  %v4089_v32 = vadd.f32 %v3962_v36, %v7664_v51 }
 0x297   : > { %4673 = vst.msk [vmem:[%s7729_s27 + $0x28] sm:$0xf] %vm725_vm0, %v5045_v25  ;;  %v4435_v37 = vadd.f32 %v4434_v24, %v4404_v9  ;;  %v4474_v50 = vmul.f32 %v4404_v9, %v4404_v9  ;;  %v5044_v2 = vpack.c.bf16 %v4404_v9, %v4404_v9  ;;  %v5838_v17 = vpop.f32.mrf.mxu1 }
 0x298   : > { %v5905_v52 = vpop.f32.mrf.mxu0  ;;  %v5047_v49 = vpack.c.bf16 %v4407_v56, %v4407_v56  ;;  %v4406_v60 = vadd.f32 %v4279_v8, %v4089_v32  ;;  %v4091_v0 = vadd.f32 %v5838_v17, %v7667_v6  ;;  %v4477_v16 = vmul.f32 %v4407_v56, %v4407_v56 }
 0x299   : > { %v4505_v59 = vadd.f32 %v4504_v22, %v4474_v50  ;;  %4672 = vst.msk [vmem:[%s7729_s27 + $0x24] sm:$0xf] %vm725_vm0, %v5044_v2  ;;  %v4436_v7 = vadd.f32 %v4435_v37, %v4405_v62  ;;  %v3965_v51 = vpop.f32.mrf.mxu1 }
 0x29a   : > { %v4294_v40 = vpop.f32.mrf.mxu0  ;;  %4675 = vst.msk [vmem:[%s7729_s27 + $0x30] sm:$0xf] %vm725_vm0, %v5047_v49  ;;  %v4476_v54 = vmul.f32 %v4406_v60, %v4406_v60  ;;  %v5046_v15 = vpack.c.bf16 %v4406_v60, %v4406_v60  ;;  %v4408_v47 = vadd.f32 %v5902_v10, %v4091_v0 }
 0x29b   : > { %v4437_v53 = vadd.f32 %v4436_v7, %v4406_v60  ;;  %v4506_v21 = vadd.f32 %v4505_v59, %v4475_v41  ;;  %v5841_v42 = vpop.f32.mrf.mxu1 }
 0x29c   : > { %v5906_v14 = vpop.f32.mrf.mxu0  ;;  %4674 = vst.msk [vmem:[%s7729_s27 + $0x2c] sm:$0xf] %vm725_vm0, %v5046_v15  ;;  %v5048_v6 = vpack.c.bf16 %v4408_v47, %v4408_v47  ;;  %v4093_v27 = vadd.f32 %v5841_v42, %v7670_v58  ;;  %v4478_v24 = vmul.f32 %v4408_v47, %v4408_v47 }
 0x29d   : > { %v4507_v28 = vadd.f32 %v4506_v21, %v4476_v54  ;;  %v4438_v11 = vadd.f32 %v4437_v53, %v4407_v56  ;;  %v3977_v20 = vpop.f32.mrf.mxu1 }
 0x29e   : > { %v4296_v33 = vpop.f32.mrf.mxu0  ;;  %4676 = vst.msk [vmem:[%s7729_s27 + $0x34] sm:$0xf] %vm725_vm0, %v5048_v6  ;;  %v4410_v31 = vadd.f32 %v5905_v52, %v4093_v27 }
 0x29f   : > { %v4439_v39 = vadd.f32 %v4438_v11, %v4408_v47  ;;  %v4508_v43 = vadd.f32 %v4507_v28, %v4477_v16  ;;  %v5842_v30 = vpop.f32.mrf.mxu1 }
 0x2a0   : > { %v5909_v8 = vpop.f32.mrf.mxu0  ;;  %v5050_v48 = vpack.c.bf16 %v4410_v31, %v4410_v31  ;;  %v4480_v37 = vmul.f32 %v4410_v31, %v4410_v31 }
 0x2a1   : > { %v4509_v62 = vadd.f32 %v4508_v43, %v4478_v24  ;;  %v3979_v26 = vpop.f32.mrf.mxu1 }
 0x2a2   : > { %v4308_v10 = vpop.f32.mrf.mxu0  ;;  %4678 = vst.msk [vmem:[%s7729_s27 + $0x3c] sm:$0xf] %vm725_vm0, %v5050_v48  ;;  %v4092_v58 = vadd.f32 %v3979_v26, %v7673_v12 }
 0x2a3   : > { %v5845_v22 = vpop.f32.mrf.mxu1 }
 0x2a4   : > { %v5910_v5 = vpop.f32.mrf.mxu0  ;;  %v4409_v45 = vadd.f32 %v4296_v33, %v4092_v58 }
 0x2a5   : > { %v3991_v25 = vpop.f32.mrf.mxu1 }
 0x2a6   : > { %v4311_v38 = vpop.f32.mrf.mxu0  ;;  %v4440_v9 = vadd.f32 %v4439_v39, %v4409_v45  ;;  %v4479_v36 = vmul.f32 %v4409_v45, %v4409_v45  ;;  %v5049_v56 = vpack.c.bf16 %v4409_v45, %v4409_v45  ;;  %v4094_v32 = vadd.f32 %v3991_v25, %v7676_v46 }
 0x2a7   : > { %v5846_v50 = vpop.f32.mrf.mxu1 }
 0x2a8   : > { %v5913_v52 = vpop.f32.mrf.mxu0  ;;  %v4510_v2 = vadd.f32 %v4509_v62, %v4479_v36  ;;  %4677 = vst.msk [vmem:[%s7729_s27 + $0x38] sm:$0xf] %vm725_vm0, %v5049_v56  ;;  %v4411_v17 = vadd.f32 %v4308_v10, %v4094_v32  ;;  %v4441_v49 = vadd.f32 %v4440_v9, %v4410_v31  ;;  %v4096_v12 = vadd.f32 %v5846_v50, %v7679_v55 }
 0x2a9   : > { %v3994_v0 = vpop.f32.mrf.mxu1 }
 0x2aa   : > { %v4323_v60 = vpop.f32.mrf.mxu0  ;;  %v4442_v40 = vadd.f32 %v4441_v49, %v4411_v17  ;;  %v4481_v41 = vmul.f32 %v4411_v17, %v4411_v17  ;;  %v4511_v59 = vadd.f32 %v4510_v2, %v4480_v37  ;;  %v5051_v7 = vpack.c.bf16 %v4411_v17, %v4411_v17 }
 0x2ab   : > { %v4413_v46 = vadd.f32 %v5910_v5, %v4096_v12  ;;  %v4095_v54 = vadd.f32 %v3994_v0, %v7682_v4  ;;  %v5849_v15 = vpop.f32.mrf.mxu1 }
 0x2ac   : > { %v5914_v51 = vpop.f32.mrf.mxu0  ;;  %v4512_v47 = vadd.f32 %v4511_v59, %v4481_v41  ;;  %4679 = vst.msk [vmem:[%s7729_s27 + $0x40] sm:$0xf] %vm725_vm0, %v5051_v7  ;;  %v4098_v14 = vadd.f32 %v5849_v15, %v7685_v19 }
 0x2ad   : > { %v5053_v21 = vpack.c.bf16 %v4413_v46, %v4413_v46  ;;  %v4412_v55 = vadd.f32 %v4311_v38, %v4095_v54  ;;  %v4006_v42 = vpop.f32.mrf.mxu1  ;;  %v4483_v39 = vmul.f32 %v4413_v46, %v4413_v46 }
 0x2ae   : > { %v4326_v53 = vpop.f32.mrf.mxu0  ;;  %v4415_v6 = vadd.f32 %v5913_v52, %v4098_v14  ;;  %v4097_v27 = vadd.f32 %v4006_v42, %v7688_v63 }
 0x2af   : > { %4681 = vst.msk [vmem:[%s7729_s27 + $0x48] sm:$0xf] %vm725_vm0, %v5053_v21  ;;  %v4443_v16 = vadd.f32 %v4442_v40, %v4412_v55  ;;  %v4482_v4 = vmul.f32 %v4412_v55, %v4412_v55  ;;  %v5052_v28 = vpack.c.bf16 %v4412_v55, %v4412_v55  ;;  %v5850_v11 = vpop.f32.mrf.mxu1 }
 0x2b0   : > { %v5917_v33 = vpop.f32.mrf.mxu0  ;;  %v5055_v20 = vpack.c.bf16 %v4415_v6, %v4415_v6  ;;  %v4414_v31 = vadd.f32 %v4323_v60, %v4097_v27  ;;  %v4099_v19 = vadd.f32 %v5850_v11, %v7691_v3  ;;  %v4485_v38 = vmul.f32 %v4415_v6, %v4415_v6 }
 0x2b1   : > { %v4513_v24 = vadd.f32 %v4512_v47, %v4482_v4  ;;  %4680 = vst.msk [vmem:[%s7729_s27 + $0x44] sm:$0xf] %vm725_vm0, %v5052_v28  ;;  %v4444_v43 = vadd.f32 %v4443_v16, %v4413_v46  ;;  %v4009_v63 = vpop.f32.mrf.mxu1 }
 0x2b2   : > { %v4338_v8 = vpop.f32.mrf.mxu0  ;;  %4683 = vst.msk [vmem:[%s7729_s27 + $0x50] sm:$0xf] %vm725_vm0, %v5055_v20  ;;  %v4484_v30 = vmul.f32 %v4414_v31, %v4414_v31  ;;  %v5054_v48 = vpack.c.bf16 %v4414_v31, %v4414_v31  ;;  %v4416_v10 = vadd.f32 %v5914_v51, %v4099_v19 }
 0x2b3   : > { %v4445_v26 = vadd.f32 %v4444_v43, %v4414_v31  ;;  %v4514_v58 = vadd.f32 %v4513_v24, %v4483_v39  ;;  %v5853_v5 = vpop.f32.mrf.mxu1 }
 0x2b4   : > { %v5918_v62 = vpop.f32.mrf.mxu0  ;;  %4682 = vst.msk [vmem:[%s7729_s27 + $0x4c] sm:$0xf] %vm725_vm0, %v5054_v48  ;;  %v5056_v3 = vpack.c.bf16 %v4416_v10, %v4416_v10  ;;  %v4101_v22 = vadd.f32 %v5853_v5, %v7694_v29  ;;  %v4486_v37 = vmul.f32 %v4416_v10, %v4416_v10 }
 0x2b5   : > { %v4515_v25 = vadd.f32 %v4514_v58, %v4484_v30  ;;  %v4446_v9 = vadd.f32 %v4445_v26, %v4415_v6  ;;  %v4021_v36 = vpop.f32.mrf.mxu1 }
 0x2b6   : > { %v4340_v45 = vpop.f32.mrf.mxu0  ;;  %4684 = vst.msk [vmem:[%s7729_s27 + $0x54] sm:$0xf] %vm725_vm0, %v5056_v3  ;;  %v4418_v56 = vadd.f32 %v5917_v33, %v4101_v22 }
 0x2b7   : > { %v4447_v52 = vadd.f32 %v4446_v9, %v4416_v10  ;;  %v4516_v50 = vadd.f32 %v4515_v25, %v4485_v38  ;;  %v5854_v2 = vpop.f32.mrf.mxu1 }
 0x2b8   : > { %v5921_v32 = vpop.f32.mrf.mxu0  ;;  %v5058_v17 = vpack.c.bf16 %v4418_v56, %v4418_v56  ;;  %v4488_v14 = vmul.f32 %v4418_v56, %v4418_v56 }
 0x2b9   : > { %v4517_v12 = vadd.f32 %v4516_v50, %v4486_v37  ;;  %v4023_v60 = vpop.f32.mrf.mxu1 }
 0x2ba   : > { %v4352_v49 = vpop.f32.mrf.mxu0  ;;  %4686 = vst.msk [vmem:[%s7729_s27 + $0x5c] sm:$0xf] %vm725_vm0, %v5058_v17  ;;  %v4100_v29 = vadd.f32 %v4023_v60, %v7697_v13 }
 0x2bb   : > { %v5857_v40 = vpop.f32.mrf.mxu1 }
 0x2bc   : > { %v5922_v0 = vpop.f32.mrf.mxu0  ;;  %v4417_v41 = vadd.f32 %v4340_v45, %v4100_v29 }
 0x2bd   : > { %v4035_v7 = vpop.f32.mrf.mxu1 }
 0x2be   : > { %v4355_v59 = vpop.f32.mrf.mxu0  ;;  %v4448_v51 = vadd.f32 %v4447_v52, %v4417_v41  ;;  %v4487_v46 = vmul.f32 %v4417_v41, %v4417_v41  ;;  %v5057_v54 = vpack.c.bf16 %v4417_v41, %v4417_v41  ;;  %v4102_v15 = vadd.f32 %v4035_v7, %v7700_v44 }
 0x2bf   : > { %v5858_v53 = vpop.f32.mrf.mxu1 }
 0x2c0   : > { %v5925_v47 = vpop.f32.mrf.mxu0  ;;  %v4518_v21 = vadd.f32 %v4517_v12, %v4487_v46  ;;  %4685 = vst.msk [vmem:[%s7729_s27 + $0x58] sm:$0xf] %vm725_vm0, %v5057_v54  ;;  %v4419_v55 = vadd.f32 %v4352_v49, %v4102_v15  ;;  %v4449_v42 = vadd.f32 %v4448_v51, %v4418_v56  ;;  %v4104_v13 = vadd.f32 %v5858_v53, %v7703_v35 }
 0x2c1   : > { %v4038_v27 = vpop.f32.mrf.mxu1 }
 0x2c2   : > { %v4367_v6 = vpop.f32.mrf.mxu0  ;;  %v4450_v33 = vadd.f32 %v4449_v42, %v4419_v55  ;;  %v4489_v16 = vmul.f32 %v4419_v55, %v4419_v55  ;;  %v4519_v4 = vadd.f32 %v4518_v21, %v4488_v14  ;;  %v5059_v28 = vpack.c.bf16 %v4419_v55, %v4419_v55 }
 0x2c3   : > { %v4421_v44 = vadd.f32 %v5922_v0, %v4104_v13  ;;  %v4103_v20 = vadd.f32 %v4038_v27, %v7706_v23  ;;  %v5861_v31 = vpop.f32.mrf.mxu1 }
 0x2c4   : > { %v5926_v11 = vpop.f32.mrf.mxu0  ;;  %v4520_v19 = vadd.f32 %v4519_v4, %v4489_v16  ;;  %4687 = vst.msk [vmem:[%s7729_s27 + $0x60] sm:$0xf] %vm725_vm0, %v5059_v28  ;;  %v4106_v8 = vadd.f32 %v5861_v31, %v7709_v18 }
 0x2c5   : > { %v5061_v24 = vpack.c.bf16 %v4421_v44, %v4421_v44  ;;  %v4420_v35 = vadd.f32 %v4355_v59, %v4103_v20  ;;  %v4050_v43 = vpop.f32.mrf.mxu1  ;;  %v4491_v22 = vmul.f32 %v4421_v44, %v4421_v44 }
 0x2c6   : > { %v4370_v39 = vpop.f32.mrf.mxu0  ;;  %v4423_v63 = vadd.f32 %v5925_v47, %v4106_v8  ;;  %v4105_v30 = vadd.f32 %v4050_v43, %v7712_v57 }
 0x2c7   : > { %4689 = vst.msk [vmem:[%s7729_s27 + $0x68] sm:$0xf] %vm725_vm0, %v5061_v24  ;;  %v4451_v10 = vadd.f32 %v4450_v33, %v4420_v35  ;;  %v4490_v23 = vmul.f32 %v4420_v35, %v4420_v35  ;;  %v5060_v62 = vpack.c.bf16 %v4420_v35, %v4420_v35  ;;  %v5862_v26 = vpop.f32.mrf.mxu1 }
 0x2c8   : > { %v5929_v48 = vpop.f32.mrf.mxu0  ;;  %v5063_v58 = vpack.c.bf16 %v4423_v63, %v4423_v63  ;;  %v4422_v5 = vadd.f32 %v4367_v6, %v4105_v30  ;;  %v4107_v18 = vadd.f32 %v5862_v26, %v7715_v61  ;;  %v4493_v2 = vmul.f32 %v4423_v63, %v4423_v63 }
 0x2c9   : > { %v4521_v45 = vadd.f32 %v4520_v19, %v4490_v23  ;;  %4688 = vst.msk [vmem:[%s7729_s27 + $0x64] sm:$0xf] %vm725_vm0, %v5060_v62  ;;  %v4452_v38 = vadd.f32 %v4451_v10, %v4421_v44  ;;  %v4053_v57 = vpop.f32.mrf.mxu1 }
 0x2ca   : > { %v4382_v3 = vpop.f32.mrf.mxu0  ;;  %4691 = vst.msk [vmem:[%s7729_s27 + $0x70] sm:$0xf] %vm725_vm0, %v5063_v58  ;;  %v4492_v25 = vmul.f32 %v4422_v5, %v4422_v5  ;;  %v5062_v9 = vpack.c.bf16 %v4422_v5, %v4422_v5  ;;  %v4424_v36 = vadd.f32 %v5926_v11, %v4107_v18 }
 0x2cb   : > { %v4453_v32 = vadd.f32 %v4452_v38, %v4422_v5  ;;  %v4522_v52 = vadd.f32 %v4521_v45, %v4491_v22  ;;  %v5865_v37 = vpop.f32.mrf.mxu1 }
 0x2cc   : > { %v5930_v56 = vpop.f32.mrf.mxu0  ;;  %4690 = vst.msk [vmem:[%s7729_s27 + $0x6c] sm:$0xf] %vm725_vm0, %v5062_v9  ;;  %v5064_v61 = vpack.c.bf16 %v4424_v36, %v4424_v36  ;;  %v4109_v50 = vadd.f32 %v5865_v37, %v7718_v1  ;;  %v4494_v0 = vmul.f32 %v4424_v36, %v4424_v36 }
 0x2cd   : > { %v4523_v17 = vadd.f32 %v4522_v52, %v4492_v25  ;;  %v4454_v49 = vadd.f32 %v4453_v32, %v4423_v63  ;;  %v4065_v12 = vpop.f32.mrf.mxu1 }
 0x2ce   : > { %4692 = vst.msk [vmem:[%s7729_s27 + $0x74] sm:$0xf] %vm725_vm0, %v5064_v61  ;;  %v4426_v60 = vadd.f32 %v5929_v48, %v4109_v50  ;;  %v4384_v1 = vpop.f32.mrf.mxu0 }
 0x2cf   : > { %v4455_v29 = vadd.f32 %v4454_v49, %v4424_v36  ;;  %v4524_v40 = vadd.f32 %v4523_v17, %v4493_v2  ;;  %v5866_v41 = vpop.f32.mrf.mxu1 }
 0x2d0   : > { %v5066_v59 = vpack.c.bf16 %v4426_v60, %v4426_v60  ;;  %v4496_v53 = vmul.f32 %v4426_v60, %v4426_v60 }
 0x2d1   : > { %v4525_v7 = vadd.f32 %v4524_v40, %v4494_v0  ;;  %v4067_v51 = vpop.f32.mrf.mxu1 }
 0x2d2   : > { %4694 = vst.msk [vmem:[%s7729_s27 + $0x7c] sm:$0xf] %vm725_vm0, %v5066_v59  ;;  %v4108_v46 = vadd.f32 %v4067_v51, %v7721_v34 }
 0x2d4   : > { %v4425_v54 = vadd.f32 %v4384_v1, %v4108_v46 }
 0x2d6   : > { %v4456_v15 = vadd.f32 %v4455_v29, %v4425_v54  ;;  %v4495_v47 = vmul.f32 %v4425_v54, %v4425_v54  ;;  %v5065_v14 = vpack.c.bf16 %v4425_v54, %v4425_v54 }
 0x2d8   : > { %v4457_v21 = vadd.f32 %v4456_v15, %v4426_v60  ;;  %v4526_v55 = vadd.f32 %v4525_v7, %v4495_v47  ;;  %4693 = vst.msk [vmem:[%s7729_s27 + $0x78] sm:$0xf] %vm725_vm0, %v5065_v14 }
 0x2da   : > { %v4458_v42 = vrot.slane %v4457_v21, 4  ;;  %v4527_v13 = vadd.f32 %v4526_v55, %v4496_v53 }
 0x2dc   : > { %v4459_v6 = vadd.f32 %v4458_v42, %v4457_v21  ;;  %v4528_v27 = vrot.slane %v4527_v13, 4 }
 0x2de   : > { %v4460_v33 = vrot.slane %v4459_v6, 2  ;;  %v4529_v16 = vadd.f32 %v4528_v27, %v4527_v13 }
 0x2e0   : > { %v4461_v4 = vadd.f32 %v4460_v33, %v4459_v6  ;;  %v4530_v34 = vrot.slane %v4529_v16, 2 }
 0x2e2   : > { %v4462_v28 = vrot.slane %v4461_v4, 1  ;;  %v4531_v11 = vadd.f32 %v4530_v34, %v4529_v16 }
 0x2e4   : > { %v4463_v44 = vadd.f32 %v4462_v28, %v4461_v4  ;;  %v4532_v20 = vrot.slane %v4531_v11, 1 }
 0x2e6   : > { %4464 = vst [vmem:[%s211_s30] sm:$0x1] %v4463_v44  ;;  %v4533_v31 = vadd.f32 %v4532_v20, %v4531_v11 }
 0x2e8   : > { %4534 = vst [vmem:[%s214_s7] sm:$0x1] %v4533_v31 }
 0x2e9 PF: > { %s15_s15 = sadd.s32 1, %s6094_s15  }
 0x2ea   : > { %p12_p4 = scmp.ge.s32.totalorder %s15_s15, 4  }
 0x2ec   :  { %14 = sbr.rel (!%p12_p4) target bundleno = 1 (0x1), region = 83 }

</bundles_post_ra>
